<compile_context>
chip_gen: v7x
topology: tpu7x:2x2x1
jax: 0.10.0
libtpu: 0.0.40
codegen_flags: <defaults>
</compile_context>

<pallas_src>
import jax
import jax.numpy as jnp
from jax import lax
from jax.experimental import pallas as pl
from jax.experimental.pallas import tpu as pltpu

TEMPERATURE = 0.07
BASE_TEMPERATURE = 0.07 * 2
THRESH = 0.5
_LOSS_SCALE = -(TEMPERATURE / BASE_TEMPERATURE)

_CONTRACT_LAST = (((1,), (1,)), ((), ()))   # contract dim 1 of both operands == A @ B.T


# --------------------- kernel 1: fused first-layer linears (s @ [wq|wk|h1a|h1c]) ------------
def _fused_l1_kernel(x_ref, w_ref, b_ref, o_ref, acc_ref):
    k = pl.program_id(1)

    @pl.when(k == 0)
    def _():
        acc_ref[...] = jnp.zeros_like(acc_ref)

    acc_ref[...] += jnp.dot(x_ref[...], w_ref[...],
                            preferred_element_type=jnp.float32)

    @pl.when(k == pl.num_programs(1) - 1)
    def _():   # bias added once, in the finalize block only
        o_ref[...] = (acc_ref[...] + b_ref[...]).astype(o_ref.dtype)


def _fused_l1(x_bf, w1_bf, b1_f32, *, tk, tn, vmem_bytes):
    n, d = x_bf.shape
    d4 = w1_bf.shape[1]
    return pl.pallas_call(
        _fused_l1_kernel,
        out_shape=jax.ShapeDtypeStruct((n, d4), jnp.float32),
        grid_spec=pltpu.PrefetchScalarGridSpec(
            num_scalar_prefetch=0,
            grid=(d4 // tn, d // tk),                       # (out tiles, K tiles) — K last
            in_specs=[
                pl.BlockSpec((n, tk), lambda j, k: (0, k)),     # activations (bf16)
                pl.BlockSpec((tk, tn), lambda j, k: (k, j)),    # fused weight (bf16)
                pl.BlockSpec((1, tn), lambda j, k: (0, j)),     # fused bias (f32)
            ],
            out_specs=pl.BlockSpec((n, tn), lambda j, k: (0, j)),
            scratch_shapes=[pltpu.VMEM((n, tn), jnp.float32)],
        ),
        compiler_params=pltpu.CompilerParams(
            dimension_semantics=("parallel", "arbitrary"),
            vmem_limit_bytes=vmem_bytes),
    )(x_bf, w1_bf, b1_f32)


# --------------------- kernel 2: the two projection-head second layers (batched) ------------
def _heads_l2_kernel(h_ref, w_ref, b_ref, o_ref, acc_ref):
    k = pl.program_id(2)

    @pl.when(k == 0)
    def _():
        acc_ref[...] = jnp.zeros_like(acc_ref)

    h = jnp.maximum(h_ref[...], 0.0).astype(jnp.bfloat16)      # ReLU, bf16 into the MXU
    acc_ref[...] += jnp.dot(h, w_ref[...], preferred_element_type=jnp.float32)

    @pl.when(k == pl.num_programs(2) - 1)
    def _():
        o_ref[...] = (acc_ref[...] + b_ref[...]).astype(o_ref.dtype)


def _heads_l2(act1, w2_bf, b2_f32, d_in, *, tk, tn, vmem_bytes):
    n = act1.shape[0]
    feat = w2_bf.shape[2]
    kpd = d_in // tk            # K-tiles per logical D-chunk of act1's columns
    return pl.pallas_call(
        _heads_l2_kernel,
        out_shape=jax.ShapeDtypeStruct((2, n, feat), jnp.float32),
        grid_spec=pltpu.PrefetchScalarGridSpec(
            num_scalar_prefetch=0,
            grid=(2, feat // tn, d_in // tk),               # (head, out tiles, K tiles)
            in_specs=[
                # columns [(2+b)*D : (3+b)*D] of act1 are head b's pre-ReLU hidden state
                pl.BlockSpec((n, tk), lambda b, j, k: (0, (2 + b) * kpd + k)),
                pl.BlockSpec((None, tk, tn), lambda b, j, k: (b, k, j)),   # stacked weights
                pl.BlockSpec((None, 1, tn), lambda b, j, k: (b, 0, j)),    # stacked biases
            ],
            out_specs=pl.BlockSpec((None, n, tn), lambda b, j, k: (b, 0, j)),
            scratch_shapes=[pltpu.VMEM((n, tn), jnp.float32)],
        ),
        compiler_params=pltpu.CompilerParams(
            dimension_semantics=("parallel", "parallel", "arbitrary"),
            vmem_limit_bytes=vmem_bytes),
    )(act1, w2_bf, b2_f32)


# --------------------- kernel 3: [N, N] contrastive epilogue --------------------------------
def _epilogue_kernel(qk_ref, ac_ref, out_ref):
    d = qk_ref.shape[1] // 2
    qx = qk_ref[:, :d].astype(jnp.bfloat16)
    kx = qk_ref[:, d:].astype(jnp.bfloat16)

    # graph similarity -> per-row min/max normalize -> threshold mask with diagonal forced to 1
    sim = lax.dot_general(qx, kx, _CONTRACT_LAST, preferred_element_type=jnp.float32)
    dot = sim - jnp.min(sim, axis=1, keepdims=True)
    # exact divide here: the result feeds a threshold compare (faithful: NaN if a row is constant)
    dot = dot / jnp.max(dot, axis=1, keepdims=True)
    row = lax.broadcasted_iota(jnp.int32, dot.shape, 0)
    col = lax.broadcasted_iota(jnp.int32, dot.shape, 1)
    mask = jnp.where(row == col, 1.0, jnp.where(dot > THRESH, 1.0, 0.0))

    def l2norm(x):  # F.normalize(dim=1); EUP rsqrt, guard equivalent to eps=1e-12
        ss = jnp.sum(x * x, axis=1, keepdims=True)
        return x * lax.rsqrt(jnp.maximum(ss, 1e-24))

    anchor = l2norm(ac_ref[0])
    contrast = l2norm(ac_ref[1])

    logits = lax.dot_general(anchor.astype(jnp.bfloat16), contrast.astype(jnp.bfloat16),
                             _CONTRACT_LAST, preferred_element_type=jnp.float32)
    logits = logits * (1.0 / TEMPERATURE)
    logits = logits - jnp.max(logits, axis=1, keepdims=True)
    log_prob = logits - jnp.log(jnp.sum(jnp.exp(logits), axis=1, keepdims=True))

    pos = jnp.sum(mask * log_prob, axis=1, keepdims=True)
    cnt = jnp.sum(mask, axis=1, keepdims=True)                 # integer-valued, >= 1
    mean_log_prob_pos = pos * pl.reciprocal(cnt, approx=True)  # EUP vrcp
    out_ref[...] = jnp.mean(_LOSS_SCALE * mean_log_prob_pos).reshape(1, 1)


def _epilogue(act1, ac, d_in, *, vmem_bytes):
    n = act1.shape[0]
    feat = ac.shape[2]
    return pl.pallas_call(
        _epilogue_kernel,
        out_shape=jax.ShapeDtypeStruct((1, 1), jnp.float32),
        grid_spec=pltpu.PrefetchScalarGridSpec(
            num_scalar_prefetch=0,
            grid=(1,),
            in_specs=[
                pl.BlockSpec((n, 2 * d_in), lambda i: (0, 0)),   # only the qx|kx columns of act1
                pl.BlockSpec((2, n, feat), lambda i: (0, 0, 0)),
            ],
            out_specs=pl.BlockSpec((1, 1), lambda i: (0, 0)),
        ),
        compiler_params=pltpu.CompilerParams(
            dimension_semantics=("arbitrary",),
            vmem_limit_bytes=vmem_bytes),
    )(act1, ac)


# --------------------- wrappers --------------------------------------------------------------
def fuse_params(params):
    """Pre-fuse / pre-cast weights once (bf16 storage => half the HBM traffic)."""
    bf16 = jnp.bfloat16
    w1 = jnp.concatenate([params["wq_w"], params["wk_w"],
                          params["h1a_w"], params["h1c_w"]], axis=1).astype(bf16)     # [D, 4D]
    b1 = jnp.concatenate([params["wq_b"], params["wk_b"],
                          params["h1a_b"], params["h1c_b"]], axis=1).astype(jnp.float32)
    w2 = jnp.stack([params["h2a_w"], params["h2c_w"]], axis=0).astype(bf16)            # [2, D, F]
    b2 = jnp.stack([params["h2a_b"], params["h2c_b"]], axis=0).astype(jnp.float32)     # [2, 1, F]
    return {"w1": w1, "b1": b1, "w2": w2, "b2": b2}


def graph_con_loss(t_feat, s_feat, fused, *, tk=None, tn=None,
                   vmem_bytes=32 * 1024 * 1024):
    del t_feat   # unused by the reference forward (signature parity)
    n, d = s_feat.shape
    feat = fused["w2"].shape[2]
    tk = tk or min(512, d)
    tn = tn or min(512, feat)
    assert tk % 128 == 0 and tn % 128 == 0
    assert d % tk == 0 and (4 * d) % tn == 0 and feat % tn == 0

    x_bf = s_feat.astype(jnp.bfloat16)
    act1 = _fused_l1(x_bf, fused["w1"], fused["b1"], tk=tk, tn=tn, vmem_bytes=vmem_bytes)
    ac = _heads_l2(act1, fused["w2"], fused["b2"], d, tk=tk, tn=tn, vmem_bytes=vmem_bytes)
    out = _epilogue(act1, ac, d, vmem_bytes=vmem_bytes)
    return out[0, 0]


# --------------------- pure-JAX reference (mirrors the kernel's bf16 quantization points) ----
def _reference(s_feat, params):
    f32 = jnp.float32
    bf = lambda x: x.astype(jnp.bfloat16).astype(f32)
    s = bf(s_feat)
    lin = lambda x, w, b: x @ bf(w) + b
    qx = lin(s, params["wq_w"], params["wq_b"])
    kx = lin(s, params["wk_w"], params["wk_b"])
    sim = bf(qx) @ bf(kx).T
    dot = sim - jnp.min(sim, axis=1, keepdims=True)
    dot = dot / jnp.max(dot, axis=1, keepdims=True)
    mask = (dot > THRESH).astype(f32)
    n = mask.shape[0]
    mask = mask.at[jnp.arange(n), jnp.arange(n)].set(1.0)
    h1 = bf(jnp.maximum(lin(s, params["h1a_w"], params["h1a_b"]), 0.0))
    anchor = h1 @ bf(params["h2a_w"]) + params["h2a_b"]
    h2 = bf(jnp.maximum(lin(s, params["h1c_w"], params["h1c_b"]), 0.0))
    contrast = h2 @ bf(params["h2c_w"]) + params["h2c_b"]
    l2 = lambda x: x / jnp.maximum(jnp.linalg.norm(x, axis=1, keepdims=True), 1e-12)
    anchor, contrast = l2(anchor), l2(contrast)
    logits = (bf(anchor) @ bf(contrast).T) / TEMPERATURE
    logits = logits - jnp.max(logits, axis=1, keepdims=True)
    log_prob = logits - jnp.log(jnp.sum(jnp.exp(logits), axis=1, keepdims=True))
    mlpp = jnp.sum(mask * log_prob, axis=1) / jnp.sum(mask, axis=1)
    return jnp.mean(_LOSS_SCALE * mlpp)


def _init_params(key, dim_in, feat_dim):
    ks = jax.random.split(key, 12)
    w = lambda k, din, dout: 0.02 * jax.random.normal(k, (din, dout), jnp.float32)
    b = lambda k, dout: 0.01 * jax.random.normal(k, (1, dout), jnp.float32)
    return {
        # graph_cn.graph.wq / wk : Linear(dim_in, dim_in)
        "wq_w": w(ks[0], dim_in, dim_in), "wq_b": b(ks[1], dim_in),
        "wk_w": w(ks[2], dim_in, dim_in), "wk_b": b(ks[3], dim_in),
        # head_1 : Linear(dim_in, dim_in) -> ReLU -> Linear(dim_in, feat_dim)
        "h1a_w": w(ks[4], dim_in, dim_in), "h1a_b": b(ks[5], dim_in),
        "h2a_w": w(ks[6], dim_in, feat_dim), "h2a_b": b(ks[7], feat_dim),
        # head_2 : Linear(dim_in, dim_in) -> ReLU -> Linear(dim_in, feat_dim)
        "h1c_w": w(ks[8], dim_in, dim_in), "h1c_b": b(ks[9], dim_in),
        "h2c_w": w(ks[10], dim_in, feat_dim), "h2c_b": b(ks[11], feat_dim),
    }


if __name__ == "__main__":
    N, D = 256, 512          # N proposals, D feature dim (module uses dim_in = feat_dim = 2048)
    key = jax.random.PRNGKey(0)
    k_s, k_t, k_p = jax.random.split(key, 3)
    s_feat = jax.random.normal(k_s, (N, D), jnp.float32)
    t_feat = jax.random.normal(k_t, (N, D), jnp.float32)   # unused by forward
    params = _init_params(k_p, dim_in=D, feat_dim=D)

    fused = fuse_params(params)
    loss = jax.block_until_ready(jax.jit(graph_con_loss)(t_feat, s_feat, fused))
    ref = jax.block_until_ready(_reference(s_feat, params))

    assert jnp.isfinite(loss), "non-finite loss"
    assert jnp.allclose(loss, ref, rtol=1e-2, atol=1e-3), (loss, ref)
    print("KERNEL_OK")
</pallas_src>

<mosaic_0001>
module attributes {stable_mosaic.version = 11 : i64} {
  func.func @_epilogue_kernel(%arg0: i32, %arg1: memref<256x1024xf32, #tpu.memory_space<vmem>>, %arg2: memref<2x256x512xf32, #tpu.memory_space<vmem>>, %arg3: memref<1x1xf32, #tpu.memory_space<vmem>>) attributes {dimension_semantics = [#tpu.dimension_semantics<arbitrary>], iteration_bounds = array<i64: 1>, scalar_prefetch = 0 : i64, scratch_operands = 0 : i64, tpu.core_type = #tpu.core_type<tc>, window_params = [{transform_indices = @transform_0, window_bounds = array<i64: 256, 1024>}, {pipeline_mode = #tpu.pipeline_mode<synchronous>, transform_indices = @transform_1, window_bounds = array<i64: 2, 256, 512>}, {pipeline_mode = #tpu.pipeline_mode<synchronous>, transform_indices = @transform_2, window_bounds = array<i64: 1, 1>}]} {
    %c0 = arith.constant 0 : index
    %c0_0 = arith.constant 0 : index
    %0 = vector.load %arg1[%c0, %c0_0] : memref<256x1024xf32, #tpu.memory_space<vmem>>, vector<256x512xf32>
    %1 = arith.truncf %0 : vector<256x512xf32> to vector<256x512xbf16>
    %c0_1 = arith.constant 0 : index
    %c512 = arith.constant 512 : index
    %2 = vector.load %arg1[%c0_1, %c512] : memref<256x1024xf32, #tpu.memory_space<vmem>>, vector<256x512xf32>
    %3 = arith.truncf %2 : vector<256x512xf32> to vector<256x512xbf16>
    %cst = arith.constant dense<0.000000e+00> : vector<256x256xf32>
    %4 = tpu.matmul %1, %3, %cst {dimension_numbers = #tpu.dot_dimension_numbers<[1], [1], [0], [0], [0, 0, 1, 0], [], []>} : vector<256x512xbf16>, vector<256x512xbf16>, vector<256x256xf32> -> vector<256x256xf32>
    %cst_2 = arith.constant dense<0x7F800000> : vector<256xf32>
    %5 = vector.multi_reduction <minimumf>, %4, %cst_2 [1] : vector<256x256xf32> to vector<256xf32>
    %6 = vector.shape_cast %5 : vector<256xf32> to vector<256x1xf32>
    %7 = vector.broadcast %6 : vector<256x1xf32> to vector<256x256xf32>
    %8 = arith.subf %4, %7 : vector<256x256xf32>
    %cst_3 = arith.constant dense<0xFF800000> : vector<256xf32>
    %9 = vector.multi_reduction <maximumf>, %8, %cst_3 [1] : vector<256x256xf32> to vector<256xf32>
    %10 = vector.shape_cast %9 : vector<256xf32> to vector<256x1xf32>
    %11 = vector.broadcast %10 : vector<256x1xf32> to vector<256x256xf32>
    %12 = arith.divf %8, %11 : vector<256x256xf32>
    %13 = tpu.iota {dimensions = array<i32: 0>} : vector<256x256xi32>
    %14 = tpu.iota {dimensions = array<i32: 1>} : vector<256x256xi32>
    %15 = arith.cmpi eq, %13, %14 : vector<256x256xi32>
    %cst_4 = arith.constant 5.000000e-01 : f32
    %16 = vector.broadcast %cst_4 : f32 to vector<256x256xf32>
    %17 = arith.cmpf ogt, %12, %16 : vector<256x256xf32>
    %cst_5 = arith.constant 1.000000e+00 : f32
    %cst_6 = arith.constant 0.000000e+00 : f32
    %18 = vector.broadcast %cst_5 : f32 to vector<256x256xf32>
    %19 = vector.broadcast %cst_6 : f32 to vector<256x256xf32>
    %20 = arith.select %17, %18, %19 : vector<256x256xi1>, vector<256x256xf32>
    %cst_7 = arith.constant 1.000000e+00 : f32
    %21 = vector.broadcast %cst_7 : f32 to vector<256x256xf32>
    %22 = arith.select %15, %21, %20 : vector<256x256xi1>, vector<256x256xf32>
    %c0_8 = arith.constant 0 : index
    %c0_9 = arith.constant 0 : index
    %c0_10 = arith.constant 0 : index
    %23 = vector.load %arg2[%c0_8, %c0_9, %c0_10] : memref<2x256x512xf32, #tpu.memory_space<vmem>>, vector<1x256x512xf32>
    %24 = vector.shape_cast %23 : vector<1x256x512xf32> to vector<256x512xf32>
    %25 = arith.mulf %24, %24 : vector<256x512xf32>
    %cst_11 = arith.constant dense<0.000000e+00> : vector<256xf32>
    %26 = vector.multi_reduction <add>, %25, %cst_11 [1] : vector<256x512xf32> to vector<256xf32>
    %27 = vector.shape_cast %26 : vector<256xf32> to vector<256x1xf32>
    %cst_12 = arith.constant 1.000000e-24 : f32
    %28 = vector.broadcast %cst_12 : f32 to vector<256x1xf32>
    %29 = arith.maximumf %27, %28 : vector<256x1xf32>
    %30 = math.rsqrt %29 : vector<256x1xf32>
    %31 = vector.broadcast %30 : vector<256x1xf32> to vector<256x512xf32>
    %32 = arith.mulf %24, %31 : vector<256x512xf32>
    %c1 = arith.constant 1 : index
    %c0_13 = arith.constant 0 : index
    %c0_14 = arith.constant 0 : index
    %33 = vector.load %arg2[%c1, %c0_13, %c0_14] : memref<2x256x512xf32, #tpu.memory_space<vmem>>, vector<1x256x512xf32>
    %34 = vector.shape_cast %33 : vector<1x256x512xf32> to vector<256x512xf32>
    %35 = arith.mulf %34, %34 : vector<256x512xf32>
    %cst_15 = arith.constant dense<0.000000e+00> : vector<256xf32>
    %36 = vector.multi_reduction <add>, %35, %cst_15 [1] : vector<256x512xf32> to vector<256xf32>
    %37 = vector.shape_cast %36 : vector<256xf32> to vector<256x1xf32>
    %cst_16 = arith.constant 1.000000e-24 : f32
    %38 = vector.broadcast %cst_16 : f32 to vector<256x1xf32>
    %39 = arith.maximumf %37, %38 : vector<256x1xf32>
    %40 = math.rsqrt %39 : vector<256x1xf32>
    %41 = vector.broadcast %40 : vector<256x1xf32> to vector<256x512xf32>
    %42 = arith.mulf %34, %41 : vector<256x512xf32>
    %43 = arith.truncf %32 : vector<256x512xf32> to vector<256x512xbf16>
    %44 = arith.truncf %42 : vector<256x512xf32> to vector<256x512xbf16>
    %cst_17 = arith.constant dense<0.000000e+00> : vector<256x256xf32>
    %45 = tpu.matmul %43, %44, %cst_17 {dimension_numbers = #tpu.dot_dimension_numbers<[1], [1], [0], [0], [0, 0, 1, 0], [], []>} : vector<256x512xbf16>, vector<256x512xbf16>, vector<256x256xf32> -> vector<256x256xf32>
    %cst_18 = arith.constant 14.2857141 : f32
    %46 = vector.broadcast %cst_18 : f32 to vector<256x256xf32>
    %47 = arith.mulf %45, %46 : vector<256x256xf32>
    %cst_19 = arith.constant dense<0xFF800000> : vector<256xf32>
    %48 = vector.multi_reduction <maximumf>, %47, %cst_19 [1] : vector<256x256xf32> to vector<256xf32>
    %49 = vector.shape_cast %48 : vector<256xf32> to vector<256x1xf32>
    %50 = vector.broadcast %49 : vector<256x1xf32> to vector<256x256xf32>
    %51 = arith.subf %47, %50 : vector<256x256xf32>
    %52 = math.exp %51 : vector<256x256xf32>
    %cst_20 = arith.constant dense<0.000000e+00> : vector<256xf32>
    %53 = vector.multi_reduction <add>, %52, %cst_20 [1] : vector<256x256xf32> to vector<256xf32>
    %54 = vector.shape_cast %53 : vector<256xf32> to vector<256x1xf32>
    %55 = math.log %54 : vector<256x1xf32>
    %56 = vector.broadcast %55 : vector<256x1xf32> to vector<256x256xf32>
    %57 = arith.subf %51, %56 : vector<256x256xf32>
    %58 = arith.mulf %22, %57 : vector<256x256xf32>
    %cst_21 = arith.constant dense<0.000000e+00> : vector<256xf32>
    %59 = vector.multi_reduction <add>, %58, %cst_21 [1] : vector<256x256xf32> to vector<256xf32>
    %60 = vector.shape_cast %59 : vector<256xf32> to vector<256x1xf32>
    %cst_22 = arith.constant dense<0.000000e+00> : vector<256xf32>
    %61 = vector.multi_reduction <add>, %22, %cst_22 [1] : vector<256x256xf32> to vector<256xf32>
    %62 = vector.shape_cast %61 : vector<256xf32> to vector<256x1xf32>
    %63 = tpu.reciprocal %62 {approx = true} : vector<256x1xf32> -> vector<256x1xf32>
    %64 = arith.mulf %60, %63 : vector<256x1xf32>
    %cst_23 = arith.constant -5.000000e-01 : f32
    %65 = vector.broadcast %cst_23 : f32 to vector<256x1xf32>
    %66 = arith.mulf %65, %64 : vector<256x1xf32>
    %67 = vector.shape_cast %66 : vector<256x1xf32> to vector<1x256x1xf32>
    %cst_24 = arith.constant dense<0.000000e+00> : vector<1xf32>
    %68 = vector.multi_reduction <add>, %67, %cst_24 [1, 2] : vector<1x256x1xf32> to vector<1xf32>
    %69 = vector.shape_cast %68 : vector<1xf32> to vector<1x1x1xf32>
    %70 = vector.extract %69[0, 0, 0] : f32 from vector<1x1x1xf32>
    %cst_25 = arith.constant 2.560000e+02 : f32
    %71 = arith.divf %70, %cst_25 : f32
    %72 = vector.broadcast %71 : f32 to vector<1x1xf32>
    %c0_26 = arith.constant 0 : index
    %c0_27 = arith.constant 0 : index
    %73 = vector.load %arg3[%c0_26, %c0_27] : memref<1x1xf32, #tpu.memory_space<vmem>>, vector<1x1xf32>
    tpu.vector_store %arg3[%c0_26, %c0_27], %72 {strides = array<i32>} : memref<1x1xf32, #tpu.memory_space<vmem>>, vector<1x1xf32>,
    return
  }
  func.func @transform_0(%arg0: i32) -> (i32, i32) {
    %c0_i32 = arith.constant 0 : i32
    %c0_i32_0 = arith.constant 0 : i32
    %c0_i32_1 = arith.constant 0 : i32
    return %c0_i32, %c0_i32_0 : i32, i32
  }
  func.func @transform_1(%arg0: i32) -> (i32, i32, i32) {
    %c0_i32 = arith.constant 0 : i32
    %c0_i32_0 = arith.constant 0 : i32
    %c0_i32_1 = arith.constant 0 : i32
    %c0_i32_2 = arith.constant 0 : i32
    return %c0_i32, %c0_i32_0, %c0_i32_1 : i32, i32, i32
  }
  func.func @transform_2(%arg0: i32) -> (i32, i32) {
    %c0_i32 = arith.constant 0 : i32
    %c0_i32_0 = arith.constant 0 : i32
    %c0_i32_1 = arith.constant 0 : i32
    return %c0_i32, %c0_i32_0 : i32, i32
  }
}

module attributes {stable_mosaic.version = 11 : i64} {
  func.func @_fused_l1_kernel(%arg0: i32, %arg1: i32, %arg2: memref<256x512xbf16, #tpu.memory_space<vmem>>, %arg3: memref<512x512xbf16, #tpu.memory_space<vmem>>, %arg4: memref<1x512xf32, #tpu.memory_space<vmem>>, %arg5: memref<256x512xf32, #tpu.memory_space<vmem>>, %arg6: memref<256x512xf32, #tpu.memory_space<vmem>>) attributes {dimension_semantics = [#tpu.dimension_semantics<parallel>, #tpu.dimension_semantics<arbitrary>], iteration_bounds = array<i64: 4, 1>, scalar_prefetch = 0 : i64, scratch_operands = 1 : i64, tpu.core_type = #tpu.core_type<tc>, window_params = [{transform_indices = @transform_0, window_bounds = array<i64: 256, 512>}, {transform_indices = @transform_1, window_bounds = array<i64: 512, 512>}, {transform_indices = @transform_2, window_bounds = array<i64: 1, 512>}, {transform_indices = @transform_3, window_bounds = array<i64: 256, 512>}]} {
    %c0_i32 = arith.constant 0 : i32
    %0 = arith.cmpi eq, %arg1, %c0_i32 : i32
    %1 = arith.extui %0 : i1 to i32
    %c0_i32_0 = arith.constant 0 : i32
    %2 = arith.cmpi ne, %1, %c0_i32_0 : i32
    scf.if %2 {
      %cst_10 = arith.constant 0.000000e+00 : f32
      %12 = vector.broadcast %cst_10 : f32 to vector<256x512xf32>
      %c0_11 = arith.constant 0 : index
      %c0_12 = arith.constant 0 : index
      %13 = vector.load %arg6[%c0_11, %c0_12] : memref<256x512xf32, #tpu.memory_space<vmem>>, vector<256x512xf32>
      tpu.vector_store %arg6[%c0_11, %c0_12], %12 {strides = array<i32>} : memref<256x512xf32, #tpu.memory_space<vmem>>, vector<256x512xf32>,
    } else {
    }
    %c0 = arith.constant 0 : index
    %c0_1 = arith.constant 0 : index
    %3 = vector.load %arg6[%c0, %c0_1] : memref<256x512xf32, #tpu.memory_space<vmem>>, vector<256x512xf32>
    %c0_2 = arith.constant 0 : index
    %c0_3 = arith.constant 0 : index
    %4 = vector.load %arg2[%c0_2, %c0_3] : memref<256x512xbf16, #tpu.memory_space<vmem>>, vector<256x512xbf16>
    %c0_4 = arith.constant 0 : index
    %c0_5 = arith.constant 0 : index
    %5 = vector.load %arg3[%c0_4, %c0_5] : memref<512x512xbf16, #tpu.memory_space<vmem>>, vector<512x512xbf16>
    %cst = arith.constant dense<0.000000e+00> : vector<256x512xf32>
    %6 = tpu.matmul %4, %5, %cst {dimension_numbers = #tpu.dot_dimension_numbers<[1], [0], [0], [1], [0, 0, 1, 1], [], []>} : vector<256x512xbf16>, vector<512x512xbf16>, vector<256x512xf32> -> vector<256x512xf32>
    %7 = arith.addf %3, %6 : vector<256x512xf32>
    %c0_6 = arith.constant 0 : index
    %c0_7 = arith.constant 0 : index
    %8 = vector.load %arg6[%c0_6, %c0_7] : memref<256x512xf32, #tpu.memory_space<vmem>>, vector<256x512xf32>
    tpu.vector_store %arg6[%c0_6, %c0_7], %7 {strides = array<i32>} : memref<256x512xf32, #tpu.memory_space<vmem>>, vector<256x512xf32>,
    %c0_i32_8 = arith.constant 0 : i32
    %9 = arith.cmpi eq, %arg1, %c0_i32_8 : i32
    %10 = arith.extui %9 : i1 to i32
    %c0_i32_9 = arith.constant 0 : i32
    %11 = arith.cmpi ne, %10, %c0_i32_9 : i32
    scf.if %11 {
      %c0_10 = arith.constant 0 : index
      %c0_11 = arith.constant 0 : index
      %12 = vector.load %arg6[%c0_10, %c0_11] : memref<256x512xf32, #tpu.memory_space<vmem>>, vector<256x512xf32>
      %c0_12 = arith.constant 0 : index
      %c0_13 = arith.constant 0 : index
      %13 = vector.load %arg4[%c0_12, %c0_13] : memref<1x512xf32, #tpu.memory_space<vmem>>, vector<1x512xf32>
      %14 = vector.broadcast %13 : vector<1x512xf32> to vector<256x512xf32>
      %15 = arith.addf %12, %14 : vector<256x512xf32>
      %c0_14 = arith.constant 0 : index
      %c0_15 = arith.constant 0 : index
      %16 = vector.load %arg5[%c0_14, %c0_15] : memref<256x512xf32, #tpu.memory_space<vmem>>, vector<256x512xf32>
      tpu.vector_store %arg5[%c0_14, %c0_15], %15 {strides = array<i32>} : memref<256x512xf32, #tpu.memory_space<vmem>>, vector<256x512xf32>,
    } else {
    }
    return
  }
  func.func @transform_0(%arg0: i32, %arg1: i32) -> (i32, i32) {
    %c0_i32 = arith.constant 0 : i32
    %c0_i32_0 = arith.constant 0 : i32
    return %c0_i32, %arg1 : i32, i32
  }
  func.func @transform_1(%arg0: i32, %arg1: i32) -> (i32, i32) {
    %c0_i32 = arith.constant 0 : i32
    return %arg1, %arg0 : i32, i32
  }
  func.func @transform_2(%arg0: i32, %arg1: i32) -> (i32, i32) {
    %c0_i32 = arith.constant 0 : i32
    %c0_i32_0 = arith.constant 0 : i32
    return %c0_i32, %arg0 : i32, i32
  }
  func.func @transform_3(%arg0: i32, %arg1: i32) -> (i32, i32) {
    %c0_i32 = arith.constant 0 : i32
    %c0_i32_0 = arith.constant 0 : i32
    return %c0_i32, %arg0 : i32, i32
  }
}

module attributes {stable_mosaic.version = 11 : i64} {
  func.func @_heads_l2_kernel(%arg0: i32, %arg1: i32, %arg2: i32, %arg3: memref<256x512xf32, #tpu.memory_space<vmem>>, %arg4: memref<1x512x512xbf16, #tpu.memory_space<vmem>>, %arg5: memref<1x1x512xf32, #tpu.memory_space<vmem>>, %arg6: memref<1x256x512xf32, #tpu.memory_space<vmem>>, %arg7: memref<256x512xf32, #tpu.memory_space<vmem>>) attributes {dimension_semantics = [#tpu.dimension_semantics<parallel>, #tpu.dimension_semantics<parallel>, #tpu.dimension_semantics<arbitrary>], iteration_bounds = array<i64: 2, 1, 1>, scalar_prefetch = 0 : i64, scratch_operands = 1 : i64, tpu.core_type = #tpu.core_type<tc>, window_params = [{transform_indices = @transform_0, window_bounds = array<i64: 256, 512>}, {transform_indices = @transform_1, window_bounds = array<i64: 1, 512, 512>}, {transform_indices = @transform_2, window_bounds = array<i64: 1, 1, 512>}, {transform_indices = @transform_3, window_bounds = array<i64: 1, 256, 512>}]} {
    %c0_i32 = arith.constant 0 : i32
    %0 = arith.cmpi eq, %arg2, %c0_i32 : i32
    %1 = arith.extui %0 : i1 to i32
    %c0_i32_0 = arith.constant 0 : i32
    %2 = arith.cmpi ne, %1, %c0_i32_0 : i32
    scf.if %2 {
      %cst_12 = arith.constant 0.000000e+00 : f32
      %16 = vector.broadcast %cst_12 : f32 to vector<256x512xf32>
      %c0_13 = arith.constant 0 : index
      %c0_14 = arith.constant 0 : index
      %17 = vector.load %arg7[%c0_13, %c0_14] : memref<256x512xf32, #tpu.memory_space<vmem>>, vector<256x512xf32>
      tpu.vector_store %arg7[%c0_13, %c0_14], %16 {strides = array<i32>} : memref<256x512xf32, #tpu.memory_space<vmem>>, vector<256x512xf32>,
    } else {
    }
    %c0 = arith.constant 0 : index
    %c0_1 = arith.constant 0 : index
    %3 = vector.load %arg3[%c0, %c0_1] : memref<256x512xf32, #tpu.memory_space<vmem>>, vector<256x512xf32>
    %cst = arith.constant 0.000000e+00 : f32
    %4 = vector.broadcast %cst : f32 to vector<256x512xf32>
    %5 = arith.maximumf %3, %4 : vector<256x512xf32>
    %6 = arith.truncf %5 : vector<256x512xf32> to vector<256x512xbf16>
    %c0_2 = arith.constant 0 : index
    %c0_3 = arith.constant 0 : index
    %7 = vector.load %arg7[%c0_2, %c0_3] : memref<256x512xf32, #tpu.memory_space<vmem>>, vector<256x512xf32>
    %c0_4 = arith.constant 0 : index
    %c0_5 = arith.constant 0 : index
    %c0_6 = arith.constant 0 : index
    %8 = vector.load %arg4[%c0_4, %c0_5, %c0_6] : memref<1x512x512xbf16, #tpu.memory_space<vmem>>, vector<1x512x512xbf16>
    %9 = vector.shape_cast %8 : vector<1x512x512xbf16> to vector<512x512xbf16>
    %cst_7 = arith.constant dense<0.000000e+00> : vector<256x512xf32>
    %10 = tpu.matmul %6, %9, %cst_7 {dimension_numbers = #tpu.dot_dimension_numbers<[1], [0], [0], [1], [0, 0, 1, 1], [], []>} : vector<256x512xbf16>, vector<512x512xbf16>, vector<256x512xf32> -> vector<256x512xf32>
    %11 = arith.addf %7, %10 : vector<256x512xf32>
    %c0_8 = arith.constant 0 : index
    %c0_9 = arith.constant 0 : index
    %12 = vector.load %arg7[%c0_8, %c0_9] : memref<256x512xf32, #tpu.memory_space<vmem>>, vector<256x512xf32>
    tpu.vector_store %arg7[%c0_8, %c0_9], %11 {strides = array<i32>} : memref<256x512xf32, #tpu.memory_space<vmem>>, vector<256x512xf32>,
    %c0_i32_10 = arith.constant 0 : i32
    %13 = arith.cmpi eq, %arg2, %c0_i32_10 : i32
    %14 = arith.extui %13 : i1 to i32
    %c0_i32_11 = arith.constant 0 : i32
    %15 = arith.cmpi ne, %14, %c0_i32_11 : i32
    scf.if %15 {
      %c0_12 = arith.constant 0 : index
      %c0_13 = arith.constant 0 : index
      %16 = vector.load %arg7[%c0_12, %c0_13] : memref<256x512xf32, #tpu.memory_space<vmem>>, vector<256x512xf32>
      %c0_14 = arith.constant 0 : index
      %c0_15 = arith.constant 0 : index
      %c0_16 = arith.constant 0 : index
      %17 = vector.load %arg5[%c0_14, %c0_15, %c0_16] : memref<1x1x512xf32, #tpu.memory_space<vmem>>, vector<1x1x512xf32>
      %18 = vector.shape_cast %17 : vector<1x1x512xf32> to vector<1x512xf32>
      %19 = vector.broadcast %18 : vector<1x512xf32> to vector<256x512xf32>
      %20 = arith.addf %16, %19 : vector<256x512xf32>
      %c0_17 = arith.constant 0 : index
      %c0_18 = arith.constant 0 : index
      %c0_19 = arith.constant 0 : index
      %21 = vector.load %arg6[%c0_17, %c0_18, %c0_19] : memref<1x256x512xf32, #tpu.memory_space<vmem>>, vector<1x256x512xf32>
      %22 = vector.shape_cast %21 : vector<1x256x512xf32> to vector<256x512xf32>
      %23 = vector.shape_cast %20 : vector<256x512xf32> to vector<1x256x512xf32>
      tpu.vector_store %arg6[%c0_17, %c0_18, %c0_19], %23 {strides = array<i32>} : memref<1x256x512xf32, #tpu.memory_space<vmem>>, vector<1x256x512xf32>,
    } else {
    }
    return
  }
  func.func @transform_0(%arg0: i32, %arg1: i32, %arg2: i32) -> (i32, i32) {
    %c2_i32 = arith.constant 2 : i32
    %0 = arith.addi %c2_i32, %arg0 : i32
    %c1_i32 = arith.constant 1 : i32
    %1 = arith.muli %0, %c1_i32 : i32
    %2 = arith.addi %1, %arg2 : i32
    %c0_i32 = arith.constant 0 : i32
    %c0_i32_0 = arith.constant 0 : i32
    return %c0_i32, %2 : i32, i32
  }
  func.func @transform_1(%arg0: i32, %arg1: i32, %arg2: i32) -> (i32, i32, i32) {
    %c0_i32 = arith.constant 0 : i32
    return %arg0, %arg2, %arg1 : i32, i32, i32
  }
  func.func @transform_2(%arg0: i32, %arg1: i32, %arg2: i32) -> (i32, i32, i32) {
    %c0_i32 = arith.constant 0 : i32
    %c0_i32_0 = arith.constant 0 : i32
    return %arg0, %c0_i32, %arg1 : i32, i32, i32
  }
  func.func @transform_3(%arg0: i32, %arg1: i32, %arg2: i32) -> (i32, i32, i32) {
    %c0_i32 = arith.constant 0 : i32
    %c0_i32_0 = arith.constant 0 : i32
    return %arg0, %c0_i32, %arg1 : i32, i32, i32
  }
}

</mosaic_0001>

<bundles_post_ra>
// kernel: graph_con_loss.5
= control target key start
LH: loop header
LB: loop body
LE: loop exit
PB: predicated region body
PF: predicated region fallthrough
CT: control target
= control target key end

     0   :  { %s11014_s0 = inlined_call_operand.vmem [shape: f32[256,2048], index: 0, kind: input, shape index: {}]   ;;  %s11015_s1 = inlined_call_operand.vmem [shape: f32[2,256,512], index: 1, kind: input, shape index: {}]   ;;  %s11016_s2 = inlined_call_operand.hbm [shape: f32[1,1], index: 2, kind: output, shape index: {}]  }
   0x1   :  { %v32_v0 = vld [vmem:[%s11014_s0 + $0x28] sm:$0xff]  ;;  %v30_v2 = vld [vmem:[%s11014_s0 + $0x20] sm:$0xff]  ;;  %v4713_v8 = vld [vmem:[%s11015_s1 + $0x410] sm:$0xff] }
   0x2   :  { %v48_v1 = vld [vmem:[%s11014_s0 + $0xa8] sm:$0xff]  ;;  %v46_v4 = vld [vmem:[%s11014_s0 + $0xa0] sm:$0xff]  ;;  %v4714_v9 = vld [vmem:[%s11015_s1 + $0x418] sm:$0xff]  ;;  %v2694_v13 = vmul.f32 %v4713_v8, %v4713_v8 }
   0x3   :  { %v862_v3 = vpack.c.bf16 %v48_v1, %v32_v0  ;;  %v4711_v5 = vld [vmem:[%s11015_s1 + $0x400] sm:$0xff]  ;;  %v4712_v6 = vld [vmem:[%s11015_s1 + $0x408] sm:$0xff]  ;;  %v861_v7 = vpack.c.bf16 %v46_v4, %v30_v2  ;;  %v2695_v17 = vmul.f32 %v4714_v9, %v4714_v9  ;;  %v4721_v22 = vld [vmem:[%s11015_s1 + $0x450] sm:$0xff] }
   0x4   :  { %v2692_v10 = vmul.f32 %v4711_v5, %v4711_v5  ;;  %v2693_v11 = vmul.f32 %v4712_v6, %v4712_v6  ;;  %v64_v12 = vld [vmem:[%s11014_s0 + $0x128] sm:$0xff]  ;;  %v62_v15 = vld [vmem:[%s11014_s0 + $0x120] sm:$0xff]  ;;  %v4722_v24 = vld [vmem:[%s11015_s1 + $0x458] sm:$0xff]  ;;  %v2702_v27 = vmul.f32 %v4721_v22, %v4721_v22 }
   0x5   :  { %925 = vmatprep.subr.bf16.mxu0 %v862_v3  ;;  %v80_v14 = vld [vmem:[%s11014_s0 + $0x1a8] sm:$0xff]  ;;  %v78_v16 = vld [vmem:[%s11014_s0 + $0x1a0] sm:$0xff]  ;;  %v2703_v31 = vmul.f32 %v4722_v24, %v4722_v24  ;;  %v4717_v32 = vld [vmem:[%s11015_s1 + $0x430] sm:$0xff] }
   0x6   :  { %926 = vmatpush1.bf16.xpose.msra.mxu0 %v861_v7  ;;  %v2820_v18 = vadd.f32 %v2693_v11, %v2692_v10  ;;  %v866_v19 = vpack.c.bf16 %v80_v14, %v64_v12  ;;  %v4719_v20 = vld [vmem:[%s11015_s1 + $0x440] sm:$0xff]  ;;  %v4720_v21 = vld [vmem:[%s11015_s1 + $0x448] sm:$0xff]  ;;  %v865_v23 = vpack.c.bf16 %v78_v16, %v62_v15  ;;  %v4718_v33 = vld [vmem:[%s11015_s1 + $0x438] sm:$0xff]  ;;  %v2698_v38 = vmul.f32 %v4717_v32, %v4717_v32 }
   0x7   :  { %v2700_v25 = vmul.f32 %v4719_v20, %v4719_v20  ;;  %v2701_v26 = vmul.f32 %v4720_v21, %v4720_v21  ;;  %v4715_v28 = vld [vmem:[%s11015_s1 + $0x420] sm:$0xff]  ;;  %v4716_v29 = vld [vmem:[%s11015_s1 + $0x428] sm:$0xff]  ;;  %v2699_v39 = vmul.f32 %v4718_v33, %v4718_v33  ;;  %v4725_v41 = vld [vmem:[%s11015_s1 + $0x470] sm:$0xff] }
   0x8   :  { %v2821_v30 = vadd.f32 %v2820_v18, %v2694_v13  ;;  %927 = vmatprep.subr.bf16.mxu0 %v866_v19  ;;  %v2696_v34 = vmul.f32 %v4715_v28, %v4715_v28  ;;  %v2697_v35 = vmul.f32 %v4716_v29, %v4716_v29  ;;  %v4723_v36 = vld [vmem:[%s11015_s1 + $0x460] sm:$0xff]  ;;  %v4724_v40 = vld [vmem:[%s11015_s1 + $0x468] sm:$0xff]  ;;  %v4726_v42 = vld [vmem:[%s11015_s1 + $0x478] sm:$0xff]  ;;  %v2706_v47 = vmul.f32 %v4725_v41, %v4725_v41 }
   0x9   :  { %v2830_v37 = vadd.f32 %v2701_v26, %v2700_v25  ;;  %v2704_v43 = vmul.f32 %v4723_v36, %v4723_v36  ;;  %v2705_v46 = vmul.f32 %v4724_v40, %v4724_v40  ;;  %v96_v48 = vld [vmem:[%s11014_s0 + $0x228] sm:$0xff]  ;;  %v2707_v53 = vmul.f32 %v4726_v42, %v4726_v42  ;;  %v94_v55 = vld [vmem:[%s11014_s0 + $0x220] sm:$0xff]  ;;  %v4733_v60 = vld [vmem:[%s11015_s1 + $0x4b0] sm:$0xff] }
   0xa   :  { %v2822_v44 = vadd.f32 %v2821_v30, %v2695_v17  ;;  %v2825_v45 = vadd.f32 %v2697_v35, %v2696_v34  ;;  %v112_v49 = vld [vmem:[%s11014_s0 + $0x2a8] sm:$0xff]  ;;  %v110_v56 = vld [vmem:[%s11014_s0 + $0x2a0] sm:$0xff]  ;;  %v4734_v61 = vld [vmem:[%s11015_s1 + $0x4b8] sm:$0xff]  ;;  %v2714_v2 = vmul.f32 %v4733_v60, %v4733_v60 }
   0xb   :  { %v2831_v50 = vadd.f32 %v2830_v37, %v2702_v27  ;;  %v870_v51 = vpack.c.bf16 %v112_v49, %v96_v48  ;;  %v2835_v54 = vadd.f32 %v2705_v46, %v2704_v43  ;;  %v4731_v57 = vld [vmem:[%s11015_s1 + $0x4a0] sm:$0xff]  ;;  %v4732_v59 = vld [vmem:[%s11015_s1 + $0x4a8] sm:$0xff]  ;;  %v4729_v5 = vld [vmem:[%s11015_s1 + $0x490] sm:$0xff]  ;;  %v2715_v12 = vmul.f32 %v4734_v61, %v4734_v61 }
   0xc   :  { %2823 = vadd.xlane.f32.xlu0 %v2822_v44  ;;  %v2826_v52 = vadd.f32 %v2825_v45, %v2698_v38  ;;  %v2712_v62 = vmul.f32 %v4731_v57, %v4731_v57  ;;  %v2713_v1 = vmul.f32 %v4732_v59, %v4732_v59  ;;  %v4727_v3 = vld [vmem:[%s11015_s1 + $0x480] sm:$0xff]  ;;  %v4728_v4 = vld [vmem:[%s11015_s1 + $0x488] sm:$0xff]  ;;  %v4730_v8 = vld [vmem:[%s11015_s1 + $0x498] sm:$0xff]  ;;  %v2710_v14 = vmul.f32 %v4729_v5, %v4729_v5 }
   0xd   :  { %v2832_v58 = vadd.f32 %v2831_v50, %v2703_v31  ;;  %v2836_v0 = vadd.f32 %v2835_v54, %v2706_v47  ;;  %v128_v6 = vld [vmem:[%s11014_s0 + $0x328] sm:$0xff]  ;;  %v2708_v9 = vmul.f32 %v4727_v3, %v4727_v3  ;;  %v2709_v10 = vmul.f32 %v4728_v4, %v4728_v4  ;;  %v4739_v15 = vld [vmem:[%s11015_s1 + $0x4e0] sm:$0xff]  ;;  %v4741_v20 = vld [vmem:[%s11015_s1 + $0x4f0] sm:$0xff] }
   0xe   :  { %928 = vmatpush1.bf16.xpose.msra.mxu0 %v865_v23  ;;  %v2827_v63 = vadd.f32 %v2826_v52, %v2699_v39  ;;  %v144_v7 = vld [vmem:[%s11014_s0 + $0x3a8] sm:$0xff]  ;;  %v2845_v13 = vadd.f32 %v2713_v1, %v2712_v62  ;;  %v869_v16 = vpack.c.bf16 %v110_v56, %v94_v55  ;;  %v2711_v17 = vmul.f32 %v4730_v8, %v4730_v8  ;;  %v4742_v21 = vld [vmem:[%s11015_s1 + $0x4f8] sm:$0xff]  ;;  %v4735_v27 = vld [vmem:[%s11015_s1 + $0x4c0] sm:$0xff] }
   0xf   :  { %2833 = vadd.xlane.f32.xlu1 %v2832_v58  ;;  %929 = vmatprep.subr.bf16.mxu0 %v870_v51  ;;  %v2837_v11 = vadd.f32 %v2836_v0, %v2707_v53  ;;  %v2840_v18 = vadd.f32 %v2709_v10, %v2708_v9  ;;  %v4740_v19 = vld [vmem:[%s11015_s1 + $0x4e8] sm:$0xff]  ;;  %v2720_v22 = vmul.f32 %v4739_v15, %v4739_v15  ;;  %v4737_v29 = vld [vmem:[%s11015_s1 + $0x4d0] sm:$0xff]  ;;  %v4738_v31 = vld [vmem:[%s11015_s1 + $0x4d8] sm:$0xff] }
  0x10   :  { %2828 = vadd.xlane.f32.xlu0 %v2827_v63  ;;  %v874_v23 = vpack.c.bf16 %v144_v7, %v128_v6  ;;  %v2846_v24 = vadd.f32 %v2845_v13, %v2714_v2  ;;  %v2721_v25 = vmul.f32 %v4740_v19, %v4740_v19  ;;  %v2722_v26 = vmul.f32 %v4741_v20, %v4741_v20  ;;  %v4736_v28 = vld [vmem:[%s11015_s1 + $0x4c8] sm:$0xff]  ;;  %v5857_v35 = vld [vmem:[%s11014_s0 + $0x320] sm:$0xff]  ;;  %v4749_v45 = vld [vmem:[%s11015_s1 + $0x530] sm:$0xff] }
  0x11   :  { %v2841_v30 = vadd.f32 %v2840_v18, %v2710_v14  ;;  %v2716_v32 = vmul.f32 %v4735_v27, %v4735_v27  ;;  %v2717_v33 = vmul.f32 %v4736_v28, %v4736_v28  ;;  %v2718_v34 = vmul.f32 %v4737_v29, %v4737_v29  ;;  %v5862_v36 = vld [vmem:[%s11014_s0 + $0x3a0] sm:$0xff]  ;;  %v4748_v44 = vld [vmem:[%s11015_s1 + $0x528] sm:$0xff]  ;;  %v4750_v46 = vld [vmem:[%s11015_s1 + $0x538] sm:$0xff] }
  0x12   :  { %v2847_v37 = vadd.f32 %v2846_v24, %v2715_v12  ;;  %v2723_v38 = vmul.f32 %v4742_v21, %v4742_v21  ;;  %v2855_v39 = vadd.f32 %v2721_v25, %v2720_v22  ;;  %v4747_v40 = vld [vmem:[%s11015_s1 + $0x520] sm:$0xff]  ;;  %v2719_v42 = vmul.f32 %v4738_v31, %v4738_v31  ;;  %v4744_v52 = vld [vmem:[%s11015_s1 + $0x508] sm:$0xff]  ;;  %v4745_v53 = vld [vmem:[%s11015_s1 + $0x510] sm:$0xff] }
  0x13   :  { %2838 = vadd.xlane.f32.xlu1 %v2837_v11  ;;  %v2842_v41 = vadd.f32 %v2841_v30, %v2711_v17  ;;  %v2850_v43 = vadd.f32 %v2717_v33, %v2716_v32  ;;  %v2728_v47 = vmul.f32 %v4747_v40, %v4747_v40  ;;  %v2729_v49 = vmul.f32 %v4748_v44, %v4748_v44  ;;  %v4743_v51 = vld [vmem:[%s11015_s1 + $0x500] sm:$0xff]  ;;  %v4746_v55 = vld [vmem:[%s11015_s1 + $0x518] sm:$0xff]  ;;  %v160_v58 = vld [vmem:[%s11014_s0 + $0x428] sm:$0xff] }
  0x14   :  { %v2856_v48 = vadd.f32 %v2855_v39, %v2722_v26  ;;  %v2730_v50 = vmul.f32 %v4749_v45, %v4749_v45  ;;  %v2724_v56 = vmul.f32 %v4743_v51, %v4743_v51  ;;  %v2725_v57 = vmul.f32 %v4744_v52, %v4744_v52  ;;  %v176_v59 = vld [vmem:[%s11014_s0 + $0x4a8] sm:$0xff]  ;;  %v4755_v0 = vld [vmem:[%s11015_s1 + $0x560] sm:$0xff]  ;;  %v4757_v6 = vld [vmem:[%s11015_s1 + $0x570] sm:$0xff] }
  0x15   :  { %v2851_v54 = vadd.f32 %v2850_v43, %v2718_v34  ;;  %2843 = vadd.xlane.f32.xlu0 %v2842_v41  ;;  %v2731_v61 = vmul.f32 %v4750_v46, %v4750_v46  ;;  %v2865_v62 = vadd.f32 %v2729_v49, %v2728_v47  ;;  %v2726_v63 = vmul.f32 %v4745_v53, %v4745_v53  ;;  %v4756_v5 = vld [vmem:[%s11015_s1 + $0x568] sm:$0xff]  ;;  %v4758_v7 = vld [vmem:[%s11015_s1 + $0x578] sm:$0xff]  ;;  %v4751_v12 = vld [vmem:[%s11015_s1 + $0x540] sm:$0xff] }
  0x16   :  { %930 = vmatpush1.bf16.xpose.msra.mxu0 %v869_v16  ;;  %v2857_v60 = vadd.f32 %v2856_v48, %v2723_v38  ;;  %v873_v1 = vpack.c.bf16 %v5862_v36, %v5857_v35  ;;  %v2727_v3 = vmul.f32 %v4746_v55, %v4746_v55  ;;  %v2860_v4 = vadd.f32 %v2725_v57, %v2724_v56  ;;  %v4752_v13 = vld [vmem:[%s11015_s1 + $0x548] sm:$0xff]  ;;  %v4753_v14 = vld [vmem:[%s11015_s1 + $0x550] sm:$0xff]  ;;  %v4754_v17 = vld [vmem:[%s11015_s1 + $0x558] sm:$0xff] }
  0x17   :  { %931 = vmatprep.subr.bf16.mxu0 %v874_v23  ;;  %2848 = vadd.xlane.f32.xlu1 %v2847_v37  ;;  %v2852_v2 = vadd.f32 %v2851_v54, %v2719_v42  ;;  %v2866_v8 = vadd.f32 %v2865_v62, %v2730_v50  ;;  %v2736_v9 = vmul.f32 %v4755_v0, %v4755_v0  ;;  %v5923_v20 = vld [vmem:[%s11014_s0 + $0x420] sm:$0xff]  ;;  %v5933_v22 = vld [vmem:[%s11014_s0 + $0x528] sm:$0xff]  ;;  %v4765_v33 = vld [vmem:[%s11015_s1 + $0x5b0] sm:$0xff] }
  0x18   :  { %v2737_v10 = vmul.f32 %v4756_v5, %v4756_v5  ;;  %v2738_v11 = vmul.f32 %v4757_v6, %v4757_v6  ;;  %v878_v15 = vpack.c.bf16 %v176_v59, %v160_v58  ;;  %v2861_v16 = vadd.f32 %v2860_v4, %v2726_v63  ;;  %v5928_v21 = vld [vmem:[%s11014_s0 + $0x4a0] sm:$0xff]  ;;  %v5938_v23 = vld [vmem:[%s11014_s0 + $0x5a8] sm:$0xff]  ;;  %v4766_v34 = vld [vmem:[%s11015_s1 + $0x5b8] sm:$0xff] }
  0x19   :  { %v2732_v18 = vmul.f32 %v4751_v12, %v4751_v12  ;;  %v2733_v19 = vmul.f32 %v4752_v13, %v4752_v13  ;;  %2853 = vadd.xlane.f32.xlu0 %v2852_v2  ;;  %v2867_v24 = vadd.f32 %v2866_v8, %v2731_v61  ;;  %v2739_v25 = vmul.f32 %v4758_v7, %v4758_v7  ;;  %v4763_v28 = vld [vmem:[%s11015_s1 + $0x5a0] sm:$0xff]  ;;  %v4764_v32 = vld [vmem:[%s11015_s1 + $0x5a8] sm:$0xff]  ;;  %v4761_v41 = vld [vmem:[%s11015_s1 + $0x590] sm:$0xff] }
  0x1a   :  { %v2875_v26 = vadd.f32 %v2737_v10, %v2736_v9  ;;  %v2734_v27 = vmul.f32 %v4753_v14, %v4753_v14  ;;  %v2862_v29 = vadd.f32 %v2861_v16, %v2727_v3  ;;  %v2735_v30 = vmul.f32 %v4754_v17, %v4754_v17  ;;  %v4759_v39 = vld [vmem:[%s11015_s1 + $0x580] sm:$0xff]  ;;  %v4760_v40 = vld [vmem:[%s11015_s1 + $0x588] sm:$0xff]  ;;  %v4762_v44 = vld [vmem:[%s11015_s1 + $0x598] sm:$0xff] }
  0x1b   :  { %2858 = vadd.xlane.f32.xlu1 %v2857_v60  ;;  %v2870_v31 = vadd.f32 %v2733_v19, %v2732_v18  ;;  %v2744_v36 = vmul.f32 %v4763_v28, %v4763_v28  ;;  %v2745_v37 = vmul.f32 %v4764_v32, %v4764_v32  ;;  %v2746_v38 = vmul.f32 %v4765_v33, %v4765_v33  ;;  %v4771_v50 = vld [vmem:[%s11015_s1 + $0x5e0] sm:$0xff]  ;;  %v4772_v55 = vld [vmem:[%s11015_s1 + $0x5e8] sm:$0xff]  ;;  %v4773_v56 = vld [vmem:[%s11015_s1 + $0x5f0] sm:$0xff] }
  0x1c   :  { %v2876_v35 = vadd.f32 %v2875_v26, %v2738_v11  ;;  %v2747_v43 = vmul.f32 %v4766_v34, %v4766_v34  ;;  %v2740_v45 = vmul.f32 %v4759_v39, %v4759_v39  ;;  %v2741_v48 = vmul.f32 %v4760_v40, %v4760_v40  ;;  %v4774_v57 = vld [vmem:[%s11015_s1 + $0x5f8] sm:$0xff]  ;;  %v4767_v62 = vld [vmem:[%s11015_s1 + $0x5c0] sm:$0xff]  ;;  %v4768_v63 = vld [vmem:[%s11015_s1 + $0x5c8] sm:$0xff] }
  0x1d   :  { %v2871_v42 = vadd.f32 %v2870_v31, %v2734_v27  ;;  %2863 = vadd.xlane.f32.xlu0 %v2862_v29  ;;  %v2885_v47 = vadd.f32 %v2745_v37, %v2744_v36  ;;  %v2742_v49 = vmul.f32 %v4761_v41, %v4761_v41  ;;  %v877_v51 = vpack.c.bf16 %v5928_v21, %v5923_v20  ;;  %v4769_v0 = vld [vmem:[%s11015_s1 + $0x5d0] sm:$0xff]  ;;  %v4770_v3 = vld [vmem:[%s11015_s1 + $0x5d8] sm:$0xff]  ;;  %v5995_v6 = vld [vmem:[%s11014_s0 + $0x520] sm:$0xff] }
  0x1e   :  { %932 = vmatpush1.bf16.xpose.msra.mxu0 %v873_v1  ;;  %v2877_v46 = vadd.f32 %v2876_v35, %v2739_v25  ;;  %v882_v52 = vpack.c.bf16 %v5938_v23, %v5933_v22  ;;  %v2743_v54 = vmul.f32 %v4762_v44, %v4762_v44  ;;  %v2880_v59 = vadd.f32 %v2741_v48, %v2740_v45  ;;  %v6000_v7 = vld [vmem:[%s11014_s0 + $0x5a0] sm:$0xff]  ;;  %v4781_v16 = vld [vmem:[%s11015_s1 + $0x630] sm:$0xff]  ;;  %v4782_v17 = vld [vmem:[%s11015_s1 + $0x638] sm:$0xff] }
  0x1f   :  { %933 = vmatprep.subr.bf16.mxu0 %v878_v15  ;;  %2868 = vadd.xlane.f32.xlu1 %v2867_v24  ;;  %v2872_v53 = vadd.f32 %v2871_v42, %v2735_v30  ;;  %v2886_v58 = vadd.f32 %v2885_v47, %v2746_v38  ;;  %v2752_v60 = vmul.f32 %v4771_v50, %v4771_v50  ;;  %v4779_v12 = vld [vmem:[%s11015_s1 + $0x620] sm:$0xff]  ;;  %v4780_v15 = vld [vmem:[%s11015_s1 + $0x628] sm:$0xff]  ;;  %v4777_v24 = vld [vmem:[%s11015_s1 + $0x610] sm:$0xff] }
  0x20   :  { %v2753_v61 = vmul.f32 %v4772_v55, %v4772_v55  ;;  %v2754_v1 = vmul.f32 %v4773_v56, %v4773_v56  ;;  %v2755_v2 = vmul.f32 %v4774_v57, %v4774_v57  ;;  %v2748_v4 = vmul.f32 %v4767_v62, %v4767_v62  ;;  %v4775_v22 = vld [vmem:[%s11015_s1 + $0x600] sm:$0xff]  ;;  %v4776_v23 = vld [vmem:[%s11015_s1 + $0x608] sm:$0xff]  ;;  %v4778_v28 = vld [vmem:[%s11015_s1 + $0x618] sm:$0xff] }
  0x21   :  { %v2749_v5 = vmul.f32 %v4768_v63, %v4768_v63  ;;  %2873 = vadd.xlane.f32.xlu0 %v2872_v53  ;;  %v2887_v8 = vadd.f32 %v2886_v58, %v2747_v43  ;;  %v2881_v9 = vadd.f32 %v2880_v59, %v2742_v49  ;;  %v2750_v11 = vmul.f32 %v4769_v0, %v4769_v0  ;;  %v224_v29 = vld [vmem:[%s11014_s0 + $0x628] sm:$0xff]  ;;  %v4787_v35 = vld [vmem:[%s11015_s1 + $0x660] sm:$0xff]  ;;  %v4789_v40 = vld [vmem:[%s11015_s1 + $0x670] sm:$0xff] }
  0x22   :  { %v2895_v10 = vadd.f32 %v2753_v61, %v2752_v60  ;;  %v2751_v13 = vmul.f32 %v4770_v3, %v4770_v3  ;;  %v2760_v20 = vmul.f32 %v4779_v12, %v4779_v12  ;;  %v2761_v21 = vmul.f32 %v4780_v15, %v4780_v15  ;;  %v240_v30 = vld [vmem:[%s11014_s0 + $0x6a8] sm:$0xff]  ;;  %v4790_v41 = vld [vmem:[%s11015_s1 + $0x678] sm:$0xff]  ;;  %v4785_v48 = vld [vmem:[%s11015_s1 + $0x650] sm:$0xff] }
  0x23   :  { %2878 = vadd.xlane.f32.xlu1 %v2877_v46  ;;  %v2890_v14 = vadd.f32 %v2749_v5, %v2748_v4  ;;  %v2882_v18 = vadd.f32 %v2881_v9, %v2743_v54  ;;  %v2762_v26 = vmul.f32 %v4781_v16, %v4781_v16  ;;  %v2763_v27 = vmul.f32 %v4782_v17, %v4782_v17  ;;  %v4788_v39 = vld [vmem:[%s11015_s1 + $0x668] sm:$0xff]  ;;  %v4783_v46 = vld [vmem:[%s11015_s1 + $0x640] sm:$0xff]  ;;  %v4793_v9 = vld [vmem:[%s11015_s1 + $0x690] sm:$0xff] }
  0x24   :  { %v2896_v19 = vadd.f32 %v2895_v10, %v2754_v1  ;;  %v2905_v32 = vadd.f32 %v2761_v21, %v2760_v20  ;;  %v2756_v33 = vmul.f32 %v4775_v22, %v4775_v22  ;;  %v2757_v34 = vmul.f32 %v4776_v23, %v4776_v23  ;;  %v4784_v47 = vld [vmem:[%s11015_s1 + $0x648] sm:$0xff]  ;;  %v6061_v54 = vld [vmem:[%s11014_s0 + $0x620] sm:$0xff]  ;;  %v4797_v1 = vld [vmem:[%s11015_s1 + $0x6b0] sm:$0xff] }
  0x25   :  { %v2891_v25 = vadd.f32 %v2890_v14, %v2750_v11  ;;  %2883 = vadd.xlane.f32.xlu0 %v2882_v18  ;;  %v881_v36 = vpack.c.bf16 %v6000_v7, %v5995_v6  ;;  %v2758_v38 = vmul.f32 %v4777_v24, %v4777_v24  ;;  %v2759_v43 = vmul.f32 %v4778_v28, %v4778_v28  ;;  %v6066_v55 = vld [vmem:[%s11014_s0 + $0x6a0] sm:$0xff]  ;;  %v4796_v0 = vld [vmem:[%s11015_s1 + $0x6a8] sm:$0xff] }
  0x26   :  { %934 = vmatpush1.bf16.xpose.msra.mxu0 %v877_v51  ;;  %v2897_v31 = vadd.f32 %v2896_v19, %v2755_v2  ;;  %v2906_v42 = vadd.f32 %v2905_v32, %v2762_v26  ;;  %v2900_v44 = vadd.f32 %v2757_v34, %v2756_v33  ;;  %v2768_v45 = vmul.f32 %v4787_v35, %v4787_v35  ;;  %v4795_v60 = vld [vmem:[%s11015_s1 + $0x6a0] sm:$0xff]  ;;  %v4798_v2 = vld [vmem:[%s11015_s1 + $0x6b8] sm:$0xff]  ;;  %v256_v14 = vld [vmem:[%s11014_s0 + $0x728] sm:$0xff] }
  0x27   :  { %935 = vmatprep.subr.bf16.mxu0 %v882_v52  ;;  %2888 = vadd.xlane.f32.xlu1 %v2887_v8  ;;  %v2892_v37 = vadd.f32 %v2891_v25, %v2751_v13  ;;  %v886_v49 = vpack.c.bf16 %v240_v30, %v224_v29  ;;  %v2769_v50 = vmul.f32 %v4788_v39, %v4788_v39  ;;  %v4786_v52 = vld [vmem:[%s11015_s1 + $0x658] sm:$0xff]  ;;  %v4791_v7 = vld [vmem:[%s11015_s1 + $0x680] sm:$0xff]  ;;  %v4792_v8 = vld [vmem:[%s11015_s1 + $0x688] sm:$0xff] }
  0x28   :  { %v2770_v51 = vmul.f32 %v4789_v40, %v4789_v40  ;;  %v2764_v53 = vmul.f32 %v4783_v46, %v4783_v46  ;;  %v2907_v56 = vadd.f32 %v2906_v42, %v2763_v27  ;;  %v2901_v57 = vadd.f32 %v2900_v44, %v2758_v38  ;;  %v4794_v13 = vld [vmem:[%s11015_s1 + $0x698] sm:$0xff]  ;;  %v272_v15 = vld [vmem:[%s11014_s0 + $0x7a8] sm:$0xff]  ;;  %v4803_v20 = vld [vmem:[%s11015_s1 + $0x6e0] sm:$0xff] }
  0x29   :  { %2893 = vadd.xlane.f32.xlu0 %v2892_v37  ;;  %v2765_v58 = vmul.f32 %v4784_v47, %v4784_v47  ;;  %v2766_v59 = vmul.f32 %v4785_v48, %v4785_v48  ;;  %v2771_v61 = vmul.f32 %v4790_v41, %v4790_v41  ;;  %v2915_v62 = vadd.f32 %v2769_v50, %v2768_v45  ;;  %v4804_v24 = vld [vmem:[%s11015_s1 + $0x6e8] sm:$0xff]  ;;  %v4805_v25 = vld [vmem:[%s11015_s1 + $0x6f0] sm:$0xff]  ;;  %v4806_v26 = vld [vmem:[%s11015_s1 + $0x6f8] sm:$0xff] }
  0x2a   :  { %v2767_v63 = vmul.f32 %v4786_v52, %v4786_v52  ;;  %v2902_v3 = vadd.f32 %v2901_v57, %v2759_v43  ;;  %v2776_v5 = vmul.f32 %v4795_v60, %v4795_v60  ;;  %v2777_v6 = vmul.f32 %v4796_v0, %v4796_v0  ;;  %v4800_v32 = vld [vmem:[%s11015_s1 + $0x6c8] sm:$0xff]  ;;  %v4801_v33 = vld [vmem:[%s11015_s1 + $0x6d0] sm:$0xff]  ;;  %v4802_v38 = vld [vmem:[%s11015_s1 + $0x6d8] sm:$0xff] }
  0x2b   :  { %2898 = vadd.xlane.f32.xlu1 %v2897_v31  ;;  %v2910_v4 = vadd.f32 %v2765_v58, %v2764_v53  ;;  %v2916_v10 = vadd.f32 %v2915_v62, %v2770_v51  ;;  %v2778_v11 = vmul.f32 %v4797_v1, %v4797_v1  ;;  %v2779_v12 = vmul.f32 %v4798_v2, %v4798_v2  ;;  %v4799_v31 = vld [vmem:[%s11015_s1 + $0x6c0] sm:$0xff]  ;;  %v4813_v50 = vld [vmem:[%s11015_s1 + $0x730] sm:$0xff]  ;;  %v4814_v51 = vld [vmem:[%s11015_s1 + $0x738] sm:$0xff] }
  0x2c   :  { %v2925_v17 = vadd.f32 %v2777_v6, %v2776_v5  ;;  %v2772_v18 = vmul.f32 %v4791_v7, %v4791_v7  ;;  %v2773_v19 = vmul.f32 %v4792_v8, %v4792_v8  ;;  %v885_v21 = vpack.c.bf16 %v6066_v55, %v6061_v54  ;;  %v6127_v39 = vld [vmem:[%s11014_s0 + $0x720] sm:$0xff]  ;;  %v4808_v57 = vld [vmem:[%s11015_s1 + $0x708] sm:$0xff]  ;;  %v4809_v58 = vld [vmem:[%s11015_s1 + $0x710] sm:$0xff] }
  0x2d   :  { %2903 = vadd.xlane.f32.xlu0 %v2902_v3  ;;  %v2911_v16 = vadd.f32 %v2910_v4, %v2766_v59  ;;  %v2917_v22 = vadd.f32 %v2916_v10, %v2771_v61  ;;  %v2774_v23 = vmul.f32 %v4793_v9, %v4793_v9  ;;  %v2775_v29 = vmul.f32 %v4794_v13, %v4794_v13  ;;  %v6132_v40 = vld [vmem:[%s11014_s0 + $0x7a0] sm:$0xff]  ;;  %v288_v59 = vld [vmem:[%s11014_s0 + $0x828] sm:$0xff]  ;;  %v4810_v0 = vld [vmem:[%s11015_s1 + $0x718] sm:$0xff] }
  0x2e   :  { %936 = vmatpush1.bf16.xpose.msra.mxu0 %v881_v36  ;;  %v2926_v28 = vadd.f32 %v2925_v17, %v2778_v11  ;;  %v2920_v30 = vadd.f32 %v2773_v19, %v2772_v18  ;;  %v890_v34 = vpack.c.bf16 %v272_v15, %v256_v14  ;;  %v2784_v35 = vmul.f32 %v4803_v20, %v4803_v20  ;;  %v4811_v45 = vld [vmem:[%s11015_s1 + $0x720] sm:$0xff]  ;;  %v304_v60 = vld [vmem:[%s11014_s0 + $0x8a8] sm:$0xff]  ;;  %v4821_v11 = vld [vmem:[%s11015_s1 + $0x770] sm:$0xff] }
  0x2f   :  { %937 = vmatprep.subr.bf16.mxu0 %v886_v49  ;;  %2908 = vadd.xlane.f32.xlu1 %v2907_v56  ;;  %v2912_v27 = vadd.f32 %v2911_v16, %v2767_v63  ;;  %v2785_v36 = vmul.f32 %v4804_v24, %v4804_v24  ;;  %v2786_v37 = vmul.f32 %v4805_v25, %v4805_v25  ;;  %v4812_v49 = vld [vmem:[%s11015_s1 + $0x728] sm:$0xff]  ;;  %v4807_v56 = vld [vmem:[%s11015_s1 + $0x700] sm:$0xff]  ;;  %v4817_v19 = vld [vmem:[%s11015_s1 + $0x750] sm:$0xff] }
  0x30   :  { %v2927_v41 = vadd.f32 %v2926_v28, %v2779_v12  ;;  %v2921_v42 = vadd.f32 %v2920_v30, %v2774_v23  ;;  %v2780_v43 = vmul.f32 %v4799_v31, %v4799_v31  ;;  %v2781_v44 = vmul.f32 %v4800_v32, %v4800_v32  ;;  %v4819_v5 = vld [vmem:[%s11015_s1 + $0x760] sm:$0xff]  ;;  %v4820_v10 = vld [vmem:[%s11015_s1 + $0x768] sm:$0xff]  ;;  %v4822_v12 = vld [vmem:[%s11015_s1 + $0x778] sm:$0xff] }
  0x31   :  { %2913 = vadd.xlane.f32.xlu0 %v2912_v27  ;;  %v2787_v46 = vmul.f32 %v4806_v26, %v4806_v26  ;;  %v2935_v47 = vadd.f32 %v2785_v36, %v2784_v35  ;;  %v2782_v48 = vmul.f32 %v4801_v33, %v4801_v33  ;;  %v2783_v53 = vmul.f32 %v4802_v38, %v4802_v38  ;;  %v4815_v17 = vld [vmem:[%s11015_s1 + $0x740] sm:$0xff]  ;;  %v4816_v18 = vld [vmem:[%s11015_s1 + $0x748] sm:$0xff]  ;;  %v4818_v24 = vld [vmem:[%s11015_s1 + $0x758] sm:$0xff] }
  0x32   :  { %v2922_v52 = vadd.f32 %v2921_v42, %v2775_v29  ;;  %v2930_v54 = vadd.f32 %v2781_v44, %v2780_v43  ;;  %v2792_v55 = vmul.f32 %v4811_v45, %v4811_v45  ;;  %v2793_v62 = vmul.f32 %v4812_v49, %v4812_v49  ;;  %v4827_v28 = vld [vmem:[%s11015_s1 + $0x7a0] sm:$0xff]  ;;  %v4829_v35 = vld [vmem:[%s11015_s1 + $0x7b0] sm:$0xff]  ;;  %v4830_v36 = vld [vmem:[%s11015_s1 + $0x7b8] sm:$0xff] }
  0x33   :  { %2918 = vadd.xlane.f32.xlu1 %v2917_v22  ;;  %v2936_v61 = vadd.f32 %v2935_v47, %v2786_v37  ;;  %v2794_v63 = vmul.f32 %v4813_v50, %v4813_v50  ;;  %v889_v1 = vpack.c.bf16 %v6132_v40, %v6127_v39  ;;  %v2788_v3 = vmul.f32 %v4807_v56, %v4807_v56  ;;  %v286_v29 = vld [vmem:[%s11014_s0 + $0x820] sm:$0xff]  ;;  %v4825_v42 = vld [vmem:[%s11015_s1 + $0x790] sm:$0xff]  ;;  %v24_v47 = vld [vmem:[%s11014_s0 + $0x8] sm:$0xff] }
  0x34   :  { %v2931_v2 = vadd.f32 %v2930_v54, %v2782_v48  ;;  %v2789_v4 = vmul.f32 %v4808_v57, %v4808_v57  ;;  %v2795_v7 = vmul.f32 %v4814_v51, %v4814_v51  ;;  %v2945_v8 = vadd.f32 %v2793_v62, %v2792_v55  ;;  %v4823_v40 = vld [vmem:[%s11015_s1 + $0x780] sm:$0xff]  ;;  %v40_v48 = vld [vmem:[%s11014_s0 + $0x88] sm:$0xff]  ;;  %v4826_v54 = vld [vmem:[%s11015_s1 + $0x798] sm:$0xff] }
  0x35   :  { %2923 = vadd.xlane.f32.xlu0 %v2922_v52  ;;  %v2937_v6 = vadd.f32 %v2936_v61, %v2787_v46  ;;  %v2790_v9 = vmul.f32 %v4809_v58, %v4809_v58  ;;  %v894_v13 = vpack.c.bf16 %v304_v60, %v288_v59  ;;  %v2791_v15 = vmul.f32 %v4810_v0, %v4810_v0  ;;  %v302_v43 = vld [vmem:[%s11014_s0 + $0x8a0] sm:$0xff]  ;;  %v320_v49 = vld [vmem:[%s11014_s0 + $0x928] sm:$0xff] }
  0x36   :  { %938 = vmatpush1.bf16.xpose.msra.mxu0 %v885_v21  ;;  %v2932_v14 = vadd.f32 %v2931_v2, %v2783_v53  ;;  %v2940_v16 = vadd.f32 %v2789_v4, %v2788_v3  ;;  %v2946_v20 = vadd.f32 %v2945_v8, %v2794_v63  ;;  %v2800_v21 = vmul.f32 %v4819_v5, %v4819_v5  ;;  %v336_v50 = vld [vmem:[%s11014_s0 + $0x9a8] sm:$0xff]  ;;  %v4835_v63 = vld [vmem:[%s11015_s1 + $0x7e0] sm:$0xff] }
  0x37   :  { %939 = vmatprep.subr.bf16.mxu0 %v890_v34  ;;  %2928 = vadd.xlane.f32.xlu1 %v2927_v41  ;;  %v2801_v22 = vmul.f32 %v4820_v10, %v4820_v10  ;;  %v2802_v23 = vmul.f32 %v4821_v11, %v4821_v11  ;;  %v2796_v26 = vmul.f32 %v4815_v17, %v4815_v17  ;;  %v4828_v34 = vld [vmem:[%s11015_s1 + $0x7a8] sm:$0xff]  ;;  %v4834_v17 = vld [vmem:[%s11015_s1 + $0x7d8] sm:$0xff] }
  0x38   :  { %v2941_v25 = vadd.f32 %v2940_v16, %v2790_v9  ;;  %v2797_v27 = vmul.f32 %v4816_v18, %v4816_v18  ;;  %v2947_v30 = vadd.f32 %v2946_v20, %v2795_v7  ;;  %v2803_v31 = vmul.f32 %v4822_v12, %v4822_v12  ;;  %v4824_v41 = vld [vmem:[%s11015_s1 + $0x788] sm:$0xff]  ;;  %v4831_v7 = vld [vmem:[%s11015_s1 + $0x7c0] sm:$0xff]  ;;  %v4833_v12 = vld [vmem:[%s11015_s1 + $0x7d0] sm:$0xff] }
  0x39   :  { %2933 = vadd.xlane.f32.xlu0 %v2932_v14  ;;  %v2955_v32 = vadd.f32 %v2801_v22, %v2800_v21  ;;  %v2798_v33 = vmul.f32 %v4817_v19, %v4817_v19  ;;  %v2799_v38 = vmul.f32 %v4818_v24, %v4818_v24  ;;  %v2808_v45 = vmul.f32 %v4827_v28, %v4827_v28  ;;  %v4836_v0 = vld [vmem:[%s11015_s1 + $0x7e8] sm:$0xff]  ;;  %v334_v14 = vld [vmem:[%s11014_s0 + $0x9a0] sm:$0xff]  ;;  %v1961_v28 = vld [vmem:[%s11015_s1 + $0x30] sm:$0xff] }
  0x3a   :  { %v2942_v37 = vadd.f32 %v2941_v25, %v2791_v15  ;;  %v2950_v39 = vadd.f32 %v2797_v27, %v2796_v26  ;;  %v2809_v46 = vmul.f32 %v4828_v34, %v4828_v34  ;;  %v2810_v52 = vmul.f32 %v4829_v35, %v4829_v35  ;;  %v4832_v8 = vld [vmem:[%s11015_s1 + $0x7c8] sm:$0xff]  ;;  %v1959_v25 = vld [vmem:[%s11015_s1 + $0x20] sm:$0xff] }
  0x3b   :  { %2938 = vadd.xlane.f32.xlu1 %v2937_v6  ;;  %v2956_v44 = vadd.f32 %v2955_v32, %v2802_v23  ;;  %v2811_v53 = vmul.f32 %v4830_v36, %v4830_v36  ;;  %v2804_v55 = vmul.f32 %v4823_v40, %v4823_v40  ;;  %v2805_v58 = vmul.f32 %v4824_v41, %v4824_v41  ;;  %v4838_v6 = vld [vmem:[%s11015_s1 + $0x7f8] sm:$0xff]  ;;  %v352_v19 = vld [vmem:[%s11014_s0 + $0xa28] sm:$0xff]  ;;  %v1955_v34 = vld [vmem:[%s11015_s1] sm:$0xff] }
  0x3c   :  { %v2951_v51 = vadd.f32 %v2950_v39, %v2798_v33  ;;  %v2965_v57 = vadd.f32 %v2809_v46, %v2808_v45  ;;  %v2806_v59 = vmul.f32 %v4825_v42, %v4825_v42  ;;  %v893_v60 = vpack.c.bf16 %v302_v43, %v286_v29  ;;  %v368_v20 = vld [vmem:[%s11014_s0 + $0xaa8] sm:$0xff]  ;;  %v1962_v29 = vld [vmem:[%s11015_s1 + $0x38] sm:$0xff]  ;;  %v1957_v36 = vld [vmem:[%s11015_s1 + $0x10] sm:$0xff] }
  0x3d   :  { %2943 = vadd.xlane.f32.xlu0 %v2942_v37  ;;  %v2957_v56 = vadd.f32 %v2956_v44, %v2803_v31  ;;  %v670_v62 = vpack.c.bf16 %v40_v48, %v24_v47  ;;  %v898_v2 = vpack.c.bf16 %v336_v50, %v320_v49  ;;  %v2807_v4 = vmul.f32 %v4826_v54, %v4826_v54  ;;  %v1960_v27 = vld [vmem:[%s11015_s1 + $0x28] sm:$0xff]  ;;  %v1958_v40 = vld [vmem:[%s11015_s1 + $0x18] sm:$0xff]  ;;  %v1969_v54 = vld [vmem:[%s11015_s1 + $0x70] sm:$0xff] }
  0x3e   :  { %940 = vmatpush1.bf16.xpose.msra.mxu0 %v889_v1  ;;  %v2952_v61 = vadd.f32 %v2951_v51, %v2799_v38  ;;  %v4837_v1 = vld [vmem:[%s11015_s1 + $0x7f0] sm:$0xff]  ;;  %v2966_v3 = vadd.f32 %v2965_v57, %v2810_v52  ;;  %v2960_v5 = vadd.f32 %v2805_v58, %v2804_v55  ;;  %v2816_v9 = vmul.f32 %v4835_v63, %v4835_v63  ;;  %v1956_v35 = vld [vmem:[%s11015_s1 + $0x8] sm:$0xff]  ;;  %v1967_v52 = vld [vmem:[%s11015_s1 + $0x60] sm:$0xff] }
  0x3f   :  { %941 = vmatprep.subr.bf16.mxu0 %v894_v13  ;;  %2948 = vadd.xlane.f32.xlu1 %v2947_v30  ;;  %v2817_v10 = vmul.f32 %v4836_v0, %v4836_v0  ;;  %v2818_v11 = vmul.f32 %v4837_v1, %v4837_v1  ;;  %v318_v13 = vld [vmem:[%s11014_s0 + $0x920] sm:$0xff]  ;;  %v2812_v18 = vmul.f32 %v4831_v7, %v4831_v7  ;;  %v1965_v1 = vld [vmem:[%s11015_s1 + $0x50] sm:$0xff] }
  0x40   :  { %957 = vmatprep.mubr.bf16.mxu0 %v670_v62  ;;  %v2967_v15 = vadd.f32 %v2966_v3, %v2811_v53  ;;  %v2961_v16 = vadd.f32 %v2960_v5, %v2806_v59  ;;  %v2819_v21 = vmul.f32 %v4838_v6, %v4838_v6  ;;  %v2813_v23 = vmul.f32 %v4832_v8, %v4832_v8  ;;  %v1968_v53 = vld [vmem:[%s11015_s1 + $0x68] sm:$0xff]  ;;  %v350_v62 = vld [vmem:[%s11014_s0 + $0xa20] sm:$0xff] }
  0x41   :  { %2953 = vadd.xlane.f32.xlu0 %v2952_v61  ;;  %v2975_v22 = vadd.f32 %v2817_v10, %v2816_v9  ;;  %v2814_v24 = vmul.f32 %v4833_v12, %v4833_v12  ;;  %v2815_v31 = vmul.f32 %v4834_v17, %v4834_v17  ;;  %v2087_v33 = vmul.f32 %v1959_v25, %v1959_v25  ;;  %v1964_v61 = vld [vmem:[%s11015_s1 + $0x48] sm:$0xff] }
  0x42   :  { %v2962_v26 = vadd.f32 %v2961_v16, %v2807_v4  ;;  %v2970_v32 = vadd.f32 %v2813_v23, %v2812_v18  ;;  %v897_v37 = vpack.c.bf16 %v334_v14, %v318_v13  ;;  %v2088_v38 = vmul.f32 %v1960_v27, %v1960_v27  ;;  %v366_v4 = vld [vmem:[%s11014_s0 + $0xaa0] sm:$0xff]  ;;  %v384_v5 = vld [vmem:[%s11014_s0 + $0xb28] sm:$0xff] }
  0x43   :  { %2958 = vadd.xlane.f32.xlu1 %v2957_v56  ;;  %v2976_v30 = vadd.f32 %v2975_v22, %v2818_v11  ;;  %v2089_v39 = vmul.f32 %v1961_v28, %v1961_v28  ;;  %v2083_v41 = vmul.f32 %v1955_v34, %v1955_v34  ;;  %v2084_v44 = vmul.f32 %v1956_v35, %v1956_v35  ;;  %v1970_v56 = vld [vmem:[%s11015_s1 + $0x78] sm:$0xff]  ;;  %v400_v6 = vld [vmem:[%s11014_s0 + $0xba8] sm:$0xff]  ;;  %v1971_v23 = vld [vmem:[%s11015_s1 + $0x80] sm:$0xff] }
  0x44   :  { %v2971_v43 = vadd.f32 %v2970_v32, %v2814_v24  ;;  %v2085_v45 = vmul.f32 %v1957_v36, %v1957_v36  ;;  %v902_v46 = vpack.c.bf16 %v368_v20, %v352_v19  ;;  %v2090_v47 = vmul.f32 %v1962_v29, %v1962_v29  ;;  %v1976_v16 = vld [vmem:[%s11015_s1 + $0xa8] sm:$0xff]  ;;  %v1977_v19 = vld [vmem:[%s11015_s1 + $0xb0] sm:$0xff]  ;;  %v1978_v20 = vld [vmem:[%s11015_s1 + $0xb8] sm:$0xff] }
  0x45   :  { %2963 = vadd.xlane.f32.xlu0 %v2962_v26  ;;  %v2977_v42 = vadd.f32 %v2976_v30, %v2819_v21  ;;  %v2216_v48 = vadd.f32 %v2088_v38, %v2087_v33  ;;  %v2086_v50 = vmul.f32 %v1958_v40, %v1958_v40  ;;  %v2211_v51 = vadd.f32 %v2084_v44, %v2083_v41  ;;  %v1972_v28 = vld [vmem:[%s11015_s1 + $0x88] sm:$0xff]  ;;  %v1973_v29 = vld [vmem:[%s11015_s1 + $0x90] sm:$0xff]  ;;  %v1974_v30 = vld [vmem:[%s11015_s1 + $0x98] sm:$0xff] }
  0x46   :  { %942 = vmatpush1.bf16.xpose.msra.mxu0 %v893_v60  ;;  %v2972_v49 = vadd.f32 %v2971_v43, %v2815_v31  ;;  %v2095_v57 = vmul.f32 %v1967_v52, %v1967_v52  ;;  %v2096_v58 = vmul.f32 %v1968_v53, %v1968_v53  ;;  %v2097_v59 = vmul.f32 %v1969_v54, %v1969_v54  ;;  %v1963_v60 = vld [vmem:[%s11015_s1 + $0x40] sm:$0xff]  ;;  %v416_v38 = vld [vmem:[%s11014_s0 + $0xc28] sm:$0xff]  ;;  %v1981_v54 = vld [vmem:[%s11015_s1 + $0xd0] sm:$0xff] }
  0x47   :  { %943 = vmatprep.subr.bf16.mxu0 %v898_v2  ;;  %2968 = vadd.xlane.f32.xlu1 %v2967_v15  ;;  %v2217_v55 = vadd.f32 %v2216_v48, %v2089_v39  ;;  %v2212_v63 = vadd.f32 %v2211_v51, %v2085_v45  ;;  %v2098_v0 = vmul.f32 %v1970_v56, %v1970_v56  ;;  %v1966_v2 = vld [vmem:[%s11015_s1 + $0x58] sm:$0xff]  ;;  %v1975_v15 = vld [vmem:[%s11015_s1 + $0xa0] sm:$0xff]  ;;  %v432_v39 = vld [vmem:[%s11014_s0 + $0xca8] sm:$0xff] }
  0x48   :  { %v2091_v3 = vmul.f32 %v1963_v60, %v1963_v60  ;;  %v2226_v8 = vadd.f32 %v2096_v58, %v2095_v57  ;;  %v2092_v9 = vmul.f32 %v1964_v61, %v1964_v61  ;;  %v2093_v10 = vmul.f32 %v1965_v1, %v1965_v1  ;;  %v382_v35 = vld [vmem:[%s11014_s0 + $0xb20] sm:$0xff]  ;;  %v1984_v44 = vld [vmem:[%s11015_s1 + $0xe8] sm:$0xff]  ;;  %v1985_v45 = vld [vmem:[%s11015_s1 + $0xf0] sm:$0xff] }
  0x49   :  { %2973 = vadd.xlane.f32.xlu0 %v2972_v49  ;;  %v2218_v7 = vadd.f32 %v2217_v55, %v2090_v47  ;;  %v2213_v11 = vadd.f32 %v2212_v63, %v2086_v50  ;;  %v2094_v13 = vmul.f32 %v1966_v2, %v1966_v2  ;;  %v901_v17 = vpack.c.bf16 %v366_v4, %v350_v62  ;;  %v398_v36 = vld [vmem:[%s11014_s0 + $0xba0] sm:$0xff]  ;;  %v1980_v53 = vld [vmem:[%s11015_s1 + $0xc8] sm:$0xff]  ;;  %v1982_v55 = vld [vmem:[%s11015_s1 + $0xd8] sm:$0xff] }
  0x4a   :  { %v2227_v12 = vadd.f32 %v2226_v8, %v2097_v59  ;;  %v2221_v14 = vadd.f32 %v2092_v9, %v2091_v3  ;;  %v906_v18 = vpack.c.bf16 %v400_v6, %v384_v5  ;;  %v2103_v21 = vmul.f32 %v1975_v15, %v1975_v15  ;;  %v1983_v43 = vld [vmem:[%s11015_s1 + $0xe0] sm:$0xff]  ;;  %v1992_v5 = vld [vmem:[%s11015_s1 + $0x128] sm:$0xff]  ;;  %v1993_v6 = vld [vmem:[%s11015_s1 + $0x130] sm:$0xff] }
  0x4b   :  { %2978 = vadd.xlane.f32.xlu1 %v2977_v42  ;;  %v2104_v22 = vmul.f32 %v1976_v16, %v1976_v16  ;;  %v2105_v26 = vmul.f32 %v1977_v19, %v1977_v19  ;;  %v2106_v27 = vmul.f32 %v1978_v20, %v1978_v20  ;;  %v2099_v32 = vmul.f32 %v1971_v23, %v1971_v23  ;;  %v1979_v52 = vld [vmem:[%s11015_s1 + $0xc0] sm:$0xff]  ;;  %v1994_v8 = vld [vmem:[%s11015_s1 + $0x138] sm:$0xff]  ;;  %v1989_v16 = vld [vmem:[%s11015_s1 + $0x110] sm:$0xff] }
  0x4c   :  { %v2228_v24 = vadd.f32 %v2227_v12, %v2098_v0  ;;  %v2222_v25 = vadd.f32 %v2221_v14, %v2093_v10  ;;  %v2100_v33 = vmul.f32 %v1972_v28, %v1972_v28  ;;  %v2101_v34 = vmul.f32 %v1973_v29, %v1973_v29  ;;  %v414_v2 = vld [vmem:[%s11014_s0 + $0xc20] sm:$0xff]  ;;  %v448_v20 = vld [vmem:[%s11014_s0 + $0xd28] sm:$0xff] }
  0x4d   :  { %2214 = vadd.xlane.f32.xlu0 %v2213_v11  ;;  %v2236_v31 = vadd.f32 %v2104_v22, %v2103_v21  ;;  %v2102_v41 = vmul.f32 %v1974_v30, %v1974_v30  ;;  %v2111_v47 = vmul.f32 %v1983_v43, %v1983_v43  ;;  %v2112_v50 = vmul.f32 %v1984_v44, %v1984_v44  ;;  %v1991_v4 = vld [vmem:[%s11015_s1 + $0x120] sm:$0xff]  ;;  %v464_v21 = vld [vmem:[%s11014_s0 + $0xda8] sm:$0xff]  ;;  %v1997_v43 = vld [vmem:[%s11015_s1 + $0x150] sm:$0xff] }
  0x4e   :  { %944 = vmatpush1.bf16.xpose.msra.mxu0 %v897_v37  ;;  %v2223_v37 = vadd.f32 %v2222_v25, %v2094_v13  ;;  %v2231_v42 = vadd.f32 %v2100_v33, %v2099_v32  ;;  %v2113_v51 = vmul.f32 %v1985_v45, %v1985_v45  ;;  %v2107_v56 = vmul.f32 %v1979_v52, %v1979_v52  ;;  %v1987_v12 = vld [vmem:[%s11015_s1 + $0x100] sm:$0xff]  ;;  %v1988_v13 = vld [vmem:[%s11015_s1 + $0x108] sm:$0xff]  ;;  %v1998_v44 = vld [vmem:[%s11015_s1 + $0x158] sm:$0xff] }
  0x4f   :  { %945 = vmatprep.subr.bf16.mxu0 %v902_v46  ;;  %2219 = vadd.xlane.f32.xlu1 %v2218_v7  ;;  %v2237_v40 = vadd.f32 %v2236_v31, %v2105_v26  ;;  %v1986_v46 = vld [vmem:[%s11015_s1 + $0xf8] sm:$0xff]  ;;  %v2108_v57 = vmul.f32 %v1980_v53, %v1980_v53  ;;  %v2109_v58 = vmul.f32 %v1981_v54, %v1981_v54  ;;  %v430_v14 = vld [vmem:[%s11014_s0 + $0xca0] sm:$0xff]  ;;  %v2000_v31 = vld [vmem:[%s11015_s1 + $0x168] sm:$0xff] }
  0x50   :  { %v2232_v49 = vadd.f32 %v2231_v42, %v2101_v34  ;;  %v905_v59 = vpack.c.bf16 %v398_v36, %v382_v35  ;;  %v2114_v61 = vmul.f32 %v1986_v46, %v1986_v46  ;;  %v2246_v62 = vadd.f32 %v2112_v50, %v2111_v47  ;;  %v1999_v30 = vld [vmem:[%s11015_s1 + $0x160] sm:$0xff]  ;;  %v2001_v34 = vld [vmem:[%s11015_s1 + $0x170] sm:$0xff]  ;;  %v2002_v35 = vld [vmem:[%s11015_s1 + $0x178] sm:$0xff] }
  0x51   :  { %2224 = vadd.xlane.f32.xlu0 %v2223_v37  ;;  %v2238_v48 = vadd.f32 %v2237_v40, %v2106_v27  ;;  %v910_v63 = vpack.c.bf16 %v432_v39, %v416_v38  ;;  %v2110_v0 = vmul.f32 %v1982_v55, %v1982_v55  ;;  %v2241_v1 = vadd.f32 %v2108_v57, %v2107_v56  ;;  %v1995_v38 = vld [vmem:[%s11015_s1 + $0x140] sm:$0xff]  ;;  %v1996_v42 = vld [vmem:[%s11015_s1 + $0x148] sm:$0xff] }
  0x52   :  { %v2233_v60 = vadd.f32 %v2232_v49, %v2102_v41  ;;  %v2247_v3 = vadd.f32 %v2246_v62, %v2113_v51  ;;  %v2119_v9 = vmul.f32 %v1991_v4, %v1991_v4  ;;  %v2120_v10 = vmul.f32 %v1992_v5, %v1992_v5  ;;  %v446_v50 = vld [vmem:[%s11014_s0 + $0xd20] sm:$0xff]  ;;  %v480_v52 = vld [vmem:[%s11014_s0 + $0xe28] sm:$0xff]  ;;  %v2005_v4 = vld [vmem:[%s11015_s1 + $0x190] sm:$0xff] }
  0x53   :  { %2229 = vadd.xlane.f32.xlu1 %v2228_v24  ;;  %v2242_v7 = vadd.f32 %v2241_v1, %v2109_v58  ;;  %v2121_v11 = vmul.f32 %v1993_v6, %v1993_v6  ;;  %v2116_v19 = vmul.f32 %v1988_v13, %v1988_v13  ;;  %v2122_v23 = vmul.f32 %v1994_v8, %v1994_v8  ;;  %v462_v51 = vld [vmem:[%s11014_s0 + $0xda0] sm:$0xff]  ;;  %v496_v53 = vld [vmem:[%s11014_s0 + $0xea8] sm:$0xff]  ;;  %v2006_v5 = vld [vmem:[%s11015_s1 + $0x198] sm:$0xff] }
  0x54   :  { %v2248_v15 = vadd.f32 %v2247_v3, %v2114_v61  ;;  %v2256_v24 = vadd.f32 %v2120_v10, %v2119_v9  ;;  %v2117_v25 = vmul.f32 %v1989_v16, %v1989_v16  ;;  %v909_v28 = vpack.c.bf16 %v430_v14, %v414_v2  ;;  %v2007_v57 = vld [vmem:[%s11015_s1 + $0x1a0] sm:$0xff]  ;;  %v2008_v58 = vld [vmem:[%s11015_s1 + $0x1a8] sm:$0xff] }
  0x55   :  { %2234 = vadd.xlane.f32.xlu0 %v2233_v60  ;;  %v2243_v22 = vadd.f32 %v2242_v7, %v2110_v0  ;;  %v914_v32 = vpack.c.bf16 %v464_v21, %v448_v20  ;;  %v2127_v36 = vmul.f32 %v1999_v30, %v1999_v30  ;;  %v2128_v37 = vmul.f32 %v2000_v31, %v2000_v31  ;;  %v2010_v60 = vld [vmem:[%s11015_s1 + $0x1b8] sm:$0xff]  ;;  %v2003_v2 = vld [vmem:[%s11015_s1 + $0x180] sm:$0xff]  ;;  %v2004_v3 = vld [vmem:[%s11015_s1 + $0x188] sm:$0xff] }
  0x56   :  { %946 = vmatpush1.bf16.xpose.msra.mxu0 %v901_v17  ;;  %v1990_v17 = vld [vmem:[%s11015_s1 + $0x118] sm:$0xff]  ;;  %v2257_v29 = vadd.f32 %v2256_v24, %v2121_v11  ;;  %v2129_v40 = vmul.f32 %v2001_v34, %v2001_v34  ;;  %v2130_v41 = vmul.f32 %v2002_v35, %v2002_v35  ;;  %v2123_v45 = vmul.f32 %v1995_v38, %v1995_v38  ;;  %v478_v16 = vld [vmem:[%s11014_s0 + $0xe20] sm:$0xff]  ;;  %v2017_v20 = vld [vmem:[%s11015_s1 + $0x1f0] sm:$0xff] }
  0x57   :  { %947 = vmatprep.subr.bf16.mxu0 %v906_v18  ;;  %2239 = vadd.xlane.f32.xlu1 %v2238_v48  ;;  %v2115_v18 = vmul.f32 %v1987_v12, %v1987_v12  ;;  %v2118_v26 = vmul.f32 %v1990_v17, %v1990_v17  ;;  %v2266_v47 = vadd.f32 %v2128_v37, %v2127_v36  ;;  %v2013_v30 = vld [vmem:[%s11015_s1 + $0x1d0] sm:$0xff]  ;;  %v2014_v31 = vld [vmem:[%s11015_s1 + $0x1d8] sm:$0xff]  ;;  %v512_v34 = vld [vmem:[%s11014_s0 + $0xf28] sm:$0xff] }
  0x58   :  { %v2258_v39 = vadd.f32 %v2257_v29, %v2122_v23  ;;  %v2124_v48 = vmul.f32 %v1996_v42, %v1996_v42  ;;  %v2125_v49 = vmul.f32 %v1997_v43, %v1997_v43  ;;  %v2126_v55 = vmul.f32 %v1998_v44, %v1998_v44  ;;  %v528_v35 = vld [vmem:[%s11014_s0 + $0xfa8] sm:$0xff]  ;;  %v2023_v44 = vld [vmem:[%s11015_s1 + $0x220] sm:$0xff] }
  0x59   :  { %v2251_v27 = vadd.f32 %v2116_v19, %v2115_v18  ;;  %2244 = vadd.xlane.f32.xlu0 %v2243_v22  ;;  %v2267_v54 = vadd.f32 %v2266_v47, %v2129_v40  ;;  %v2135_v61 = vmul.f32 %v2007_v57, %v2007_v57  ;;  %v2136_v0 = vmul.f32 %v2008_v58, %v2008_v58  ;;  %v2015_v18 = vld [vmem:[%s11015_s1 + $0x1e0] sm:$0xff]  ;;  %v2016_v19 = vld [vmem:[%s11015_s1 + $0x1e8] sm:$0xff]  ;;  %v2018_v22 = vld [vmem:[%s11015_s1 + $0x1f8] sm:$0xff] }
  0x5a   :  { %v2261_v56 = vadd.f32 %v2124_v48, %v2123_v45  ;;  %v2131_v6 = vmul.f32 %v2003_v2, %v2003_v2  ;;  %v2132_v7 = vmul.f32 %v2004_v3, %v2004_v3  ;;  %v2133_v8 = vmul.f32 %v2005_v4, %v2005_v4  ;;  %v2024_v45 = vld [vmem:[%s11015_s1 + $0x228] sm:$0xff]  ;;  %v2025_v48 = vld [vmem:[%s11015_s1 + $0x230] sm:$0xff]  ;;  %v2022_v58 = vld [vmem:[%s11015_s1 + $0x218] sm:$0xff] }
  0x5b   :  { %2249 = vadd.xlane.f32.xlu1 %v2248_v15  ;;  %v2252_v33 = vadd.f32 %v2251_v27, %v2117_v25  ;;  %v2268_v62 = vadd.f32 %v2267_v54, %v2130_v41  ;;  %v913_v9 = vpack.c.bf16 %v462_v51, %v446_v50  ;;  %v2138_v11 = vmul.f32 %v2010_v60, %v2010_v60  ;;  %v2012_v27 = vld [vmem:[%s11015_s1 + $0x1c8] sm:$0xff]  ;;  %v2021_v57 = vld [vmem:[%s11015_s1 + $0x210] sm:$0xff]  ;;  %v36_v2 = vld [vmem:[%s11014_s0 + $0x38] sm:$0xff] }
  0x5c   :  { %v2276_v12 = vadd.f32 %v2136_v0, %v2135_v61  ;;  %v918_v13 = vpack.c.bf16 %v496_v53, %v480_v52  ;;  %v2134_v14 = vmul.f32 %v2006_v5, %v2006_v5  ;;  %v2271_v15 = vadd.f32 %v2132_v7, %v2131_v6  ;;  %v2019_v52 = vld [vmem:[%s11015_s1 + $0x200] sm:$0xff]  ;;  %v52_v3 = vld [vmem:[%s11014_s0 + $0xb8] sm:$0xff] }
  0x5d   :  { %v2253_v46 = vadd.f32 %v2252_v33, %v2118_v26  ;;  %v2143_v23 = vmul.f32 %v2015_v18, %v2015_v18  ;;  %v2144_v24 = vmul.f32 %v2016_v19, %v2016_v19  ;;  %v2145_v25 = vmul.f32 %v2017_v20, %v2017_v20  ;;  %v2011_v26 = vld [vmem:[%s11015_s1 + $0x1c0] sm:$0xff]  ;;  %v2029_v18 = vld [vmem:[%s11015_s1 + $0x250] sm:$0xff]  ;;  %v2030_v19 = vld [vmem:[%s11015_s1 + $0x258] sm:$0xff] }
  0x5e   :  { %948 = vmatpush1.bf16.xpose.msra.mxu0 %v905_v59  ;;  %v2009_v59 = vld [vmem:[%s11015_s1 + $0x1b0] sm:$0xff]  ;;  %v2272_v21 = vadd.f32 %v2271_v15, %v2133_v8  ;;  %v2140_v33 = vmul.f32 %v2012_v27, %v2012_v27  ;;  %v2146_v37 = vmul.f32 %v2018_v22, %v2018_v22  ;;  %v2142_v40 = vmul.f32 %v2014_v31, %v2014_v31  ;;  %v510_v0 = vld [vmem:[%s11014_s0 + $0xf20] sm:$0xff]  ;;  %v2032_v8 = vld [vmem:[%s11015_s1 + $0x268] sm:$0xff] }
  0x5f   :  { %949 = vmatprep.subr.bf16.mxu0 %v910_v63  ;;  %2259 = vadd.xlane.f32.xlu1 %v2258_v39  ;;  %v2262_v63 = vadd.f32 %v2261_v56, %v2125_v49  ;;  %v2137_v1 = vmul.f32 %v2009_v59, %v2009_v59  ;;  %v2286_v38 = vadd.f32 %v2144_v24, %v2143_v23  ;;  %v2026_v49 = vld [vmem:[%s11015_s1 + $0x238] sm:$0xff]  ;;  %v2020_v56 = vld [vmem:[%s11015_s1 + $0x208] sm:$0xff]  ;;  %v2031_v7 = vld [vmem:[%s11015_s1 + $0x260] sm:$0xff] }
  0x60   :  { %2254 = vadd.xlane.f32.xlu0 %v2253_v46  ;;  %v2273_v36 = vadd.f32 %v2272_v21, %v2134_v14  ;;  %v2141_v39 = vmul.f32 %v2013_v30, %v2013_v30  ;;  %v922_v46 = vpack.c.bf16 %v528_v35, %v512_v34  ;;  %v2151_v50 = vmul.f32 %v2023_v44, %v2023_v44  ;;  %v22_v30 = vld [vmem:[%s11014_s0] sm:$0xff]  ;;  %v6599_v34 = vld [vmem:[%s11014_s0 + $0x108] sm:$0xff] }
  0x61   :  { %v2263_v10 = vadd.f32 %v2262_v63, %v2126_v55  ;;  %v2277_v17 = vadd.f32 %v2276_v12, %v2137_v1  ;;  %v2287_v43 = vadd.f32 %v2286_v38, %v2145_v25  ;;  %v2152_v51 = vmul.f32 %v2024_v45, %v2024_v45  ;;  %v526_v1 = vld [vmem:[%s11014_s0 + $0xfa0] sm:$0xff]  ;;  %v2041_v38 = vld [vmem:[%s11015_s1 + $0x2b0] sm:$0xff]  ;;  %v2036_v45 = vld [vmem:[%s11015_s1 + $0x288] sm:$0xff] }
  0x62   :  { %v2153_v54 = vmul.f32 %v2025_v48, %v2025_v48  ;;  %v2154_v55 = vmul.f32 %v2026_v49, %v2026_v49  ;;  %v2147_v59 = vmul.f32 %v2019_v52, %v2019_v52  ;;  %v2149_v63 = vmul.f32 %v2021_v57, %v2021_v57  ;;  %v38_v31 = vld [vmem:[%s11014_s0 + $0x80] sm:$0xff]  ;;  %v2037_v48 = vld [vmem:[%s11015_s1 + $0x290] sm:$0xff]  ;;  %v2038_v49 = vld [vmem:[%s11015_s1 + $0x298] sm:$0xff] }
  0x63   :  { %2269 = vadd.xlane.f32.xlu1 %v2268_v62  ;;  %v2278_v29 = vadd.f32 %v2277_v17, %v2138_v11  ;;  %v2288_v53 = vadd.f32 %v2287_v43, %v2146_v37  ;;  %v2296_v61 = vadd.f32 %v2152_v51, %v2151_v50  ;;  %v2148_v62 = vmul.f32 %v2020_v56, %v2020_v56  ;;  %v2028_v17 = vld [vmem:[%s11015_s1 + $0x248] sm:$0xff]  ;;  %v2035_v44 = vld [vmem:[%s11015_s1 + $0x280] sm:$0xff]  ;;  %v68_v52 = vld [vmem:[%s11014_s0 + $0x138] sm:$0xff] }
  0x64   :  { %2264 = vadd.xlane.f32.xlu0 %v2263_v10  ;;  %v2150_v5 = vmul.f32 %v2022_v58, %v2022_v58  ;;  %v2034_v10 = vld [vmem:[%s11015_s1 + $0x278] sm:$0xff]  ;;  %v2159_v11 = vmul.f32 %v2031_v7, %v2031_v7  ;;  %v2160_v14 = vmul.f32 %v2032_v8, %v2032_v8  ;;  %v2156_v21 = vmul.f32 %v2028_v17, %v2028_v17  ;;  %v2040_v37 = vld [vmem:[%s11015_s1 + $0x2a8] sm:$0xff]  ;;  %v2043_v8 = vld [vmem:[%s11015_s1 + $0x2c0] sm:$0xff] }
  0x65   :  { %v2297_v4 = vadd.f32 %v2296_v61, %v2153_v54  ;;  %v2291_v6 = vadd.f32 %v2148_v62, %v2147_v59  ;;  %v2157_v22 = vmul.f32 %v2029_v18, %v2029_v18  ;;  %v921_v23 = vpack.c.bf16 %v526_v1, %v510_v0  ;;  %v2047_v0 = vld [vmem:[%s11015_s1 + $0x2e0] sm:$0xff]  ;;  %v2048_v1 = vld [vmem:[%s11015_s1 + $0x2e8] sm:$0xff]  ;;  %v66_v18 = vld [vmem:[%s11014_s0 + $0x130] sm:$0xff] }
  0x66   :  { %950 = vmatpush1.bf16.xpose.msra.mxu0 %v909_v28  ;;  %v494_v28 = vld [vmem:[%s11014_s0 + $0xea0] sm:$0xff]  ;;  %v2162_v25 = vmul.f32 %v2034_v10, %v2034_v10  ;;  %v864_v27 = vpack.c.bf16 %v52_v3, %v36_v2  ;;  %v2169_v43 = vmul.f32 %v2041_v38, %v2041_v38  ;;  %v2163_v50 = vmul.f32 %v2035_v44, %v2035_v44 }
  0x67   :  { %951 = vmatprep.subr.bf16.mxu0 %v914_v32  ;;  %v2139_v32 = vmul.f32 %v2011_v26, %v2011_v26  ;;  %2279 = vadd.xlane.f32.xlu1 %v2278_v29  ;;  %v917_v42 = vpack.c.bf16 %v494_v28, %v478_v16  ;;  %v2298_v12 = vadd.f32 %v2297_v4, %v2154_v55  ;;  %v2027_v16 = vld [vmem:[%s11015_s1 + $0x240] sm:$0xff]  ;;  %v2049_v4 = vld [vmem:[%s11015_s1 + $0x2f0] sm:$0xff] }
  0x68   :  { %2274 = vadd.xlane.f32.xlu0 %v2273_v36  ;;  %v2155_v20 = vmul.f32 %v2027_v16, %v2027_v16  ;;  %v2306_v26 = vadd.f32 %v2160_v14, %v2159_v11  ;;  %v2158_v28 = vmul.f32 %v2030_v19, %v2030_v19  ;;  %v2039_v36 = vld [vmem:[%s11015_s1 + $0x2a0] sm:$0xff]  ;;  %v2164_v51 = vmul.f32 %v2036_v45, %v2036_v45  ;;  %v2046_v14 = vld [vmem:[%s11015_s1 + $0x2d8] sm:$0xff] }
  0x69   :  { %v2281_v41 = vadd.f32 %v2140_v33, %v2139_v32  ;;  %v6589_v32 = vld [vmem:[%s11014_s0 + $0x30] sm:$0xff]  ;;  %v2165_v57 = vmul.f32 %v2037_v48, %v2037_v48  ;;  %v2166_v58 = vmul.f32 %v2038_v49, %v2038_v49  ;;  %v2176_v7 = vmul.f32 %v2048_v1, %v2048_v1  ;;  %v54_v16 = vld [vmem:[%s11014_s0 + $0x100] sm:$0xff]  ;;  %v2054_v45 = vld [vmem:[%s11015_s1 + $0x318] sm:$0xff] }
  0x6a   :  { %v2301_v29 = vadd.f32 %v2156_v21, %v2155_v20  ;;  %v6594_v33 = vld [vmem:[%s11014_s0 + $0xb0] sm:$0xff]  ;;  %v2311_v59 = vadd.f32 %v2164_v51, %v2163_v50  ;;  %v2177_v10 = vmul.f32 %v2049_v4, %v2049_v4  ;;  %v70_v17 = vld [vmem:[%s11014_s0 + $0x180] sm:$0xff]  ;;  %v2066_v1 = vld [vmem:[%s11015_s1 + $0x378] sm:$0xff] }
  0x6b   :  { %v2282_v47 = vadd.f32 %v2281_v41, %v2141_v39  ;;  %2289 = vadd.xlane.f32.xlu1 %v2288_v53  ;;  %v2167_v41 = vmul.f32 %v2039_v36, %v2039_v36  ;;  %v84_v53 = vld [vmem:[%s11014_s0 + $0x1b8] sm:$0xff]  ;;  %v863_v61 = vpack.c.bf16 %v6594_v33, %v6589_v32  ;;  %v673_v32 = vpack.c.bf16 %v70_v17, %v54_v16  ;;  %v2056_v33 = vld [vmem:[%s11015_s1 + $0x328] sm:$0xff] }
  0x6c   :  { %v2302_v39 = vadd.f32 %v2301_v29, %v2157_v22  ;;  %v868_v2 = vpack.c.bf16 %v84_v53, %v68_v52  ;;  %v2312_v3 = vadd.f32 %v2311_v59, %v2165_v57  ;;  %v2174_v29 = vmul.f32 %v2046_v14, %v2046_v14  ;;  %v6712_v53 = vld [vmem:[%s11014_s0 + $0x200] sm:$0xff]  ;;  %v6727_v59 = vld [vmem:[%s11014_s0 + $0x2b0] sm:$0xff]  ;;  %v132_v14 = vld [vmem:[%s11014_s0 + $0x338] sm:$0xff] }
  0x6d   :  { %v2283_v60 = vadd.f32 %v2282_v47, %v2142_v40  ;;  %v2042_v40 = vld [vmem:[%s11015_s1 + $0x2b8] sm:$0xff] }
  0x6e   :  { %952 = vmatpush1.bf16.xpose.msra.mxu0 %v913_v9  ;;  %v2033_v9 = vld [vmem:[%s11015_s1 + $0x270] sm:$0xff]  ;;  %v2303_v54 = vadd.f32 %v2302_v39, %v2158_v28  ;;  %v2170_v55 = vmul.f32 %v2042_v40, %v2042_v40  ;;  %v2313_v19 = vadd.f32 %v2312_v3, %v2166_v58  ;;  %v2184_v39 = vmul.f32 %v2056_v33, %v2056_v33  ;;  %v2067_v33 = vld [vmem:[%s11015_s1 + $0x380] sm:$0xff] }
  0x6f   :  { %953 = vmatprep.subr.bf16.mxu0 %v918_v13  ;;  %2284 = vadd.xlane.f32.xlu0 %v2283_v60  ;;  %v2292_v13 = vadd.f32 %v2291_v6, %v2149_v63  ;;  %v2161_v15 = vmul.f32 %v2033_v9, %v2033_v9  ;;  %v669_v60 = vpack.c.bf16 %v38_v31, %v22_v30  ;;  %v2055_v31 = vld [vmem:[%s11015_s1 + $0x320] sm:$0xff]  ;;  %v6722_v58 = vld [vmem:[%s11014_s0 + $0x230] sm:$0xff] }
  0x70   :  { %2299 = vadd.xlane.f32.xlu1 %v2298_v12  ;;  %v2175_v6 = vmul.f32 %v2047_v0, %v2047_v0  ;;  %v2044_v12 = vld [vmem:[%s11015_s1 + $0x2c8] sm:$0xff]  ;;  %v2183_v36 = vmul.f32 %v2055_v31, %v2055_v31 }
  0x71   :  { %v2293_v24 = vadd.f32 %v2292_v13, %v2150_v5  ;;  %v2307_v35 = vadd.f32 %v2306_v26, %v2161_v15  ;;  %v2050_v5 = vld [vmem:[%s11015_s1 + $0x2f8] sm:$0xff]  ;;  %v2045_v13 = vld [vmem:[%s11015_s1 + $0x2d0] sm:$0xff]  ;;  %v2171_v15 = vmul.f32 %v2043_v8, %v2043_v8  ;;  %v2172_v21 = vmul.f32 %v2044_v12, %v2044_v12 }
  0x72   :  { %v2178_v11 = vmul.f32 %v2050_v5, %v2050_v5  ;;  %v2326_v20 = vadd.f32 %v2176_v7, %v2175_v6  ;;  %v2173_v22 = vmul.f32 %v2045_v13, %v2045_v13  ;;  %v100_v26 = vld [vmem:[%s11014_s0 + $0x238] sm:$0xff]  ;;  %v2336_v52 = vadd.f32 %v2184_v39, %v2183_v36  ;;  %v2059_v5 = vld [vmem:[%s11015_s1 + $0x340] sm:$0xff]  ;;  %v2060_v6 = vld [vmem:[%s11015_s1 + $0x348] sm:$0xff] }
  0x73   :  { %2294 = vadd.xlane.f32.xlu0 %v2293_v24  ;;  %v2308_v47 = vadd.f32 %v2307_v35, %v2162_v25  ;;  %v88_v24 = vld [vmem:[%s11014_s0 + $0x208] sm:$0xff]  ;;  %v2321_v30 = vadd.f32 %v2172_v21, %v2171_v15  ;;  %v2058_v35 = vld [vmem:[%s11015_s1 + $0x338] sm:$0xff]  ;;  %v2187_v12 = vmul.f32 %v2059_v5, %v2059_v5  ;;  %v871_v21 = vpack.c.bf16 %v6727_v59, %v6722_v58  ;;  %v2069_v39 = vld [vmem:[%s11015_s1 + $0x390] sm:$0xff] }
  0x74   :  { %v104_v25 = vld [vmem:[%s11014_s0 + $0x288] sm:$0xff]  ;;  %v2327_v28 = vadd.f32 %v2326_v20, %v2177_v10  ;;  %v2186_v51 = vmul.f32 %v2058_v35, %v2058_v35  ;;  %v2061_v10 = vld [vmem:[%s11015_s1 + $0x350] sm:$0xff]  ;;  %v148_v15 = vld [vmem:[%s11014_s0 + $0x3b8] sm:$0xff] }
  0x75   :  { %2309 = vadd.xlane.f32.xlu1 %v2308_v47  ;;  %v2322_v38 = vadd.f32 %v2321_v30, %v2173_v22  ;;  %v678_v49 = vpack.c.bf16 %v104_v25, %v88_v24  ;;  %v120_v7 = vld [vmem:[%s11014_s0 + $0x308] sm:$0xff]  ;;  %v2071_v25 = vld [vmem:[%s11015_s1 + $0x3a0] sm:$0xff]  ;;  %v2074_v30 = vld [vmem:[%s11015_s1 + $0x3b8] sm:$0xff] }
  0x76   :  { %954 = vmatpush1.bf16.xpose.msra.mxu0 %v917_v42  ;;  %v2168_v42 = vmul.f32 %v2040_v37, %v2040_v37  ;;  %v2328_v37 = vadd.f32 %v2327_v28, %v2178_v11  ;;  %v2062_v11 = vld [vmem:[%s11015_s1 + $0x358] sm:$0xff]  ;;  %v136_v13 = vld [vmem:[%s11014_s0 + $0x388] sm:$0xff]  ;;  %v876_v28 = vpack.c.bf16 %v148_v15, %v132_v14  ;;  %v2199_v31 = vmul.f32 %v2071_v25, %v2071_v25  ;;  %v2081_v58 = vld [vmem:[%s11015_s1 + $0x3f0] sm:$0xff] }
  0x77   :  { %955 = vmatprep.subr.bf16.mxu0 %v922_v46  ;;  %v72_v46 = vld [vmem:[%s11014_s0 + $0x188] sm:$0xff]  ;;  %2304 = vadd.xlane.f32.xlu0 %v2303_v54  ;;  %v2323_v50 = vadd.f32 %v2322_v38, %v2174_v29  ;;  %v6717_v54 = vld [vmem:[%s11014_s0 + $0x280] sm:$0xff]  ;;  %v2073_v29 = vld [vmem:[%s11015_s1 + $0x3b0] sm:$0xff] }
  0x78   :  { %v2316_v56 = vadd.f32 %v2168_v42, %v2167_v41  ;;  %v674_v62 = vpack.c.bf16 %v72_v46, %v6599_v34  ;;  %v2057_v34 = vld [vmem:[%s11015_s1 + $0x330] sm:$0xff]  ;;  %v2051_v41 = vld [vmem:[%s11015_s1 + $0x300] sm:$0xff]  ;;  %v2052_v42 = vld [vmem:[%s11015_s1 + $0x308] sm:$0xff]  ;;  %v677_v20 = vpack.c.bf16 %v6717_v54, %v6712_v53  ;;  %v2201_v36 = vmul.f32 %v2073_v29, %v2073_v29 }
  0x79   :  { %v2185_v40 = vmul.f32 %v2057_v34, %v2057_v34  ;;  %v2179_v46 = vmul.f32 %v2051_v41, %v2051_v41  ;;  %v2180_v47 = vmul.f32 %v2052_v42, %v2052_v42  ;;  %v2068_v38 = vld [vmem:[%s11015_s1 + $0x388] sm:$0xff]  ;;  %v118_v41 = vld [vmem:[%s11014_s0 + $0x300] sm:$0xff] }
  0x7a   :  { %v2317_v63 = vadd.f32 %v2316_v56, %v2169_v43  ;;  %v2053_v43 = vld [vmem:[%s11015_s1 + $0x310] sm:$0xff]  ;;  %v2182_v56 = vmul.f32 %v2054_v45, %v2054_v45  ;;  %v134_v42 = vld [vmem:[%s11014_s0 + $0x380] sm:$0xff]  ;;  %v2196_v45 = vmul.f32 %v2068_v38, %v2068_v38 }
  0x7b   :  { %2314 = vadd.xlane.f32.xlu0 %v2313_v19  ;;  %v2181_v48 = vmul.f32 %v2053_v43, %v2053_v43  ;;  %v2331_v57 = vadd.f32 %v2180_v47, %v2179_v46  ;;  %v2189_v19 = vmul.f32 %v2061_v10, %v2061_v10  ;;  %v2197_v46 = vmul.f32 %v2069_v39, %v2069_v39  ;;  %v130_v47 = vld [vmem:[%s11014_s0 + $0x330] sm:$0xff] }
  0x7c   :  { %v2318_v9 = vadd.f32 %v2317_v63, %v2170_v55  ;;  %v2065_v63 = vld [vmem:[%s11015_s1 + $0x370] sm:$0xff]  ;;  %v681_v59 = vpack.c.bf16 %v134_v42, %v118_v41 }
  0x7d   :  { %v2332_v0 = vadd.f32 %v2331_v57, %v2181_v48  ;;  %v2193_v4 = vmul.f32 %v2065_v63, %v2065_v63  ;;  %v146_v48 = vld [vmem:[%s11014_s0 + $0x3b0] sm:$0xff]  ;;  %v2080_v57 = vld [vmem:[%s11015_s1 + $0x3e8] sm:$0xff]  ;;  %v2075_v63 = vld [vmem:[%s11015_s1 + $0x3c0] sm:$0xff] }
  0x7e   :  { %956 = vmatpush1.bf16.xpose.msra.mxu0 %v921_v23  ;;  %v82_v23 = vld [vmem:[%s11014_s0 + $0x1b0] sm:$0xff]  ;;  %2319 = vadd.xlane.f32.xlu1 %v2318_v9  ;;  %v2194_v9 = vmul.f32 %v2066_v1, %v2066_v1  ;;  %v180_v1 = vld [vmem:[%s11014_s0 + $0x4b8] sm:$0xff]  ;;  %v2203_v10 = vmul.f32 %v2075_v63, %v2075_v63  ;;  %v875_v14 = vpack.c.bf16 %v146_v48, %v130_v47 }
  0x7f   :  { %1118 = vmatprep.subr.bf16.mxu0 %v864_v27  ;;  %v116_v27 = vld [vmem:[%s11014_s0 + $0x2b8] sm:$0xff]  ;;  %v867_v44 = vpack.c.bf16 %v82_v23, %v66_v18  ;;  %2324 = vadd.xlane.f32.xlu0 %v2323_v50  ;;  %v2333_v16 = vadd.f32 %v2332_v0, %v2182_v56  ;;  %v2188_v18 = vmul.f32 %v2060_v6, %v2060_v6  ;;  %v168_v50 = vld [vmem:[%s11014_s0 + $0x488] sm:$0xff]  ;;  %v2079_v56 = vld [vmem:[%s11015_s1 + $0x3e0] sm:$0xff] }
  0x80   :  { %v872_v55 = vpack.c.bf16 %v116_v27, %v100_v26  ;;  %v2190_v23 = vmul.f32 %v2062_v11, %v2062_v11  ;;  %v2072_v26 = vld [vmem:[%s11015_s1 + $0x3a8] sm:$0xff]  ;;  %v682_v27 = vpack.c.bf16 %v136_v13, %v120_v7  ;;  %v2077_v6 = vld [vmem:[%s11015_s1 + $0x3d0] sm:$0xff]  ;;  %v2078_v7 = vld [vmem:[%s11015_s1 + $0x3d8] sm:$0xff] }
  0x81   :  { %v2341_v24 = vadd.f32 %v2188_v18, %v2187_v12  ;;  %v2076_v0 = vld [vmem:[%s11015_s1 + $0x3c8] sm:$0xff]  ;;  %v2205_v12 = vmul.f32 %v2077_v6, %v2077_v6 }
  0x82   :  { %2329 = vadd.xlane.f32.xlu1 %v2328_v37  ;;  %v2202_v37 = vmul.f32 %v2074_v30, %v2074_v30  ;;  %v2204_v11 = vmul.f32 %v2076_v0, %v2076_v0 }
  0x83   :  { %2334 = vadd.xlane.f32.xlu0 %v2333_v16  ;;  %v2342_v35 = vadd.f32 %v2341_v24, %v2189_v19  ;;  %v2206_v19 = vmul.f32 %v2078_v7, %v2078_v7 }
  0x85   :  { %958 = vmatmul.mubr.bf16.vlgmr.msra.gmra.mrb[0].mxu0 %v669_v60  ;;  %v2337_v60 = vadd.f32 %v2336_v52, %v2185_v40  ;;  %v2070_v40 = vld [vmem:[%s11015_s1 + $0x398] sm:$0xff] }
  0x86   :  { %1119 = vmatpush1.bf16.xpose.msra.mxu0 %v863_v61  ;;  %967 = vmatprep.mubr.bf16.mxu0 %v674_v62  ;;  %v2063_v61 = vld [vmem:[%s11015_s1 + $0x360] sm:$0xff]  ;;  %v2064_v62 = vld [vmem:[%s11015_s1 + $0x368] sm:$0xff]  ;;  %v164_v52 = vld [vmem:[%s11014_s0 + $0x438] sm:$0xff]  ;;  %v2198_v54 = vmul.f32 %v2070_v40, %v2070_v40 }
  0x87   :  { %1120 = vmatprep.subr.bf16.mxu0 %v868_v2  ;;  %v2191_v2 = vmul.f32 %v2063_v61, %v2063_v61  ;;  %v2192_v3 = vmul.f32 %v2064_v62, %v2064_v62  ;;  %v2338_v8 = vadd.f32 %v2337_v60, %v2186_v51  ;;  %v2343_v51 = vadd.f32 %v2342_v35, %v2190_v23  ;;  %v2082_v60 = vld [vmem:[%s11015_s1 + $0x3f8] sm:$0xff] }
  0x88   :  { %v2207_v61 = vmul.f32 %v2079_v56, %v2079_v56  ;;  %v2208_v62 = vmul.f32 %v2080_v57, %v2080_v57  ;;  %v2210_v5 = vmul.f32 %v2082_v60, %v2082_v60 }
  0x89   :  { %v2346_v17 = vadd.f32 %v2192_v3, %v2191_v2  ;;  %2339 = vadd.xlane.f32.xlu1 %v2338_v8  ;;  %2344 = vadd.xlane.f32.xlu0 %v2343_v51 }
  0x8b   :  { %v2347_v22 = vadd.f32 %v2346_v17, %v2193_v4  ;;  %v2209_v4 = vmul.f32 %v2081_v58, %v2081_v58  ;;  %v880_v17 = vpack.c.bf16 %v180_v1, %v164_v52 }
  0x8d   :  { %968 = vmatmul.mubr.bf16.gmra.mrb[4].mxu0 %v673_v32  ;;  %v2200_v32 = vmul.f32 %v2072_v26, %v2072_v26  ;;  %v2348_v34 = vadd.f32 %v2347_v22, %v2194_v9  ;;  %v2366_v9 = vadd.f32 %v2208_v62, %v2207_v61 }
  0x8e   :  { %1121 = vmatpush1.bf16.xpose.msra.mxu0 %v867_v44  ;;  %977 = vmatprep.mubr.bf16.mxu0 %v678_v49  ;;  %v2195_v44 = vmul.f32 %v2067_v33, %v2067_v33  ;;  %v152_v49 = vld [vmem:[%s11014_s0 + $0x408] sm:$0xff] }
  0x8f   :  { %1122 = vmatprep.subr.bf16.mxu0 %v872_v55  ;;  %v2356_v43 = vadd.f32 %v2200_v32, %v2199_v31  ;;  %2349 = vadd.xlane.f32.xlu1 %v2348_v34  ;;  %v686_v15 = vpack.c.bf16 %v168_v50, %v152_v49  ;;  %v2367_v18 = vadd.f32 %v2366_v9, %v2209_v4 }
  0x90   :  { %v2351_v55 = vadd.f32 %v2196_v45, %v2195_v44 }
  0x91   :  { %v2357_v53 = vadd.f32 %v2356_v43, %v2201_v36 }
  0x92   :  { %v2352_v3 = vadd.f32 %v2351_v55, %v2197_v46 }
  0x93   :  { %v2358_v2 = vadd.f32 %v2357_v53, %v2202_v37 }
  0x94   :  { %v2353_v16 = vadd.f32 %v2352_v3, %v2198_v54 }
  0x95   :  { %978 = vmatmul.mubr.bf16.gmra.mrb[8].mxu0 %v677_v20  ;;  %2359 = vadd.xlane.f32.xlu1 %v2358_v2  ;;  %v2361_v20 = vadd.f32 %v2204_v11, %v2203_v10 }
  0x96   :  { %1123 = vmatpush1.bf16.xpose.msra.mxu0 %v871_v21  ;;  %987 = vmatprep.mubr.bf16.mxu0 %v682_v27 }
  0x97   :  { %1124 = vmatprep.subr.bf16.mxu0 %v876_v28  ;;  %2354 = vadd.xlane.f32.xlu0 %v2353_v16 }
  0x99   :  { %v2824_v8 = vpop.xlane.xlu0 %2823 }
  0x9a   :  { %v2980_v13 = vmax.f32 %v2824_v8, 1e-24 }
  0x9c   :  { %4971 = vrsqrt.f32 %v2980_v13  ;;  %v2834_v21 = vpop.xlane.xlu1 %2833 }
  0x9d   :  { %7 = vsyncpa [#allocation4], 0  ;;  %v2982_v22 = vmax.f32 %v2834_v21, 1e-24  ;;  %v2829_v23 = vpop.xlane.xlu0 %2828  ;;  %988 = vmatmul.mubr.bf16.gmra.mrb[12].mxu0 %v681_v59  ;;  %v2368_v24 = vadd.f32 %v2367_v18, %v2210_v5  ;;  %v2362_v25 = vadd.f32 %v2361_v20, %v2205_v12  ;;  %v150_v27 = vld [vmem:[%s11014_s0 + $0x400] sm:$0xff]  ;;  %v162_v29 = vld [vmem:[%s11014_s0 + $0x430] sm:$0xff] }
  0x9e   :  { %v2981_v26 = vmax.f32 %v2829_v23, 1e-24  ;;  %1125 = vmatpush1.bf16.xpose.msra.mxu0 %v875_v14  ;;  %997 = vmatprep.mubr.bf16.mxu0 %v686_v15  ;;  %v166_v28 = vld [vmem:[%s11014_s0 + $0x480] sm:$0xff]  ;;  %v178_v30 = vld [vmem:[%s11014_s0 + $0x4b0] sm:$0xff]  ;;  %v184_v31 = vld [vmem:[%s11014_s0 + $0x508] sm:$0xff] }
  0x9f   :  { %4973 = vrsqrt.f32 %v2982_v22  ;;  %1126 = vmatprep.subr.bf16.mxu0 %v880_v17  ;;  %v200_v32 = vld [vmem:[%s11014_s0 + $0x588] sm:$0xff]  ;;  %2369 = vadd.xlane.f32.xlu1 %v2368_v24  ;;  %v2363_v33 = vadd.f32 %v2362_v25, %v2206_v19  ;;  %v196_v35 = vld [vmem:[%s11014_s0 + $0x538] sm:$0xff]  ;;  %v685_v38 = vpack.c.bf16 %v166_v28, %v150_v27  ;;  %v879_v39 = vpack.c.bf16 %v178_v30, %v162_v29  ;;  %v182_v43 = vld [vmem:[%s11014_s0 + $0x500] sm:$0xff] }
  0xa0   :  { %4975 = vrsqrt.f32 %v2981_v26  ;;  %v2839_v34 = vpop.xlane.xlu1 %2838  ;;  %v212_v36 = vld [vmem:[%s11014_s0 + $0x5b8] sm:$0xff]  ;;  %v690_v40 = vpack.c.bf16 %v200_v32, %v184_v31  ;;  %v198_v44 = vld [vmem:[%s11014_s0 + $0x580] sm:$0xff]  ;;  %v194_v47 = vld [vmem:[%s11014_s0 + $0x530] sm:$0xff] }
  0xa1   :  { %v2983_v37 = vmax.f32 %v2839_v34, 1e-24  ;;  %2364 = vadd.xlane.f32.xlu0 %v2363_v33  ;;  %v884_v41 = vpack.c.bf16 %v212_v36, %v196_v35  ;;  %v210_v48 = vld [vmem:[%s11014_s0 + $0x5b0] sm:$0xff]  ;;  %v216_v49 = vld [vmem:[%s11014_s0 + $0x608] sm:$0xff]  ;;  %v228_v53 = vld [vmem:[%s11014_s0 + $0x638] sm:$0xff]  ;;  %v689_v55 = vpack.c.bf16 %v198_v44, %v182_v43 }
  0xa2   :  { %v2844_v46 = vpop.xlane.xlu0 %2843  ;;  %v232_v52 = vld [vmem:[%s11014_s0 + $0x688] sm:$0xff]  ;;  %v244_v54 = vld [vmem:[%s11014_s0 + $0x6b8] sm:$0xff]  ;;  %v883_v56 = vpack.c.bf16 %v210_v48, %v194_v47  ;;  %v5420_v2 = vld [vmem:[%s11015_s1 + $0x400] sm:$0xff] }
  0xa3   :  { %4977 = vrsqrt.f32 %v2983_v37  ;;  %v2984_v51 = vmax.f32 %v2844_v46, 1e-24  ;;  %v5419_v59 = vld [vmem:[%s11015_s1 + $0x408] sm:$0xff]  ;;  %v694_v63 = vpack.c.bf16 %v232_v52, %v216_v49  ;;  %v888_v0 = vpack.c.bf16 %v244_v54, %v228_v53  ;;  %v5421_v5 = vld [vmem:[%s11015_s1 + $0x418] sm:$0xff]  ;;  %v5422_v7 = vld [vmem:[%s11015_s1 + $0x410] sm:$0xff] }
  0xa4   :  { %v2849_v42 = vpop.xlane.xlu1 %2848  ;;  %v5423_v9 = vld [vmem:[%s11015_s1 + $0x428] sm:$0xff]  ;;  %v5424_v11 = vld [vmem:[%s11015_s1 + $0x420] sm:$0xff]  ;;  %v5425_v13 = vld [vmem:[%s11015_s1 + $0x438] sm:$0xff] }
  0xa5   :  { %998 = vmatmul.mubr.bf16.gmra.mrb[16].mxu0 %v685_v38  ;;  %v2985_v45 = vmax.f32 %v2849_v42, 1e-24  ;;  %v5426_v15 = vld [vmem:[%s11015_s1 + $0x448] sm:$0xff]  ;;  %v6925_v17 = vld [vmem:[%s11014_s0 + $0x600] sm:$0xff]  ;;  %v5427_v19 = vld [vmem:[%s11015_s1 + $0x430] sm:$0xff] }
  0xa6   :  { %v4972_v50 = vpop.eup %4971  ;;  %1127 = vmatpush1.bf16.xpose.msra.mxu0 %v879_v39  ;;  %1007 = vmatprep.mubr.bf16.mxu0 %v690_v40  ;;  %v2854_v62 = vpop.xlane.xlu0 %2853  ;;  %v5428_v21 = vld [vmem:[%s11015_s1 + $0x458] sm:$0xff]  ;;  %v230_v26 = vld [vmem:[%s11014_s0 + $0x680] sm:$0xff]  ;;  %v6944_v27 = vld [vmem:[%s11014_s0 + $0x630] sm:$0xff] }
  0xa7   :  { %4979 = vrsqrt.f32 %v2985_v45  ;;  %1128 = vmatprep.subr.bf16.mxu0 %v884_v41  ;;  %v3045_v60 = vmul.f32 %v5419_v59, %v4972_v50  ;;  %v3044_v3 = vmul.f32 %v5420_v2, %v4972_v50  ;;  %v2986_v4 = vmax.f32 %v2854_v62, 1e-24  ;;  %v6949_v28 = vld [vmem:[%s11014_s0 + $0x6b0] sm:$0xff]  ;;  %v5429_v32 = vld [vmem:[%s11015_s1 + $0x468] sm:$0xff]  ;;  %v5430_v38 = vld [vmem:[%s11015_s1 + $0x478] sm:$0xff] }
  0xa8   :  { %4981 = vrsqrt.f32 %v2984_v51  ;;  %v2859_v57 = vpop.xlane.xlu1 %2858  ;;  %v6900_v6 = vmul.f32 %v5421_v5, %v4972_v50  ;;  %v6905_v8 = vmul.f32 %v5422_v7, %v4972_v50  ;;  %v248_v35 = vld [vmem:[%s11014_s0 + $0x708] sm:$0xff]  ;;  %v5431_v40 = vld [vmem:[%s11015_s1 + $0x450] sm:$0xff]  ;;  %v693_v45 = vpack.c.bf16 %v230_v26, %v6925_v17  ;;  %v260_v47 = vld [vmem:[%s11014_s0 + $0x738] sm:$0xff] }
  0xa9   :  { %v6889_v58 = vpop.eup %4973  ;;  %v2987_v61 = vmax.f32 %v2859_v57, 1e-24  ;;  %v264_v36 = vld [vmem:[%s11014_s0 + $0x788] sm:$0xff]  ;;  %v5432_v42 = vld [vmem:[%s11015_s1 + $0x470] sm:$0xff]  ;;  %v887_v46 = vpack.c.bf16 %v6949_v28, %v6944_v27  ;;  %v276_v48 = vld [vmem:[%s11014_s0 + $0x7b8] sm:$0xff] }
  0xaa   :  { %v4976_v1 = vpop.eup %4975  ;;  %v3053_v16 = vmul.f32 %v5426_v15, %v6889_v58  ;;  %v6936_v22 = vmul.f32 %v5428_v21, %v6889_v58  ;;  %v2864_v30 = vpop.xlane.xlu0 %2863  ;;  %v6973_v41 = vmul.f32 %v5431_v40, %v6889_v58  ;;  %v698_v51 = vpack.c.bf16 %v264_v36, %v248_v35  ;;  %v5433_v57 = vld [vmem:[%s11015_s1 + $0x440] sm:$0xff]  ;;  %v5435_v62 = vld [vmem:[%s11015_s1 + $0x4a8] sm:$0xff]  ;;  %v5438_v7 = vld [vmem:[%s11015_s1 + $0x4b8] sm:$0xff] }
  0xab   :  { %v3049_v10 = vmul.f32 %v5423_v9, %v4976_v1  ;;  %v3048_v12 = vmul.f32 %v5424_v11, %v4976_v1  ;;  %4983 = vrsqrt.f32 %v2987_v61  ;;  %v6916_v14 = vmul.f32 %v5425_v13, %v4976_v1  ;;  %v5436_v2 = vld [vmem:[%s11015_s1 + $0x488] sm:$0xff]  ;;  %v246_v13 = vld [vmem:[%s11014_s0 + $0x700] sm:$0xff]  ;;  %v5440_v17 = vld [vmem:[%s11015_s1 + $0x4b0] sm:$0xff] }
  0xac   :  { %4985 = vrsqrt.f32 %v2986_v4  ;;  %v2869_v18 = vpop.xlane.xlu1 %2868  ;;  %v6930_v20 = vmul.f32 %v5427_v19, %v4976_v1  ;;  %v2988_v34 = vmax.f32 %v2864_v30, 1e-24  ;;  %v3052_v59 = vmul.f32 %v5433_v57, %v6889_v58  ;;  %v5437_v4 = vld [vmem:[%s11015_s1 + $0x498] sm:$0xff]  ;;  %v274_v28 = vld [vmem:[%s11014_s0 + $0x7b0] sm:$0xff]  ;;  %v296_v35 = vld [vmem:[%s11014_s0 + $0x888] sm:$0xff] }
  0xad   :  { %v4978_v23 = vpop.eup %4977  ;;  %1008 = vmatmul.mubr.bf16.gmra.mrb[20].mxu0 %v689_v55  ;;  %v3237_v24 = vpack.c.bf16 %v3049_v10, %v3045_v60  ;;  %v3236_v25 = vpack.c.bf16 %v3048_v12, %v3044_v3  ;;  %v2989_v29 = vmax.f32 %v2869_v18, 1e-24  ;;  %v5434_v60 = vld [vmem:[%s11015_s1 + $0x460] sm:$0xff]  ;;  %v892_v1 = vpack.c.bf16 %v276_v48, %v260_v47  ;;  %v5439_v10 = vld [vmem:[%s11015_s1 + $0x490] sm:$0xff]  ;;  %v308_v40 = vld [vmem:[%s11014_s0 + $0x8b8] sm:$0xff] }
  0xae   :  { %1129 = vmatpush1.bf16.xpose.msra.mxu0 %v883_v56  ;;  %v3057_v33 = vmul.f32 %v5429_v32, %v4978_v23  ;;  %1017 = vmatprep.mubr.bf16.mxu0 %v694_v63  ;;  %v6967_v39 = vmul.f32 %v5430_v38, %v4978_v23  ;;  %v6978_v43 = vmul.f32 %v5432_v42, %v4978_v23  ;;  %v2874_v53 = vpop.xlane.xlu0 %2873  ;;  %v5442_v32 = vld [vmem:[%s11015_s1 + $0x4a0] sm:$0xff]  ;;  %v292_v38 = vld [vmem:[%s11014_s0 + $0x838] sm:$0xff]  ;;  %v5445_v48 = vld [vmem:[%s11015_s1 + $0x4d0] sm:$0xff] }
  0xaf   :  { %3300 = vmatprep.subr.bf16.mxu1 %v3237_v24  ;;  %1130 = vmatprep.subr.bf16.mxu0 %v888_v0  ;;  %4987 = vrsqrt.f32 %v2989_v29  ;;  %v3056_v61 = vmul.f32 %v5434_v60, %v4978_v23  ;;  %v2990_v0 = vmax.f32 %v2874_v53, 1e-24  ;;  %v262_v23 = vld [vmem:[%s11014_s0 + $0x780] sm:$0xff]  ;;  %v258_v24 = vld [vmem:[%s11014_s0 + $0x730] sm:$0xff] }
  0xb0   :  { %3301 = vmatpush1.bf16.xpose.msra.mxu1 %v3236_v25  ;;  %v3241_v44 = vpack.c.bf16 %v3057_v33, %v3053_v16  ;;  %4989 = vrsqrt.f32 %v2988_v34  ;;  %v2879_v49 = vpop.xlane.xlu1 %2878  ;;  %v5441_v29 = vld [vmem:[%s11015_s1 + $0x480] sm:$0xff]  ;;  %v280_v34 = vld [vmem:[%s11014_s0 + $0x808] sm:$0xff]  ;;  %v5448_v60 = vld [vmem:[%s11015_s1 + $0x4f0] sm:$0xff] }
  0xb1   :  { %v4980_v50 = vpop.eup %4979  ;;  %v2991_v52 = vmax.f32 %v2879_v49, 1e-24  ;;  %v3240_v21 = vpack.c.bf16 %v3056_v61, %v3052_v59 }
  0xb2   :  { %v4982_v56 = vpop.eup %4981  ;;  %3302 = vmatprep.subr.bf16.mxu1 %v3241_v44  ;;  %v3065_v63 = vmul.f32 %v5435_v62, %v4980_v50  ;;  %v7014_v9 = vmul.f32 %v5438_v7, %v4980_v50  ;;  %v2884_v16 = vpop.xlane.xlu0 %2883  ;;  %v7029_v18 = vmul.f32 %v5440_v17, %v4980_v50  ;;  %v7052_v33 = vmul.f32 %v5442_v32, %v4980_v50  ;;  %v5443_v44 = vld [vmem:[%s11015_s1 + $0x4d8] sm:$0xff] }
  0xb3   :  { %v3061_v3 = vmul.f32 %v5436_v2, %v4982_v56  ;;  %4991 = vrsqrt.f32 %v2991_v52  ;;  %v7009_v5 = vmul.f32 %v5437_v4, %v4982_v56  ;;  %v7019_v11 = vmul.f32 %v5439_v10, %v4982_v56  ;;  %v5446_v52 = vld [vmem:[%s11015_s1 + $0x4c8] sm:$0xff] }
  0xb4   :  { %4993 = vrsqrt.f32 %v2990_v0  ;;  %v2889_v58 = vpop.xlane.xlu1 %2888  ;;  %v2992_v26 = vmax.f32 %v2884_v16, 1e-24  ;;  %v7047_v30 = vmul.f32 %v5441_v29, %v4982_v56  ;;  %v5447_v56 = vld [vmem:[%s11015_s1 + $0x4e8] sm:$0xff]  ;;  %v702_v0 = vpack.c.bf16 %v296_v35, %v280_v34  ;;  %v290_v29 = vld [vmem:[%s11014_s0 + $0x830] sm:$0xff]  ;;  %v5452_v35 = vld [vmem:[%s11015_s1 + $0x4c0] sm:$0xff] }
  0xb5   :  { %v7021_v12 = vpop.eup %4983  ;;  %1018 = vmatmul.mubr.bf16.gmra.mrb[24].mxu0 %v693_v45  ;;  %v3245_v15 = vpack.c.bf16 %v3065_v63, %v3061_v3  ;;  %v2993_v25 = vmax.f32 %v2889_v58, 1e-24  ;;  %v891_v63 = vpack.c.bf16 %v274_v28, %v258_v24  ;;  %v896_v2 = vpack.c.bf16 %v308_v40, %v292_v38  ;;  %v294_v28 = vld [vmem:[%s11014_s0 + $0x880] sm:$0xff]  ;;  %v306_v34 = vld [vmem:[%s11014_s0 + $0x8b0] sm:$0xff]  ;;  %v312_v40 = vld [vmem:[%s11014_s0 + $0x908] sm:$0xff] }
  0xb6   :  { %v7031_v19 = vpop.eup %4985  ;;  %1131 = vmatpush1.bf16.xpose.msra.mxu0 %v887_v46  ;;  %1027 = vmatprep.mubr.bf16.mxu0 %v698_v51  ;;  %4995 = vrsqrt.f32 %v2992_v26  ;;  %v5444_v46 = vld [vmem:[%s11015_s1 + $0x4f8] sm:$0xff]  ;;  %v697_v51 = vpack.c.bf16 %v262_v23, %v246_v13  ;;  %v3073_v57 = vmul.f32 %v5447_v56, %v7021_v12  ;;  %v2894_v59 = vpop.xlane.xlu0 %2893  ;;  %v7100_v61 = vmul.f32 %v5448_v60, %v7021_v12  ;;  %v278_v26 = vld [vmem:[%s11014_s0 + $0x800] sm:$0xff] }
  0xb7   :  { %1132 = vmatprep.subr.bf16.mxu0 %v892_v1  ;;  %v7072_v45 = vmul.f32 %v5443_v44, %v7031_v19  ;;  %v7078_v47 = vmul.f32 %v5444_v46, %v7021_v12  ;;  %v7084_v49 = vmul.f32 %v5445_v48, %v7031_v19  ;;  %v3069_v53 = vmul.f32 %v5446_v52, %v7031_v19  ;;  %v5449_v13 = vld [vmem:[%s11015_s1 + $0x518] sm:$0xff] }
  0xb8   :  { %3303 = vmatpush1.bf16.xpose.msra.mxu1 %v3240_v21  ;;  %v2899_v42 = vpop.xlane.xlu1 %2898  ;;  %4997 = vrsqrt.f32 %v2993_v25  ;;  %v2994_v1 = vmax.f32 %v2894_v59, 1e-24  ;;  %v3244_v58 = vpack.c.bf16 %v7052_v33, %v7047_v30  ;;  %v5450_v23 = vld [vmem:[%s11015_s1 + $0x538] sm:$0xff]  ;;  %v5451_v30 = vld [vmem:[%s11015_s1 + $0x4e0] sm:$0xff]  ;;  %v7148_v38 = vmul.f32 %v5452_v35, %v7031_v19 }
  0xb9   :  { %v7086_v50 = vpop.eup %4987  ;;  %3304 = vmatprep.subr.bf16.mxu1 %v3245_v15  ;;  %v2995_v3 = vmax.f32 %v2899_v42, 1e-24  ;;  %v3249_v17 = vpack.c.bf16 %v3073_v57, %v3069_v53  ;;  %v7139_v32 = vmul.f32 %v5451_v30, %v7021_v12  ;;  %v328_v12 = vld [vmem:[%s11014_s0 + $0x988] sm:$0xff]  ;;  %v324_v46 = vld [vmem:[%s11014_s0 + $0x938] sm:$0xff]  ;;  %v5454_v53 = vld [vmem:[%s11015_s1 + $0x530] sm:$0xff] }
  0xba   :  { %v7102_v62 = vpop.eup %4989  ;;  %4999 = vrsqrt.f32 %v2994_v1  ;;  %v2904_v21 = vpop.xlane.xlu0 %2903  ;;  %v7122_v24 = vmul.f32 %v5450_v23, %v7086_v50  ;;  %v340_v19 = vld [vmem:[%s11014_s0 + $0x9b8] sm:$0xff]  ;;  %v7174_v56 = vmul.f32 %v5454_v53, %v7086_v50  ;;  %v5457_v1 = vld [vmem:[%s11015_s1 + $0x508] sm:$0xff]  ;;  %v706_v23 = vpack.c.bf16 %v328_v12, %v312_v40  ;;  %v7209_v30 = vld [vmem:[%s11014_s0 + $0x900] sm:$0xff] }
  0xbb   :  { %v7114_v15 = vmul.f32 %v5449_v13, %v7102_v62  ;;  %5001 = vrsqrt.f32 %v2995_v3  ;;  %v2996_v42 = vmax.f32 %v2904_v21, 1e-24  ;;  %v5455_v57 = vld [vmem:[%s11015_s1 + $0x558] sm:$0xff]  ;;  %v5458_v3 = vld [vmem:[%s11015_s1 + $0x528] sm:$0xff]  ;;  %v895_v21 = vpack.c.bf16 %v306_v34, %v290_v29  ;;  %v7214_v29 = vld [vmem:[%s11014_s0 + $0x980] sm:$0xff] }
  0xbc   :  { %v2909_v4 = vpop.xlane.xlu1 %2908  ;;  %v5456_v60 = vld [vmem:[%s11015_s1 + $0x578] sm:$0xff] }
  0xbd   :  { %v7116_v16 = vpop.eup %4991  ;;  %1028 = vmatmul.mubr.bf16.gmra.mrb[28].mxu0 %v697_v51  ;;  %v2997_v33 = vmax.f32 %v2909_v4, 1e-24  ;;  %v5453_v51 = vld [vmem:[%s11015_s1 + $0x510] sm:$0xff] }
  0xbe   :  { %v7124_v25 = vpop.eup %4993  ;;  %1133 = vmatpush1.bf16.xpose.msra.mxu0 %v891_v63  ;;  %1037 = vmatprep.mubr.bf16.mxu0 %v702_v0  ;;  %v7168_v52 = vmul.f32 %v5453_v51, %v7102_v62  ;;  %v7186_v63 = vmul.f32 %v5456_v60, %v7116_v16  ;;  %v701_v0 = vpack.c.bf16 %v294_v28, %v278_v26  ;;  %v2914_v4 = vpop.xlane.xlu0 %2913  ;;  %v5460_v51 = vld [vmem:[%s11015_s1 + $0x570] sm:$0xff] }
  0xbf   :  { %1134 = vmatprep.subr.bf16.mxu0 %v896_v2  ;;  %v7180_v59 = vmul.f32 %v5455_v57, %v7124_v25  ;;  %v3077_v2 = vmul.f32 %v5457_v1, %v7102_v62  ;;  %5003 = vrsqrt.f32 %v2997_v33  ;;  %v3248_v28 = vpack.c.bf16 %v7139_v32, %v7148_v38  ;;  %v322_v60 = vld [vmem:[%s11014_s0 + $0x930] sm:$0xff] }
  0xc0   :  { %3305 = vmatpush1.bf16.xpose.msra.mxu1 %v3244_v58  ;;  %v2919_v48 = vpop.xlane.xlu1 %2918  ;;  %v3081_v58 = vmul.f32 %v5458_v3, %v7086_v50  ;;  %v7196_v13 = vpop.eup %4995  ;;  %v900_v33 = vpack.c.bf16 %v340_v19, %v324_v46  ;;  %5005 = vrsqrt.f32 %v2996_v42  ;;  %v2998_v34 = vmax.f32 %v2914_v4, 1e-24  ;;  %v5461_v19 = vld [vmem:[%s11015_s1 + $0x598] sm:$0xff] }
  0xc1   :  { %11293 = vst [vmem:[#allocation6_spill] sm:$0xff] %v7180_v59  ;;  %3306 = vmatprep.subr.bf16.mxu1 %v3249_v17  ;;  %v5459_v17 = vld [vmem:[%s11015_s1 + $0x550] sm:$0xff]  ;;  %v2999_v40 = vmax.f32 %v2919_v48, 1e-24  ;;  %v7226_v53 = vmul.f32 %v5460_v51, %v7116_v16  ;;  %v7232_v48 = vmul.f32 %v5461_v19, %v7196_v13  ;;  %v705_v57 = vpack.c.bf16 %v7214_v29, %v7209_v30  ;;  %v5463_v30 = vld [vmem:[%s11015_s1 + $0x5b8] sm:$0xff] }
  0xc2   :  { %v7202_v26 = vmul.f32 %v5459_v17, %v7124_v25  ;;  %v7216_v35 = vpop.eup %4997  ;;  %v3253_v42 = vpack.c.bf16 %v3081_v58, %v3077_v2  ;;  %v2924_v46 = vpop.xlane.xlu0 %2923  ;;  %v5462_v58 = vld [vmem:[%s11015_s1 + $0x520] sm:$0xff]  ;;  %5007 = vrsqrt.f32 %v2998_v34  ;;  %v372_v34 = vld [vmem:[%s11014_s0 + $0xab8] sm:$0xff] }
  0xc3   :  { %11295 = vst [vmem:[#allocation8_spill] sm:$0xff] %v7226_v53  ;;  %11296 = vst [vmem:[#allocation9_spill] sm:$0xff] %v7232_v48  ;;  %v7250_v4 = vmul.f32 %v5462_v58, %v7086_v50  ;;  %v3000_v17 = vmax.f32 %v2924_v46, 1e-24  ;;  %v7262_v29 = vmul.f32 %v5463_v30, %v7216_v35  ;;  %v5464_v50 = vld [vmem:[%s11015_s1 + $0x500] sm:$0xff]  ;;  %5009 = vrsqrt.f32 %v2999_v40  ;;  %v5467_v40 = vld [vmem:[%s11015_s1 + $0x548] sm:$0xff] }
  0xc4   :  { %11294 = vst [vmem:[#allocation7_spill] sm:$0xff] %v7202_v26  ;;  %v2929_v12 = vpop.xlane.xlu1 %2928  ;;  %v7244_v3 = vpop.eup %4999  ;;  %v532_v26 = vld [vmem:[%s11014_s0 + $0xfb8] sm:$0xff] }
  0xc5   :  { %1038 = vmatmul.mubr.bf16.gmra.mrb[32].mxu0 %v701_v0  ;;  %v338_v0 = vld [vmem:[%s11014_s0 + $0x9b0] sm:$0xff]  ;;  %v3001_v1 = vmax.f32 %v2929_v12, 1e-24  ;;  %11297 = vst [vmem:[#allocation10_spill] sm:$0xff] %v7262_v29  ;;  %v356_v12 = vld [vmem:[%s11014_s0 + $0xa38] sm:$0xff]  ;;  %v7286_v58 = vpop.eup %5001 }
  0xc6   :  { %1135 = vmatpush1.bf16.xpose.msra.mxu0 %v895_v21  ;;  %1047 = vmatprep.mubr.bf16.mxu0 %v706_v23  ;;  %v344_v21 = vld [vmem:[%s11014_s0 + $0xa08] sm:$0xff]  ;;  %v899_v30 = vpack.c.bf16 %v338_v0, %v322_v60  ;;  %v2934_v38 = vpop.xlane.xlu0 %2933  ;;  %v5469_v60 = vld [vmem:[%s11015_s1 + $0x5d8] sm:$0xff] }
  0xc7   :  { %1136 = vmatprep.subr.bf16.mxu0 %v900_v33  ;;  %v360_v23 = vld [vmem:[%s11014_s0 + $0xa88] sm:$0xff]  ;;  %v3076_v33 = vmul.f32 %v5464_v50, %v7102_v62  ;;  %v5466_v62 = vld [vmem:[%s11015_s1 + $0x5b0] sm:$0xff]  ;;  %v3085_v50 = vmul.f32 %v5467_v40, %v7124_v25  ;;  %5011 = vrsqrt.f32 %v3001_v1  ;;  %v7302_v0 = vmul.f32 %v5469_v60, %v7244_v3  ;;  %v5470_v1 = vld [vmem:[%s11015_s1 + $0x5f8] sm:$0xff] }
  0xc8   :  { %3307 = vmatpush1.bf16.xpose.msra.mxu1 %v3248_v28  ;;  %v2939_v51 = vpop.xlane.xlu1 %2938  ;;  %v5465_v28 = vld [vmem:[%s11015_s1 + $0x590] sm:$0xff]  ;;  %v7284_v19 = vmul.f32 %v5466_v62, %v7216_v35  ;;  %v710_v32 = vpack.c.bf16 %v360_v23, %v344_v21  ;;  %v904_v40 = vpack.c.bf16 %v372_v34, %v356_v12  ;;  %5013 = vrsqrt.f32 %v3000_v17  ;;  %v342_v60 = vld [vmem:[%s11014_s0 + $0xa00] sm:$0xff]  ;;  %v5475_v62 = vld [vmem:[%s11015_s1 + $0x618] sm:$0xff] }
  0xc9   :  { %v7278_v46 = vmul.f32 %v5465_v28, %v7196_v13  ;;  %3308 = vmatprep.subr.bf16.mxu1 %v3253_v42  ;;  %v5468_v28 = vld [vmem:[%s11015_s1 + $0x568] sm:$0xff]  ;;  %v3003_v42 = vmax.f32 %v2939_v51, 1e-24  ;;  %11300 = vst [vmem:[#allocation13_spill] sm:$0xff] %v7302_v0  ;;  %v3002_v44 = vmax.f32 %v2934_v38, 1e-24  ;;  %v7304_v10 = vpop.eup %5003  ;;  %v7313_v23 = vmul.f32 %v5470_v1, %v7286_v58 }
  0xca   :  { %11299 = vst [vmem:[#allocation12_spill] sm:$0xff] %v7284_v19  ;;  %v3089_v2 = vmul.f32 %v5468_v28, %v7116_v16  ;;  %v3252_v28 = vpack.c.bf16 %v7250_v4, %v3076_v33  ;;  %v5471_v17 = vld [vmem:[%s11015_s1 + $0x5d0] sm:$0xff]  ;;  %v7321_v12 = vpop.eup %5005  ;;  %v2944_v33 = vpop.xlane.xlu0 %2943  ;;  %v358_v1 = vld [vmem:[%s11014_s0 + $0xa80] sm:$0xff]  ;;  %v516_v29 = vld [vmem:[%s11014_s0 + $0xf38] sm:$0xff] }
  0xcb   :  { %11298 = vst [vmem:[#allocation11_spill] sm:$0xff] %v7278_v46  ;;  %11301 = vst [vmem:[#allocation14_spill] sm:$0xff] %v7313_v23  ;;  %v7319_v38 = vmul.f32 %v5471_v17, %v7244_v3  ;;  %v5472_v34 = vld [vmem:[%s11015_s1 + $0x5f0] sm:$0xff]  ;;  %5015 = vrsqrt.f32 %v3003_v42  ;;  %v5474_v17 = vld [vmem:[%s11015_s1 + $0x540] sm:$0xff]  ;;  %v709_v27 = vpack.c.bf16 %v358_v1, %v342_v60 }
  0xcc   :  { %v2949_v7 = vpop.xlane.xlu1 %2948  ;;  %v3257_v4 = vpack.c.bf16 %v3089_v2, %v3085_v50  ;;  %v7327_v51 = vmul.f32 %v5472_v34, %v7286_v58  ;;  %v5473_v2 = vld [vmem:[%s11015_s1 + $0x560] sm:$0xff]  ;;  %v7353_v34 = vmul.f32 %v5474_v17, %v7124_v25  ;;  %v392_v42 = vld [vmem:[%s11014_s0 + $0xb88] sm:$0xff]  ;;  %5017 = vrsqrt.f32 %v3002_v44  ;;  %v404_v25 = vld [vmem:[%s11014_s0 + $0xbb8] sm:$0xff]  ;;  %v7387_v36 = vpop.eup %5007 }
  0xcd   :  { %11302 = vst [vmem:[#allocation15_spill] sm:$0xff] %v7319_v38  ;;  %1048 = vmatmul.mubr.bf16.gmra.mrb[36].mxu0 %v705_v57  ;;  %v354_v57 = vld [vmem:[%s11014_s0 + $0xa30] sm:$0xff]  ;;  %v7342_v50 = vmul.f32 %v5473_v2, %v7116_v16  ;;  %v376_v16 = vld [vmem:[%s11014_s0 + $0xb08] sm:$0xff]  ;;  %v3005_v17 = vmax.f32 %v2949_v7, 1e-24  ;;  %v7373_v44 = vmul.f32 %v5475_v62, %v7321_v12  ;;  %v5504_v19 = vld [vmem:[%s11015_s1 + $0x620] sm:$0xff] }
  0xce   :  { %11303 = vst [vmem:[#allocation16_spill] sm:$0xff] %v7327_v51  ;;  %1137 = vmatpush1.bf16.xpose.msra.mxu0 %v899_v30  ;;  %1057 = vmatprep.mubr.bf16.mxu0 %v710_v32  ;;  %v370_v30 = vld [vmem:[%s11014_s0 + $0xab0] sm:$0xff]  ;;  %v388_v32 = vld [vmem:[%s11014_s0 + $0xb38] sm:$0xff]  ;;  %v5478_v62 = vld [vmem:[%s11015_s1 + $0x588] sm:$0xff]  ;;  %v2954_v37 = vpop.xlane.xlu0 %2953  ;;  %v714_v31 = vpack.c.bf16 %v392_v42, %v376_v16  ;;  %v7696_v48 = vmul.f32 %v5504_v19, %v7304_v10 }
  0xcf   :  { %1138 = vmatprep.subr.bf16.mxu0 %v904_v40  ;;  %v3004_v40 = vmax.f32 %v2944_v33, 1e-24  ;;  %11304 = vst [vmem:[#allocation17_spill] sm:$0xff] %v7373_v44  ;;  %v5477_v2 = vld [vmem:[%s11015_s1 + $0x610] sm:$0xff]  ;;  %v3093_v55 = vmul.f32 %v5478_v62, %v7196_v13  ;;  %v903_v1 = vpack.c.bf16 %v370_v30, %v354_v57  ;;  %v3256_v62 = vpack.c.bf16 %v7342_v50, %v7353_v34  ;;  %v5482_v30 = vld [vmem:[%s11015_s1 + $0x678] sm:$0xff]  ;;  %v390_v16 = vld [vmem:[%s11014_s0 + $0xb80] sm:$0xff] }
  0xd0   :  { %3309 = vmatpush1.bf16.xpose.msra.mxu1 %v3252_v28  ;;  %v2959_v21 = vpop.xlane.xlu1 %2958  ;;  %v5476_v28 = vld [vmem:[%s11015_s1 + $0x638] sm:$0xff]  ;;  %v7385_v7 = vmul.f32 %v5477_v2, %v7321_v12  ;;  %v5480_v2 = vld [vmem:[%s11015_s1 + $0x630] sm:$0xff]  ;;  %v908_v51 = vpack.c.bf16 %v404_v25, %v388_v32  ;;  %v3006_v0 = vmax.f32 %v2954_v37, 1e-24  ;;  %v374_v37 = vld [vmem:[%s11014_s0 + $0xb00] sm:$0xff] }
  0xd1   :  { %v7379_v33 = vmul.f32 %v5476_v28, %v7304_v10  ;;  %3310 = vmatprep.subr.bf16.mxu1 %v3257_v4  ;;  %v5479_v28 = vld [vmem:[%s11015_s1 + $0x5a8] sm:$0xff]  ;;  %v7401_v60 = vmul.f32 %v5480_v2, %v7304_v10  ;;  %v7403_v4 = vpop.eup %5009  ;;  %v3007_v38 = vmax.f32 %v2959_v21, 1e-24  ;;  %5019 = vrsqrt.f32 %v3004_v40  ;;  %v5481_v21 = vld [vmem:[%s11015_s1 + $0x658] sm:$0xff] }
  0xd2   :  { %11306 = vst [vmem:[#allocation19_spill] sm:$0xff] %v7385_v7  ;;  %v3097_v54 = vmul.f32 %v5479_v28, %v7216_v35  ;;  %v7407_v28 = vpop.eup %5011  ;;  %5021 = vrsqrt.f32 %v3005_v17  ;;  %v7419_v57 = vmul.f32 %v5481_v21, %v7387_v36  ;;  %v7430_v34 = vmul.f32 %v5482_v30, %v7403_v4  ;;  %v2964_v25 = vpop.xlane.xlu0 %2963  ;;  %v408_v17 = vld [vmem:[%s11014_s0 + $0xc08] sm:$0xff]  ;;  %v420_v30 = vld [vmem:[%s11014_s0 + $0xc38] sm:$0xff] }
  0xd3   :  { %11305 = vst [vmem:[#allocation18_spill] sm:$0xff] %v7379_v33  ;;  %11307 = vst [vmem:[#allocation20_spill] sm:$0xff] %v7401_v60  ;;  %v7421_v50 = vpop.eup %5013  ;;  %5023 = vrsqrt.f32 %v3007_v38  ;;  %v3008_v21 = vmax.f32 %v2964_v25, 1e-24  ;;  %v713_v2 = vpack.c.bf16 %v390_v16, %v374_v37  ;;  %v7512_v37 = vld [vmem:[%s11014_s0 + $0xc00] sm:$0xff] }
  0xd4   :  { %v7409_v23 = vpop.xlane.xlu1 %2968  ;;  %11308 = vst [vmem:[#allocation21_spill] sm:$0xff] %v7419_v57  ;;  %v3261_v32 = vpack.c.bf16 %v3097_v54, %v3093_v55  ;;  %11309 = vst [vmem:[#allocation22_spill] sm:$0xff] %v7430_v34  ;;  %v402_v54 = vld [vmem:[%s11014_s0 + $0xbb0] sm:$0xff]  ;;  %v5483_v55 = vld [vmem:[%s11015_s1 + $0x580] sm:$0xff]  ;;  %5025 = vrsqrt.f32 %v3006_v0 }
  0xd5   :  { %1058 = vmatmul.mubr.bf16.gmra.mrb[40].mxu0 %v709_v27  ;;  %v7438_v27 = vld [vmem:[%s11014_s0 + $0xb30] sm:$0xff]  ;;  %v7447_v42 = vmul.f32 %v5483_v55, %v7196_v13  ;;  %v3009_v13 = vmax.f32 %v7409_v23, 1e-24  ;;  %v436_v0 = vld [vmem:[%s11014_s0 + $0xcb8] sm:$0xff]  ;;  %5027 = vrsqrt.f32 %v3008_v21  ;;  %v7577_v21 = vld [vmem:[%s11014_s0 + $0xd08] sm:$0xff] }
  0xd6   :  { %1139 = vmatpush1.bf16.xpose.msra.mxu0 %v903_v1  ;;  %1067 = vmatprep.mubr.bf16.mxu0 %v714_v31  ;;  %v5484_v31 = vld [vmem:[%s11015_s1 + $0x5a0] sm:$0xff]  ;;  %v424_v1 = vld [vmem:[%s11014_s0 + $0xc88] sm:$0xff]  ;;  %v5486_v55 = vld [vmem:[%s11015_s1 + $0x670] sm:$0xff] }
  0xd7   :  { %v7453_v40 = vmul.f32 %v5484_v31, %v7216_v35  ;;  %1140 = vmatprep.subr.bf16.mxu0 %v908_v51  ;;  %v5485_v35 = vld [vmem:[%s11015_s1 + $0x650] sm:$0xff]  ;;  %v7468_v51 = vpop.eup %5015  ;;  %v7482_v31 = vmul.f32 %v5486_v55, %v7403_v4  ;;  %v5489_v55 = vld [vmem:[%s11015_s1 + $0x5c8] sm:$0xff]  ;;  %v718_v60 = vpack.c.bf16 %v424_v1, %v408_v17  ;;  %v2974_v1 = vpop.xlane.xlu0 %2973  ;;  %5029 = vrsqrt.f32 %v3009_v13  ;;  %v5493_v13 = vld [vmem:[%s11015_s1 + $0x6d8] sm:$0xff] }
  0xd8   :  { %v7466_v38 = vmul.f32 %v5485_v35, %v7387_v36  ;;  %3311 = vmatpush1.bf16.xpose.msra.mxu1 %v3256_v62  ;;  %v5487_v62 = vld [vmem:[%s11015_s1 + $0x698] sm:$0xff]  ;;  %v7496_v46 = vpop.eup %5017  ;;  %v7502_v57 = vmul.f32 %v5489_v55, %v7244_v3  ;;  %v2979_v7 = vpop.xlane.xlu1 %2978  ;;  %v5491_v55 = vld [vmem:[%s11015_s1 + $0x690] sm:$0xff]  ;;  %v3010_v44 = vmax.f32 %v2974_v1, 1e-24 }
  0xd9   :  { %11311 = vst [vmem:[#allocation24_spill] sm:$0xff] %v7482_v31  ;;  %v7488_v25 = vmul.f32 %v5487_v62, %v7421_v50  ;;  %v5488_v35 = vld [vmem:[%s11015_s1 + $0x6b8] sm:$0xff]  ;;  %3312 = vmatprep.subr.bf16.mxu1 %v3261_v32  ;;  %v5490_v62 = vld [vmem:[%s11015_s1 + $0x5e8] sm:$0xff]  ;;  %v7517_v32 = vld [vmem:[%s11014_s0 + $0xc80] sm:$0xff]  ;;  %v3011_v16 = vmax.f32 %v2979_v7, 1e-24  ;;  %v7556_v1 = vmul.f32 %v5493_v13, %v7496_v46 }
  0xda   :  { %11310 = vst [vmem:[#allocation23_spill] sm:$0xff] %v7466_v38  ;;  %v7494_v23 = vmul.f32 %v5488_v35, %v7407_v28  ;;  %v3105_v34 = vmul.f32 %v5490_v62, %v7286_v58  ;;  %v907_v35 = vpack.c.bf16 %v402_v54, %v7438_v27  ;;  %v7523_v62 = vmul.f32 %v5491_v55, %v7421_v50  ;;  %v7530_v17 = vld [vmem:[%s11014_s0 + $0xc30] sm:$0xff] }
  0xdb   :  { %11312 = vst [vmem:[#allocation25_spill] sm:$0xff] %v7488_v25  ;;  %v3260_v27 = vpack.c.bf16 %v7453_v40, %v7447_v42  ;;  %v912_v54 = vpack.c.bf16 %v436_v0, %v420_v30  ;;  %v7535_v7 = vld [vmem:[%s11014_s0 + $0xcb0] sm:$0xff]  ;;  %v7547_v0 = vpop.eup %5019  ;;  %11316 = vst [vmem:[#allocation29_spill] sm:$0xff] %v7556_v1  ;;  %5031 = vrsqrt.f32 %v3011_v16  ;;  %v7600_v25 = vld [vmem:[%s11014_s0 + $0xd80] sm:$0xff] }
  0xdc   :  { %11313 = vst [vmem:[#allocation26_spill] sm:$0xff] %v7494_v23  ;;  %11314 = vst [vmem:[#allocation27_spill] sm:$0xff] %v7523_v62  ;;  %v5492_v40 = vld [vmem:[%s11015_s1 + $0x6b0] sm:$0xff]  ;;  %v3265_v55 = vpack.c.bf16 %v3105_v34, %v7502_v57  ;;  %v5495_v34 = vld [vmem:[%s11015_s1 + $0x5e0] sm:$0xff]  ;;  %5033 = vrsqrt.f32 %v3010_v44  ;;  %v2215_v62 = vpop.xlane.xlu0 %2214 }
  0xdd   :  { %v7545_v30 = vmul.f32 %v5492_v40, %v7407_v28  ;;  %1068 = vmatmul.mubr.bf16.gmra.mrb[44].mxu0 %v713_v2  ;;  %v5494_v40 = vld [vmem:[%s11015_s1 + $0x6f8] sm:$0xff]  ;;  %v7564_v2 = vpop.eup %5021  ;;  %v7572_v13 = vmul.f32 %v5495_v34, %v7286_v58  ;;  %v5496_v34 = vld [vmem:[%s11015_s1 + $0x5c0] sm:$0xff]  ;;  %v5497_v23 = vld [vmem:[%s11015_s1 + $0x6d0] sm:$0xff] }
  0xde   :  { %v7562_v42 = vmul.f32 %v5494_v40, %v7468_v51  ;;  %1141 = vmatpush1.bf16.xpose.msra.mxu0 %v907_v35  ;;  %1077 = vmatprep.mubr.bf16.mxu0 %v718_v60  ;;  %v7582_v35 = vld [vmem:[%s11014_s0 + $0xd88] sm:$0xff]  ;;  %v7587_v60 = vld [vmem:[%s11014_s0 + $0xd00] sm:$0xff]  ;;  %v2220_v40 = vpop.xlane.xlu1 %2219  ;;  %v7595_v57 = vmul.f32 %v5496_v34, %v7244_v3  ;;  %v7605_v16 = vld [vmem:[%s11014_s0 + $0xd38] sm:$0xff]  ;;  %v7614_v34 = vpop.eup %5023  ;;  %v7620_v38 = vmul.f32 %v5497_v23, %v7496_v46 }
  0xdf   :  { %11315 = vst [vmem:[#allocation28_spill] sm:$0xff] %v7545_v30  ;;  %1142 = vmatprep.subr.bf16.mxu0 %v912_v54  ;;  %v7610_v54 = vld [vmem:[%s11014_s0 + $0xdb8] sm:$0xff]  ;;  %v2372_v58 = vmax.f32 %v2220_v40, 1e-24  ;;  %v2371_v30 = vmax.f32 %v2215_v62, 1e-24  ;;  %v722_v31 = vpack.c.bf16 %v7582_v35, %v7577_v21 }
  0xe0   :  { %11317 = vst [vmem:[#allocation30_spill] sm:$0xff] %v7562_v42  ;;  %3313 = vmatpush1.bf16.xpose.msra.mxu1 %v3260_v27  ;;  %11318 = vst [vmem:[#allocation31_spill] sm:$0xff] %v7620_v38  ;;  %v5498_v44 = vld [vmem:[%s11015_s1 + $0x6f0] sm:$0xff]  ;;  %v5499_v3 = vld [vmem:[%s11015_s1 + $0x718] sm:$0xff]  ;;  %v7634_v27 = vpop.eup %5025  ;;  %v916_v33 = vpack.c.bf16 %v7610_v54, %v7605_v16 }
  0xe1   :  { %v7626_v40 = vmul.f32 %v5498_v44, %v7468_v51  ;;  %v7632_v62 = vmul.f32 %v5499_v3, %v7547_v0  ;;  %3314 = vmatprep.subr.bf16.mxu1 %v3265_v55  ;;  %v5500_v23 = vld [vmem:[%s11015_s1 + $0x608] sm:$0xff]  ;;  %5035 = vrsqrt.f32 %v2372_v58  ;;  %v5502_v3 = vld [vmem:[%s11015_s1 + $0x738] sm:$0xff]  ;;  %v7663_v58 = vld [vmem:[%s11014_s0 + $0xd30] sm:$0xff] }
  0xe2   :  { %v7640_v1 = vmul.f32 %v5500_v23, %v7321_v12  ;;  %v5501_v44 = vld [vmem:[%s11015_s1 + $0x628] sm:$0xff]  ;;  %v7652_v55 = vmul.f32 %v5502_v3, %v7564_v2  ;;  %5037 = vrsqrt.f32 %v2371_v30  ;;  %v3264_v3 = vpack.c.bf16 %v7572_v13, %v7595_v57  ;;  %v7670_v21 = vld [vmem:[%s11014_s0 + $0xdb0] sm:$0xff]  ;;  %v5503_v13 = vld [vmem:[%s11015_s1 + $0x600] sm:$0xff] }
  0xe3   :  { %11319 = vst [vmem:[#allocation32_spill] sm:$0xff] %v7626_v40  ;;  %11320 = vst [vmem:[#allocation33_spill] sm:$0xff] %v7632_v62  ;;  %v7646_v42 = vmul.f32 %v5501_v44, %v7304_v10  ;;  %v2230_v44 = vpop.xlane.xlu1 %2229  ;;  %v7675_v35 = vld [vmem:[%s11014_s0 + $0xe08] sm:$0xff]  ;;  %v7690_v23 = vmul.f32 %v5503_v13, %v7321_v12  ;;  %v5505_v54 = vld [vmem:[%s11015_s1 + $0x710] sm:$0xff]  ;;  %v7710_v62 = vpop.eup %5027  ;;  %v11324_v10 = vpack.c.bf16 %v7517_v32, %v7512_v37 }
  0xe4   :  { %11321 = vst [vmem:[#allocation34_spill] sm:$0xff] %v7652_v55  ;;  %v7680_v16 = vld [vmem:[%s11014_s0 + $0xe88] sm:$0xff]  ;;  %v2374_v30 = vmax.f32 %v2230_v44, 1e-24  ;;  %v2225_v44 = vpop.xlane.xlu0 %2224  ;;  %v7702_v57 = vmul.f32 %v5505_v54, %v7547_v0  ;;  %v5506_v12 = vld [vmem:[%s11015_s1 + $0x730] sm:$0xff]  ;;  %v7720_v54 = vld [vmem:[%s11014_s0 + $0xe00] sm:$0xff] }
  0xe5   :  { %v7708_v13 = vmul.f32 %v5506_v12, %v7564_v2  ;;  %1078 = vmatmul.mubr.bf16.gmra.mrb[48].mxu0 %v11324_v10  ;;  %v3269_v19 = vpack.c.bf16 %v7646_v42, %v7640_v1  ;;  %v2373_v55 = vmax.f32 %v2225_v44, 1e-24  ;;  %v5507_v12 = vld [vmem:[%s11015_s1 + $0x758] sm:$0xff]  ;;  %v7734_v42 = vpop.eup %5029  ;;  %v11327_v1 = vpack.c.bf16 %v7535_v7, %v7530_v17  ;;  %v5509_v7 = vld [vmem:[%s11015_s1 + $0x648] sm:$0xff] }
  0xe6   :  { %11322 = vst [vmem:[#allocation35_spill] sm:$0xff] %v7702_v57  ;;  %v7726_v38 = vmul.f32 %v5507_v12, %v7634_v27  ;;  %v5508_v37 = vld [vmem:[%s11015_s1 + $0x778] sm:$0xff]  ;;  %1087 = vmatprep.mubr.bf16.mxu0 %v722_v31  ;;  %v915_v44 = vpack.c.bf16 %v7670_v21, %v7663_v58  ;;  %v726_v10 = vpack.c.bf16 %v7680_v16, %v7675_v35  ;;  %v7746_v12 = vld [vmem:[%s11014_s0 + $0xe80] sm:$0xff]  ;;  %5039 = vrsqrt.f32 %v2374_v30  ;;  %v5510_v21 = vld [vmem:[%s11015_s1 + $0x668] sm:$0xff] }
  0xe7   :  { %11323 = vst [vmem:[#allocation36_spill] sm:$0xff] %v7708_v13  ;;  %v7732_v32 = vmul.f32 %v5508_v37, %v7614_v34  ;;  %1143 = vmatpush1.bf16.xpose.msra.mxu0 %v11327_v1  ;;  %v7751_v37 = vld [vmem:[%s11014_s0 + $0xe38] sm:$0xff]  ;;  %v7764_v58 = vmul.f32 %v5509_v7, %v7387_v36  ;;  %v7770_v35 = vmul.f32 %v5510_v21, %v7403_v4  ;;  %5041 = vrsqrt.f32 %v2373_v55  ;;  %v2240_v16 = vpop.xlane.xlu1 %2239  ;;  %v5511_v7 = vld [vmem:[%s11015_s1 + $0x750] sm:$0xff] }
  0xe8   :  { %11325 = vst [vmem:[#allocation37_spill] sm:$0xff] %v7726_v38  ;;  %v7756_v31 = vld [vmem:[%s11014_s0 + $0xeb8] sm:$0xff]  ;;  %1144 = vmatprep.subr.bf16.mxu0 %v916_v33  ;;  %v7774_v33 = vpop.eup %5031  ;;  %3315 = vmatpush1.bf16.xpose.msra.mxu1 %v3264_v3  ;;  %v2376_v1 = vmax.f32 %v2240_v16, 1e-24  ;;  %v7780_v17 = vmul.f32 %v5511_v7, %v7634_v27  ;;  %v5512_v21 = vld [vmem:[%s11015_s1 + $0x770] sm:$0xff]  ;;  %v3268_v7 = vpack.c.bf16 %v7696_v48, %v7690_v23 }
  0xe9   :  { %11326 = vst [vmem:[#allocation38_spill] sm:$0xff] %v7732_v32  ;;  %v7786_v55 = vmul.f32 %v5512_v21, %v7614_v34  ;;  %v5513_v30 = vld [vmem:[%s11015_s1 + $0x798] sm:$0xff]  ;;  %v7794_v16 = vpop.eup %5033  ;;  %3316 = vmatprep.subr.bf16.mxu1 %v3269_v19  ;;  %v920_v21 = vpack.c.bf16 %v7756_v31, %v7751_v37  ;;  %v2235_v32 = vpop.xlane.xlu0 %2234  ;;  %v5515_v48 = vld [vmem:[%s11015_s1 + $0x790] sm:$0xff]  ;;  %v3273_v31 = vpack.c.bf16 %v7770_v35, %v7764_v58  ;;  %v5518_v58 = vld [vmem:[%s11015_s1 + $0x28] sm:$0xff] }
  0xea   :  { %11328 = vst [vmem:[#allocation39_spill] sm:$0xff] %v7780_v17  ;;  %v7792_v3 = vmul.f32 %v5513_v30, %v7710_v62  ;;  %v5514_v57 = vld [vmem:[%s11015_s1 + $0x7b8] sm:$0xff]  ;;  %5043 = vrsqrt.f32 %v2376_v1  ;;  %v2375_v13 = vmax.f32 %v2235_v32, 1e-24  ;;  %v7814_v23 = vmul.f32 %v5515_v48, %v7710_v62  ;;  %v5517_v1 = vld [vmem:[%s11015_s1 + $0x660] sm:$0xff] }
  0xeb   :  { %11329 = vst [vmem:[#allocation40_spill] sm:$0xff] %v7786_v55  ;;  %v7806_v30 = vmul.f32 %v5514_v57, %v7734_v42  ;;  %v7816_v37 = vpop.eup %5035  ;;  %v5516_v57 = vld [vmem:[%s11015_s1 + $0x640] sm:$0xff]  ;;  %v7830_v19 = vmul.f32 %v5517_v1, %v7403_v4  ;;  %v5520_v4 = vld [vmem:[%s11015_s1 + $0x7b0] sm:$0xff] }
  0xec   :  { %11330 = vst [vmem:[#allocation41_spill] sm:$0xff] %v7792_v3  ;;  %11332 = vst [vmem:[#allocation43_spill] sm:$0xff] %v7814_v23  ;;  %v7824_v32 = vmul.f32 %v5516_v57, %v7387_v36  ;;  %v5038_v38 = vpop.eup %5037  ;;  %5045 = vrsqrt.f32 %v2375_v13  ;;  %v2440_v35 = vmul.f32 %v5518_v58, %v7816_v37  ;;  %v5519_v36 = vld [vmem:[%s11015_s1 + $0x20] sm:$0xff]  ;;  %v7848_v1 = vmul.f32 %v5520_v4, %v7734_v42  ;;  %v5521_v58 = vld [vmem:[%s11015_s1 + $0x8] sm:$0xff] }
  0xed   :  { %11331 = vst [vmem:[#allocation42_spill] sm:$0xff] %v7806_v30  ;;  %v7842_v57 = vmul.f32 %v5519_v36, %v7816_v37  ;;  %v11334_v13 = vpack.c.bf16 %v7600_v25, %v7587_v60  ;;  %v2436_v48 = vmul.f32 %v5521_v58, %v5038_v38  ;;  %v5522_v36 = vld [vmem:[%s11015_s1] sm:$0xff]  ;;  %v2250_v30 = vpop.xlane.xlu1 %2249  ;;  %v5523_v4 = vld [vmem:[%s11015_s1 + $0x7d8] sm:$0xff] }
  0xee   :  { %11333 = vst [vmem:[#allocation44_spill] sm:$0xff] %v7848_v1  ;;  %v7859_v3 = vmul.f32 %v5522_v36, %v5038_v38  ;;  %v7865_v17 = vmul.f32 %v5523_v4, %v7794_v16  ;;  %v5524_v25 = vld [vmem:[%s11015_s1 + $0x7f8] sm:$0xff]  ;;  %v2378_v58 = vmax.f32 %v2250_v30, 1e-24  ;;  %v2245_v36 = vpop.xlane.xlu0 %2244  ;;  %v5525_v4 = vld [vmem:[%s11015_s1 + $0x7d0] sm:$0xff]  ;;  %v3272_v59 = vpack.c.bf16 %v7830_v19, %v7824_v32 }
  0xef   :  { %1088 = vmatmul.mubr.bf16.gmra.mrb[52].mxu0 %v11334_v13  ;;  %v7871_v60 = vmul.f32 %v5524_v25, %v7774_v33  ;;  %v482_v13 = vld [vmem:[%s11014_s0 + $0xe30] sm:$0xff]  ;;  %v7882_v40 = vmul.f32 %v5525_v4, %v7794_v16  ;;  %v504_v25 = vld [vmem:[%s11014_s0 + $0xf08] sm:$0xff]  ;;  %v3173_v55 = vpack.c.bf16 %v2440_v35, %v2436_v48  ;;  %v2377_v1 = vmax.f32 %v2245_v36, 1e-24 }
  0xf0   :  { %11335 = vst [vmem:[#allocation45_spill] sm:$0xff] %v7865_v17  ;;  %1145 = vmatpush1.bf16.xpose.msra.mxu0 %v915_v44  ;;  %1097 = vmatprep.mubr.bf16.mxu0 %v726_v10  ;;  %v5526_v44 = vld [vmem:[%s11015_s1 + $0x7f0] sm:$0xff]  ;;  %v520_v4 = vld [vmem:[%s11014_s0 + $0xf88] sm:$0xff]  ;;  %5047 = vrsqrt.f32 %v2378_v58 }
  0xf1   :  { %11336 = vst [vmem:[#allocation46_spill] sm:$0xff] %v7871_v60  ;;  %11337 = vst [vmem:[#allocation47_spill] sm:$0xff] %v7882_v40  ;;  %v7888_v10 = vmul.f32 %v5526_v44, %v7774_v33  ;;  %1146 = vmatprep.subr.bf16.mxu0 %v920_v21  ;;  %v498_v30 = vld [vmem:[%s11014_s0 + $0xeb0] sm:$0xff]  ;;  %v7903_v44 = vpop.eup %5039  ;;  %3317 = vmatpush1.bf16.xpose.msra.mxu1 %v3268_v7  ;;  %v5527_v48 = vld [vmem:[%s11015_s1 + $0x688] sm:$0xff]  ;;  %5049 = vrsqrt.f32 %v2377_v1  ;;  %v730_v1 = vpack.c.bf16 %v520_v4, %v504_v25 }
  0xf2   :  { %v7915_v35 = vmul.f32 %v5527_v48, %v7421_v50  ;;  %v5528_v36 = vld [vmem:[%s11015_s1 + $0x6a8] sm:$0xff]  ;;  %v7925_v23 = vpop.eup %5041  ;;  %3318 = vmatprep.subr.bf16.mxu1 %v3273_v31  ;;  %3332 = vmatprep.mubr.bf16.mxu1 %v3173_v55  ;;  %v5529_v48 = vld [vmem:[%s11015_s1 + $0x18] sm:$0xff]  ;;  %v5531_v21 = vld [vmem:[%s11015_s1 + $0x10] sm:$0xff]  ;;  %v919_v55 = vpack.c.bf16 %v498_v30, %v482_v13  ;;  %v924_v13 = vpack.c.bf16 %v532_v26, %v516_v29  ;;  %v2255_v25 = vpop.xlane.xlu0 %2254 }
  0xf3   :  { %11338 = vst [vmem:[#allocation48_spill] sm:$0xff] %v7888_v10  ;;  %v7921_v7 = vmul.f32 %v5528_v36, %v7407_v28  ;;  %v7930_v17 = vmul.f32 %v5529_v48, %v5038_v38  ;;  %v5530_v36 = vld [vmem:[%s11015_s1 + $0x38] sm:$0xff]  ;;  %v7941_v31 = vmul.f32 %v5531_v21, %v5038_v38  ;;  %v7946_v48 = vld [vmem:[%s11014_s0 + $0xf00] sm:$0xff]  ;;  %v5532_v10 = vld [vmem:[%s11015_s1 + $0x30] sm:$0xff]  ;;  %v11344_v29 = vpack.c.bf16 %v7746_v12, %v7720_v54 }
  0xf4   :  { %v7936_v58 = vmul.f32 %v5530_v36, %v7816_v37  ;;  %v7951_v40 = vld [vmem:[%s11014_s0 + $0xf80] sm:$0xff]  ;;  %v2260_v36 = vpop.xlane.xlu1 %2259  ;;  %v7957_v38 = vmul.f32 %v5532_v10, %v7816_v37  ;;  %v5533_v21 = vld [vmem:[%s11015_s1 + $0x58] sm:$0xff]  ;;  %v7967_v53 = vpop.eup %5043  ;;  %v2379_v37 = vmax.f32 %v2255_v25, 1e-24  ;;  %v514_v54 = vld [vmem:[%s11014_s0 + $0xf30] sm:$0xff] }
  0xf5   :  { %11339 = vst [vmem:[#allocation49_spill] sm:$0xff] %v7930_v17  ;;  %11341 = vst [vmem:[#allocation51_spill] sm:$0xff] %v7941_v31  ;;  %v2380_v30 = vmax.f32 %v2260_v36, 1e-24  ;;  %v7965_v60 = vmul.f32 %v5533_v21, %v7925_v23  ;;  %v729_v10 = vpack.c.bf16 %v7951_v40, %v7946_v48  ;;  %v3277_v36 = vpack.c.bf16 %v7921_v7, %v7915_v35  ;;  %v5534_v21 = vld [vmem:[%s11015_s1 + $0x78] sm:$0xff]  ;;  %v530_v40 = vld [vmem:[%s11014_s0 + $0xfb0] sm:$0xff] }
  0xf6   :  { %11340 = vst [vmem:[#allocation50_spill] sm:$0xff] %v7936_v58  ;;  %11342 = vst [vmem:[#allocation52_spill] sm:$0xff] %v7957_v38  ;;  %v7984_v19 = vmul.f32 %v5534_v21, %v7903_v44  ;;  %v7986_v32 = vpop.eup %5045  ;;  %v5535_v12 = vld [vmem:[%s11015_s1 + $0x50] sm:$0xff]  ;;  %v28_v21 = vld [vmem:[%s11014_s0 + $0x18] sm:$0xff] }
  0xf7   :  { %11343 = vst [vmem:[#allocation53_spill] sm:$0xff] %v7965_v60  ;;  %1098 = vmatmul.mubr.bf16.gmra.mrb[56].mxu0 %v11344_v29  ;;  %5051 = vrsqrt.f32 %v2380_v30  ;;  %v7998_v35 = vmul.f32 %v5535_v12, %v7925_v23  ;;  %v5536_v7 = vld [vmem:[%s11015_s1 + $0x70] sm:$0xff]  ;;  %v5538_v30 = vld [vmem:[%s11015_s1 + $0x680] sm:$0xff] }
  0xf8   :  { %11345 = vst [vmem:[#allocation54_spill] sm:$0xff] %v7984_v19  ;;  %1147 = vmatpush1.bf16.xpose.msra.mxu0 %v919_v55  ;;  %1107 = vmatprep.mubr.bf16.mxu0 %v730_v1  ;;  %5053 = vrsqrt.f32 %v2379_v37  ;;  %v8004_v55 = vmul.f32 %v5536_v7, %v7903_v44  ;;  %v5537_v1 = vld [vmem:[%s11015_s1 + $0xb8] sm:$0xff]  ;;  %v3124_v25 = vmul.f32 %v5538_v30, %v7421_v50  ;;  %v5539_v37 = vld [vmem:[%s11015_s1 + $0x6a0] sm:$0xff]  ;;  %v2270_v12 = vpop.xlane.xlu1 %2269  ;;  %v5542_v7 = vld [vmem:[%s11015_s1 + $0xb0] sm:$0xff] }
  0xf9   :  { %11346 = vst [vmem:[#allocation55_spill] sm:$0xff] %v7998_v35  ;;  %v8010_v48 = vmul.f32 %v5537_v1, %v7967_v53  ;;  %1148 = vmatprep.subr.bf16.mxu0 %v924_v13  ;;  %v3128_v29 = vmul.f32 %v5539_v37, %v7407_v28  ;;  %v44_v13 = vld [vmem:[%s11014_s0 + $0x98] sm:$0xff]  ;;  %3319 = vmatpush1.bf16.xpose.msra.mxu1 %v3272_v59  ;;  %v2382_v28 = vmax.f32 %v2270_v12, 1e-24  ;;  %v5541_v37 = vld [vmem:[%s11015_s1 + $0x90] sm:$0xff]  ;;  %v5543_v12 = vld [vmem:[%s11015_s1 + $0x6c8] sm:$0xff]  ;;  %v2265_v35 = vpop.xlane.xlu0 %2264 }
  0xfa   :  { %11347 = vst [vmem:[#allocation56_spill] sm:$0xff] %v8004_v55  ;;  %v5540_v50 = vld [vmem:[%s11015_s1 + $0x98] sm:$0xff]  ;;  %v8040_v26 = vmul.f32 %v5541_v37, %v7986_v32  ;;  %v8046_v4 = vmul.f32 %v5542_v7, %v7967_v53  ;;  %3320 = vmatprep.subr.bf16.mxu1 %v3277_v36  ;;  %v923_v59 = vpack.c.bf16 %v530_v40, %v514_v54  ;;  %v5544_v37 = vld [vmem:[%s11015_s1 + $0x6e8] sm:$0xff]  ;;  %v8058_v7 = vpop.eup %5047  ;;  %v2381_v54 = vmax.f32 %v2265_v35, 1e-24  ;;  %v26_v55 = vld [vmem:[%s11014_s0 + $0x10] sm:$0xff] }
  0xfb   :  { %11348 = vst [vmem:[#allocation57_spill] sm:$0xff] %v8010_v48  ;;  %v8032_v1 = vmul.f32 %v5540_v50, %v7986_v32  ;;  %v3133_v50 = vmul.f32 %v5543_v12, %v7496_v46  ;;  %v3137_v30 = vmul.f32 %v5544_v37, %v7468_v51  ;;  %v672_v36 = vpack.c.bf16 %v44_v13, %v28_v21  ;;  %v8062_v60 = vpop.eup %5049  ;;  %v5545_v12 = vld [vmem:[%s11015_s1 + $0xf8] sm:$0xff]  ;;  %v42_v35 = vld [vmem:[%s11014_s0 + $0x90] sm:$0xff] }
  0xfc   :  { %11350 = vst [vmem:[#allocation59_spill] sm:$0xff] %v8040_v26  ;;  %11351 = vst [vmem:[#allocation60_spill] sm:$0xff] %v8046_v4  ;;  %5055 = vrsqrt.f32 %v2382_v28  ;;  %v8068_v37 = vmul.f32 %v5545_v12, %v8058_v7  ;;  %v3276_v19 = vpack.c.bf16 %v3128_v29, %v3124_v25  ;;  %v5546_v21 = vld [vmem:[%s11015_s1 + $0xd8] sm:$0xff]  ;;  %v2280_v12 = vpop.xlane.xlu1 %2279  ;;  %v5547_v25 = vld [vmem:[%s11015_s1 + $0xd0] sm:$0xff]  ;;  %v671_v26 = vpack.c.bf16 %v42_v35, %v26_v55 }
  0xfd   :  { %11349 = vst [vmem:[#allocation58_spill] sm:$0xff] %v8032_v1  ;;  %5057 = vrsqrt.f32 %v2381_v54  ;;  %v8080_v13 = vmul.f32 %v5546_v21, %v8062_v60  ;;  %v3281_v28 = vpack.c.bf16 %v3137_v30, %v3133_v50  ;;  %v8086_v29 = vmul.f32 %v5547_v25, %v8062_v60  ;;  %v5548_v54 = vld [vmem:[%s11015_s1 + $0xf0] sm:$0xff]  ;;  %v60_v25 = vld [vmem:[%s11014_s0 + $0x118] sm:$0xff]  ;;  %v5550_v35 = vld [vmem:[%s11015_s1 + $0x6e0] sm:$0xff] }
  0xfe   :  { %11352 = vst [vmem:[#allocation61_spill] sm:$0xff] %v8068_v37  ;;  %v8092_v40 = vmul.f32 %v5548_v54, %v8058_v7  ;;  %v2384_v21 = vmax.f32 %v2280_v12, 1e-24  ;;  %v76_v4 = vld [vmem:[%s11014_s0 + $0x198] sm:$0xff]  ;;  %v5549_v12 = vld [vmem:[%s11015_s1 + $0x6c0] sm:$0xff]  ;;  %v3136_v30 = vmul.f32 %v5550_v35, %v7468_v51  ;;  %v58_v1 = vld [vmem:[%s11014_s0 + $0x110] sm:$0xff] }
  0xff   :  { %11353 = vst [vmem:[#allocation62_spill] sm:$0xff] %v8080_v13  ;;  %1108 = vmatmul.mubr.bf16.gmra.mrb[60].mxu0 %v729_v10  ;;  %11354 = vst [vmem:[#allocation63_spill] sm:$0xff] %v8086_v29  ;;  %v2275_v10 = vpop.xlane.xlu0 %2274  ;;  %v3132_v55 = vmul.f32 %v5549_v12, %v7496_v46  ;;  %v5553_v12 = vld [vmem:[%s11015_s1 + $0x728] sm:$0xff] }
 0x100   :  { %11355 = vst [vmem:[#allocation64_spill] sm:$0xff] %v8092_v40  ;;  %1149 = vmatpush1.bf16.xpose.msra.mxu0 %v923_v59  ;;  %1150 = vmatprep.mubr.bf16.mxu0 %v672_v36  ;;  %v2383_v54 = vmax.f32 %v2275_v10, 1e-24  ;;  %5059 = vrsqrt.f32 %v2384_v21  ;;  %v5551_v10 = vld [vmem:[%s11015_s1 + $0x138] sm:$0xff]  ;;  %v3145_v51 = vmul.f32 %v5553_v12, %v7564_v2 }
 0x101   :  { %v8096_v50 = vpop.eup %5051  ;;  %3321 = vmatpush1.bf16.xpose.msra.mxu1 %v3276_v19  ;;  %v5552_v19 = vld [vmem:[%s11015_s1 + $0x708] sm:$0xff]  ;;  %v5554_v21 = vld [vmem:[%s11015_s1 + $0x118] sm:$0xff] }
 0x102   :  { %v8106_v36 = vpop.eup %5053  ;;  %v8120_v59 = vmul.f32 %v5551_v10, %v8096_v50  ;;  %3322 = vmatprep.subr.bf16.mxu1 %v3281_v28  ;;  %v3141_v46 = vmul.f32 %v5552_v19, %v7547_v0  ;;  %5061 = vrsqrt.f32 %v2383_v54  ;;  %v676_v28 = vpack.c.bf16 %v76_v4, %v60_v25  ;;  %v2290_v10 = vpop.xlane.xlu1 %2289  ;;  %v5555_v19 = vld [vmem:[%s11015_s1 + $0x110] sm:$0xff]  ;;  %v5557_v4 = vld [vmem:[%s11015_s1 + $0x178] sm:$0xff] }
 0x103   :  { %v8134_v35 = vmul.f32 %v5554_v21, %v8106_v36  ;;  %v8140_v29 = vmul.f32 %v5555_v19, %v8106_v36  ;;  %v5556_v54 = vld [vmem:[%s11015_s1 + $0x130] sm:$0xff]  ;;  %v2386_v40 = vmax.f32 %v2290_v10, 1e-24  ;;  %v2285_v13 = vpop.xlane.xlu0 %2284  ;;  %v3280_v21 = vpack.c.bf16 %v3136_v30, %v3132_v55 }
 0x104   :  { %11356 = vst [vmem:[#allocation65_spill] sm:$0xff] %v8120_v59  ;;  %v8146_v12 = vmul.f32 %v5556_v54, %v8096_v50  ;;  %v2385_v37 = vmax.f32 %v2285_v13, 1e-24  ;;  %v74_v10 = vld [vmem:[%s11014_s0 + $0x190] sm:$0xff]  ;;  %v3285_v54 = vpack.c.bf16 %v3145_v51, %v3141_v46  ;;  %v108_v46 = vld [vmem:[%s11014_s0 + $0x298] sm:$0xff] }
 0x105   :  { %11357 = vst [vmem:[#allocation66_spill] sm:$0xff] %v8134_v35  ;;  %11358 = vst [vmem:[#allocation67_spill] sm:$0xff] %v8140_v29  ;;  %5063 = vrsqrt.f32 %v2386_v40  ;;  %v92_v40 = vld [vmem:[%s11014_s0 + $0x218] sm:$0xff]  ;;  %v675_v19 = vpack.c.bf16 %v74_v10, %v58_v1  ;;  %v5561_v29 = vld [vmem:[%s11015_s1 + $0x700] sm:$0xff] }
 0x106   :  { %11359 = vst [vmem:[#allocation68_spill] sm:$0xff] %v8146_v12  ;;  %v8150_v25 = vpop.eup %5055  ;;  %5065 = vrsqrt.f32 %v2385_v37  ;;  %v2300_v51 = vpop.xlane.xlu1 %2299  ;;  %v5559_v37 = vld [vmem:[%s11015_s1 + $0x158] sm:$0xff]  ;;  %v3140_v12 = vmul.f32 %v5561_v29, %v7547_v0  ;;  %v5566_v10 = vld [vmem:[%s11015_s1 + $0x1b0] sm:$0xff] }
 0x107   :  { %1151 = vmatmul.mubr.bf16.vlgmr.msra.gmra.mrb[0].mxu0 %v671_v26  ;;  %v8164_v13 = vmul.f32 %v5557_v4, %v8150_v25  ;;  %v8166_v30 = vpop.eup %5057  ;;  %v5558_v26 = vld [vmem:[%s11015_s1 + $0x170] sm:$0xff]  ;;  %v2388_v59 = vmax.f32 %v2300_v51, 1e-24  ;;  %v2295_v29 = vpop.xlane.xlu0 %2294  ;;  %v680_v51 = vpack.c.bf16 %v108_v46, %v92_v40  ;;  %v5567_v46 = vld [vmem:[%s11015_s1 + $0x198] sm:$0xff] }
 0x108   :  { %1160 = vmatprep.mubr.bf16.mxu0 %v676_v28  ;;  %v8172_v55 = vmul.f32 %v5558_v26, %v8150_v25  ;;  %v8184_v28 = vmul.f32 %v5559_v37, %v8166_v30  ;;  %v5560_v4 = vld [vmem:[%s11015_s1 + $0x150] sm:$0xff]  ;;  %v5562_v37 = vld [vmem:[%s11015_s1 + $0x720] sm:$0xff] }
 0x109   :  { %11360 = vst [vmem:[#allocation69_spill] sm:$0xff] %v8164_v13  ;;  %v8190_v26 = vmul.f32 %v5560_v4, %v8166_v30  ;;  %3323 = vmatpush1.bf16.xpose.msra.mxu1 %v3280_v21  ;;  %v3144_v35 = vmul.f32 %v5562_v37, %v7564_v2  ;;  %v5563_v4 = vld [vmem:[%s11015_s1 + $0x748] sm:$0xff]  ;;  %5067 = vrsqrt.f32 %v2388_v59  ;;  %v2387_v37 = vmax.f32 %v2295_v29, 1e-24  ;;  %v90_v59 = vld [vmem:[%s11014_s0 + $0x210] sm:$0xff] }
 0x10a   :  { %11361 = vst [vmem:[#allocation70_spill] sm:$0xff] %v8172_v55  ;;  %11362 = vst [vmem:[#allocation71_spill] sm:$0xff] %v8184_v28  ;;  %3324 = vmatprep.subr.bf16.mxu1 %v3285_v54  ;;  %v3149_v1 = vmul.f32 %v5563_v4, %v7634_v27  ;;  %v5564_v21 = vld [vmem:[%s11015_s1 + $0x768] sm:$0xff]  ;;  %v8212_v54 = vpop.eup %5059  ;;  %v5565_v4 = vld [vmem:[%s11015_s1 + $0x1b8] sm:$0xff] }
 0x10b   :  { %11363 = vst [vmem:[#allocation72_spill] sm:$0xff] %v8190_v26  ;;  %v3153_v0 = vmul.f32 %v5564_v21, %v7614_v34  ;;  %v8220_v21 = vmul.f32 %v5565_v4, %v8212_v54  ;;  %v8226_v2 = vmul.f32 %v5566_v10, %v8212_v54  ;;  %v3284_v26 = vpack.c.bf16 %v3144_v35, %v3140_v12  ;;  %v106_v40 = vld [vmem:[%s11014_s0 + $0x290] sm:$0xff]  ;;  %v2310_v4 = vpop.xlane.xlu1 %2309 }
 0x10c   :  { %v8214_v48 = vpop.eup %5061  ;;  %5069 = vrsqrt.f32 %v2387_v37  ;;  %v5568_v35 = vld [vmem:[%s11015_s1 + $0x190] sm:$0xff]  ;;  %v2390_v55 = vmax.f32 %v2310_v4, 1e-24  ;;  %v2305_v37 = vpop.xlane.xlu0 %2304 }
 0x10d   :  { %11364 = vst [vmem:[#allocation73_spill] sm:$0xff] %v8220_v21  ;;  %11365 = vst [vmem:[#allocation74_spill] sm:$0xff] %v8226_v2  ;;  %v8238_v29 = vmul.f32 %v5567_v46, %v8214_v48  ;;  %v3289_v10 = vpack.c.bf16 %v3153_v0, %v3149_v1  ;;  %v8244_v12 = vmul.f32 %v5568_v35, %v8214_v48  ;;  %v140_v1 = vld [vmem:[%s11014_s0 + $0x398] sm:$0xff]  ;;  %v2389_v0 = vmax.f32 %v2305_v37, 1e-24  ;;  %v5569_v35 = vld [vmem:[%s11015_s1 + $0x740] sm:$0xff] }
 0x10e   :  { %v679_v46 = vpack.c.bf16 %v106_v40, %v90_v59  ;;  %v3148_v59 = vmul.f32 %v5569_v35, %v7634_v27  ;;  %v5570_v40 = vld [vmem:[%s11015_s1 + $0x760] sm:$0xff]  ;;  %5071 = vrsqrt.f32 %v2390_v55  ;;  %v5571_v37 = vld [vmem:[%s11015_s1 + $0x1f8] sm:$0xff]  ;;  %v5573_v35 = vld [vmem:[%s11015_s1 + $0x7a8] sm:$0xff] }
 0x10f   :  { %11366 = vst [vmem:[#allocation75_spill] sm:$0xff] %v8238_v29  ;;  %1161 = vmatmul.mubr.bf16.gmra.mrb[4].mxu0 %v675_v19  ;;  %11367 = vst [vmem:[#allocation76_spill] sm:$0xff] %v8244_v12  ;;  %v8248_v13 = vpop.eup %5063  ;;  %v124_v19 = vld [vmem:[%s11014_s0 + $0x318] sm:$0xff]  ;;  %v3152_v28 = vmul.f32 %v5570_v40, %v7614_v34  ;;  %v3161_v34 = vmul.f32 %v5573_v35, %v7734_v42  ;;  %5073 = vrsqrt.f32 %v2389_v0  ;;  %v5576_v0 = vld [vmem:[%s11015_s1 + $0x1f0] sm:$0xff] }
 0x110   :  { %1170 = vmatprep.mubr.bf16.mxu0 %v680_v51  ;;  %v8258_v4 = vpop.eup %5065  ;;  %v8272_v51 = vmul.f32 %v5571_v37, %v8248_v13  ;;  %v5574_v55 = vld [vmem:[%s11015_s1 + $0x1d8] sm:$0xff]  ;;  %v2320_v37 = vpop.xlane.xlu1 %2319  ;;  %v8298_v35 = vmul.f32 %v5576_v0, %v8248_v13  ;;  %v138_v0 = vld [vmem:[%s11014_s0 + $0x390] sm:$0xff] }
 0x111   :  { %3325 = vmatpush1.bf16.xpose.msra.mxu1 %v3284_v26  ;;  %v5572_v26 = vld [vmem:[%s11015_s1 + $0x788] sm:$0xff]  ;;  %v8286_v40 = vmul.f32 %v5574_v55, %v8258_v4  ;;  %v2392_v2 = vmax.f32 %v2320_v37, 1e-24  ;;  %v2315_v29 = vpop.xlane.xlu0 %2314  ;;  %v122_v37 = vld [vmem:[%s11014_s0 + $0x310] sm:$0xff]  ;;  %v5581_v55 = vld [vmem:[%s11015_s1 + $0x7a0] sm:$0xff] }
 0x112   :  { %11368 = vst [vmem:[#allocation77_spill] sm:$0xff] %v8272_v51  ;;  %3326 = vmatprep.subr.bf16.mxu1 %v3289_v10  ;;  %v3157_v27 = vmul.f32 %v5572_v26, %v7710_v62  ;;  %v684_v10 = vpack.c.bf16 %v140_v1, %v124_v19  ;;  %v5575_v26 = vld [vmem:[%s11015_s1 + $0x1d0] sm:$0xff]  ;;  %11371 = vst [vmem:[#allocation80_spill] sm:$0xff] %v8298_v35  ;;  %v3288_v1 = vpack.c.bf16 %v3152_v28, %v3148_v59  ;;  %v5577_v28 = vld [vmem:[%s11015_s1 + $0x238] sm:$0xff] }
 0x113   :  { %11369 = vst [vmem:[#allocation78_spill] sm:$0xff] %v8286_v40  ;;  %v8292_v12 = vmul.f32 %v5575_v26, %v8258_v4  ;;  %v8302_v19 = vpop.eup %5067  ;;  %5075 = vrsqrt.f32 %v2392_v2  ;;  %v2391_v31 = vmax.f32 %v2315_v29, 1e-24  ;;  %v5578_v2 = vld [vmem:[%s11015_s1 + $0x230] sm:$0xff]  ;;  %v156_v59 = vld [vmem:[%s11014_s0 + $0x418] sm:$0xff] }
 0x114   :  { %v3293_v26 = vpack.c.bf16 %v3161_v34, %v3157_v27  ;;  %v8324_v29 = vmul.f32 %v5578_v2, %v8302_v19  ;;  %v172_v27 = vld [vmem:[%s11014_s0 + $0x498] sm:$0xff]  ;;  %v2330_v34 = vpop.xlane.xlu1 %2329  ;;  %v5580_v2 = vld [vmem:[%s11015_s1 + $0x780] sm:$0xff]  ;;  %v5582_v35 = vld [vmem:[%s11015_s1 + $0x210] sm:$0xff] }
 0x115   :  { %11370 = vst [vmem:[#allocation79_spill] sm:$0xff] %v8292_v12  ;;  %5077 = vrsqrt.f32 %v2391_v31  ;;  %v3156_v21 = vmul.f32 %v5580_v2, %v7710_v62  ;;  %v3160_v31 = vmul.f32 %v5581_v55, %v7734_v42  ;;  %v2394_v12 = vmax.f32 %v2330_v34, 1e-24  ;;  %v5583_v62 = vld [vmem:[%s11015_s1 + $0x7c8] sm:$0xff]  ;;  %v2325_v34 = vpop.xlane.xlu0 %2324  ;;  %v5586_v40 = vld [vmem:[%s11015_s1 + $0x270] sm:$0xff] }
 0x116   :  { %v8306_v38 = vpop.eup %5069  ;;  %11373 = vst [vmem:[#allocation82_spill] sm:$0xff] %v8324_v29  ;;  %v3165_v2 = vmul.f32 %v5583_v62, %v7794_v16  ;;  %v5584_v42 = vld [vmem:[%s11015_s1 + $0x7e8] sm:$0xff]  ;;  %v5585_v62 = vld [vmem:[%s11015_s1 + $0x278] sm:$0xff] }
 0x117   :  { %1171 = vmatmul.mubr.bf16.gmra.mrb[8].mxu0 %v679_v46  ;;  %v8318_v46 = vmul.f32 %v5577_v28, %v8302_v19  ;;  %v3169_v55 = vmul.f32 %v5584_v42, %v7774_v33  ;;  %5079 = vrsqrt.f32 %v2394_v12  ;;  %v3292_v12 = vpack.c.bf16 %v3160_v31, %v3156_v21  ;;  %v154_v21 = vld [vmem:[%s11014_s0 + $0x410] sm:$0xff] }
 0x118   :  { %1180 = vmatprep.mubr.bf16.mxu0 %v684_v10  ;;  %v5579_v10 = vld [vmem:[%s11015_s1 + $0x218] sm:$0xff] }
 0x119   :  { %11372 = vst [vmem:[#allocation81_spill] sm:$0xff] %v8318_v46  ;;  %v8336_v28 = vmul.f32 %v5579_v10, %v8306_v38  ;;  %3327 = vmatpush1.bf16.xpose.msra.mxu1 %v3288_v1  ;;  %v8350_v10 = vmul.f32 %v5582_v35, %v8306_v38  ;;  %v683_v1 = vpack.c.bf16 %v138_v0, %v122_v37  ;;  %v8362_v35 = vpop.eup %5071 }
 0x11a   :  { %3328 = vmatprep.subr.bf16.mxu1 %v3293_v26  ;;  %v688_v37 = vpack.c.bf16 %v172_v27, %v156_v59  ;;  %v2393_v26 = vmax.f32 %v2325_v34, 1e-24  ;;  %v8366_v51 = vpop.eup %5073  ;;  %v8372_v42 = vmul.f32 %v5585_v62, %v8362_v35  ;;  %v8378_v59 = vmul.f32 %v5586_v40, %v8362_v35  ;;  %v5587_v27 = vld [vmem:[%s11015_s1 + $0x258] sm:$0xff]  ;;  %v2340_v62 = vpop.xlane.xlu1 %2339  ;;  %v170_v40 = vld [vmem:[%s11014_s0 + $0x490] sm:$0xff] }
 0x11b   :  { %11374 = vst [vmem:[#allocation83_spill] sm:$0xff] %v8336_v28  ;;  %11375 = vst [vmem:[#allocation84_spill] sm:$0xff] %v8350_v10  ;;  %v8384_v34 = vmul.f32 %v5587_v27, %v8366_v51  ;;  %v3297_v0 = vpack.c.bf16 %v3169_v55, %v3165_v2  ;;  %v5588_v10 = vld [vmem:[%s11015_s1 + $0x250] sm:$0xff]  ;;  %v2396_v31 = vmax.f32 %v2340_v62, 1e-24  ;;  %v5589_v62 = vld [vmem:[%s11015_s1 + $0x7c0] sm:$0xff] }
 0x11c   :  { %11376 = vst [vmem:[#allocation85_spill] sm:$0xff] %v8372_v42  ;;  %11377 = vst [vmem:[#allocation86_spill] sm:$0xff] %v8378_v59  ;;  %5081 = vrsqrt.f32 %v2393_v26  ;;  %v8390_v29 = vmul.f32 %v5588_v10, %v8366_v51  ;;  %v188_v10 = vld [vmem:[%s11014_s0 + $0x518] sm:$0xff]  ;;  %v3164_v2 = vmul.f32 %v5589_v62, %v7794_v16  ;;  %v5592_v16 = vld [vmem:[%s11015_s1 + $0x2b0] sm:$0xff] }
 0x11d   :  { %11378 = vst [vmem:[#allocation87_spill] sm:$0xff] %v8384_v34  ;;  %v8400_v55 = vpop.eup %5075  ;;  %v5590_v34 = vld [vmem:[%s11015_s1 + $0x7e0] sm:$0xff]  ;;  %5083 = vrsqrt.f32 %v2396_v31  ;;  %v5593_v31 = vld [vmem:[%s11015_s1 + $0x298] sm:$0xff] }
 0x11e   :  { %11379 = vst [vmem:[#allocation88_spill] sm:$0xff] %v8390_v29  ;;  %11380 = vst [vmem:[#allocation89_spill] sm:$0xff] %v8400_v55  ;;  %v3168_v42 = vmul.f32 %v5590_v34, %v7774_v33  ;;  %v687_v29 = vpack.c.bf16 %v170_v40, %v154_v21  ;;  %v8430_v62 = vmul.f32 %v5592_v16, %v8400_v55  ;;  %v2350_v34 = vpop.xlane.xlu1 %2349 }
 0x11f   :  { %1181 = vmatmul.mubr.bf16.gmra.mrb[12].mxu0 %v683_v1  ;;  %v2335_v1 = vpop.xlane.xlu0 %2334  ;;  %v2398_v40 = vmax.f32 %v2350_v34, 1e-24  ;;  %v186_v34 = vld [vmem:[%s11014_s0 + $0x510] sm:$0xff] }
 0x120   :  { %1190 = vmatprep.mubr.bf16.mxu0 %v688_v37  ;;  %v204_v37 = vld [vmem:[%s11014_s0 + $0x598] sm:$0xff]  ;;  %v2395_v26 = vmax.f32 %v2335_v1, 1e-24  ;;  %11382 = vst [vmem:[#allocation91_spill] sm:$0xff] %v8430_v62  ;;  %v3296_v16 = vpack.c.bf16 %v3168_v42, %v3164_v2  ;;  %v202_v42 = vld [vmem:[%s11014_s0 + $0x590] sm:$0xff]  ;;  %v5599_v62 = vld [vmem:[%s11015_s1 + $0x68] sm:$0xff] }
 0x121   :  { %3329 = vmatpush1.bf16.xpose.msra.mxu1 %v3292_v12  ;;  %v5591_v1 = vld [vmem:[%s11015_s1 + $0x2b8] sm:$0xff]  ;;  %v8424_v12 = vpop.eup %5077  ;;  %v692_v33 = vpack.c.bf16 %v204_v37, %v188_v10  ;;  %v691_v46 = vpack.c.bf16 %v202_v42, %v186_v34 }
 0x122   :  { %v8422_v27 = vmul.f32 %v5591_v1, %v8400_v55  ;;  %3330 = vmatprep.subr.bf16.mxu1 %v3297_v0  ;;  %5085 = vrsqrt.f32 %v2395_v26  ;;  %v8436_v1 = vmul.f32 %v5593_v31, %v8424_v12  ;;  %v5594_v0 = vld [vmem:[%s11015_s1 + $0x290] sm:$0xff]  ;;  %v8444_v26 = vpop.eup %5079  ;;  %v5595_v2 = vld [vmem:[%s11015_s1 + $0x2f8] sm:$0xff]  ;;  %v2360_v59 = vpop.xlane.xlu1 %2359 }
 0x123   :  { %v8442_v21 = vmul.f32 %v5594_v0, %v8424_v12  ;;  %11385 = vst [vmem:[#allocation94_spill] sm:$0xff] %v8444_v26  ;;  %v2345_v10 = vpop.xlane.xlu0 %2344  ;;  %5087 = vrsqrt.f32 %v2398_v40  ;;  %v8462_v0 = vmul.f32 %v5595_v2, %v8444_v26  ;;  %v220_v40 = vld [vmem:[%s11014_s0 + $0x618] sm:$0xff] }
 0x124   :  { %11381 = vst [vmem:[#allocation90_spill] sm:$0xff] %v8422_v27  ;;  %11383 = vst [vmem:[#allocation92_spill] sm:$0xff] %v8436_v1  ;;  %v2397_v31 = vmax.f32 %v2345_v10, 1e-24  ;;  %v236_v10 = vld [vmem:[%s11014_s0 + $0x698] sm:$0xff]  ;;  %v5600_v27 = vld [vmem:[%s11015_s1 + $0x2d0] sm:$0xff] }
 0x125   :  { %11384 = vst [vmem:[#allocation93_spill] sm:$0xff] %v8442_v21  ;;  %v5597_v2 = vld [vmem:[%s11015_s1 + $0x2d8] sm:$0xff]  ;;  %v2400_v1 = vmax.f32 %v2360_v59, 1e-24 }
 0x126   :  { %v8450_v28 = vpop.eup %5081  ;;  %5089 = vrsqrt.f32 %v2397_v31  ;;  %v2448_v31 = vmul.f32 %v5599_v62, %v7903_v44  ;;  %v696_v62 = vpack.c.bf16 %v236_v10, %v220_v40  ;;  %v5603_v40 = vld [vmem:[%s11015_s1 + $0x318] sm:$0xff] }
 0x127   :  { %1191 = vmatmul.mubr.bf16.gmra.mrb[16].mxu0 %v687_v29  ;;  %v5596_v29 = vld [vmem:[%s11015_s1 + $0x2f0] sm:$0xff]  ;;  %v8480_v37 = vmul.f32 %v5597_v2, %v8450_v28  ;;  %v8494_v2 = vmul.f32 %v5600_v27, %v8450_v28  ;;  %v8501_v58 = vpop.eup %5083  ;;  %5091 = vrsqrt.f32 %v2400_v1 }
 0x128   :  { %1200 = vmatprep.mubr.bf16.mxu0 %v692_v33  ;;  %v8468_v33 = vmul.f32 %v5596_v29, %v8444_v26  ;;  %v5598_v29 = vld [vmem:[%s11015_s1 + $0x48] sm:$0xff]  ;;  %v5602_v27 = vld [vmem:[%s11015_s1 + $0x330] sm:$0xff] }
 0x129   :  { %3331 = vmatpush1.bf16.xpose.msra.mxu1 %v3296_v16  ;;  %v2444_v21 = vmul.f32 %v5598_v29, %v7925_v23  ;;  %v11386_v16 = vpack.c.bf16 %v6916_v14, %v6900_v6  ;;  %v2355_v29 = vpop.xlane.xlu0 %2354  ;;  %v5601_v6 = vld [vmem:[%s11015_s1 + $0x338] sm:$0xff]  ;;  %v8517_v34 = vmul.f32 %v5602_v27, %v8501_v58 }
 0x12a   :  { %v2399_v59 = vmax.f32 %v2355_v29, 1e-24  ;;  %v8511_v14 = vmul.f32 %v5601_v6, %v8501_v58  ;;  %v5604_v29 = vld [vmem:[%s11015_s1 + $0x310] sm:$0xff] }
 0x12b   :  { %3493 = vmatprep.subr.bf16.mxu1 %v11386_v16  ;;  %v3177_v1 = vpack.c.bf16 %v2448_v31, %v2444_v21  ;;  %v218_v21 = vld [vmem:[%s11014_s0 + $0x610] sm:$0xff] }
 0x12c   :  { %v8505_v55 = vpop.eup %5085  ;;  %5093 = vrsqrt.f32 %v2399_v59  ;;  %v2370_v42 = vpop.xlane.xlu1 %2369  ;;  %v234_v31 = vld [vmem:[%s11014_s0 + $0x690] sm:$0xff] }
 0x12d   :  { %v8523_v10 = vmul.f32 %v5603_v40, %v8505_v55  ;;  %v2402_v16 = vmax.f32 %v2370_v42, 1e-24  ;;  %v8529_v6 = vmul.f32 %v5604_v29, %v8505_v55  ;;  %v8543_v40 = vpop.eup %5087  ;;  %v5606_v29 = vld [vmem:[%s11015_s1 + $0x40] sm:$0xff] }
 0x12e   :  { %v2365_v27 = vpop.xlane.xlu0 %2364  ;;  %v2443_v26 = vmul.f32 %v5606_v29, %v7925_v23  ;;  %v5607_v23 = vld [vmem:[%s11015_s1 + $0x88] sm:$0xff] }
 0x12f   :  { %1201 = vmatmul.mubr.bf16.gmra.mrb[20].mxu0 %v691_v46  ;;  %v5605_v46 = vld [vmem:[%s11015_s1 + $0x60] sm:$0xff]  ;;  %5095 = vrsqrt.f32 %v2402_v16  ;;  %v2401_v42 = vmax.f32 %v2365_v27, 1e-24  ;;  %v5608_v29 = vld [vmem:[%s11015_s1 + $0xa8] sm:$0xff]  ;;  %v5609_v27 = vld [vmem:[%s11015_s1 + $0x378] sm:$0xff] }
 0x130   :  { %1210 = vmatprep.mubr.bf16.mxu0 %v696_v62  ;;  %v2447_v59 = vmul.f32 %v5605_v46, %v7903_v44  ;;  %v11387_v62 = vpack.c.bf16 %v7842_v57, %v7859_v3  ;;  %v252_v44 = vld [vmem:[%s11014_s0 + $0x718] sm:$0xff]  ;;  %v11388_v57 = vpack.c.bf16 %v6930_v20, %v6905_v8  ;;  %v2456_v16 = vmul.f32 %v5608_v29, %v7967_v53  ;;  %v8577_v20 = vpop.eup %5089 }
 0x131   :  { %v268_v46 = vld [vmem:[%s11014_s0 + $0x798] sm:$0xff]  ;;  %v8575_v8 = vmul.f32 %v5609_v27, %v8543_v40  ;;  %5097 = vrsqrt.f32 %v2401_v42 }
 0x132   :  { %3333 = vmatmul.mubr.bf16.vlgmr.msra.gmra.mrb[0].mxu1 %v11387_v62  ;;  %v2452_v62 = vmul.f32 %v5607_v23, %v7986_v32  ;;  %v5610_v23 = vld [vmem:[%s11015_s1 + $0x370] sm:$0xff]  ;;  %v700_v3 = vpack.c.bf16 %v268_v46, %v252_v44  ;;  %v5611_v27 = vld [vmem:[%s11015_s1 + $0x358] sm:$0xff]  ;;  %v5619_v44 = vld [vmem:[%s11015_s1 + $0xc8] sm:$0xff] }
 0x133   :  { %3494 = vmatpush1.bf16.xpose.msra.mxu1 %v11388_v57  ;;  %3342 = vmatprep.mubr.bf16.mxu1 %v3177_v1  ;;  %v11389_v1 = vpack.c.bf16 %v6967_v39, %v6936_v22  ;;  %v695_v57 = vpack.c.bf16 %v234_v31, %v218_v21  ;;  %v8586_v29 = vmul.f32 %v5610_v23, %v8543_v40  ;;  %v5612_v22 = vld [vmem:[%s11015_s1 + $0x350] sm:$0xff]  ;;  %v8600_v31 = vpop.eup %5091  ;;  %v5617_v46 = vld [vmem:[%s11015_s1 + $0x398] sm:$0xff] }
 0x134   :  { %v8592_v17 = vmul.f32 %v5611_v27, %v8577_v20  ;;  %v8598_v39 = vmul.f32 %v5612_v22, %v8577_v20  ;;  %v3176_v21 = vpack.c.bf16 %v2447_v59, %v2443_v26  ;;  %v3181_v42 = vpack.c.bf16 %v2456_v16, %v2452_v62  ;;  %v5614_v26 = vld [vmem:[%s11015_s1 + $0x3b0] sm:$0xff]  ;;  %v5615_v27 = vld [vmem:[%s11015_s1 + $0x80] sm:$0xff] }
 0x135   :  { %3495 = vmatprep.subr.bf16.mxu1 %v11389_v1  ;;  %11390 = vst [vmem:[#allocation95_spill] sm:$0xff] %v8586_v29  ;;  %v5613_v1 = vld [vmem:[%s11015_s1 + $0x3b8] sm:$0xff]  ;;  %v8616_v59 = vmul.f32 %v5614_v26, %v8600_v31  ;;  %v250_v16 = vld [vmem:[%s11014_s0 + $0x710] sm:$0xff]  ;;  %v2451_v22 = vmul.f32 %v5615_v27, %v7986_v32 }
 0x136   :  { %11391 = vst [vmem:[#allocation96_spill] sm:$0xff] %v8592_v17  ;;  %11392 = vst [vmem:[#allocation97_spill] sm:$0xff] %v8598_v39  ;;  %v8610_v23 = vmul.f32 %v5613_v1, %v8600_v31  ;;  %v8618_v62 = vpop.eup %5093  ;;  %v5616_v1 = vld [vmem:[%s11015_s1 + $0xa0] sm:$0xff]  ;;  %v284_v26 = vld [vmem:[%s11014_s0 + $0x818] sm:$0xff]  ;;  %v2460_v39 = vmul.f32 %v5619_v44, %v8062_v60 }
 0x137   :  { %1211 = vmatmul.mubr.bf16.gmra.mrb[24].mxu0 %v695_v57  ;;  %v266_v57 = vld [vmem:[%s11014_s0 + $0x790] sm:$0xff]  ;;  %v8644_v32 = vmul.f32 %v5617_v46, %v8618_v62  ;;  %v5620_v46 = vld [vmem:[%s11015_s1 + $0xe8] sm:$0xff] }
 0x138   :  { %1220 = vmatprep.mubr.bf16.mxu0 %v700_v3  ;;  %v2455_v3 = vmul.f32 %v5616_v1, %v7967_v53  ;;  %v5618_v27 = vld [vmem:[%s11015_s1 + $0x390] sm:$0xff]  ;;  %v11393_v1 = vpack.c.bf16 %v6978_v43, %v6973_v41  ;;  %v2464_v29 = vmul.f32 %v5620_v46, %v8058_v7  ;;  %v699_v41 = vpack.c.bf16 %v266_v57, %v250_v16 }
 0x139   :  { %v8650_v53 = vmul.f32 %v5618_v27, %v8618_v62  ;;  %v8663_v17 = vpop.eup %5095  ;;  %v11394_v27 = vpack.c.bf16 %v7014_v9, %v7009_v5  ;;  %v5622_v5 = vld [vmem:[%s11015_s1 + $0x3f0] sm:$0xff] }
 0x13a   :  { %3343 = vmatmul.mubr.bf16.gmra.mrb[4].mxu1 %v3176_v21  ;;  %v300_v21 = vld [vmem:[%s11014_s0 + $0x898] sm:$0xff]  ;;  %v8682_v9 = vmul.f32 %v5622_v5, %v8663_v17  ;;  %v3180_v57 = vpack.c.bf16 %v2455_v3, %v2451_v22  ;;  %v5626_v5 = vld [vmem:[%s11015_s1 + $0xe0] sm:$0xff]  ;;  %v11395_v3 = vpack.c.bf16 %v7029_v18, %v7019_v11  ;;  %v11396_v22 = vpack.c.bf16 %v7078_v47, %v7072_v45 }
 0x13b   :  { %3496 = vmatpush1.bf16.xpose.msra.mxu1 %v11393_v1  ;;  %3352 = vmatprep.mubr.bf16.mxu1 %v3181_v42  ;;  %v704_v44 = vpack.c.bf16 %v300_v21, %v284_v26  ;;  %v5621_v1 = vld [vmem:[%s11015_s1 + $0x3f8] sm:$0xff]  ;;  %v8684_v16 = vpop.eup %5097  ;;  %v5629_v45 = vld [vmem:[%s11015_s1 + $0x100] sm:$0xff] }
 0x13c   :  { %3497 = vmatprep.subr.bf16.mxu1 %v11394_v27  ;;  %v8676_v46 = vmul.f32 %v5621_v1, %v8663_v17  ;;  %v3185_v27 = vpack.c.bf16 %v2464_v29, %v2460_v39  ;;  %v5623_v26 = vld [vmem:[%s11015_s1 + $0x3d8] sm:$0xff]  ;;  %v5624_v1 = vld [vmem:[%s11015_s1 + $0x3d0] sm:$0xff]  ;;  %v2467_v47 = vmul.f32 %v5629_v45, %v8106_v36  ;;  %v11399_v45 = vpack.c.bf16 %v7174_v56, %v7168_v52 }
 0x13d   :  { %v8690_v21 = vmul.f32 %v5623_v26, %v8684_v16  ;;  %v8696_v42 = vmul.f32 %v5624_v1, %v8684_v16  ;;  %v282_v29 = vld [vmem:[%s11014_s0 + $0x810] sm:$0xff]  ;;  %v2463_v26 = vmul.f32 %v5626_v5, %v8058_v7  ;;  %v316_v1 = vld [vmem:[%s11014_s0 + $0x918] sm:$0xff]  ;;  %v5628_v7 = vld [vmem:[%s11015_s1 + $0x128] sm:$0xff] }
 0x13e   :  { %v298_v39 = vld [vmem:[%s11014_s0 + $0x890] sm:$0xff]  ;;  %v2472_v5 = vmul.f32 %v5628_v7, %v8096_v50 }
 0x13f   :  { %1221 = vmatmul.mubr.bf16.gmra.mrb[28].mxu0 %v699_v41  ;;  %v5625_v41 = vld [vmem:[%s11015_s1 + $0xc0] sm:$0xff]  ;;  %v703_v43 = vpack.c.bf16 %v298_v39, %v282_v29  ;;  %v348_v39 = vld [vmem:[%s11014_s0 + $0xa18] sm:$0xff] }
 0x140   :  { %1230 = vmatprep.mubr.bf16.mxu0 %v704_v44  ;;  %v2459_v44 = vmul.f32 %v5625_v41, %v8062_v60  ;;  %v5627_v60 = vld [vmem:[%s11015_s1 + $0x108] sm:$0xff] }
 0x141   :  { %v2468_v41 = vmul.f32 %v5627_v60, %v8106_v36  ;;  %v330_v60 = vld [vmem:[%s11014_s0 + $0x990] sm:$0xff]  ;;  %v5631_v36 = vld [vmem:[%s11015_s1 + $0x148] sm:$0xff] }
 0x142   :  { %3353 = vmatmul.mubr.bf16.gmra.mrb[8].mxu1 %v3180_v57  ;;  %v332_v57 = vld [vmem:[%s11014_s0 + $0x998] sm:$0xff]  ;;  %v3184_v18 = vpack.c.bf16 %v2463_v26, %v2459_v44  ;;  %v11397_v44 = vpack.c.bf16 %v7100_v61, %v7084_v49  ;;  %v2476_v26 = vmul.f32 %v5631_v36, %v8166_v30  ;;  %v378_v36 = vld [vmem:[%s11014_s0 + $0xb10] sm:$0xff] }
 0x143   :  { %3498 = vmatpush1.bf16.xpose.msra.mxu1 %v11395_v3  ;;  %3362 = vmatprep.mubr.bf16.mxu1 %v3185_v27  ;;  %v708_v11 = vpack.c.bf16 %v332_v57, %v316_v1  ;;  %v3189_v27 = vpack.c.bf16 %v2472_v5, %v2468_v41  ;;  %v314_v3 = vld [vmem:[%s11014_s0 + $0x910] sm:$0xff]  ;;  %v11398_v57 = vpack.c.bf16 %v7122_v24, %v7114_v15  ;;  %v5633_v15 = vld [vmem:[%s11015_s1 + $0x140] sm:$0xff] }
 0x144   :  { %3499 = vmatprep.subr.bf16.mxu1 %v11396_v22  ;;  %v364_v22 = vld [vmem:[%s11014_s0 + $0xa98] sm:$0xff]  ;;  %v707_v41 = vpack.c.bf16 %v330_v60, %v314_v3  ;;  %v346_v5 = vld [vmem:[%s11014_s0 + $0xa10] sm:$0xff]  ;;  %v2475_v24 = vmul.f32 %v5633_v15, %v8166_v30  ;;  %v5635_v30 = vld [vmem:[%s11015_s1 + $0x188] sm:$0xff] }
 0x145   :  { %v712_v49 = vpack.c.bf16 %v364_v22, %v348_v39  ;;  %v380_v3 = vld [vmem:[%s11014_s0 + $0xb18] sm:$0xff] }
 0x146   :  { %v396_v60 = vld [vmem:[%s11014_s0 + $0xb98] sm:$0xff] }
 0x147   :  { %1231 = vmatmul.mubr.bf16.gmra.mrb[32].mxu0 %v703_v43  ;;  %v5630_v43 = vld [vmem:[%s11015_s1 + $0x120] sm:$0xff]  ;;  %v716_v52 = vpack.c.bf16 %v396_v60, %v380_v3 }
 0x148   :  { %1240 = vmatprep.mubr.bf16.mxu0 %v708_v11  ;;  %v2471_v29 = vmul.f32 %v5630_v43, %v8096_v50  ;;  %v5632_v50 = vld [vmem:[%s11015_s1 + $0x168] sm:$0xff]  ;;  %v362_v11 = vld [vmem:[%s11014_s0 + $0xa90] sm:$0xff] }
 0x149   :  { %v2480_v1 = vmul.f32 %v5632_v50, %v8150_v25  ;;  %v711_v22 = vpack.c.bf16 %v362_v11, %v346_v5 }
 0x14a   :  { %3363 = vmatmul.mubr.bf16.gmra.mrb[12].mxu1 %v3184_v18  ;;  %v3188_v61 = vpack.c.bf16 %v2471_v29, %v2467_v47  ;;  %v5634_v18 = vld [vmem:[%s11015_s1 + $0x160] sm:$0xff]  ;;  %v2484_v47 = vmul.f32 %v5635_v30, %v8214_v48 }
 0x14b   :  { %3500 = vmatpush1.bf16.xpose.msra.mxu1 %v11397_v44  ;;  %3372 = vmatprep.mubr.bf16.mxu1 %v3189_v27  ;;  %v3193_v7 = vpack.c.bf16 %v2480_v1, %v2476_v26  ;;  %v2479_v27 = vmul.f32 %v5634_v18, %v8150_v25  ;;  %v5636_v25 = vld [vmem:[%s11015_s1 + $0x1a8] sm:$0xff]  ;;  %v394_v26 = vld [vmem:[%s11014_s0 + $0xb90] sm:$0xff]  ;;  %v5638_v1 = vld [vmem:[%s11015_s1 + $0x1a0] sm:$0xff] }
 0x14c   :  { %3501 = vmatprep.subr.bf16.mxu1 %v11398_v57  ;;  %v2488_v43 = vmul.f32 %v5636_v25, %v8212_v54  ;;  %v11400_v29 = vld [vmem:[#allocation6_spill] sm:$0xff]  ;;  %v2487_v57 = vmul.f32 %v5638_v1, %v8212_v54  ;;  %v11406_v18 = vld [vmem:[#allocation9_spill] sm:$0xff]  ;;  %v715_v3 = vpack.c.bf16 %v394_v26, %v378_v36  ;;  %v426_v25 = vld [vmem:[%s11014_s0 + $0xc90] sm:$0xff] }
 0x14d   :  { %v11401_v39 = vpack.c.bf16 %v7186_v63, %v11400_v29  ;;  %v3192_v56 = vpack.c.bf16 %v2479_v27, %v2475_v24  ;;  %v5637_v63 = vld [vmem:[%s11015_s1 + $0x180] sm:$0xff]  ;;  %v5640_v54 = vld [vmem:[%s11015_s1 + $0x1e8] sm:$0xff] }
 0x14e   :  { %v3197_v44 = vpack.c.bf16 %v2488_v43, %v2484_v47  ;;  %v2483_v50 = vmul.f32 %v5637_v63, %v8214_v48  ;;  %v5639_v48 = vld [vmem:[%s11015_s1 + $0x1c8] sm:$0xff]  ;;  %v2496_v15 = vmul.f32 %v5640_v54, %v8248_v13  ;;  %v410_v47 = vld [vmem:[%s11014_s0 + $0xc10] sm:$0xff]  ;;  %v5641_v43 = vld [vmem:[%s11015_s1 + $0x1c0] sm:$0xff] }
 0x14f   :  { %1241 = vmatmul.mubr.bf16.gmra.mrb[36].mxu0 %v707_v41  ;;  %v412_v41 = vld [vmem:[%s11014_s0 + $0xc18] sm:$0xff]  ;;  %v2492_v11 = vmul.f32 %v5639_v48, %v8258_v4  ;;  %v11405_v24 = vld [vmem:[#allocation10_spill] sm:$0xff]  ;;  %v2491_v29 = vmul.f32 %v5641_v43, %v8258_v4  ;;  %v11409_v36 = vld [vmem:[#allocation11_spill] sm:$0xff] }
 0x150   :  { %1250 = vmatprep.mubr.bf16.mxu0 %v712_v49  ;;  %v428_v49 = vld [vmem:[%s11014_s0 + $0xc98] sm:$0xff]  ;;  %v11407_v27 = vpack.c.bf16 %v11405_v24, %v11406_v18  ;;  %v5643_v4 = vld [vmem:[%s11015_s1 + $0x208] sm:$0xff]  ;;  %v442_v48 = vld [vmem:[%s11014_s0 + $0xd10] sm:$0xff] }
 0x151   :  { %v720_v60 = vpack.c.bf16 %v428_v49, %v412_v41  ;;  %v3201_v30 = vpack.c.bf16 %v2496_v15, %v2492_v11  ;;  %v2500_v63 = vmul.f32 %v5643_v4, %v8306_v38  ;;  %v11411_v1 = vld [vmem:[#allocation14_spill] sm:$0xff]  ;;  %v719_v49 = vpack.c.bf16 %v426_v25, %v410_v47  ;;  %v458_v11 = vld [vmem:[%s11014_s0 + $0xd90] sm:$0xff] }
 0x152   :  { %3373 = vmatmul.mubr.bf16.gmra.mrb[16].mxu1 %v3188_v61  ;;  %v11402_v61 = vld [vmem:[#allocation8_spill] sm:$0xff]  ;;  %v5645_v54 = vld [vmem:[%s11015_s1 + $0x200] sm:$0xff] }
 0x153   :  { %3502 = vmatpush1.bf16.xpose.msra.mxu1 %v11399_v45  ;;  %3382 = vmatprep.mubr.bf16.mxu1 %v3193_v7  ;;  %v11403_v7 = vld [vmem:[#allocation7_spill] sm:$0xff]  ;;  %v3196_v45 = vpack.c.bf16 %v2487_v57, %v2483_v50  ;;  %v11412_v57 = vld [vmem:[#allocation13_spill] sm:$0xff]  ;;  %v2499_v15 = vmul.f32 %v5645_v54, %v8306_v38  ;;  %v11417_v43 = vld [vmem:[#allocation18_spill] sm:$0xff] }
 0x154   :  { %3503 = vmatprep.subr.bf16.mxu1 %v11401_v39  ;;  %v11404_v5 = vpack.c.bf16 %v11402_v61, %v11403_v7  ;;  %v5642_v39 = vld [vmem:[%s11015_s1 + $0x1e0] sm:$0xff]  ;;  %v11413_v41 = vpack.c.bf16 %v11411_v1, %v11412_v57  ;;  %v5647_v38 = vld [vmem:[%s11015_s1 + $0x248] sm:$0xff]  ;;  %v508_v1 = vld [vmem:[%s11014_s0 + $0xf18] sm:$0xff] }
 0x155   :  { %v5646_v24 = vld [vmem:[%s11015_s1 + $0x220] sm:$0xff]  ;;  %v2508_v47 = vmul.f32 %v5647_v38, %v8366_v51  ;;  %v524_v57 = vld [vmem:[%s11014_s0 + $0xf98] sm:$0xff] }
 0x156   :  { %v2503_v18 = vmul.f32 %v5646_v24, %v8302_v19  ;;  %v5649_v4 = vld [vmem:[%s11015_s1 + $0x240] sm:$0xff] }
 0x157   :  { %1251 = vmatmul.mubr.bf16.gmra.mrb[40].mxu0 %v711_v22  ;;  %v2495_v22 = vmul.f32 %v5642_v39, %v8248_v13  ;;  %v5644_v13 = vld [vmem:[%s11015_s1 + $0x228] sm:$0xff]  ;;  %v11425_v54 = vld [vmem:[#allocation21_spill] sm:$0xff] }
 0x158   :  { %1260 = vmatprep.mubr.bf16.mxu0 %v716_v52  ;;  %v444_v52 = vld [vmem:[%s11014_s0 + $0xd18] sm:$0xff]  ;;  %v2504_v50 = vmul.f32 %v5644_v13, %v8302_v19  ;;  %v5648_v19 = vld [vmem:[%s11015_s1 + $0x268] sm:$0xff]  ;;  %v5650_v13 = vld [vmem:[%s11015_s1 + $0x260] sm:$0xff] }
 0x159   :  { %v3200_v7 = vpack.c.bf16 %v2495_v22, %v2491_v29  ;;  %v2512_v25 = vmul.f32 %v5648_v19, %v8362_v35  ;;  %v11418_v29 = vld [vmem:[#allocation17_spill] sm:$0xff]  ;;  %v723_v22 = vpack.c.bf16 %v458_v11, %v442_v48  ;;  %v11424_v11 = vld [vmem:[#allocation22_spill] sm:$0xff] }
 0x15a   :  { %3383 = vmatmul.mubr.bf16.gmra.mrb[20].mxu1 %v3192_v56  ;;  %v460_v56 = vld [vmem:[%s11014_s0 + $0xd98] sm:$0xff]  ;;  %v11419_v39 = vpack.c.bf16 %v11417_v43, %v11418_v29  ;;  %v11428_v43 = vld [vmem:[#allocation23_spill] sm:$0xff] }
 0x15b   :  { %3504 = vmatpush1.bf16.xpose.msra.mxu1 %v11404_v5  ;;  %3392 = vmatprep.mubr.bf16.mxu1 %v3197_v44  ;;  %v11408_v44 = vld [vmem:[#allocation12_spill] sm:$0xff]  ;;  %v724_v61 = vpack.c.bf16 %v460_v56, %v444_v52  ;;  %v3205_v5 = vpack.c.bf16 %v2504_v50, %v2500_v63  ;;  %v3204_v56 = vpack.c.bf16 %v2503_v18, %v2499_v15 }
 0x15c   :  { %3505 = vmatprep.subr.bf16.mxu1 %v11407_v27  ;;  %v11410_v26 = vpack.c.bf16 %v11408_v44, %v11409_v36  ;;  %v476_v27 = vld [vmem:[%s11014_s0 + $0xe18] sm:$0xff]  ;;  %v3209_v44 = vpack.c.bf16 %v2512_v25, %v2508_v47  ;;  %v474_v36 = vld [vmem:[%s11014_s0 + $0xe10] sm:$0xff]  ;;  %v2507_v63 = vmul.f32 %v5649_v4, %v8366_v51  ;;  %v2511_v50 = vmul.f32 %v5650_v13, %v8362_v35  ;;  %v5651_v51 = vld [vmem:[%s11015_s1 + $0x288] sm:$0xff] }
 0x15d   :  { %v5652_v35 = vld [vmem:[%s11015_s1 + $0x2a8] sm:$0xff]  ;;  %v11426_v15 = vpack.c.bf16 %v11424_v11, %v11425_v54  ;;  %v732_v18 = vpack.c.bf16 %v524_v57, %v508_v1  ;;  %v5654_v47 = vld [vmem:[%s11015_s1 + $0x2a0] sm:$0xff]  ;;  %v11427_v25 = vld [vmem:[#allocation24_spill] sm:$0xff] }
 0x15e   :  { %v11429_v29 = vpack.c.bf16 %v11427_v25, %v11428_v43  ;;  %v5658_v57 = vld [vmem:[%s11015_s1 + $0x2e0] sm:$0xff] }
 0x15f   :  { %1261 = vmatmul.mubr.bf16.gmra.mrb[44].mxu0 %v715_v3  ;;  %v492_v3 = vld [vmem:[%s11014_s0 + $0xe98] sm:$0xff]  ;;  %v11443_v43 = vld [vmem:[#allocation34_spill] sm:$0xff] }
 0x160   :  { %1270 = vmatprep.mubr.bf16.mxu0 %v720_v60  ;;  %v11414_v60 = vld [vmem:[#allocation16_spill] sm:$0xff]  ;;  %v728_v52 = vpack.c.bf16 %v492_v3, %v476_v27  ;;  %v3208_v27 = vpack.c.bf16 %v2511_v50, %v2507_v63  ;;  %v5657_v50 = vld [vmem:[%s11015_s1 + $0x2c0] sm:$0xff] }
 0x161   :  { %v2523_v1 = vmul.f32 %v5657_v50, %v8450_v28  ;;  %v11438_v11 = vld [vmem:[#allocation29_spill] sm:$0xff] }
 0x162   :  { %3393 = vmatmul.mubr.bf16.gmra.mrb[24].mxu1 %v3196_v45  ;;  %v11415_v45 = vld [vmem:[#allocation15_spill] sm:$0xff] }
 0x163   :  { %3506 = vmatpush1.bf16.xpose.msra.mxu1 %v11410_v26  ;;  %3402 = vmatprep.mubr.bf16.mxu1 %v3201_v30  ;;  %v11416_v30 = vpack.c.bf16 %v11414_v60, %v11415_v45  ;;  %v490_v26 = vld [vmem:[%s11014_s0 + $0xe90] sm:$0xff] }
 0x164   :  { %3507 = vmatprep.subr.bf16.mxu1 %v11413_v41  ;;  %v11420_v41 = vld [vmem:[#allocation20_spill] sm:$0xff]  ;;  %v727_v24 = vpack.c.bf16 %v490_v26, %v474_v36  ;;  %v11432_v36 = vld [vmem:[#allocation25_spill] sm:$0xff] }
 0x165   :  { %v506_v60 = vld [vmem:[%s11014_s0 + $0xf10] sm:$0xff] }
 0x166   :  { %v522_v45 = vld [vmem:[%s11014_s0 + $0xf90] sm:$0xff] }
 0x167   :  { %1271 = vmatmul.mubr.bf16.gmra.mrb[48].mxu0 %v719_v49  ;;  %v11421_v49 = vld [vmem:[#allocation19_spill] sm:$0xff]  ;;  %v731_v4 = vpack.c.bf16 %v522_v45, %v506_v60  ;;  %v11440_v45 = vld [vmem:[#allocation32_spill] sm:$0xff] }
 0x168   :  { %1280 = vmatprep.mubr.bf16.mxu0 %v724_v61  ;;  %v11422_v61 = vpack.c.bf16 %v11420_v41, %v11421_v49  ;;  %v11434_v49 = vld [vmem:[#allocation28_spill] sm:$0xff] }
 0x16a   :  { %3403 = vmatmul.mubr.bf16.gmra.mrb[28].mxu1 %v3200_v7  ;;  %v2516_v7 = vmul.f32 %v5651_v51, %v8424_v12 }
 0x16b   :  { %3508 = vmatpush1.bf16.xpose.msra.mxu1 %v11416_v30  ;;  %3412 = vmatprep.mubr.bf16.mxu1 %v3205_v5  ;;  %v11423_v5 = vld [vmem:[#allocation89_spill] sm:$0xff] }
 0x16c   :  { %3509 = vmatprep.subr.bf16.mxu1 %v11419_v39  ;;  %v2520_v48 = vmul.f32 %v5652_v35, %v11423_v5  ;;  %v5653_v30 = vld [vmem:[%s11015_s1 + $0x280] sm:$0xff]  ;;  %v2519_v19 = vmul.f32 %v5654_v47, %v11423_v5  ;;  %v5655_v39 = vld [vmem:[%s11015_s1 + $0x2c8] sm:$0xff] }
 0x16d   :  { %v2515_v38 = vmul.f32 %v5653_v30, %v8424_v12  ;;  %v5656_v12 = vld [vmem:[%s11015_s1 + $0x2e8] sm:$0xff] }
 0x16e   :  { %v3213_v3 = vpack.c.bf16 %v2520_v48, %v2516_v7  ;;  %v5659_v7 = vld [vmem:[%s11015_s1 + $0x308] sm:$0xff] }
 0x16f   :  { %1281 = vmatmul.mubr.bf16.gmra.mrb[52].mxu0 %v723_v22  ;;  %v2524_v22 = vmul.f32 %v5655_v39, %v8450_v28  ;;  %v3212_v63 = vpack.c.bf16 %v2519_v19, %v2515_v38  ;;  %v2532_v35 = vmul.f32 %v5659_v7, %v8505_v55  ;;  %v5660_v28 = vld [vmem:[%s11015_s1 + $0x328] sm:$0xff]  ;;  %v5670_v7 = vld [vmem:[%s11015_s1 + $0x3a0] sm:$0xff] }
 0x170   :  { %1290 = vmatprep.mubr.bf16.mxu0 %v728_v52  ;;  %v11430_v52 = vld [vmem:[#allocation94_spill] sm:$0xff]  ;;  %v2536_v5 = vmul.f32 %v5660_v28, %v8501_v58  ;;  %v11441_v30 = vld [vmem:[#allocation31_spill] sm:$0xff]  ;;  %v11452_v28 = vld [vmem:[#allocation40_spill] sm:$0xff] }
 0x171   :  { %v2527_v41 = vmul.f32 %v5658_v57, %v11430_v52  ;;  %v11437_v48 = vld [vmem:[#allocation30_spill] sm:$0xff]  ;;  %v11442_v38 = vpack.c.bf16 %v11440_v45, %v11441_v30  ;;  %v11450_v57 = vld [vmem:[#allocation37_spill] sm:$0xff] }
 0x172   :  { %3413 = vmatmul.mubr.bf16.gmra.mrb[32].mxu1 %v3204_v56  ;;  %v2528_v56 = vmul.f32 %v5656_v12, %v11430_v52  ;;  %v11439_v54 = vpack.c.bf16 %v11437_v48, %v11438_v11  ;;  %v5663_v47 = vld [vmem:[%s11015_s1 + $0x348] sm:$0xff]  ;;  %v5665_v12 = vld [vmem:[%s11015_s1 + $0x340] sm:$0xff] }
 0x173   :  { %3510 = vmatpush1.bf16.xpose.msra.mxu1 %v11422_v61  ;;  %3422 = vmatprep.mubr.bf16.mxu1 %v3209_v44  ;;  %v11431_v44 = vld [vmem:[#allocation26_spill] sm:$0xff]  ;;  %v11435_v61 = vld [vmem:[#allocation27_spill] sm:$0xff]  ;;  %v2540_v19 = vmul.f32 %v5663_v47, %v8577_v20  ;;  %v2539_v52 = vmul.f32 %v5665_v12, %v8577_v20  ;;  %v11458_v47 = vld [vmem:[#allocation44_spill] sm:$0xff] }
 0x174   :  { %3511 = vmatprep.subr.bf16.mxu1 %v11426_v15  ;;  %v11433_v26 = vpack.c.bf16 %v11431_v44, %v11432_v36  ;;  %v3217_v13 = vpack.c.bf16 %v2528_v56, %v2524_v22  ;;  %v11436_v51 = vpack.c.bf16 %v11434_v49, %v11435_v61  ;;  %v3216_v15 = vpack.c.bf16 %v2527_v41, %v2523_v1  ;;  %v5666_v56 = vld [vmem:[%s11015_s1 + $0x360] sm:$0xff]  ;;  %v11446_v36 = vld [vmem:[#allocation36_spill] sm:$0xff]  ;;  %v5668_v20 = vld [vmem:[%s11015_s1 + $0x3a8] sm:$0xff] }
 0x175   :  { %v2543_v44 = vmul.f32 %v5666_v56, %v8543_v40  ;;  %v2552_v50 = vmul.f32 %v5668_v20, %v8600_v31  ;;  %v11449_v1 = vld [vmem:[#allocation38_spill] sm:$0xff]  ;;  %v11477_v20 = vld [vmem:[#allocation55_spill] sm:$0xff] }
 0x176   :  { %v5669_v61 = vld [vmem:[%s11015_s1 + $0x380] sm:$0xff]  ;;  %v5671_v11 = vld [vmem:[%s11015_s1 + $0x3c8] sm:$0xff] }
 0x177   :  { %1291 = vmatmul.mubr.bf16.gmra.mrb[56].mxu0 %v727_v24  ;;  %v3221_v24 = vpack.c.bf16 %v2536_v5, %v2532_v35  ;;  %v3224_v41 = vpack.c.bf16 %v2543_v44, %v2539_v52  ;;  %v2551_v35 = vmul.f32 %v5670_v7, %v8600_v31  ;;  %v11453_v5 = vld [vmem:[#allocation39_spill] sm:$0xff]  ;;  %v5674_v30 = vld [vmem:[%s11015_s1 + $0x3e0] sm:$0xff] }
 0x178   :  { %1300 = vmatprep.mubr.bf16.mxu0 %v732_v18  ;;  %v5661_v18 = vld [vmem:[%s11015_s1 + $0x300] sm:$0xff]  ;;  %v11454_v48 = vpack.c.bf16 %v11452_v28, %v11453_v5  ;;  %v11471_v44 = vld [vmem:[#allocation51_spill] sm:$0xff]  ;;  %v11488_v28 = vld [vmem:[#allocation64_spill] sm:$0xff] }
 0x179   :  { %v11467_v12 = vld [vmem:[#allocation50_spill] sm:$0xff]  ;;  %v11468_v52 = vld [vmem:[#allocation49_spill] sm:$0xff]  ;;  %v11489_v5 = vld [vmem:[#allocation63_spill] sm:$0xff] }
 0x17a   :  { %3423 = vmatmul.mubr.bf16.gmra.mrb[36].mxu1 %v3208_v27  ;;  %v2531_v27 = vmul.f32 %v5661_v18, %v8505_v55  ;;  %v5664_v55 = vld [vmem:[%s11015_s1 + $0x368] sm:$0xff]  ;;  %v11456_v18 = vld [vmem:[#allocation41_spill] sm:$0xff]  ;;  %v11469_v56 = vpack.c.bf16 %v11467_v12, %v11468_v52 }
 0x17b   :  { %3512 = vmatpush1.bf16.xpose.msra.mxu1 %v11429_v29  ;;  %3432 = vmatprep.mubr.bf16.mxu1 %v3213_v3  ;;  %v5662_v3 = vld [vmem:[%s11015_s1 + $0x320] sm:$0xff]  ;;  %v2544_v25 = vmul.f32 %v5664_v55, %v8543_v40  ;;  %v11451_v40 = vpack.c.bf16 %v11449_v1, %v11450_v57 }
 0x17c   :  { %3513 = vmatprep.subr.bf16.mxu1 %v11433_v26  ;;  %v2535_v60 = vmul.f32 %v5662_v3, %v8501_v58  ;;  %v11444_v29 = vld [vmem:[#allocation33_spill] sm:$0xff]  ;;  %v11447_v26 = vld [vmem:[#allocation35_spill] sm:$0xff]  ;;  %v11480_v57 = vld [vmem:[#allocation58_spill] sm:$0xff] }
 0x17d   :  { %v11445_v58 = vpack.c.bf16 %v11443_v43, %v11444_v29  ;;  %v3225_v22 = vpack.c.bf16 %v2544_v25, %v2540_v19  ;;  %v11459_v19 = vld [vmem:[#allocation43_spill] sm:$0xff]  ;;  %v11461_v25 = vld [vmem:[#allocation46_spill] sm:$0xff]  ;;  %v11462_v43 = vld [vmem:[#allocation45_spill] sm:$0xff] }
 0x17e   :  { %v3220_v39 = vpack.c.bf16 %v2535_v60, %v2531_v27  ;;  %v5673_v60 = vld [vmem:[%s11015_s1 + $0x3c0] sm:$0xff]  ;;  %v11460_v55 = vpack.c.bf16 %v11458_v47, %v11459_v19  ;;  %v11463_v29 = vpack.c.bf16 %v11461_v25, %v11462_v43  ;;  %v11504_v47 = vld [vmem:[#allocation75_spill] sm:$0xff] }
 0x17f   :  { %1301 = vmatmul.mubr.bf16.gmra.mrb[60].mxu0 %v731_v4  ;;  %v11448_v4 = vpack.c.bf16 %v11446_v36, %v11447_v26  ;;  %v2555_v45 = vmul.f32 %v5673_v60, %v8684_v16  ;;  %v11473_v26 = vld [vmem:[#allocation54_spill] sm:$0xff]  ;;  %v11479_v1 = vld [vmem:[#allocation57_spill] sm:$0xff] }
 0x180   :  { %v11486_v7 = vld [vmem:[#allocation62_spill] sm:$0xff]  ;;  %v11509_v52 = vld [vmem:[#allocation77_spill] sm:$0xff] }
 0x181   :  { %v11500_v60 = vld [vmem:[#allocation70_spill] sm:$0xff] }
 0x182   :  { %3433 = vmatmul.mubr.bf16.gmra.mrb[40].mxu1 %v3212_v63  ;;  %v5667_v63 = vld [vmem:[%s11015_s1 + $0x388] sm:$0xff] }
 0x183   :  { %3514 = vmatpush1.bf16.xpose.msra.mxu1 %v11436_v51  ;;  %3442 = vmatprep.mubr.bf16.mxu1 %v3217_v13  ;;  %v2548_v13 = vmul.f32 %v5667_v63, %v8618_v62  ;;  %v2547_v51 = vmul.f32 %v5669_v61, %v8618_v62  ;;  %v5672_v62 = vld [vmem:[%s11015_s1 + $0x3e8] sm:$0xff]  ;;  %s5700_s1 = smov [#allocation3]  }
 0x184   :  { %3515 = vmatprep.subr.bf16.mxu1 %v11439_v54  ;;  %v2556_v54 = vmul.f32 %v5671_v11, %v8684_v16  ;;  %v11491_v11 = vld [vmem:[#allocation65_spill] sm:$0xff]  ;;  %s4699_s3 = sshll.u32 %s5700_s1, 4  ;;  %s4700_s3 = int_to_ptr.vmem [resolvable:$true] %s4699_s3 }
 0x185   :  { %v3229_v49 = vpack.c.bf16 %v2552_v50, %v2548_v13  ;;  %v3228_v27 = vpack.c.bf16 %v2551_v35, %v2547_v51  ;;  %v11476_v13 = vld [vmem:[#allocation56_spill] sm:$0xff]  ;;  %v11485_v51 = vld [vmem:[#allocation61_spill] sm:$0xff]  ;;  %s5675_s6 = scalar_lea.vmem %s4700_s3, 16  ;;  %s5679_s7 = scalar_lea.vmem %s4700_s3, 32 }
 0x186   :  { %v11478_v50 = vpack.c.bf16 %v11476_v13, %v11477_v20  ;;  %v11487_v35 = vpack.c.bf16 %v11485_v51, %v11486_v7  ;;  %v11512_v20 = vld [vmem:[#allocation80_spill] sm:$0xff]  ;;  %p5676_p0 = scmp.ne.s32.totalorder %s4700_s3, %s5675_s6  ;;  %p5680_p1 = scmp.lt.s32.totalorder %s4700_s3, %s4700_s3 }
 0x187   :  { %p5681_p2 = scmp.lt.s32.totalorder %s5679_s7, %s5675_s6 }
 0x189   :  { %p5682_p3 = por %p5681_p2, %p5680_p1 }
 0x18a   :  { %3443 = vmatmul.mubr.bf16.gmra.mrb[44].mxu1 %v3216_v15  ;;  %v2560_v15 = vmul.f32 %v5672_v62, %v8663_v17 }
 0x18b   :  { %3516 = vmatpush1.bf16.xpose.msra.mxu1 %v11442_v38  ;;  %3452 = vmatprep.mubr.bf16.mxu1 %v3221_v24  ;;  %v11455_v24 = vld [vmem:[#allocation42_spill] sm:$0xff]  ;;  %v2559_v38 = vmul.f32 %v5674_v30, %v8663_v17  ;;  %v11470_v17 = vld [vmem:[#allocation52_spill] sm:$0xff]  ;;  %p5683_p4 = pnand %p5682_p3, %p5676_p0 }
 0x18c   :  { %3517 = vmatprep.subr.bf16.mxu1 %v11445_v58  ;;  %v11457_v31 = vpack.c.bf16 %v11455_v24, %v11456_v18  ;;  %v3233_v3 = vpack.c.bf16 %v2560_v15, %v2556_v54  ;;  %v11472_v36 = vpack.c.bf16 %v11470_v17, %v11471_v44  ;;  %v11492_v54 = vld [vmem:[#allocation66_spill] sm:$0xff]  ;;  %v11494_v15 = vld [vmem:[#allocation68_spill] sm:$0xff]  ;;  %v11495_v24 = vld [vmem:[#allocation67_spill] sm:$0xff] }
 0x18d   :  { %v3232_v58 = vpack.c.bf16 %v2559_v38, %v2555_v45  ;;  %v11493_v62 = vpack.c.bf16 %v11491_v11, %v11492_v54  ;;  %v11496_v18 = vpack.c.bf16 %v11494_v15, %v11495_v24  ;;  %v11501_v45 = vld [vmem:[#allocation72_spill] sm:$0xff]  ;;  %v11503_v38 = vld [vmem:[#allocation73_spill] sm:$0xff] }
 0x18e   :  { %v11502_v30 = vpack.c.bf16 %v11500_v60, %v11501_v45  ;;  %v11505_v19 = vpack.c.bf16 %v11503_v38, %v11504_v47  ;;  %v11521_v54 = vld [vmem:[#allocation85_spill] sm:$0xff]  ;;  %v11524_v45 = vld [vmem:[#allocation86_spill] sm:$0xff] }
 0x18f   :  { %v11527_v47 = vld [vmem:[#allocation90_spill] sm:$0xff] }
 0x192   :  { %3453 = vmatmul.mubr.bf16.gmra.mrb[48].mxu1 %v3220_v39  ;;  %v11464_v39 = vld [vmem:[#allocation48_spill] sm:$0xff] }
 0x193   :  { %3518 = vmatpush1.bf16.xpose.msra.mxu1 %v11448_v4  ;;  %3462 = vmatprep.mubr.bf16.mxu1 %v3225_v22  ;;  %v11465_v22 = vld [vmem:[#allocation47_spill] sm:$0xff]  ;;  %v11474_v4 = vld [vmem:[#allocation53_spill] sm:$0xff] }
 0x194   :  { %3519 = vmatprep.subr.bf16.mxu1 %v11451_v40  ;;  %v11466_v16 = vpack.c.bf16 %v11464_v39, %v11465_v22  ;;  %v11475_v63 = vpack.c.bf16 %v11473_v26, %v11474_v4  ;;  %v11481_v40 = vpack.c.bf16 %v11479_v1, %v11480_v57  ;;  %v11506_v22 = vld [vmem:[#allocation74_spill] sm:$0xff]  ;;  %v11515_v57 = vld [vmem:[#allocation81_spill] sm:$0xff] }
 0x19a   :  { %3463 = vmatmul.mubr.bf16.gmra.mrb[52].mxu1 %v3224_v41  ;;  %v11482_v41 = vld [vmem:[#allocation60_spill] sm:$0xff] }
 0x19b   :  { %3520 = vmatpush1.bf16.xpose.msra.mxu1 %v11454_v48  ;;  %3472 = vmatprep.mubr.bf16.mxu1 %v3229_v49  ;;  %v11483_v49 = vld [vmem:[#allocation59_spill] sm:$0xff]  ;;  %v11490_v48 = vpack.c.bf16 %v11488_v28, %v11489_v5  ;;  %v11518_v5 = vld [vmem:[#allocation82_spill] sm:$0xff] }
 0x19c   :  { %3521 = vmatprep.subr.bf16.mxu1 %v11457_v31  ;;  %v11484_v61 = vpack.c.bf16 %v11482_v41, %v11483_v49  ;;  %v11497_v31 = vld [vmem:[#allocation69_spill] sm:$0xff] }
 0x1a2   :  { %3473 = vmatmul.mubr.bf16.gmra.mrb[56].mxu1 %v3228_v27  ;;  %v11498_v27 = vld [vmem:[#allocation71_spill] sm:$0xff] }
 0x1a3   :  { %3522 = vmatpush1.bf16.xpose.msra.mxu1 %v11460_v55  ;;  %3482 = vmatprep.mubr.bf16.mxu1 %v3233_v3  ;;  %v11499_v3 = vpack.c.bf16 %v11497_v31, %v11498_v27 }
 0x1a4   :  { %3523 = vmatprep.subr.bf16.mxu1 %v11463_v29 }
 0x1aa   :  { %3483 = vmatmul.mubr.bf16.gmra.mrb[60].mxu1 %v3232_v58 }
 0x1ab   :  { %3524 = vmatpush1.bf16.xpose.msra.mxu1 %v11466_v16  ;;  %3525 = vmatprep.mubr.bf16.mxu1 %v11469_v56  ;;  %v11507_v16 = vld [vmem:[#allocation76_spill] sm:$0xff]  ;;  %v11510_v56 = vld [vmem:[#allocation78_spill] sm:$0xff] }
 0x1ac   :  { %v11508_v12 = vpack.c.bf16 %v11506_v22, %v11507_v16  ;;  %v11511_v17 = vpack.c.bf16 %v11509_v52, %v11510_v56 }
 0x1b2   :  { %3526 = vmatmul.mubr.bf16.vlgmr.msra.gmra.mrb[0].mxu1 %v11472_v36 }
 0x1b3   :  { %3535 = vmatprep.mubr.bf16.mxu1 %v11475_v63 }
 0x1ba   :  { %3536 = vmatmul.mubr.bf16.gmra.mrb[4].mxu1 %v11478_v50  ;;  %v11513_v50 = vld [vmem:[#allocation79_spill] sm:$0xff] }
 0x1bb   :  { %3545 = vmatprep.mubr.bf16.mxu1 %v11481_v40  ;;  %v11514_v1 = vpack.c.bf16 %v11512_v20, %v11513_v50  ;;  %v11516_v40 = vld [vmem:[#allocation83_spill] sm:$0xff]  ;;  %v11533_v20 = vpack.c.bf16 %v8462_v0, %v8480_v37  ;;  %v11534_v37 = vpack.c.bf16 %v8468_v33, %v8494_v2  ;;  %v11535_v0 = vpack.c.bf16 %v8511_v14, %v8523_v10  ;;  %v11537_v14 = vld [vmem:[#allocation96_spill] sm:$0xff] }
 0x1bc   :  { %v11517_v41 = vpack.c.bf16 %v11515_v57, %v11516_v40  ;;  %v11536_v2 = vpack.c.bf16 %v8517_v34, %v8529_v6  ;;  %v11538_v10 = vpack.c.bf16 %v8575_v8, %v11537_v14  ;;  %v11539_v6 = vld [vmem:[#allocation95_spill] sm:$0xff] }
 0x1c2   :  { %3546 = vmatmul.mubr.bf16.gmra.mrb[8].mxu1 %v11484_v61 }
 0x1c3   :  { %3555 = vmatprep.mubr.bf16.mxu1 %v11487_v35 }
 0x1ca   :  { %3556 = vmatmul.mubr.bf16.gmra.mrb[12].mxu1 %v11490_v48  ;;  %v11519_v48 = vld [vmem:[#allocation84_spill] sm:$0xff] }
 0x1cb   :  { %3565 = vmatprep.mubr.bf16.mxu1 %v11493_v62  ;;  %v11520_v11 = vpack.c.bf16 %v11518_v5, %v11519_v48  ;;  %v11522_v62 = vld [vmem:[#allocation87_spill] sm:$0xff] }
 0x1cc   :  { %v11523_v15 = vpack.c.bf16 %v11521_v54, %v11522_v62 }
 0x1d2   :  { %3566 = vmatmul.mubr.bf16.gmra.mrb[16].mxu1 %v11496_v18 }
 0x1d3   :  { %3575 = vmatprep.mubr.bf16.mxu1 %v11499_v3 }
 0x1da   :  { %3576 = vmatmul.mubr.bf16.gmra.mrb[20].mxu1 %v11502_v30  ;;  %v9112_v55 = vpop.f32.mrb[0].mxu0  ;;  %v11525_v30 = vld [vmem:[#allocation88_spill] sm:$0xff] }
 0x1db   :  { %3585 = vmatprep.mubr.bf16.mxu1 %v11505_v19  ;;  %v9114_v25 = vpop.f32.mrb[1].mxu0  ;;  %v11526_v38 = vpack.c.bf16 %v11524_v45, %v11525_v30  ;;  %v11528_v19 = vld [vmem:[#allocation92_spill] sm:$0xff]  ;;  %v11540_v30 = vld [vmem:[#allocation97_spill] sm:$0xff] }
 0x1dc   :  { %v9116_v43 = vpop.f32.mrb[2].mxu0  ;;  %v1311_v29 = vmin.f32 %v9112_v55, %v9114_v25  ;;  %v11541_v8 = vpack.c.bf16 %v11539_v6, %v11540_v30 }
 0x1dd   :  { %v9120_v58 = vpop.f32.mrb[3].mxu0 }
 0x1de   :  { %1312 = vmin.xlane.f32.xlu1 %v1311_v29  ;;  %v1314_v39 = vmin.f32 %v9116_v43, %v9120_v58  ;;  %v11529_v29 = vpack.c.bf16 %v11527_v47, %v11528_v19 }
 0x1e0   :  { %1315 = vmin.xlane.f32.xlu0 %v1314_v39 }
 0x1e2   :  { %3586 = vmatmul.mubr.bf16.gmra.mrb[24].mxu1 %v11508_v12  ;;  %v9130_v44 = vpop.f32.mrb[4].mxu0 }
 0x1e3   :  { %3595 = vmatprep.mubr.bf16.mxu1 %v11511_v17  ;;  %v9132_v36 = vpop.f32.mrb[5].mxu0  ;;  %v11530_v17 = vld [vmem:[#allocation91_spill] sm:$0xff] }
 0x1e4   :  { %v9134_v26 = vpop.f32.mrb[6].mxu0  ;;  %v1317_v4 = vmin.f32 %v9130_v44, %v9132_v36 }
 0x1e5   :  { %v9138_v63 = vpop.f32.mrb[7].mxu0 }
 0x1e6   :  { %1318 = vmin.xlane.f32.xlu0 %v1317_v4  ;;  %v1320_v13 = vmin.f32 %v9134_v26, %v9138_v63  ;;  %v11531_v4 = vld [vmem:[#allocation93_spill] sm:$0xff] }
 0x1ea   :  { %3596 = vmatmul.mubr.bf16.gmra.mrb[28].mxu1 %v11514_v1  ;;  %1321 = vmin.xlane.f32.xlu0 %v1320_v13  ;;  %v9148_v49 = vpop.f32.mrb[8].mxu0  ;;  %v11532_v13 = vpack.c.bf16 %v11530_v17, %v11531_v4 }
 0x1eb   :  { %3605 = vmatprep.mubr.bf16.mxu1 %v11517_v41  ;;  %v9150_v61 = vpop.f32.mrb[9].mxu0 }
 0x1ec   :  { %v9152_v51 = vpop.f32.mrb[10].mxu0  ;;  %v1323_v7 = vmin.f32 %v9148_v49, %v9150_v61 }
 0x1ed   :  { %v9156_v35 = vpop.f32.mrb[11].mxu0 }
 0x1ee   :  { %1324 = vmin.xlane.f32.xlu0 %v1323_v7  ;;  %v1326_v28 = vmin.f32 %v9152_v51, %v9156_v35 }
 0x1f2   :  { %3606 = vmatmul.mubr.bf16.gmra.mrb[32].mxu1 %v11520_v11  ;;  %1327 = vmin.xlane.f32.xlu0 %v1326_v28  ;;  %v9166_v24 = vpop.f32.mrb[12].mxu0 }
 0x1f3   :  { %3615 = vmatprep.mubr.bf16.mxu1 %v11523_v15  ;;  %v9168_v18 = vpop.f32.mrb[13].mxu0 }
 0x1f4   :  { %v9170_v31 = vpop.f32.mrb[14].mxu0  ;;  %v1329_v27 = vmin.f32 %v9166_v24, %v9168_v18 }
 0x1f5   :  { %v9174_v3 = vpop.f32.mrb[15].mxu0 }
 0x1f6   :  { %1330 = vmin.xlane.f32.xlu0 %v1329_v27  ;;  %v1332_v60 = vmin.f32 %v9170_v31, %v9174_v3 }
 0x1fa   :  { %3616 = vmatmul.mubr.bf16.gmra.mrb[36].mxu1 %v11526_v38  ;;  %1333 = vmin.xlane.f32.xlu0 %v1332_v60  ;;  %v9184_v39 = vpop.f32.mrb[16].mxu0  ;;  %v11542_v38 = vpack.c.bf16 %v8610_v23, %v8644_v32  ;;  %v11543_v23 = vpack.c.bf16 %v8616_v59, %v8650_v53  ;;  %v11544_v32 = vpack.c.bf16 %v8676_v46, %v8690_v21 }
 0x1fb   :  { %3625 = vmatprep.mubr.bf16.mxu1 %v11529_v29  ;;  %v9186_v22 = vpop.f32.mrb[17].mxu0  ;;  %v11545_v53 = vpack.c.bf16 %v8682_v9, %v8696_v42 }
 0x1fc   :  { %v9188_v16 = vpop.f32.mrb[18].mxu0  ;;  %v1335_v12 = vmin.f32 %v9184_v39, %v9186_v22 }
 0x1fd   :  { %v9192_v52 = vpop.f32.mrb[19].mxu0 }
 0x1fe   :  { %1336 = vmin.xlane.f32.xlu0 %v1335_v12  ;;  %v1338_v56 = vmin.f32 %v9188_v16, %v9192_v52 }
 0x202   :  { %3626 = vmatmul.mubr.bf16.gmra.mrb[40].mxu1 %v11532_v13  ;;  %1339 = vmin.xlane.f32.xlu0 %v1338_v56  ;;  %v9202_v50 = vpop.f32.mrb[20].mxu0 }
 0x203   :  { %3635 = vmatprep.mubr.bf16.mxu1 %v11533_v20  ;;  %v9204_v1 = vpop.f32.mrb[21].mxu0 }
 0x204   :  { %v9206_v57 = vpop.f32.mrb[22].mxu0  ;;  %v1341_v40 = vmin.f32 %v9202_v50, %v9204_v1 }
 0x205   :  { %v9210_v41 = vpop.f32.mrb[23].mxu0 }
 0x206   :  { %1342 = vmin.xlane.f32.xlu0 %v1341_v40  ;;  %v1344_v7 = vmin.f32 %v9206_v57, %v9210_v41 }
 0x20a   :  { %3636 = vmatmul.mubr.bf16.gmra.mrb[44].mxu1 %v11534_v37  ;;  %1345 = vmin.xlane.f32.xlu0 %v1344_v7  ;;  %v9220_v28 = vpop.f32.mrb[24].mxu0 }
 0x20b   :  { %3645 = vmatprep.mubr.bf16.mxu1 %v11535_v0  ;;  %v9222_v5 = vpop.f32.mrb[25].mxu0 }
 0x20c   :  { %v9224_v48 = vpop.f32.mrb[26].mxu0  ;;  %v1347_v11 = vmin.f32 %v9220_v28, %v9222_v5 }
 0x20d   :  { %v9228_v54 = vpop.f32.mrb[27].mxu0 }
 0x20e   :  { %1348 = vmin.xlane.f32.xlu0 %v1347_v11  ;;  %v1350_v33 = vmin.f32 %v9224_v48, %v9228_v54 }
 0x212   :  { %3646 = vmatmul.mubr.bf16.gmra.mrb[48].mxu1 %v11536_v2  ;;  %1351 = vmin.xlane.f32.xlu0 %v1350_v33  ;;  %v9238_v62 = vpop.f32.mrb[28].mxu0 }
 0x213   :  { %3655 = vmatprep.mubr.bf16.mxu1 %v11538_v10  ;;  %v9240_v15 = vpop.f32.mrb[29].mxu0 }
 0x214   :  { %v9242_v27 = vpop.f32.mrb[30].mxu0  ;;  %v1353_v60 = vmin.f32 %v9238_v62, %v9240_v15 }
 0x215   :  { %v9246_v45 = vpop.f32.mrb[31].mxu0 }
 0x216   :  { %1354 = vmin.xlane.f32.xlu0 %v1353_v60  ;;  %v1356_v34 = vmin.f32 %v9242_v27, %v9246_v45 }
 0x21a   :  { %3656 = vmatmul.mubr.bf16.gmra.mrb[52].mxu1 %v11541_v8  ;;  %1357 = vmin.xlane.f32.xlu0 %v1356_v34  ;;  %v9256_v47 = vpop.f32.mrb[32].mxu0 }
 0x21b   :  { %3665 = vmatprep.mubr.bf16.mxu1 %v11542_v38  ;;  %v9258_v19 = vpop.f32.mrb[33].mxu0 }
 0x21c   :  { %v9260_v29 = vpop.f32.mrb[34].mxu0  ;;  %v1359_v12 = vmin.f32 %v9256_v47, %v9258_v19 }
 0x21d   :  { %v9264_v56 = vpop.f32.mrb[35].mxu0 }
 0x21e   :  { %1360 = vmin.xlane.f32.xlu0 %v1359_v12  ;;  %v1362_v17 = vmin.f32 %v9260_v29, %v9264_v56 }
 0x222   :  { %3666 = vmatmul.mubr.bf16.gmra.mrb[56].mxu1 %v11543_v23  ;;  %1363 = vmin.xlane.f32.xlu0 %v1362_v17  ;;  %v9274_v4 = vpop.f32.mrb[36].mxu0 }
 0x223   :  { %3675 = vmatprep.mubr.bf16.mxu1 %v11544_v32  ;;  %v9276_v13 = vpop.f32.mrb[37].mxu0 }
 0x224   :  { %v1365_v20 = vmin.f32 %v9274_v4, %v9276_v13  ;;  %v9280_v40 = vpop.f32.mrb[38].mxu0 }
 0x225   :  { %v9282_v7 = vpop.f32.mrb[39].mxu0 }
 0x226   :  { %v1368_v59 = vmin.f32 %v9280_v40, %v9282_v7  ;;  %1366 = vmin.xlane.f32.xlu0 %v1365_v20 }
 0x22a   :  { %3676 = vmatmul.mubr.bf16.gmra.mrb[60].mxu1 %v11545_v53  ;;  %1369 = vmin.xlane.f32.xlu0 %v1368_v59  ;;  %v9289_v46 = vpop.f32.mrb[40].mxu0 }
 0x22b   :  { %v9291_v21 = vpop.f32.mrb[41].mxu0 }
 0x22c   :  { %v1371_v37 = vmin.f32 %v9289_v46, %v9291_v21  ;;  %v9295_v0 = vpop.f32.mrb[42].mxu0 }
 0x22d   :  { %v9297_v11 = vpop.f32.mrb[43].mxu0 }
 0x22e   :  { %v1374_v33 = vmin.f32 %v9295_v0, %v9297_v11  ;;  %1372 = vmin.xlane.f32.xlu0 %v1371_v37 }
 0x232   :  { %1375 = vmin.xlane.f32.xlu0 %v1374_v33  ;;  %v9301_v2 = vpop.f32.mrb[44].mxu0 }
 0x233   :  { %v9303_v42 = vpop.f32.mrb[45].mxu0 }
 0x234   :  { %v1377_v9 = vmin.f32 %v9301_v2, %v9303_v42  ;;  %v9307_v14 = vpop.f32.mrb[46].mxu0 }
 0x235   :  { %11546 = vst [vmem:[#allocation6_spill] sm:$0xff] %v9307_v14  ;;  %v9309_v10 = vpop.f32.mrb[47].mxu0 }
 0x236   :  { %11547 = vst [vmem:[#allocation8_spill] sm:$0xff] %v9309_v10  ;;  %v1380_v60 = vmin.f32 %v9307_v14, %v9309_v10  ;;  %1378 = vmin.xlane.f32.xlu0 %v1377_v9 }
 0x23a   :  { %1381 = vmin.xlane.f32.xlu0 %v1380_v60  ;;  %v9313_v34 = vpop.f32.mrb[48].mxu0 }
 0x23b   :  { %11548 = vst [vmem:[#allocation7_spill] sm:$0xff] %v9313_v34  ;;  %v9315_v6 = vpop.f32.mrb[49].mxu0 }
 0x23c   :  { %11549 = vst [vmem:[#allocation10_spill] sm:$0xff] %v9315_v6  ;;  %v1383_v30 = vmin.f32 %v9313_v34, %v9315_v6  ;;  %v9319_v8 = vpop.f32.mrb[50].mxu0 }
 0x23d   :  { %11550 = vst [vmem:[#allocation9_spill] sm:$0xff] %v9319_v8  ;;  %v9321_v38 = vpop.f32.mrb[51].mxu0 }
 0x23e   :  { %11551 = vst [vmem:[#allocation12_spill] sm:$0xff] %v9321_v38  ;;  %v1386_v12 = vmin.f32 %v9319_v8, %v9321_v38  ;;  %1384 = vmin.xlane.f32.xlu0 %v1383_v30 }
 0x242   :  { %1387 = vmin.xlane.f32.xlu0 %v1386_v12  ;;  %v9325_v17 = vpop.f32.mrb[52].mxu0 }
 0x243   :  { %11552 = vst [vmem:[#allocation11_spill] sm:$0xff] %v9325_v17  ;;  %v9327_v23 = vpop.f32.mrb[53].mxu0 }
 0x244   :  { %11553 = vst [vmem:[#allocation14_spill] sm:$0xff] %v9327_v23  ;;  %v1389_v32 = vmin.f32 %v9325_v17, %v9327_v23  ;;  %v9331_v20 = vpop.f32.mrb[54].mxu0 }
 0x245   :  { %11554 = vst [vmem:[#allocation13_spill] sm:$0xff] %v9331_v20  ;;  %v9333_v59 = vpop.f32.mrb[55].mxu0 }
 0x246   :  { %11555 = vst [vmem:[#allocation16_spill] sm:$0xff] %v9333_v59  ;;  %v1392_v53 = vmin.f32 %v9331_v20, %v9333_v59  ;;  %1390 = vmin.xlane.f32.xlu0 %v1389_v32 }
 0x24a   :  { %1393 = vmin.xlane.f32.xlu0 %v1392_v53  ;;  %v9337_v37 = vpop.f32.mrb[56].mxu0 }
 0x24b   :  { %11556 = vst [vmem:[#allocation15_spill] sm:$0xff] %v9337_v37  ;;  %v9339_v33 = vpop.f32.mrb[57].mxu0 }
 0x24c   :  { %11557 = vst [vmem:[#allocation18_spill] sm:$0xff] %v9339_v33  ;;  %v1395_v9 = vmin.f32 %v9337_v37, %v9339_v33  ;;  %v9343_v60 = vpop.f32.mrb[58].mxu0 }
 0x24d   :  { %11558 = vst [vmem:[#allocation17_spill] sm:$0xff] %v9343_v60  ;;  %v9345_v30 = vpop.f32.mrb[59].mxu0 }
 0x24e   :  { %11559 = vst [vmem:[#allocation20_spill] sm:$0xff] %v9345_v30  ;;  %v1398_v12 = vmin.f32 %v9343_v60, %v9345_v30  ;;  %1396 = vmin.xlane.f32.xlu0 %v1395_v9 }
 0x252   :  { %1399 = vmin.xlane.f32.xlu0 %v1398_v12  ;;  %v9349_v23 = vpop.f32.mrb[60].mxu0 }
 0x253   :  { %11560 = vst [vmem:[#allocation19_spill] sm:$0xff] %v9349_v23  ;;  %v9351_v32 = vpop.f32.mrb[61].mxu0 }
 0x254   :  { %11561 = vst [vmem:[#allocation89_spill] sm:$0xff] %v9351_v32  ;;  %v1401_v53 = vmin.f32 %v9349_v23, %v9351_v32  ;;  %v9355_v59 = vpop.f32.mrb[62].mxu0 }
 0x255   :  { %11562 = vst [vmem:[#allocation22_spill] sm:$0xff] %v9355_v59  ;;  %v9357_v20 = vpop.f32.mrb[63].mxu0 }
 0x256   :  { %11563 = vst [vmem:[#allocation21_spill] sm:$0xff] %v9357_v20  ;;  %v1404_v33 = vmin.f32 %v9355_v59, %v9357_v20  ;;  %1402 = vmin.xlane.f32.xlu0 %v1401_v53 }
 0x258   :  { %1405 = vmin.xlane.f32.xlu1 %v1404_v33 }
 0x26b   :  { %v1313_v37 = vpop.xlane.xlu1 %1312 }
 0x26c   :  { %v9362_v9 = vsub.f32 %v9112_v55, %v1313_v37  ;;  %v9365_v12 = vsub.f32 %v9114_v25, %v1313_v37 }
 0x26d   :  { %v1316_v30 = vpop.xlane.xlu0 %1315 }
 0x26e   :  { %v1471_v32 = vmax.f32 %v9362_v9, %v9365_v12  ;;  %v9370_v23 = vsub.f32 %v9116_v43, %v1316_v30  ;;  %v9373_v60 = vsub.f32 %v9120_v58, %v1316_v30 }
 0x270   :  { %11564 = vst [vmem:[#allocation24_spill] sm:$0xff] %v9370_v23  ;;  %11565 = vst [vmem:[#allocation23_spill] sm:$0xff] %v9373_v60  ;;  %1472 = vmax.xlane.f32.xlu0 %v1471_v32  ;;  %v1474_v33 = vmax.f32 %v9370_v23, %v9373_v60 }
 0x272   :  { %1475 = vmax.xlane.f32.xlu1 %v1474_v33 }
 0x273   :  { %v1319_v55 = vpop.xlane.xlu0 %1318 }
 0x274   :  { %v9378_v53 = vsub.f32 %v9130_v44, %v1319_v55  ;;  %v9381_v25 = vsub.f32 %v9132_v36, %v1319_v55 }
 0x276   :  { %v1477_v37 = vmax.f32 %v9378_v53, %v9381_v25 }
 0x277   :  { %v1322_v43 = vpop.xlane.xlu0 %1321 }
 0x278   :  { %1478 = vmax.xlane.f32.xlu0 %v1477_v37  ;;  %v9386_v58 = vsub.f32 %v9134_v26, %v1322_v43  ;;  %v9389_v30 = vsub.f32 %v9138_v63, %v1322_v43 }
 0x27a   :  { %11566 = vst [vmem:[#allocation94_spill] sm:$0xff] %v9386_v58  ;;  %11567 = vst [vmem:[#allocation26_spill] sm:$0xff] %v9389_v30  ;;  %v1480_v32 = vmax.f32 %v9386_v58, %v9389_v30 }
 0x27b   :  { %v1325_v33 = vpop.xlane.xlu0 %1324 }
 0x27c   :  { %v9394_v44 = vsub.f32 %v9148_v49, %v1325_v33  ;;  %v9397_v36 = vsub.f32 %v9150_v61, %v1325_v33  ;;  %1481 = vmax.xlane.f32.xlu1 %v1480_v32 }
 0x27e   :  { %v1483_v55 = vmax.f32 %v9394_v44, %v9397_v36 }
 0x27f   :  { %v1328_v37 = vpop.xlane.xlu0 %1327 }
 0x280   :  { %1484 = vmax.xlane.f32.xlu0 %v1483_v55  ;;  %v9402_v26 = vsub.f32 %v9152_v51, %v1328_v37  ;;  %v9405_v63 = vsub.f32 %v9156_v35, %v1328_v37 }
 0x282   :  { %11568 = vst [vmem:[#allocation25_spill] sm:$0xff] %v9402_v26  ;;  %11569 = vst [vmem:[#allocation28_spill] sm:$0xff] %v9405_v63  ;;  %v1486_v43 = vmax.f32 %v9402_v26, %v9405_v63 }
 0x283   :  { %v1331_v49 = vpop.xlane.xlu0 %1330 }
 0x284   :  { %1487 = vmax.xlane.f32.xlu1 %v1486_v43  ;;  %v9416_v59 = vsub.f32 %v9166_v24, %v1331_v49  ;;  %v9419_v35 = vsub.f32 %v9168_v18, %v1331_v49 }
 0x285   :  { %v3527_v30 = vpop.f32.mrb[0].mxu1 }
 0x286   :  { %v9409_v61 = vmul.f32 14.285714, %v3527_v30  ;;  %v3529_v32 = vpop.f32.mrb[1].mxu1  ;;  %v1489_v18 = vmax.f32 %v9416_v59, %v9419_v35 }
 0x287   :  { %v9411_v33 = vmul.f32 14.285714, %v3529_v32  ;;  %v3531_v58 = vpop.f32.mrb[2].mxu1  ;;  %v1334_v51 = vpop.xlane.xlu0 %1333 }
 0x288   :  { %11570 = vst [vmem:[#allocation27_spill] sm:$0xff] %v9409_v61  ;;  %v9413_v20 = vmul.f32 14.285714, %v3531_v58  ;;  %v3533_v55 = vpop.f32.mrb[3].mxu1  ;;  %v9428_v58 = vsub.f32 %v9170_v31, %v1334_v51  ;;  %v9431_v32 = vsub.f32 %v9174_v3, %v1334_v51 }
 0x289   :  { %11571 = vst [vmem:[#allocation30_spill] sm:$0xff] %v9411_v33  ;;  %v3750_v37 = vmax.f32 %v9409_v61, %v9411_v33  ;;  %v9423_v43 = vmul.f32 14.285714, %v3533_v55 }
 0x28a   :  { %11572 = vst [vmem:[#allocation29_spill] sm:$0xff] %v9428_v58  ;;  %11573 = vst [vmem:[#allocation32_spill] sm:$0xff] %v9431_v32  ;;  %v1492_v31 = vmax.f32 %v9428_v58, %v9431_v32 }
 0x28b   :  { %3751 = vmax.xlane.f32.xlu0 %v3750_v37  ;;  %v3753_v30 = vmax.f32 %v9413_v20, %v9423_v43  ;;  %v1337_v24 = vpop.xlane.xlu0 %1336 }
 0x28d   :  { %v3537_v63 = vpop.f32.mrb[4].mxu1  ;;  %3754 = vmax.xlane.f32.xlu1 %v3753_v30 }
 0x28e   :  { %v9435_v49 = vmul.f32 14.285714, %v3537_v63  ;;  %v3539_v55 = vpop.f32.mrb[5].mxu1 }
 0x28f   :  { %v9437_v26 = vmul.f32 14.285714, %v3539_v55  ;;  %v3541_v37 = vpop.f32.mrb[6].mxu1  ;;  %1490 = vmax.xlane.f32.xlu0 %v1489_v18  ;;  %v1340_v51 = vpop.xlane.xlu0 %1339  ;;  %v9450_v55 = vsub.f32 %v9184_v39, %v1337_v24  ;;  %v9453_v18 = vsub.f32 %v9186_v22, %v1337_v24 }
 0x290   :  { %v9441_v60 = vmul.f32 14.285714, %v3541_v37  ;;  %v3543_v3 = vpop.f32.mrb[7].mxu1 }
 0x291   :  { %v3756_v30 = vmax.f32 %v9435_v49, %v9437_v26  ;;  %v9445_v23 = vmul.f32 14.285714, %v3543_v3  ;;  %1493 = vmax.xlane.f32.xlu1 %v1492_v31  ;;  %11574 = vst [vmem:[#allocation31_spill] sm:$0xff] %v9450_v55  ;;  %11575 = vst [vmem:[#allocation34_spill] sm:$0xff] %v9453_v18  ;;  %v1495_v3 = vmax.f32 %v9450_v55, %v9453_v18 }
 0x292   :  { %v9458_v31 = vsub.f32 %v9188_v16, %v1340_v51 }
 0x293   :  { %3757 = vmax.xlane.f32.xlu0 %v3756_v30  ;;  %v3759_v63 = vmax.f32 %v9441_v60, %v9445_v23  ;;  %v1343_v37 = vpop.xlane.xlu0 %1342  ;;  %v9461_v30 = vsub.f32 %v9192_v52, %v1340_v51 }
 0x294   :  { %11576 = vst [vmem:[#allocation33_spill] sm:$0xff] %v9458_v31 }
 0x295   :  { %v3547_v32 = vpop.f32.mrb[8].mxu1  ;;  %3760 = vmax.xlane.f32.xlu1 %v3759_v63  ;;  %11577 = vst [vmem:[#allocation36_spill] sm:$0xff] %v9461_v30  ;;  %v1498_v24 = vmax.f32 %v9458_v31, %v9461_v30  ;;  %v9478_v30 = vsub.f32 %v9202_v50, %v1343_v37 }
 0x296   :  { %v3549_v58 = vpop.f32.mrb[9].mxu1  ;;  %v9463_v8 = vmul.f32 14.285714, %v3547_v32 }
 0x297   :  { %v3551_v17 = vpop.f32.mrb[10].mxu1  ;;  %v1346_v39 = vpop.xlane.xlu0 %1345  ;;  %v9465_v22 = vmul.f32 14.285714, %v3549_v58  ;;  %11580 = vst [vmem:[#allocation37_spill] sm:$0xff] %v9478_v30 }
 0x298   :  { %v3553_v38 = vpop.f32.mrb[11].mxu1  ;;  %v9469_v55 = vmul.f32 14.285714, %v3551_v17  ;;  %v9486_v34 = vsub.f32 %v9206_v57, %v1346_v39 }
 0x299   :  { %1496 = vmax.xlane.f32.xlu1 %v1495_v3  ;;  %v9471_v16 = vmul.f32 14.285714, %v3553_v38  ;;  %v3762_v51 = vmax.f32 %v9463_v8, %v9465_v22 }
 0x29a   :  { %11578 = vst [vmem:[#allocation35_spill] sm:$0xff] %v9469_v55  ;;  %11582 = vst [vmem:[#allocation39_spill] sm:$0xff] %v9486_v34 }
 0x29b   :  { %v1349_v63 = vpop.xlane.xlu0 %1348  ;;  %11579 = vst [vmem:[#allocation38_spill] sm:$0xff] %v9471_v16  ;;  %v3765_v58 = vmax.f32 %v9469_v55, %v9471_v16 }
 0x29d   :  { %v3557_v33 = vpop.f32.mrb[12].mxu1  ;;  %1499 = vmax.xlane.f32.xlu1 %v1498_v24  ;;  %v9481_v24 = vsub.f32 %v9204_v1, %v1343_v37 }
 0x29e   :  { %v3559_v18 = vpop.f32.mrb[13].mxu1  ;;  %v9491_v14 = vmul.f32 14.285714, %v3557_v33 }
 0x29f   :  { %v3561_v52 = vpop.f32.mrb[14].mxu1  ;;  %v1352_v32 = vpop.xlane.xlu0 %1351  ;;  %11581 = vst [vmem:[#allocation40_spill] sm:$0xff] %v9481_v24  ;;  %v1501_v6 = vmax.f32 %v9478_v30, %v9481_v24  ;;  %v9493_v1 = vmul.f32 14.285714, %v3559_v18 }
 0x2a0   :  { %v3563_v3 = vpop.f32.mrb[15].mxu1  ;;  %11584 = vst [vmem:[#allocation41_spill] sm:$0xff] %v9491_v14  ;;  %v9499_v57 = vmul.f32 14.285714, %v3561_v52 }
 0x2a1   :  { %3763 = vmax.xlane.f32.xlu1 %v3762_v51  ;;  %v9489_v51 = vsub.f32 %v9210_v41, %v1346_v39  ;;  %11585 = vst [vmem:[#allocation44_spill] sm:$0xff] %v9493_v1  ;;  %v9501_v30 = vmul.f32 14.285714, %v3563_v3 }
 0x2a2   :  { %11586 = vst [vmem:[#allocation43_spill] sm:$0xff] %v9499_v57 }
 0x2a3   :  { %v1355_v17 = vpop.xlane.xlu0 %1354  ;;  %11583 = vst [vmem:[#allocation42_spill] sm:$0xff] %v9489_v51  ;;  %v1504_v37 = vmax.f32 %v9486_v34, %v9489_v51  ;;  %11587 = vst [vmem:[#allocation46_spill] sm:$0xff] %v9501_v30  ;;  %v3771_v18 = vmax.f32 %v9499_v57, %v9501_v30  ;;  %v9510_v51 = vsub.f32 %v9220_v28, %v1349_v63 }
 0x2a5   :  { %v3567_v31 = vpop.f32.mrb[16].mxu1  ;;  %3766 = vmax.xlane.f32.xlu1 %v3765_v58  ;;  %11588 = vst [vmem:[#allocation45_spill] sm:$0xff] %v9510_v51 }
 0x2a6   :  { %v3569_v38 = vpop.f32.mrb[17].mxu1 }
 0x2a7   :  { %v3571_v61 = vpop.f32.mrb[18].mxu1  ;;  %v1358_v50 = vpop.xlane.xlu0 %1357 }
 0x2a8   :  { %v3573_v10 = vpop.f32.mrb[19].mxu1 }
 0x2a9   :  { %1502 = vmax.xlane.f32.xlu1 %v1501_v6  ;;  %v3768_v6 = vmax.f32 %v9491_v14, %v9493_v1  ;;  %v9518_v1 = vsub.f32 %v9224_v48, %v1352_v32  ;;  %v9521_v14 = vsub.f32 %v9228_v54, %v1352_v32 }
 0x2ab   :  { %v9497_v58 = vpop.xlane.xlu0 %1360  ;;  %11590 = vst [vmem:[#allocation47_spill] sm:$0xff] %v9518_v1  ;;  %11591 = vst [vmem:[#allocation50_spill] sm:$0xff] %v9521_v14  ;;  %v1510_v48 = vmax.f32 %v9518_v1, %v9521_v14  ;;  %v9554_v14 = vsub.f32 %v9238_v62, %v1355_v17 }
 0x2ad   :  { %v3577_v16 = vpop.f32.mrb[20].mxu1  ;;  %1505 = vmax.xlane.f32.xlu1 %v1504_v37  ;;  %v9513_v37 = vsub.f32 %v9222_v5, %v1349_v63  ;;  %v9531_v63 = vmul.f32 14.285714, %v3567_v31  ;;  %11596 = vst [vmem:[#allocation53_spill] sm:$0xff] %v9554_v14 }
 0x2ae   :  { %v3579_v24 = vpop.f32.mrb[21].mxu1 }
 0x2af   :  { %v3581_v41 = vpop.f32.mrb[22].mxu1  ;;  %v9505_v39 = vpop.xlane.xlu0 %1363  ;;  %11589 = vst [vmem:[#allocation48_spill] sm:$0xff] %v9513_v37  ;;  %v1507_v28 = vmax.f32 %v9510_v51, %v9513_v37  ;;  %11592 = vst [vmem:[#allocation49_spill] sm:$0xff] %v9531_v63  ;;  %v9545_v51 = vmul.f32 14.285714, %v3571_v61 }
 0x2b0   :  { %v3583_v33 = vpop.f32.mrb[23].mxu1 }
 0x2b1   :  { %3769 = vmax.xlane.f32.xlu1 %v3768_v6  ;;  %11594 = vst [vmem:[#allocation51_spill] sm:$0xff] %v9545_v51 }
 0x2b3   :  { %v9515_v52 = vpop.xlane.xlu0 %1366 }
 0x2b5   :  { %v3587_v3 = vpop.f32.mrb[24].mxu1  ;;  %3772 = vmax.xlane.f32.xlu1 %v3771_v18  ;;  %v9533_v18 = vmul.f32 14.285714, %v3569_v38 }
 0x2b6   :  { %v3589_v34 = vpop.f32.mrb[25].mxu1 }
 0x2b7   :  { %v9523_v6 = vpop.f32.mrb[26].mxu1  ;;  %v9529_v5 = vpop.xlane.xlu0 %1369  ;;  %11593 = vst [vmem:[#allocation52_spill] sm:$0xff] %v9533_v18  ;;  %v3774_v37 = vmax.f32 %v9531_v63, %v9533_v18  ;;  %v9568_v18 = vsub.f32 %v9242_v27, %v1358_v50 }
 0x2b8   :  { %v9527_v30 = vpop.f32.mrb[27].mxu1 }
 0x2b9   :  { %1508 = vmax.xlane.f32.xlu1 %v1507_v28  ;;  %v9547_v28 = vmul.f32 14.285714, %v3573_v10  ;;  %11598 = vst [vmem:[#allocation55_spill] sm:$0xff] %v9568_v18 }
 0x2bb   :  { %v9539_v54 = vpop.xlane.xlu0 %1372  ;;  %11595 = vst [vmem:[#allocation54_spill] sm:$0xff] %v9547_v28  ;;  %v3777_v1 = vmax.f32 %v9545_v51, %v9547_v28  ;;  %v9581_v51 = vmul.f32 14.285714, %v3577_v16 }
 0x2bd   :  { %v9537_v57 = vpop.f32.mrb[28].mxu1  ;;  %1511 = vmax.xlane.f32.xlu1 %v1510_v48  ;;  %v9557_v48 = vsub.f32 %v9240_v15, %v1355_v17  ;;  %11600 = vst [vmem:[#allocation58_spill] sm:$0xff] %v9581_v51 }
 0x2be   :  { %v9541_v32 = vpop.f32.mrb[29].mxu1 }
 0x2bf   :  { %v9549_v31 = vpop.f32.mrb[30].mxu1  ;;  %11597 = vst [vmem:[#allocation56_spill] sm:$0xff] %v9557_v48  ;;  %v9561_v55 = vpop.xlane.xlu0 %1375  ;;  %v1513_v15 = vmax.f32 %v9554_v14, %v9557_v48  ;;  %v9593_v48 = vmul.f32 14.285714, %v3581_v41 }
 0x2c0   :  { %v9551_v38 = vpop.f32.mrb[31].mxu1 }
 0x2c1   :  { %3775 = vmax.xlane.f32.xlu1 %v3774_v37  ;;  %v9571_v37 = vsub.f32 %v9246_v45, %v1358_v50  ;;  %11602 = vst [vmem:[#allocation59_spill] sm:$0xff] %v9593_v48 }
 0x2c3   :  { %11599 = vst [vmem:[#allocation57_spill] sm:$0xff] %v9571_v37  ;;  %v9579_v28 = vpop.xlane.xlu0 %1378  ;;  %v1516_v27 = vmax.f32 %v9568_v18, %v9571_v37  ;;  %v9605_v37 = vsub.f32 %v9256_v47, %v9497_v58  ;;  %v9625_v47 = vsub.f32 %v9264_v56, %v9505_v39 }
 0x2c5   :  { %v9563_v61 = vpop.f32.mrb[32].mxu1  ;;  %3778 = vmax.xlane.f32.xlu1 %v3777_v1  ;;  %v9583_v1 = vmul.f32 14.285714, %v3579_v24  ;;  %11604 = vst [vmem:[#allocation62_spill] sm:$0xff] %v9605_v37  ;;  %11608 = vst [vmem:[#allocation66_spill] sm:$0xff] %v9625_v47 }
 0x2c6   :  { %v9565_v10 = vpop.f32.mrb[33].mxu1 }
 0x2c7   :  { %v9573_v62 = vpop.f32.mrb[34].mxu1  ;;  %11601 = vst [vmem:[#allocation60_spill] sm:$0xff] %v9583_v1  ;;  %v3780_v50 = vmax.f32 %v9581_v51, %v9583_v1  ;;  %v9599_v16 = vpop.xlane.xlu0 %1381 }
 0x2c8   :  { %v9577_v17 = vpop.f32.mrb[35].mxu1 }
 0x2c9   :  { %1514 = vmax.xlane.f32.xlu1 %v1513_v15  ;;  %v9595_v15 = vmul.f32 14.285714, %v3583_v33 }
 0x2cb   :  { %11603 = vst [vmem:[#allocation61_spill] sm:$0xff] %v9595_v15  ;;  %v3783_v41 = vmax.f32 %v9593_v48, %v9595_v15  ;;  %v9615_v18 = vpop.xlane.xlu0 %1384  ;;  %v9635_v48 = vmul.f32 14.285714, %v3589_v34 }
 0x2cc   :  { %11606 = vst [vmem:[#allocation63_spill] sm:$0xff] %v9615_v18 }
 0x2cd   :  { %v9587_v63 = vpop.f32.mrb[36].mxu1  ;;  %1517 = vmax.xlane.f32.xlu1 %v1516_v27  ;;  %v9609_v27 = vsub.f32 %v9258_v19, %v9497_v58  ;;  %11610 = vst [vmem:[#allocation67_spill] sm:$0xff] %v9635_v48 }
 0x2ce   :  { %v9589_v45 = vpop.f32.mrb[37].mxu1 }
 0x2cf   :  { %v9597_v14 = vpop.f32.mrb[38].mxu1  ;;  %11605 = vst [vmem:[#allocation64_spill] sm:$0xff] %v9609_v27  ;;  %v1519_v58 = vmax.f32 %v9605_v37, %v9609_v27  ;;  %v9639_v51 = vpop.xlane.xlu0 %1387  ;;  %v9648_v37 = vmul.f32 14.285714, %v9523_v6 }
 0x2d0   :  { %v9601_v24 = vpop.f32.mrb[39].mxu1 }
 0x2d1   :  { %3781 = vmax.xlane.f32.xlu1 %v3780_v50  ;;  %v9621_v50 = vsub.f32 %v9260_v29, %v9505_v39  ;;  %11611 = vst [vmem:[#allocation69_spill] sm:$0xff] %v9648_v37 }
 0x2d3   :  { %11607 = vst [vmem:[#allocation65_spill] sm:$0xff] %v9621_v50  ;;  %v1522_v29 = vmax.f32 %v9621_v50, %v9625_v47  ;;  %v9657_v50 = vpop.xlane.xlu0 %1390  ;;  %v9665_v47 = vsub.f32 %v9276_v13, %v9515_v52 }
 0x2d5   :  { %v9613_v33 = vpop.f32.mrb[40].mxu1  ;;  %3784 = vmax.xlane.f32.xlu1 %v3783_v41  ;;  %v9633_v41 = vmul.f32 14.285714, %v3587_v3  ;;  %v9651_v3 = vmul.f32 14.285714, %v9527_v30  ;;  %11614 = vst [vmem:[#allocation72_spill] sm:$0xff] %v9665_v47 }
 0x2d6   :  { %v9617_v1 = vpop.f32.mrb[41].mxu1 }
 0x2d7   :  { %v9627_v19 = vpop.f32.mrb[42].mxu1  ;;  %11609 = vst [vmem:[#allocation68_spill] sm:$0xff] %v9633_v41  ;;  %v3786_v39 = vmax.f32 %v9633_v41, %v9635_v48  ;;  %11612 = vst [vmem:[#allocation71_spill] sm:$0xff] %v9651_v3  ;;  %v3789_v6 = vmax.f32 %v9648_v37, %v9651_v3 }
 0x2d8   :  { %v9631_v15 = vpop.f32.mrb[43].mxu1 }
 0x2d9   :  { %1520 = vmax.xlane.f32.xlu1 %v1519_v58 }
 0x2dd   :  { %v9641_v18 = vpop.f32.mrb[44].mxu1  ;;  %1523 = vmax.xlane.f32.xlu1 %v1522_v29  ;;  %v9661_v29 = vsub.f32 %v9274_v4, %v9515_v52  ;;  %v9679_v4 = vsub.f32 %v9282_v7, %v9529_v5  ;;  %v9685_v52 = vpop.xlane.xlu0 %1393 }
 0x2de   :  { %v9643_v56 = vpop.f32.mrb[45].mxu1 }
 0x2df   :  { %v9653_v34 = vpop.f32.mrb[46].mxu1  ;;  %11613 = vst [vmem:[#allocation70_spill] sm:$0xff] %v9661_v29  ;;  %11616 = vst [vmem:[#allocation75_spill] sm:$0xff] %v9679_v4  ;;  %v1525_v13 = vmax.f32 %v9661_v29, %v9665_v47 }
 0x2e0   :  { %v9655_v58 = vpop.f32.mrb[47].mxu1 }
 0x2e1   :  { %3787 = vmax.xlane.f32.xlu1 %v3786_v39  ;;  %v9675_v39 = vsub.f32 %v9280_v40, %v9529_v5  ;;  %v9693_v40 = vmul.f32 14.285714, %v9541_v32  ;;  %v9699_v37 = vpop.xlane.xlu0 %1396 }
 0x2e3   :  { %11615 = vst [vmem:[#allocation73_spill] sm:$0xff] %v9675_v39  ;;  %11618 = vst [vmem:[#allocation76_spill] sm:$0xff] %v9693_v40  ;;  %v1528_v7 = vmax.f32 %v9675_v39, %v9679_v4  ;;  %v9721_v39 = vsub.f32 %v9291_v21, %v9539_v54 }
 0x2e5   :  { %v9669_v30 = vpop.f32.mrb[48].mxu1  ;;  %3790 = vmax.xlane.f32.xlu1 %v3789_v6  ;;  %v9690_v6 = vmul.f32 14.285714, %v9537_v57  ;;  %v9709_v57 = vmul.f32 14.285714, %v9551_v38  ;;  %11622 = vst [vmem:[#allocation79_spill] sm:$0xff] %v9721_v39  ;;  %v9725_v4 = vpop.xlane.xlu0 %1399 }
 0x2e6   :  { %v9671_v27 = vpop.f32.mrb[49].mxu1 }
 0x2e7   :  { %v9681_v48 = vpop.f32.mrb[50].mxu1  ;;  %11617 = vst [vmem:[#allocation74_spill] sm:$0xff] %v9690_v6  ;;  %v3792_v47 = vmax.f32 %v9690_v6, %v9693_v40  ;;  %11620 = vst [vmem:[#allocation78_spill] sm:$0xff] %v9709_v57 }
 0x2e8   :  { %v9687_v3 = vpop.f32.mrb[51].mxu1 }
 0x2e9   :  { %1526 = vmax.xlane.f32.xlu1 %v1525_v13  ;;  %v9706_v13 = vmul.f32 14.285714, %v9549_v31 }
 0x2eb   :  { %11619 = vst [vmem:[#allocation77_spill] sm:$0xff] %v9706_v13  ;;  %v3795_v31 = vmax.f32 %v9706_v13, %v9709_v57  ;;  %v9745_v13 = vpop.xlane.xlu0 %1402 }
 0x2ec   :  { %11625 = vst [vmem:[#allocation82_spill] sm:$0xff] %v9745_v13 }
 0x2ed   :  { %v9697_v5 = vpop.f32.mrb[52].mxu1  ;;  %1529 = vmax.xlane.f32.xlu1 %v1528_v7  ;;  %v9717_v7 = vsub.f32 %v9289_v46, %v9539_v54  ;;  %v9737_v46 = vsub.f32 %v9297_v11, %v9561_v55 }
 0x2ee   :  { %v9701_v29 = vpop.f32.mrb[53].mxu1 }
 0x2ef   :  { %v9711_v32 = vpop.f32.mrb[54].mxu1  ;;  %11621 = vst [vmem:[#allocation80_spill] sm:$0xff] %v9717_v7  ;;  %11624 = vst [vmem:[#allocation83_spill] sm:$0xff] %v9737_v46  ;;  %v1531_v54 = vmax.f32 %v9717_v7, %v9721_v39  ;;  %v9762_v39 = vmul.f32 14.285714, %v9573_v62 }
 0x2f0   :  { %v9713_v41 = vpop.f32.mrb[55].mxu1 }
 0x2f1   :  { %3793 = vmax.xlane.f32.xlu1 %v3792_v47  ;;  %v9733_v47 = vsub.f32 %v9295_v0, %v9561_v55  ;;  %v9751_v0 = vmul.f32 14.285714, %v9565_v10 }
 0x2f3   :  { %11623 = vst [vmem:[#allocation81_spill] sm:$0xff] %v9733_v47  ;;  %11627 = vst [vmem:[#allocation85_spill] sm:$0xff] %v9751_v0  ;;  %v1534_v11 = vmax.f32 %v9733_v47, %v9737_v46  ;;  %v1663_v47 = vlaneseq  ;;  %v9777_v46 = vsub.f32 %v9303_v42, %v9579_v28 }
 0x2f5   :  { %v9727_v38 = vpop.f32.mrb[56].mxu1  ;;  %3796 = vmax.xlane.f32.xlu1 %v3795_v31  ;;  %v9748_v31 = vmul.f32 14.285714, %v9563_v61  ;;  %v9765_v61 = vmul.f32 14.285714, %v9577_v17  ;;  %11630 = vst [vmem:[#allocation88_spill] sm:$0xff] %v9777_v46 }
 0x2f6   :  { %v9729_v40 = vpop.f32.mrb[57].mxu1 }
 0x2f7   :  { %v9739_v21 = vpop.f32.mrb[58].mxu1  ;;  %11626 = vst [vmem:[#allocation84_spill] sm:$0xff] %v9748_v31  ;;  %11628 = vst [vmem:[#allocation87_spill] sm:$0xff] %v9765_v61  ;;  %v3801_v62 = vmax.f32 %v9762_v39, %v9765_v61 }
 0x2f8   :  { %v9743_v57 = vpop.f32.mrb[59].mxu1 }
 0x2f9   :  { %1532 = vmax.xlane.f32.xlu1 %v1531_v54  ;;  %v3798_v54 = vmax.f32 %v9748_v31, %v9751_v0  ;;  %v9781_v0 = vshrl.u32 %v1663_v47, 7  ;;  %v9789_v31 = vmul.f32 14.285714, %v9589_v45 }
 0x2fd   :  { %v9755_v55 = vpop.f32.mrb[60].mxu1  ;;  %1535 = vmax.xlane.f32.xlu1 %v1534_v11  ;;  %v1473_v7 = vpop.xlane.xlu0 %1472  ;;  %v9773_v11 = vsub.f32 %v9301_v2, %v9579_v28  ;;  %v9794_v28 = vmul.f32 14.285714, %v9597_v14  ;;  %v11195_v14 = vmov 0.0  }
 0x2fe   :  { %v9757_v6 = vpop.f32.mrb[61].mxu1  ;;  %5099 = vrcp.f32 %v1473_v7  ;;  %v9783_v7 = vand.u32 127, %v1663_v47  ;;  %v9799_v47 = vpop.xlane.xlu1 %1405 }
 0x2ff   :  { %v9767_v10 = vpop.f32.mrb[62].mxu1  ;;  %11629 = vst [vmem:[#allocation86_spill] sm:$0xff] %v9773_v11  ;;  %v1537_v2 = vmax.f32 %v9773_v11, %v9777_v46  ;;  %11631 = vst [vmem:[#allocation90_spill] sm:$0xff] %v9794_v28  ;;  %v1666_v11 = vadd.s32 16, %v9781_v0 }
 0x300   :  { %v9769_v13 = vpop.f32.mrb[63].mxu1  ;;  %vm1699_vm0 = vcmp.eq.s32.totalorder %v9781_v0, %v9783_v7 }
 0x301   :  { %3799 = vmax.xlane.f32.xlu1 %v3798_v54  ;;  %v9786_v54 = vmul.f32 14.285714, %v9587_v63  ;;  %vm1703_vm3 = vcmp.eq.s32.totalorder %v1666_v11, %v9783_v7  ;;  %v9854_v11 = vmul.f32 14.285714, %v9643_v56 }
 0x303   :  { %v3804_v45 = vmax.f32 %v9786_v54, %v9789_v31 }
 0x305   :  { %3802 = vmax.xlane.f32.xlu1 %v3801_v62  ;;  %v1479_v17 = vpop.xlane.xlu0 %1478  ;;  %v9797_v62 = vmul.f32 14.285714, %v9601_v24 }
 0x306   :  { %5101 = vrcp.f32 %v1479_v17 }
 0x307   :  { %11632 = vst [vmem:[#allocation92_spill] sm:$0xff] %v9797_v62 }
 0x308   :  { %v5100_v42 = vpop.eup %5099 }
 0x309   :  { %1538 = vmax.xlane.f32.xlu1 %v1537_v2  ;;  %v1568_v63 = vmul.f32 %v5100_v42, %v9362_v9  ;;  %v1569_v61 = vmul.f32 %v5100_v42, %v9365_v12  ;;  %v3807_v9 = vmax.f32 %v9794_v28, %v9797_v62  ;;  %v9813_v2 = vpop.xlane.xlu1 %1475  ;;  %v9833_v28 = vmul.f32 14.285714, %v9627_v19 }
 0x30a   :  { %v1668_v19 = vadd.s32 32, %v9781_v0 }
 0x30b   :  { %vm1763_vm1 = vcmp.gt.f32.partialorder %v1568_v63, 0.5  ;;  %vm1764_vm2 = vcmp.gt.f32.partialorder %v1569_v61, 0.5  ;;  %v9819_v63 = vmul.f32 14.285714, %v9613_v33  ;;  %v9822_v61 = vmul.f32 14.285714, %v9617_v1 }
 0x30c   :  { %v1827_v17 = vsel %vm1763_vm1, 1.0, %v11195_v14  ;;  %v9809_v24 = vsel %vm1764_vm2, 1.0, %v11195_v14  ;;  %v9836_v1 = vmul.f32 14.285714, %v9631_v15  ;;  %vm1707_vm6 = vcmp.eq.s32.totalorder %v1668_v19, %v9783_v7 }
 0x30d   :  { %3805 = vmax.xlane.f32.xlu1 %v3804_v45  ;;  %11633 = vst [vmem:[#allocation91_spill] sm:$0xff] %v9809_v24  ;;  %v1485_v12 = vpop.xlane.xlu0 %1484  ;;  %v9815_v42 = vsel %vm1699_vm0, 1.0, %v1827_v17  ;;  %v9826_v46 = vpop.xlane.xlu1 %1481  ;;  %v3810_v33 = vmax.f32 %v9819_v63, %v9822_v61  ;;  %v9890_v19 = vmul.f32 14.285714, %v9669_v30  ;;  %v9904_v30 = vmul.f32 14.285714, %v9681_v48 }
 0x30e   :  { %11634 = vst [vmem:[#allocation93_spill] sm:$0xff] %v9815_v42  ;;  %5103 = vrcp.f32 %v1485_v12  ;;  %v4422_v45 = vadd.f32 %v9815_v42, %v9809_v24  ;;  %11635 = vst [vmem:[#allocation96_spill] sm:$0xff] %v9836_v1  ;;  %v3813_v15 = vmax.f32 %v9833_v28, %v9836_v1  ;;  %v9864_v24 = vmul.f32 14.285714, %v9655_v58 }
 0x310   :  { %v5102_v14 = vpop.eup %5101  ;;  %4423 = vadd.xlane.f32.xlu0 %v4422_v45  ;;  %v9851_v45 = vmul.f32 14.285714, %v9641_v18 }
 0x311   :  { %3808 = vmax.xlane.f32.xlu1 %v3807_v9  ;;  %v1574_v17 = vmul.f32 %v5102_v14, %v9378_v53  ;;  %v1575_v62 = vmul.f32 %v5102_v14, %v9381_v25  ;;  %v11636_v9 = vmov 0.0   ;;  %v9843_v25 = vpop.xlane.xlu1 %1487 }
 0x312   :  { %v3816_v1 = vmax.f32 %v9851_v45, %v9854_v11 }
 0x313   :  { %vm1767_vm4 = vcmp.gt.f32.partialorder %v1574_v17, 0.5  ;;  %vm1768_vm5 = vcmp.gt.f32.partialorder %v1575_v62, 0.5 }
 0x314   :  { %v1831_v12 = vsel %vm1767_vm4, 1.0, %v11636_v9  ;;  %v9841_v53 = vsel %vm1768_vm5, 1.0, %v11636_v9 }
 0x315   :  { %3811 = vmax.xlane.f32.xlu1 %v3810_v33  ;;  %11637 = vst [vmem:[#allocation95_spill] sm:$0xff] %v9841_v53  ;;  %v9845_v14 = vsel %vm1703_vm3, 1.0, %v1831_v12  ;;  %v9861_v12 = vmul.f32 14.285714, %v9653_v34 }
 0x316   :  { %11638 = vst [vmem:[#allocation97_spill] sm:$0xff] %v9845_v14  ;;  %v4428_v62 = vadd.f32 %v9845_v14, %v9841_v53 }
 0x318   :  { %v9858_v17 = vpop.xlane.xlu0 %3751  ;;  %v5104_v33 = vpop.eup %5103  ;;  %4429 = vadd.xlane.f32.xlu0 %v4428_v62  ;;  %v3819_v62 = vmax.f32 %v9861_v12, %v9864_v24 }
 0x319   :  { %3814 = vmax.xlane.f32.xlu1 %v3813_v15  ;;  %v1580_v18 = vmul.f32 %v5104_v33, %v9394_v44  ;;  %v1581_v56 = vmul.f32 %v5104_v33, %v9397_v36  ;;  %v9893_v33 = vmul.f32 14.285714, %v9671_v27  ;;  %v9907_v27 = vmul.f32 14.285714, %v9687_v3 }
 0x31a   :  { %v3755_v42 = vpop.xlane.xlu1 %3754 }
 0x31b   :  { %v9871_v53 = vsub.f32 %v9413_v20, %v3755_v42  ;;  %v9874_v15 = vsub.f32 %v9423_v43, %v3755_v42  ;;  %vm1771_vm7 = vcmp.gt.f32.partialorder %v1580_v18, 0.5  ;;  %vm1772_vm8 = vcmp.gt.f32.partialorder %v1581_v56, 0.5 }
 0x31c   :  { %v1491_v34 = vpop.xlane.xlu0 %1490  ;;  %v1835_v36 = vsel %vm1771_vm7, 1.0, %v11636_v9  ;;  %v9885_v43 = vsel %vm1772_vm8, 1.0, %v11636_v9  ;;  %v3825_v48 = vmax.f32 %v9904_v30, %v9907_v27 }
 0x31d   :  { %11639 = vst [vmem:[#allocation98_spill] sm:$0xff] %v9871_v53  ;;  %11640 = vst [vmem:[#allocation99_spill] sm:$0xff] %v9874_v15  ;;  %v3914_v58 = vmul.f32 1.442695, %v9871_v53  ;;  %v3916_v44 = vmul.f32 1.442695, %v9874_v15  ;;  %3817 = vmax.xlane.f32.xlu1 %v3816_v1 }
 0x31e   :  { %v9882_v20 = vpop.xlane.xlu1 %1493  ;;  %11641 = vst [vmem:[#allocation100_spill] sm:$0xff] %v9885_v43  ;;  %v9887_v42 = vsel %vm1707_vm6, 1.0, %v1835_v36  ;;  %v11666_v15 = vld [vmem:[#allocation10_spill] sm:$0xff] }
 0x31f   :  { %11642 = vst [vmem:[#allocation101_spill] sm:$0xff] %v9887_v42  ;;  %5105 = vpow2.f32 %v3914_v58  ;;  %v4434_v1 = vadd.f32 %v9887_v42, %v9885_v43 }
 0x320   :  { %5107 = vpow2.f32 %v3916_v44  ;;  %v3758_v18 = vpop.xlane.xlu0 %3757  ;;  %v3822_v44 = vmax.f32 %v9890_v19, %v9893_v33 }
 0x321   :  { %5109 = vrcp.f32 %v1491_v34  ;;  %v9898_v56 = vsub.f32 %v9435_v49, %v3758_v18  ;;  %v9901_v14 = vsub.f32 %v9437_v26, %v3758_v18  ;;  %3820 = vmax.xlane.f32.xlu1 %v3819_v62  ;;  %4435 = vadd.xlane.f32.xlu0 %v4434_v1  ;;  %v9924_v62 = vmul.f32 14.285714, %v9697_v5 }
 0x322   :  { %v3761_v58 = vpop.xlane.xlu1 %3760  ;;  %v9927_v1 = vmul.f32 14.285714, %v9701_v29  ;;  %v1670_v5 = vadd.s32 48, %v9781_v0 }
 0x323   :  { %11643 = vst [vmem:[#allocation102_spill] sm:$0xff] %v9898_v56  ;;  %11644 = vst [vmem:[#allocation103_spill] sm:$0xff] %v9901_v14  ;;  %v3918_v34 = vmul.f32 1.442695, %v9898_v56  ;;  %v9913_v49 = vsub.f32 %v9441_v60, %v3761_v58  ;;  %v3920_v26 = vmul.f32 1.442695, %v9901_v14  ;;  %v9917_v36 = vsub.f32 %v9445_v23, %v3761_v58 }
 0x324   :  { %v9932_v58 = vmul.f32 14.285714, %v9711_v32  ;;  %vm1711_vm9 = vcmp.eq.s32.totalorder %v1670_v5, %v9783_v7 }
 0x325   :  { %11645 = vst [vmem:[#allocation104_spill] sm:$0xff] %v9913_v49  ;;  %11646 = vst [vmem:[#allocation105_spill] sm:$0xff] %v9917_v36  ;;  %3823 = vmax.xlane.f32.xlu1 %v3822_v44  ;;  %5111 = vpow2.f32 %v3918_v34  ;;  %v3922_v60 = vmul.f32 1.442695, %v9913_v49  ;;  %v3924_v18 = vmul.f32 1.442695, %v9917_v36  ;;  %v3828_v34 = vmax.f32 %v9924_v62, %v9927_v1 }
 0x326   :  { %v9921_v3 = vpop.xlane.xlu1 %1496  ;;  %5113 = vpow2.f32 %v3920_v26  ;;  %v9935_v44 = vmul.f32 14.285714, %v9713_v41  ;;  %v9951_v49 = vmul.f32 14.285714, %v9729_v40 }
 0x327   :  { %5115 = vpow2.f32 %v3922_v60 }
 0x328   :  { %5117 = vpow2.f32 %v3924_v18  ;;  %v3831_v41 = vmax.f32 %v9932_v58, %v9935_v44 }
 0x329   :  { %v5106_v23 = vpop.eup %5105  ;;  %3826 = vmax.xlane.f32.xlu1 %v3825_v48  ;;  %v9948_v48 = vmul.f32 14.285714, %v9727_v38 }
 0x32a   :  { %v5108_v43 = vpop.eup %5107  ;;  %v9938_v42 = vpop.xlane.xlu1 %1499 }
 0x32b   :  { %v5110_v29 = vpop.eup %5109  ;;  %v4041_v26 = vadd.f32 %v5108_v43, %v5106_v23 }
 0x32c   :  { %v1586_v36 = vmul.f32 %v5110_v29, %v9416_v59  ;;  %v1587_v32 = vmul.f32 %v5110_v29, %v9419_v35  ;;  %v9972_v29 = vmul.f32 14.285714, %v9739_v21 }
 0x32d   :  { %4042 = vadd.xlane.f32.xlu0 %v4041_v26  ;;  %3829 = vmax.xlane.f32.xlu1 %v3828_v34  ;;  %v9975_v26 = vmul.f32 14.285714, %v9743_v57 }
 0x32e   :  { %v3764_v60 = vpop.xlane.xlu1 %3763  ;;  %vm1775_vm10 = vcmp.gt.f32.partialorder %v1586_v36, 0.5  ;;  %vm1776_vm11 = vcmp.gt.f32.partialorder %v1587_v32, 0.5  ;;  %v11651_v32 = vld [vmem:[#allocation35_spill] sm:$0xff] }
 0x32f   :  { %v9954_v59 = vsub.f32 %v9463_v8, %v3764_v60  ;;  %v9957_v35 = vsub.f32 %v9465_v22, %v3764_v60  ;;  %v1839_v43 = vsel %vm1775_vm10, 1.0, %v11636_v9  ;;  %v9961_v18 = vsel %vm1776_vm11, 1.0, %v11636_v9  ;;  %v5112_v38 = vpop.eup %5111 }
 0x330   :  { %11649 = vst [vmem:[#allocation108_spill] sm:$0xff] %v9961_v18  ;;  %v9963_v23 = vsel %vm1711_vm9, 1.0, %v1839_v43  ;;  %v5114_v8 = vpop.eup %5113  ;;  %v3834_v22 = vmax.f32 %v9948_v48, %v9951_v49  ;;  %v11653_v43 = vld [vmem:[#allocation38_spill] sm:$0xff]  ;;  %v3837_v57 = vmax.f32 %v9972_v29, %v9975_v26 }
 0x331   :  { %11647 = vst [vmem:[#allocation106_spill] sm:$0xff] %v9954_v59  ;;  %11648 = vst [vmem:[#allocation107_spill] sm:$0xff] %v9957_v35  ;;  %v3926_v40 = vmul.f32 1.442695, %v9954_v59  ;;  %v3928_v5 = vmul.f32 1.442695, %v9957_v35  ;;  %v4440_v36 = vadd.f32 %v9963_v23, %v9961_v18  ;;  %3832 = vmax.xlane.f32.xlu1 %v3831_v41  ;;  %v5116_v41 = vpop.eup %5115  ;;  %v4044_v21 = vadd.f32 %v5114_v8, %v5112_v38 }
 0x332   :  { %11650 = vst [vmem:[#allocation109_spill] sm:$0xff] %v9963_v23  ;;  %v3767_v34 = vpop.xlane.xlu1 %3766  ;;  %v5118_v59 = vpop.eup %5117  ;;  %v10000_v8 = vmul.f32 14.285714, %v9767_v10 }
 0x333   :  { %5119 = vpow2.f32 %v3926_v40  ;;  %4441 = vadd.xlane.f32.xlu0 %v4440_v36  ;;  %v9978_v60 = vsub.f32 %v11651_v32, %v3767_v34  ;;  %v9981_v35 = vsub.f32 %v11653_v43, %v3767_v34  ;;  %v9990_v40 = vmul.f32 14.285714, %v9755_v55 }
 0x334   :  { %5121 = vpow2.f32 %v3928_v5  ;;  %v9993_v36 = vmul.f32 14.285714, %v9757_v6  ;;  %v4047_v5 = vadd.f32 %v5118_v59, %v5116_v41  ;;  %v11657_v59 = vld [vmem:[#allocation8_spill] sm:$0xff]  ;;  %v11659_v41 = vld [vmem:[#allocation41_spill] sm:$0xff] }
 0x335   :  { %11652 = vst [vmem:[#allocation35_spill] sm:$0xff] %v9978_v60  ;;  %11654 = vst [vmem:[#allocation38_spill] sm:$0xff] %v9981_v35  ;;  %v3930_v18 = vmul.f32 1.442695, %v9978_v60  ;;  %v3932_v23 = vmul.f32 1.442695, %v9981_v35  ;;  %3835 = vmax.xlane.f32.xlu1 %v3834_v22  ;;  %v10011_v32 = vsub.f32 %v11657_v59, %v9599_v16 }
 0x336   :  { %v9985_v14 = vpop.xlane.xlu1 %1502  ;;  %v3840_v38 = vmax.f32 %v9990_v40, %v9993_v36  ;;  %v10003_v22 = vmul.f32 14.285714, %v9769_v13  ;;  %v11661_v13 = vld [vmem:[#allocation44_spill] sm:$0xff]  ;;  %v11663_v59 = vld [vmem:[#allocation63_spill] sm:$0xff] }
 0x337   :  { %5123 = vpow2.f32 %v3930_v18  ;;  %4045 = vadd.xlane.f32.xlu0 %v4044_v21  ;;  %v11655_v18 = vld [vmem:[#allocation6_spill] sm:$0xff]  ;;  %11658 = vst [vmem:[#allocation8_spill] sm:$0xff] %v10011_v32  ;;  %v11664_v60 = vld [vmem:[#allocation7_spill] sm:$0xff] }
 0x338   :  { %5125 = vpow2.f32 %v3932_v23  ;;  %v10007_v23 = vsub.f32 %v11655_v18, %v9599_v16  ;;  %v3843_v10 = vmax.f32 %v10000_v8, %v10003_v22  ;;  %v10025_v56 = vsub.f32 %v11664_v60, %v11663_v59  ;;  %v11672_v60 = vld [vmem:[#allocation27_spill] sm:$0xff] }
 0x339   :  { %3838 = vmax.xlane.f32.xlu1 %v3837_v57 }
 0x33a   :  { %v9995_v34 = vpop.xlane.xlu1 %1505  ;;  %11656 = vst [vmem:[#allocation6_spill] sm:$0xff] %v10007_v23  ;;  %11665 = vst [vmem:[#allocation63_spill] sm:$0xff] %v10025_v56 }
 0x33b   :  { %4048 = vadd.xlane.f32.xlu0 %v4047_v5 }
 0x33d   :  { %v5120_v55 = vpop.eup %5119  ;;  %3841 = vmax.xlane.f32.xlu1 %v3840_v38 }
 0x33e   :  { %v5122_v6 = vpop.eup %5121  ;;  %v3770_v43 = vpop.xlane.xlu1 %3769 }
 0x33f   :  { %v10016_v21 = vsub.f32 %v11659_v41, %v3770_v43  ;;  %v10019_v57 = vsub.f32 %v11661_v13, %v3770_v43  ;;  %v4050_v5 = vadd.f32 %v5122_v6, %v5120_v55  ;;  %v10029_v41 = vsub.f32 %v11666_v15, %v11663_v59  ;;  %v11668_v6 = vld [vmem:[#allocation43_spill] sm:$0xff]  ;;  %v11670_v13 = vld [vmem:[#allocation46_spill] sm:$0xff] }
 0x340   :  { %v1540_v55 = vmax.f32 %v10007_v23, %v10011_v32 }
 0x341   :  { %11660 = vst [vmem:[#allocation41_spill] sm:$0xff] %v10016_v21  ;;  %11662 = vst [vmem:[#allocation44_spill] sm:$0xff] %v10019_v57  ;;  %v5124_v38 = vpop.eup %5123  ;;  %v3934_v35 = vmul.f32 1.442695, %v10016_v21  ;;  %v3936_v18 = vmul.f32 1.442695, %v10019_v57  ;;  %4051 = vadd.xlane.f32.xlu0 %v4050_v5  ;;  %3844 = vmax.xlane.f32.xlu1 %v3843_v10  ;;  %v10041_v57 = vsub.f32 %v11672_v60, %v9858_v17 }
 0x342   :  { %v5126_v16 = vpop.eup %5125  ;;  %11667 = vst [vmem:[#allocation7_spill] sm:$0xff] %v10029_v41  ;;  %v3773_v53 = vpop.xlane.xlu1 %3772  ;;  %v11680_v60 = vld [vmem:[#allocation11_spill] sm:$0xff]  ;;  %v11743_v21 = vld [vmem:[#allocation36_spill] sm:$0xff] }
 0x343   :  { %5127 = vpow2.f32 %v3934_v35  ;;  %v10034_v43 = vsub.f32 %v11668_v6, %v3773_v53  ;;  %v10037_v5 = vsub.f32 %v11670_v13, %v3773_v53  ;;  %v4053_v10 = vadd.f32 %v5126_v16, %v5124_v38  ;;  %11673 = vst [vmem:[#allocation46_spill] sm:$0xff] %v10041_v57  ;;  %v11674_v35 = vld [vmem:[#allocation30_spill] sm:$0xff]  ;;  %v11676_v53 = vld [vmem:[#allocation9_spill] sm:$0xff] }
 0x344   :  { %5129 = vpow2.f32 %v3936_v18  ;;  %v10047_v23 = vsub.f32 %v11674_v35, %v9858_v17  ;;  %v10053_v38 = vsub.f32 %v11676_v53, %v9639_v51  ;;  %v11678_v18 = vld [vmem:[#allocation12_spill] sm:$0xff]  ;;  %v1543_v13 = vmax.f32 %v10025_v56, %v10029_v41  ;;  %v11682_v53 = vld [vmem:[#allocation14_spill] sm:$0xff] }
 0x345   :  { %11669 = vst [vmem:[#allocation10_spill] sm:$0xff] %v10034_v43  ;;  %11671 = vst [vmem:[#allocation43_spill] sm:$0xff] %v10037_v5  ;;  %v3938_v15 = vmul.f32 1.442695, %v10034_v43  ;;  %v3940_v59 = vmul.f32 1.442695, %v10037_v5  ;;  %4054 = vadd.xlane.f32.xlu0 %v4053_v10  ;;  %1541 = vmax.xlane.f32.xlu1 %v1540_v55  ;;  %v10057_v16 = vsub.f32 %v11678_v18, %v9639_v51 }
 0x346   :  { %11675 = vst [vmem:[#allocation27_spill] sm:$0xff] %v10047_v23  ;;  %v10049_v6 = vpop.xlane.xlu1 %1508  ;;  %11677 = vst [vmem:[#allocation30_spill] sm:$0xff] %v10053_v38  ;;  %v3910_v55 = vmul.f32 1.442695, %v10041_v57  ;;  %v3912_v17 = vmul.f32 1.442695, %v10047_v23  ;;  %v10067_v35 = vsub.f32 %v11680_v60, %v9657_v50  ;;  %v10071_v51 = vsub.f32 %v11682_v53, %v9657_v50 }
 0x347   :  { %11679 = vst [vmem:[#allocation9_spill] sm:$0xff] %v10057_v16  ;;  %5131 = vpow2.f32 %v3938_v15  ;;  %v1546_v15 = vmax.f32 %v10053_v38, %v10057_v16  ;;  %v11686_v41 = vld [vmem:[#allocation16_spill] sm:$0xff]  ;;  %v11688_v23 = vld [vmem:[#allocation49_spill] sm:$0xff] }
 0x348   :  { %5133 = vpow2.f32 %v3940_v59  ;;  %11681 = vst [vmem:[#allocation12_spill] sm:$0xff] %v10067_v35  ;;  %11683 = vst [vmem:[#allocation11_spill] sm:$0xff] %v10071_v51  ;;  %v10081_v32 = vsub.f32 %v11686_v41, %v9685_v52  ;;  %v11690_v53 = vld [vmem:[#allocation52_spill] sm:$0xff] }
 0x349   :  { %1544 = vmax.xlane.f32.xlu1 %v1543_v13  ;;  %5135 = vpow2.f32 %v3910_v55  ;;  %v11684_v13 = vld [vmem:[#allocation13_spill] sm:$0xff]  ;;  %v1549_v55 = vmax.f32 %v10067_v35, %v10071_v51 }
 0x34a   :  { %v10063_v10 = vpop.xlane.xlu1 %1511  ;;  %v10077_v56 = vsub.f32 %v11684_v13, %v9685_v52  ;;  %11687 = vst [vmem:[#allocation13_spill] sm:$0xff] %v10081_v32  ;;  %5137 = vpow2.f32 %v3912_v17 }
 0x34b   :  { %5139 = vrcp.f32 %v9813_v2 }
 0x34c   :  { %11685 = vst [vmem:[#allocation14_spill] sm:$0xff] %v10077_v56  ;;  %5141 = vrcp.f32 %v9826_v46  ;;  %v1552_v2 = vmax.f32 %v10077_v56, %v10081_v32  ;;  %v11706_v56 = vld [vmem:[#allocation19_spill] sm:$0xff] }
 0x34d   :  { %v5128_v18 = vpop.eup %5127  ;;  %1547 = vmax.xlane.f32.xlu1 %v1546_v15 }
 0x34e   :  { %v5130_v59 = vpop.eup %5129  ;;  %v3776_v60 = vpop.xlane.xlu1 %3775 }
 0x34f   :  { %v10084_v50 = vsub.f32 %v11688_v23, %v3776_v60  ;;  %v10087_v57 = vsub.f32 %v11690_v53, %v3776_v60  ;;  %v4056_v38 = vadd.f32 %v5130_v59, %v5128_v18  ;;  %v11692_v23 = vld [vmem:[#allocation15_spill] sm:$0xff]  ;;  %v11694_v60 = vld [vmem:[#allocation18_spill] sm:$0xff] }
 0x350   :  { %v10096_v17 = vsub.f32 %v11692_v23, %v9699_v37  ;;  %v10100_v18 = vsub.f32 %v11694_v60, %v9699_v37  ;;  %v11696_v53 = vld [vmem:[#allocation51_spill] sm:$0xff] }
 0x351   :  { %11689 = vst [vmem:[#allocation16_spill] sm:$0xff] %v10084_v50  ;;  %11691 = vst [vmem:[#allocation49_spill] sm:$0xff] %v10087_v57  ;;  %v5132_v15 = vpop.eup %5131  ;;  %v3942_v13 = vmul.f32 1.442695, %v10084_v50  ;;  %v3944_v52 = vmul.f32 1.442695, %v10087_v57  ;;  %4057 = vadd.xlane.f32.xlu0 %v4056_v38  ;;  %1550 = vmax.xlane.f32.xlu1 %v1549_v55 }
 0x352   :  { %v5134_v41 = vpop.eup %5133  ;;  %11693 = vst [vmem:[#allocation52_spill] sm:$0xff] %v10096_v17  ;;  %11695 = vst [vmem:[#allocation15_spill] sm:$0xff] %v10100_v18  ;;  %v3779_v59 = vpop.xlane.xlu1 %3778  ;;  %v11698_v38 = vld [vmem:[#allocation54_spill] sm:$0xff] }
 0x353   :  { %5143 = vpow2.f32 %v3942_v13  ;;  %v10106_v35 = vsub.f32 %v11696_v53, %v3779_v59  ;;  %v10109_v55 = vsub.f32 %v11698_v38, %v3779_v59  ;;  %v4059_v51 = vadd.f32 %v5134_v41, %v5132_v15  ;;  %v5136_v60 = vpop.eup %5135  ;;  %v11715_v57 = vld [vmem:[#allocation22_spill] sm:$0xff] }
 0x354   :  { %5145 = vpow2.f32 %v3944_v52  ;;  %v1555_v13 = vmax.f32 %v10096_v17, %v10100_v18  ;;  %v5138_v53 = vpop.eup %5137  ;;  %v11700_v52 = vld [vmem:[#allocation17_spill] sm:$0xff]  ;;  %v11704_v17 = vld [vmem:[#allocation24_spill] sm:$0xff]  ;;  %v11705_v18 = vld [vmem:[#allocation82_spill] sm:$0xff] }
 0x355   :  { %11697 = vst [vmem:[#allocation18_spill] sm:$0xff] %v10106_v35  ;;  %11699 = vst [vmem:[#allocation51_spill] sm:$0xff] %v10109_v55  ;;  %v3946_v23 = vmul.f32 1.442695, %v10106_v35  ;;  %v3948_v37 = vmul.f32 1.442695, %v10109_v55  ;;  %4060 = vadd.xlane.f32.xlu0 %v4059_v51  ;;  %1553 = vmax.xlane.f32.xlu1 %v1552_v2  ;;  %5147 = vrcp.f32 %v9843_v25  ;;  %v5140_v15 = vpop.eup %5139  ;;  %v10120_v41 = vsub.f32 %v11700_v52, %v9725_v4 }
 0x356   :  { %v10114_v46 = vpop.xlane.xlu1 %1514  ;;  %v11702_v51 = vld [vmem:[#allocation20_spill] sm:$0xff]  ;;  %v4038_v2 = vadd.f32 %v5138_v53, %v5136_v60  ;;  %v5142_v38 = vpop.eup %5141  ;;  %v10132_v32 = vsub.f32 %v11706_v56, %v11705_v18  ;;  %v11708_v52 = vld [vmem:[#allocation89_spill] sm:$0xff]  ;;  %v11711_v53 = vld [vmem:[#allocation58_spill] sm:$0xff] }
 0x357   :  { %5149 = vpow2.f32 %v3946_v23  ;;  %11701 = vst [vmem:[#allocation54_spill] sm:$0xff] %v10120_v41  ;;  %v10124_v59 = vsub.f32 %v11702_v51, %v9725_v4  ;;  %v10136_v16 = vsub.f32 %v11708_v52, %v11705_v18  ;;  %v10150_v18 = vsub.f32 %v11715_v57, %v9799_v47  ;;  %v11717_v52 = vld [vmem:[#allocation21_spill] sm:$0xff] }
 0x358   :  { %5151 = vpow2.f32 %v3948_v37  ;;  %v1571_v37 = vmul.f32 %v5140_v15, %v11704_v17  ;;  %11707 = vst [vmem:[#allocation20_spill] sm:$0xff] %v10132_v32  ;;  %v11713_v17 = vld [vmem:[#allocation60_spill] sm:$0xff]  ;;  %v10154_v50 = vsub.f32 %v11717_v52, %v9799_v47  ;;  %v11720_v52 = vld [vmem:[#allocation26_spill] sm:$0xff] }
 0x359   :  { %1556 = vmax.xlane.f32.xlu1 %v1555_v13  ;;  %11703 = vst [vmem:[#allocation17_spill] sm:$0xff] %v10124_v59  ;;  %5153 = vrcp.f32 %v9882_v20  ;;  %11709 = vst [vmem:[#allocation24_spill] sm:$0xff] %v10136_v16  ;;  %v1558_v51 = vmax.f32 %v10120_v41, %v10124_v59  ;;  %v11710_v20 = vld [vmem:[#allocation23_spill] sm:$0xff]  ;;  %v1561_v47 = vmax.f32 %v10132_v32, %v10136_v16 }
 0x35a   :  { %v10126_v25 = vpop.xlane.xlu1 %1517  ;;  %v1572_v60 = vmul.f32 %v5140_v15, %v11710_v20  ;;  %5155 = vrcp.f32 %v9921_v3  ;;  %11716 = vst [vmem:[#allocation89_spill] sm:$0xff] %v10150_v18  ;;  %11718 = vst [vmem:[#allocation23_spill] sm:$0xff] %v10154_v50  ;;  %v1665_v15 = vadd.s32 8, %v9781_v0  ;;  %v1667_v3 = vadd.s32 24, %v9781_v0  ;;  %v11721_v59 = vld [vmem:[#allocation59_spill] sm:$0xff] }
 0x35b   :  { %vm1765_vm12 = vcmp.gt.f32.partialorder %v1571_v37, 0.5  ;;  %5157 = vrcp.f32 %v9938_v42  ;;  %v1578_v41 = vmul.f32 %v5142_v38, %v11720_v52 }
 0x35c   :  { %vm1766_vm13 = vcmp.gt.f32.partialorder %v1572_v60, 0.5  ;;  %vm1701_vm14 = vcmp.eq.s32.totalorder %v1665_v15, %v9783_v7  ;;  %v1829_v42 = vsel %vm1765_vm12, 1.0, %v11636_v9  ;;  %vm1705_vm15 = vcmp.eq.s32.totalorder %v1667_v3, %v9783_v7 }
 0x35d   :  { %v5144_v23 = vpop.eup %5143  ;;  %4039 = vadd.xlane.f32.xlu1 %v4038_v2  ;;  %vm1770_vm1 = vcmp.gt.f32.partialorder %v1578_v41, 0.5  ;;  %v1671_v60 = vadd.s32 56, %v9781_v0  ;;  %v11728_v41 = vld [vmem:[#allocation32_spill] sm:$0xff] }
 0x35e   :  { %v5146_v13 = vpop.eup %5145  ;;  %v3782_v4 = vpop.xlane.xlu1 %3781 }
 0x35f   :  { %v10143_v2 = vsub.f32 %v11711_v53, %v3782_v4  ;;  %v10146_v55 = vsub.f32 %v11713_v17, %v3782_v4  ;;  %v4062_v56 = vadd.f32 %v5146_v13, %v5144_v23  ;;  %v5148_v35 = vpop.eup %5147  ;;  %v11719_v23 = vld [vmem:[#allocation94_spill] sm:$0xff]  ;;  %vm1713_vm6 = vcmp.eq.s32.totalorder %v1671_v60, %v9783_v7 }
 0x360   :  { %v1577_v13 = vmul.f32 %v5142_v38, %v11719_v23 }
 0x361   :  { %11712 = vst [vmem:[#allocation82_spill] sm:$0xff] %v10143_v2  ;;  %11714 = vst [vmem:[#allocation19_spill] sm:$0xff] %v10146_v55  ;;  %v5150_v20 = vpop.eup %5149  ;;  %v3950_v53 = vmul.f32 1.442695, %v10143_v2  ;;  %v3952_v4 = vmul.f32 1.442695, %v10146_v55  ;;  %4063 = vadd.xlane.f32.xlu0 %v4062_v56  ;;  %1559 = vmax.xlane.f32.xlu1 %v1558_v51 }
 0x362   :  { %v5152_v57 = vpop.eup %5151  ;;  %v3785_v17 = vpop.xlane.xlu1 %3784  ;;  %v11723_v55 = vld [vmem:[#allocation61_spill] sm:$0xff]  ;;  %vm1769_vm0 = vcmp.gt.f32.partialorder %v1577_v13, 0.5  ;;  %v11726_v13 = vld [vmem:[#allocation28_spill] sm:$0xff] }
 0x363   :  { %5159 = vpow2.f32 %v3950_v53  ;;  %v10166_v2 = vsub.f32 %v11721_v59, %v3785_v17  ;;  %v10169_v56 = vsub.f32 %v11723_v55, %v3785_v17  ;;  %v4065_v37 = vadd.f32 %v5152_v57, %v5150_v20  ;;  %v11725_v51 = vld [vmem:[#allocation25_spill] sm:$0xff]  ;;  %v5154_v5 = vpop.eup %5153 }
 0x364   :  { %5161 = vpow2.f32 %v3952_v4  ;;  %v1583_v23 = vmul.f32 %v5148_v35, %v11725_v51  ;;  %v1564_v59 = vmax.f32 %v10150_v18, %v10154_v50  ;;  %v10184_v20 = vsel %vm1766_vm13, 1.0, %v11636_v9  ;;  %v11727_v17 = vld [vmem:[#allocation29_spill] sm:$0xff]  ;;  %v5156_v52 = vpop.eup %5155 }
 0x365   :  { %11722 = vst [vmem:[#allocation58_spill] sm:$0xff] %v10166_v2  ;;  %11724 = vst [vmem:[#allocation60_spill] sm:$0xff] %v10169_v56  ;;  %v3954_v32 = vmul.f32 1.442695, %v10166_v2  ;;  %v3956_v38 = vmul.f32 1.442695, %v10169_v56  ;;  %4066 = vadd.xlane.f32.xlu0 %v4065_v37  ;;  %1562 = vmax.xlane.f32.xlu1 %v1561_v47  ;;  %5163 = vrcp.f32 %v9985_v14  ;;  %v1584_v57 = vmul.f32 %v5148_v35, %v11726_v13 }
 0x366   :  { %v10178_v55 = vpop.xlane.xlu1 %1520  ;;  %v1669_v53 = vadd.s32 40, %v9781_v0  ;;  %v10189_v4 = vsel %vm1701_vm14, 1.0, %v1829_v42  ;;  %v1833_v14 = vsel %vm1769_vm0, 1.0, %v11636_v9  ;;  %vm1773_vm2 = vcmp.gt.f32.partialorder %v1583_v23, 0.5  ;;  %v5158_v23 = vpop.eup %5157  ;;  %v11736_v2 = vld [vmem:[#allocation34_spill] sm:$0xff] }
 0x367   :  { %5165 = vpow2.f32 %v3954_v32  ;;  %v1589_v47 = vmul.f32 %v5154_v5, %v11727_v17  ;;  %v4425_v32 = vadd.f32 %v10189_v4, %v10184_v20  ;;  %v1590_v15 = vmul.f32 %v5154_v5, %v11728_v41 }
 0x368   :  { %5167 = vpow2.f32 %v3956_v38  ;;  %vm1709_vm3 = vcmp.eq.s32.totalorder %v1669_v53, %v9783_v7  ;;  %v10202_v35 = vsel %vm1770_vm1, 1.0, %v11636_v9  ;;  %v10206_v42 = vsel %vm1705_vm15, 1.0, %v1833_v14  ;;  %v11729_v38 = vld [vmem:[#allocation31_spill] sm:$0xff] }
 0x369   :  { %1565 = vmax.xlane.f32.xlu1 %v1564_v59  ;;  %vm1774_vm4 = vcmp.gt.f32.partialorder %v1584_v57, 0.5  ;;  %v1837_v51 = vsel %vm1773_vm2, 1.0, %v11636_v9  ;;  %vm1777_vm5 = vcmp.gt.f32.partialorder %v1589_v47, 0.5  ;;  %v1592_v59 = vmul.f32 %v5156_v52, %v11729_v38  ;;  %v11732_v38 = vld [vmem:[#allocation68_spill] sm:$0xff] }
 0x36a   :  { %v10195_v37 = vpop.xlane.xlu1 %1523  ;;  %v1672_v13 = vadd.s32 64, %v9781_v0  ;;  %5169 = vrcp.f32 %v9995_v34  ;;  %v4431_v3 = vadd.f32 %v10206_v42, %v10202_v35  ;;  %v10216_v57 = vsel %vm1774_vm4, 1.0, %v11636_v9  ;;  %v11734_v34 = vld [vmem:[#allocation67_spill] sm:$0xff] }
 0x36b   :  { %11730 = vst [vmem:[#allocation22_spill] sm:$0xff] %v10216_v57  ;;  %v10220_v14 = vsel %vm1709_vm3, 1.0, %v1837_v51  ;;  %vm1778_vm7 = vcmp.gt.f32.partialorder %v1590_v15, 0.5  ;;  %v1841_v16 = vsel %vm1777_vm5, 1.0, %v11636_v9  ;;  %v1593_v43 = vmul.f32 %v5156_v52, %v11736_v2 }
 0x36c   :  { %11731 = vst [vmem:[#allocation21_spill] sm:$0xff] %v10220_v14  ;;  %vm1715_vm8 = vcmp.eq.s32.totalorder %v1672_v13, %v9783_v7  ;;  %vm1779_vm9 = vcmp.gt.f32.partialorder %v1592_v59, 0.5  ;;  %5171 = vrcp.f32 %v10049_v6  ;;  %v10240_v2 = vsel %vm1778_vm7, 1.0, %v11636_v9  ;;  %v11746_v59 = vld [vmem:[#allocation40_spill] sm:$0xff] }
 0x36d   :  { %v5160_v17 = vpop.eup %5159  ;;  %4426 = vadd.xlane.f32.xlu1 %v4425_v32  ;;  %11738 = vst [vmem:[#allocation59_spill] sm:$0xff] %v10240_v2  ;;  %v10244_v6 = vsel %vm1713_vm6, 1.0, %v1841_v16  ;;  %v1673_v52 = vadd.s32 72, %v9781_v0  ;;  %vm1780_vm10 = vcmp.gt.f32.partialorder %v1593_v43, 0.5  ;;  %v1843_v15 = vsel %vm1779_vm9, 1.0, %v11636_v9 }
 0x36e   :  { %v5162_v5 = vpop.eup %5161  ;;  %v3788_v41 = vpop.xlane.xlu1 %3787  ;;  %v1674_v43 = vadd.s32 80, %v9781_v0 }
 0x36f   :  { %v10223_v18 = vsub.f32 %v11732_v38, %v3788_v41  ;;  %v10226_v32 = vsub.f32 %v11734_v34, %v3788_v41  ;;  %v4068_v50 = vadd.f32 %v5162_v5, %v5160_v17  ;;  %v5164_v56 = vpop.eup %5163  ;;  %v11737_v41 = vld [vmem:[#allocation33_spill] sm:$0xff]  ;;  %v4437_v34 = vadd.f32 %v10220_v14, %v10216_v57 }
 0x370   :  { %v1595_v17 = vmul.f32 %v5158_v23, %v11737_v41  ;;  %v11741_v41 = vld [vmem:[#allocation71_spill] sm:$0xff]  ;;  %v1596_v57 = vmul.f32 %v5158_v23, %v11743_v21  ;;  %vm1717_vm12 = vcmp.eq.s32.totalorder %v1673_v52, %v9783_v7  ;;  %v4443_v21 = vadd.f32 %v10244_v6, %v10240_v2  ;;  %v11760_v2 = vld [vmem:[#allocation78_spill] sm:$0xff] }
 0x371   :  { %11733 = vst [vmem:[#allocation94_spill] sm:$0xff] %v10223_v18  ;;  %11735 = vst [vmem:[#allocation26_spill] sm:$0xff] %v10226_v32  ;;  %v5166_v53 = vpop.eup %5165  ;;  %v3958_v51 = vmul.f32 1.442695, %v10223_v18  ;;  %v3960_v38 = vmul.f32 1.442695, %v10226_v32  ;;  %4069 = vadd.xlane.f32.xlu0 %v4068_v50  ;;  %4432 = vadd.xlane.f32.xlu1 %v4431_v3  ;;  %vm1719_vm0 = vcmp.eq.s32.totalorder %v1674_v43, %v9783_v7 }
 0x372   :  { %v5168_v5 = vpop.eup %5167  ;;  %v3791_v47 = vpop.xlane.xlu1 %3790  ;;  %v11739_v50 = vld [vmem:[#allocation69_spill] sm:$0xff]  ;;  %vm1781_vm11 = vcmp.gt.f32.partialorder %v1595_v17, 0.5  ;;  %v10266_v23 = vsel %vm1780_vm10, 1.0, %v11636_v9  ;;  %vm1782_vm13 = vcmp.gt.f32.partialorder %v1596_v57, 0.5  ;;  %v11753_v43 = vld [vmem:[#allocation74_spill] sm:$0xff] }
 0x373   :  { %5173 = vpow2.f32 %v3958_v51  ;;  %v10248_v3 = vsub.f32 %v11739_v50, %v3791_v47  ;;  %v10251_v32 = vsub.f32 %v11741_v41, %v3791_v47  ;;  %v4071_v18 = vadd.f32 %v5168_v5, %v5166_v53  ;;  %v11744_v51 = vld [vmem:[#allocation37_spill] sm:$0xff]  ;;  %11745 = vst [vmem:[#allocation28_spill] sm:$0xff] %v10266_v23  ;;  %v11748_v47 = vld [vmem:[#allocation39_spill] sm:$0xff] }
 0x374   :  { %5175 = vpow2.f32 %v3960_v38  ;;  %v1598_v50 = vmul.f32 %v5164_v56, %v11744_v51  ;;  %v5170_v53 = vpop.eup %5169  ;;  %v10271_v38 = vsel %vm1715_vm8, 1.0, %v1843_v15  ;;  %v1845_v17 = vsel %vm1781_vm11, 1.0, %v11636_v9  ;;  %v11751_v15 = vld [vmem:[#allocation42_spill] sm:$0xff] }
 0x375   :  { %11740 = vst [vmem:[#allocation61_spill] sm:$0xff] %v10248_v3  ;;  %11742 = vst [vmem:[#allocation25_spill] sm:$0xff] %v10251_v32  ;;  %v3962_v16 = vmul.f32 1.442695, %v10248_v3  ;;  %v3964_v60 = vmul.f32 1.442695, %v10251_v32  ;;  %4072 = vadd.xlane.f32.xlu0 %v4071_v18  ;;  %4438 = vadd.xlane.f32.xlu1 %v4437_v34  ;;  %v1599_v18 = vmul.f32 %v5164_v56, %v11746_v59 }
 0x376   :  { %v10259_v14 = vpop.xlane.xlu1 %1526  ;;  %11747 = vst [vmem:[#allocation29_spill] sm:$0xff] %v10271_v38  ;;  %vm1783_vm14 = vcmp.gt.f32.partialorder %v1598_v50, 0.5  ;;  %v1601_v34 = vmul.f32 %v5170_v53, %v11748_v47  ;;  %v5172_v41 = vpop.eup %5171  ;;  %v10280_v56 = vsel %vm1782_vm13, 1.0, %v11636_v9  ;;  %v10284_v13 = vsel %vm1717_vm12, 1.0, %v1845_v17  ;;  %v11755_v3 = vld [vmem:[#allocation76_spill] sm:$0xff] }
 0x377   :  { %5177 = vpow2.f32 %v3962_v16  ;;  %v4446_v16 = vadd.f32 %v10271_v38, %v10266_v23  ;;  %11749 = vst [vmem:[#allocation32_spill] sm:$0xff] %v10280_v56  ;;  %11750 = vst [vmem:[#allocation31_spill] sm:$0xff] %v10284_v13  ;;  %vm1784_vm15 = vcmp.gt.f32.partialorder %v1599_v18, 0.5  ;;  %v1847_v57 = vsel %vm1783_vm14, 1.0, %v11636_v9  ;;  %v11752_v18 = vld [vmem:[#allocation45_spill] sm:$0xff] }
 0x378   :  { %5179 = vpow2.f32 %v3964_v60  ;;  %v1602_v60 = vmul.f32 %v5170_v53, %v11751_v15  ;;  %v1675_v51 = vadd.s32 88, %v9781_v0  ;;  %v4449_v47 = vadd.f32 %v10284_v13, %v10280_v56 }
 0x379   :  { %4444 = vadd.xlane.f32.xlu1 %v4443_v21  ;;  %v10293_v52 = vsel %vm1784_vm15, 1.0, %v11636_v9  ;;  %vm1785_vm1 = vcmp.gt.f32.partialorder %v1601_v34, 0.5  ;;  %v1604_v17 = vmul.f32 %v5172_v41, %v11752_v18  ;;  %v10302_v23 = vsel %vm1719_vm0, 1.0, %v1847_v57 }
 0x37a   :  { %v10274_v5 = vpop.xlane.xlu1 %1529  ;;  %vm1721_vm2 = vcmp.eq.s32.totalorder %v1675_v51, %v9783_v7  ;;  %vm1786_vm3 = vcmp.gt.f32.partialorder %v1602_v60, 0.5  ;;  %v1849_v18 = vsel %vm1785_vm1, 1.0, %v11636_v9  ;;  %v4452_v57 = vadd.f32 %v10302_v23, %v10293_v52 }
 0x37b   :  { %vm1787_vm4 = vcmp.gt.f32.partialorder %v1604_v17, 0.5 }
 0x37d   :  { %v5174_v50 = vpop.eup %5173  ;;  %4447 = vadd.xlane.f32.xlu1 %v4446_v16  ;;  %v1676_v16 = vadd.s32 96, %v9781_v0 }
 0x37e   :  { %v5176_v21 = vpop.eup %5175  ;;  %v3794_v59 = vpop.xlane.xlu1 %3793 }
 0x37f   :  { %v10297_v32 = vsub.f32 %v11753_v43, %v3794_v59  ;;  %v10300_v53 = vsub.f32 %v11755_v3, %v3794_v59  ;;  %v4074_v15 = vadd.f32 %v5176_v21, %v5174_v50  ;;  %v11757_v43 = vld [vmem:[#allocation48_spill] sm:$0xff]  ;;  %v11758_v21 = vld [vmem:[#allocation77_spill] sm:$0xff]  ;;  %vm1723_vm5 = vcmp.eq.s32.totalorder %v1676_v16, %v9783_v7 }
 0x380   :  { %v1605_v3 = vmul.f32 %v5172_v41, %v11757_v43  ;;  %v10324_v41 = vsel %vm1721_vm2, 1.0, %v1849_v18 }
 0x381   :  { %11754 = vst [vmem:[#allocation68_spill] sm:$0xff] %v10297_v32  ;;  %11756 = vst [vmem:[#allocation67_spill] sm:$0xff] %v10300_v53  ;;  %v5178_v56 = vpop.eup %5177  ;;  %v3966_v13 = vmul.f32 1.442695, %v10297_v32  ;;  %v3968_v34 = vmul.f32 1.442695, %v10300_v53  ;;  %4075 = vadd.xlane.f32.xlu0 %v4074_v15  ;;  %4450 = vadd.xlane.f32.xlu1 %v4449_v47 }
 0x382   :  { %v5180_v59 = vpop.eup %5179  ;;  %v3797_v50 = vpop.xlane.xlu1 %3796  ;;  %v10320_v47 = vsel %vm1786_vm3, 1.0, %v11636_v9  ;;  %vm1788_vm6 = vcmp.gt.f32.partialorder %v1605_v3, 0.5  ;;  %v11763_v3 = vld [vmem:[#allocation84_spill] sm:$0xff] }
 0x383   :  { %5181 = vpow2.f32 %v3966_v13  ;;  %v10313_v38 = vsub.f32 %v11758_v21, %v3797_v50  ;;  %v10316_v32 = vsub.f32 %v11760_v2, %v3797_v50  ;;  %v4077_v53 = vadd.f32 %v5180_v59, %v5178_v56  ;;  %v11764_v50 = vld [vmem:[#allocation85_spill] sm:$0xff] }
 0x384   :  { %5183 = vpow2.f32 %v3968_v34  ;;  %v1851_v2 = vsel %vm1787_vm4, 1.0, %v11636_v9  ;;  %v4455_v60 = vadd.f32 %v10324_v41, %v10320_v47  ;;  %v10335_v51 = vsel %vm1788_vm6, 1.0, %v11636_v9 }
 0x385   :  { %11759 = vst [vmem:[#allocation34_spill] sm:$0xff] %v10313_v38  ;;  %11761 = vst [vmem:[#allocation33_spill] sm:$0xff] %v10316_v32  ;;  %v3970_v13 = vmul.f32 1.442695, %v10313_v38  ;;  %v3972_v17 = vmul.f32 1.442695, %v10316_v32  ;;  %4078 = vadd.xlane.f32.xlu0 %v4077_v53  ;;  %4453 = vadd.xlane.f32.xlu1 %v4452_v57 }
 0x386   :  { %v10330_v56 = vpop.xlane.xlu1 %1532  ;;  %11762 = vst [vmem:[#allocation69_spill] sm:$0xff] %v10335_v51  ;;  %v10337_v15 = vsel %vm1723_vm5, 1.0, %v1851_v2  ;;  %v11766_v38 = vld [vmem:[#allocation87_spill] sm:$0xff] }
 0x387   :  { %5185 = vpow2.f32 %v3970_v13  ;;  %v4458_v53 = vadd.f32 %v10337_v15, %v10335_v51 }
 0x388   :  { %5187 = vpow2.f32 %v3972_v17 }
 0x389   :  { %4456 = vadd.xlane.f32.xlu1 %v4455_v60 }
 0x38a   :  { %v10339_v16 = vpop.xlane.xlu1 %1535 }
 0x38d   :  { %v5182_v34 = vpop.eup %5181  ;;  %4459 = vadd.xlane.f32.xlu1 %v4458_v53 }
 0x38e   :  { %v5184_v18 = vpop.eup %5183  ;;  %v3800_v43 = vpop.xlane.xlu1 %3799 }
 0x38f   :  { %v10344_v59 = vsub.f32 %v11763_v3, %v3800_v43  ;;  %v10347_v57 = vsub.f32 %v11764_v50, %v3800_v43  ;;  %v4080_v21 = vadd.f32 %v5184_v18, %v5182_v34 }
 0x391   :  { %v5186_v13 = vpop.eup %5185  ;;  %v3974_v17 = vmul.f32 1.442695, %v10344_v59  ;;  %v3976_v2 = vmul.f32 1.442695, %v10347_v57  ;;  %4081 = vadd.xlane.f32.xlu0 %v4080_v21 }
 0x392   :  { %v5188_v60 = vpop.eup %5187  ;;  %v3803_v32 = vpop.xlane.xlu1 %3802 }
 0x393   :  { %5189 = vpow2.f32 %v3974_v17  ;;  %v10352_v53 = vsub.f32 %v9762_v39, %v3803_v32  ;;  %v10355_v51 = vsub.f32 %v11766_v38, %v3803_v32  ;;  %v4083_v3 = vadd.f32 %v5188_v60, %v5186_v13  ;;  %v11770_v60 = vld [vmem:[#allocation90_spill] sm:$0xff] }
 0x394   :  { %5191 = vpow2.f32 %v3976_v2 }
 0x395   :  { %11765 = vst [vmem:[#allocation71_spill] sm:$0xff] %v10352_v53  ;;  %11767 = vst [vmem:[#allocation36_spill] sm:$0xff] %v10355_v51  ;;  %v3978_v43 = vmul.f32 1.442695, %v10352_v53  ;;  %v3980_v34 = vmul.f32 1.442695, %v10355_v51  ;;  %4084 = vadd.xlane.f32.xlu0 %v4083_v3 }
 0x396   :  { %v10359_v18 = vpop.xlane.xlu1 %1538 }
 0x397   :  { %5193 = vpow2.f32 %v3978_v43  ;;  %v11771_v43 = vld [vmem:[#allocation92_spill] sm:$0xff] }
 0x398   :  { %5195 = vpow2.f32 %v3980_v34 }
 0x39a   :  { %v3806_v50 = vpop.xlane.xlu1 %3805 }
 0x39b   :  { %v10362_v21 = vsub.f32 %v9786_v54, %v3806_v50  ;;  %v10365_v39 = vsub.f32 %v9789_v31, %v3806_v50 }
 0x39d   :  { %11768 = vst [vmem:[#allocation37_spill] sm:$0xff] %v10362_v21  ;;  %11769 = vst [vmem:[#allocation40_spill] sm:$0xff] %v10365_v39  ;;  %v5190_v32 = vpop.eup %5189  ;;  %v3982_v38 = vmul.f32 1.442695, %v10362_v21  ;;  %v3984_v13 = vmul.f32 1.442695, %v10365_v39 }
 0x39e   :  { %v5192_v17 = vpop.eup %5191  ;;  %v3809_v2 = vpop.xlane.xlu1 %3808 }
 0x39f   :  { %5197 = vpow2.f32 %v3982_v38  ;;  %v10370_v3 = vsub.f32 %v11770_v60, %v3809_v2  ;;  %v10373_v34 = vsub.f32 %v11771_v43, %v3809_v2  ;;  %v4086_v51 = vadd.f32 %v5192_v17, %v5190_v32  ;;  %v11772_v2 = vld [vmem:[#allocation96_spill] sm:$0xff] }
 0x3a0   :  { %5199 = vpow2.f32 %v3984_v13 }
 0x3a1   :  { %v5194_v54 = vpop.eup %5193  ;;  %v3986_v31 = vmul.f32 1.442695, %v10370_v3  ;;  %v3988_v50 = vmul.f32 1.442695, %v10373_v34  ;;  %4087 = vadd.xlane.f32.xlu0 %v4086_v51 }
 0x3a2   :  { %v5196_v21 = vpop.eup %5195  ;;  %v3812_v53 = vpop.xlane.xlu1 %3811 }
 0x3a3   :  { %5201 = vpow2.f32 %v3986_v31  ;;  %v10378_v39 = vsub.f32 %v9819_v63, %v3812_v53  ;;  %v10381_v38 = vsub.f32 %v9822_v61, %v3812_v53  ;;  %v4089_v60 = vadd.f32 %v5196_v21, %v5194_v54 }
 0x3a4   :  { %5203 = vpow2.f32 %v3988_v50 }
 0x3a5   :  { %v3990_v32 = vmul.f32 1.442695, %v10378_v39  ;;  %v3992_v13 = vmul.f32 1.442695, %v10381_v38  ;;  %4090 = vadd.xlane.f32.xlu0 %v4089_v60 }
 0x3a6   :  { %v3815_v17 = vpop.xlane.xlu1 %3814 }
 0x3a7   :  { %5205 = vpow2.f32 %v3990_v32  ;;  %v10386_v51 = vsub.f32 %v9833_v28, %v3815_v17  ;;  %v10389_v43 = vsub.f32 %v11772_v2, %v3815_v17  ;;  %v10401_v2 = vpop.xlane.xlu0 %4423 }
 0x3a8   :  { %5207 = vpow2.f32 %v3992_v13  ;;  %11774 = vst [vmem:[#allocation42_spill] sm:$0xff] %v10401_v2 }
 0x3a9   :  { %11773 = vst [vmem:[#allocation39_spill] sm:$0xff] %v10389_v43  ;;  %v5198_v63 = vpop.eup %5197  ;;  %v3994_v61 = vmul.f32 1.442695, %v10386_v51  ;;  %v3996_v53 = vmul.f32 1.442695, %v10389_v43 }
 0x3aa   :  { %v5200_v21 = vpop.eup %5199  ;;  %v3818_v54 = vpop.xlane.xlu1 %3817 }
 0x3ab   :  { %5209 = vpow2.f32 %v3994_v61  ;;  %v10394_v31 = vsub.f32 %v9851_v45, %v3818_v54  ;;  %v10397_v50 = vsub.f32 %v9854_v11, %v3818_v54  ;;  %v4092_v28 = vadd.f32 %v5200_v21, %v5198_v63 }
 0x3ac   :  { %5211 = vpow2.f32 %v3996_v53 }
 0x3ad   :  { %v5202_v60 = vpop.eup %5201  ;;  %v3998_v32 = vmul.f32 1.442695, %v10394_v31  ;;  %v4000_v13 = vmul.f32 1.442695, %v10397_v50  ;;  %4093 = vadd.xlane.f32.xlu0 %v4092_v28  ;;  %v10411_v28 = vpop.xlane.xlu0 %4429 }
 0x3ae   :  { %v5204_v17 = vpop.eup %5203  ;;  %v3821_v43 = vpop.xlane.xlu1 %3820  ;;  %11776 = vst [vmem:[#allocation74_spill] sm:$0xff] %v10411_v28 }
 0x3af   :  { %5213 = vpow2.f32 %v3998_v32  ;;  %v10404_v61 = vsub.f32 %v9861_v12, %v3821_v43  ;;  %v10407_v45 = vsub.f32 %v9864_v24, %v3821_v43  ;;  %v4095_v11 = vadd.f32 %v5204_v17, %v5202_v60 }
 0x3b0   :  { %5215 = vpow2.f32 %v4000_v13 }
 0x3b1   :  { %11775 = vst [vmem:[#allocation45_spill] sm:$0xff] %v10407_v45  ;;  %v5206_v63 = vpop.eup %5205  ;;  %v4002_v53 = vmul.f32 1.442695, %v10404_v61  ;;  %v4004_v21 = vmul.f32 1.442695, %v10407_v45  ;;  %4096 = vadd.xlane.f32.xlu0 %v4095_v11  ;;  %v10421_v11 = vpop.xlane.xlu0 %4435 }
 0x3b2   :  { %v5208_v54 = vpop.eup %5207  ;;  %v3824_v2 = vpop.xlane.xlu1 %3823  ;;  %11779 = vst [vmem:[#allocation77_spill] sm:$0xff] %v10421_v11 }
 0x3b3   :  { %5217 = vpow2.f32 %v4002_v53  ;;  %v10414_v32 = vsub.f32 %v9890_v19, %v3824_v2  ;;  %v10417_v12 = vsub.f32 %v9893_v33, %v3824_v2  ;;  %v4098_v24 = vadd.f32 %v5208_v54, %v5206_v63 }
 0x3b4   :  { %5219 = vpow2.f32 %v4004_v21 }
 0x3b5   :  { %11777 = vst [vmem:[#allocation76_spill] sm:$0xff] %v10414_v32  ;;  %11778 = vst [vmem:[#allocation48_spill] sm:$0xff] %v10417_v12  ;;  %v5210_v43 = vpop.eup %5209  ;;  %v4006_v60 = vmul.f32 1.442695, %v10414_v32  ;;  %v4008_v13 = vmul.f32 1.442695, %v10417_v12  ;;  %4099 = vadd.xlane.f32.xlu0 %v4098_v24 }
 0x3b6   :  { %v5212_v17 = vpop.eup %5211  ;;  %v3827_v28 = vpop.xlane.xlu1 %3826 }
 0x3b7   :  { %5221 = vpow2.f32 %v4006_v60  ;;  %v10424_v53 = vsub.f32 %v9904_v30, %v3827_v28  ;;  %v10427_v19 = vsub.f32 %v9907_v27, %v3827_v28  ;;  %v4101_v33 = vadd.f32 %v5212_v17, %v5210_v43 }
 0x3b8   :  { %5223 = vpow2.f32 %v4008_v13 }
 0x3b9   :  { %11780 = vst [vmem:[#allocation78_spill] sm:$0xff] %v10424_v53  ;;  %11781 = vst [vmem:[#allocation84_spill] sm:$0xff] %v10427_v19  ;;  %v5214_v2 = vpop.eup %5213  ;;  %v4010_v63 = vmul.f32 1.442695, %v10424_v53  ;;  %v4012_v21 = vmul.f32 1.442695, %v10427_v19  ;;  %4102 = vadd.xlane.f32.xlu0 %v4101_v33 }
 0x3ba   :  { %v5216_v54 = vpop.eup %5215  ;;  %v4043_v24 = vpop.xlane.xlu0 %4042 }
 0x3bb   :  { %v3830_v12 = vpop.xlane.xlu1 %3829  ;;  %5225 = vpow2.f32 %v4010_v63  ;;  %v4104_v27 = vadd.f32 %v5216_v54, %v5214_v2 }
 0x3bc   :  { %v10432_v60 = vsub.f32 %v9924_v62, %v3830_v12  ;;  %v10435_v30 = vsub.f32 %v9927_v1, %v3830_v12  ;;  %5227 = vpow2.f32 %v4012_v21 }
 0x3bd   :  { %v5218_v28 = vpop.eup %5217  ;;  %4105 = vadd.xlane.f32.xlu0 %v4104_v27 }
 0x3be   :  { %11782 = vst [vmem:[#allocation85_spill] sm:$0xff] %v10432_v60  ;;  %11783 = vst [vmem:[#allocation87_spill] sm:$0xff] %v10435_v30  ;;  %v4014_v43 = vmul.f32 1.442695, %v10432_v60  ;;  %v4016_v13 = vmul.f32 1.442695, %v10435_v30  ;;  %v5220_v17 = vpop.eup %5219 }
 0x3bf   :  { %v3833_v33 = vpop.xlane.xlu1 %3832  ;;  %v4107_v63 = vadd.f32 %v5220_v17, %v5218_v28  ;;  %v11808_v60 = vld [vmem:[#allocation97_spill] sm:$0xff] }
 0x3c0   :  { %5229 = vpow2.f32 %v4014_v43  ;;  %v10440_v11 = vsub.f32 %v9932_v58, %v3833_v33  ;;  %v10443_v62 = vsub.f32 %v9935_v44, %v3833_v33  ;;  %v10445_v1 = vpop.xlane.xlu0 %4441 }
 0x3c1   :  { %5231 = vpow2.f32 %v4016_v13  ;;  %11786 = vst [vmem:[#allocation96_spill] sm:$0xff] %v10445_v1  ;;  %v5222_v12 = vpop.eup %5221  ;;  %4108 = vadd.xlane.f32.xlu0 %v4107_v63 }
 0x3c2   :  { %11784 = vst [vmem:[#allocation90_spill] sm:$0xff] %v10440_v11  ;;  %11785 = vst [vmem:[#allocation92_spill] sm:$0xff] %v10443_v62  ;;  %v4018_v2 = vmul.f32 1.442695, %v10440_v11  ;;  %v4020_v21 = vmul.f32 1.442695, %v10443_v62  ;;  %v5224_v54 = vpop.eup %5223  ;;  %5233 = vrcp.f32 %v10063_v10 }
 0x3c3   :  { %v3836_v27 = vpop.xlane.xlu1 %3835  ;;  %v4110_v28 = vadd.f32 %v5224_v54, %v5222_v12  ;;  %v10520_v62 = vadd.s32 128, %v9783_v7 }
 0x3c4   :  { %5235 = vpow2.f32 %v4018_v2  ;;  %v10451_v58 = vsub.f32 %v9948_v48, %v3836_v27  ;;  %v10454_v44 = vsub.f32 %v9951_v49, %v3836_v27  ;;  %v4046_v43 = vpop.xlane.xlu0 %4045 }
 0x3c5   :  { %5237 = vpow2.f32 %v4020_v21  ;;  %v5226_v13 = vpop.eup %5225  ;;  %4111 = vadd.xlane.f32.xlu0 %v4110_v28 }
 0x3c6   :  { %11787 = vst [vmem:[#allocation110_spill] sm:$0xff] %v10451_v58  ;;  %11788 = vst [vmem:[#allocation111_spill] sm:$0xff] %v10454_v44  ;;  %5239 = vrcp.f32 %v10114_v46  ;;  %v4022_v17 = vmul.f32 1.442695, %v10451_v58  ;;  %v4024_v33 = vmul.f32 1.442695, %v10454_v44  ;;  %v5228_v10 = vpop.eup %5227 }
 0x3c7   :  { %5241 = vlog2.f32 %v4043_v24  ;;  %v3839_v63 = vpop.xlane.xlu1 %3838  ;;  %v4113_v12 = vadd.f32 %v5228_v10, %v5226_v13 }
 0x3c8   :  { %5243 = vpow2.f32 %v4022_v17  ;;  %v10460_v48 = vsub.f32 %v9972_v29, %v3839_v63  ;;  %v10463_v49 = vsub.f32 %v9975_v26, %v3839_v63  ;;  %v4049_v24 = vpop.xlane.xlu0 %4048 }
 0x3c9   :  { %5245 = vpow2.f32 %v4024_v33  ;;  %4114 = vadd.xlane.f32.xlu0 %v4113_v12 }
 0x3ca   :  { %11789 = vst [vmem:[#allocation112_spill] sm:$0xff] %v10460_v48  ;;  %11790 = vst [vmem:[#allocation113_spill] sm:$0xff] %v10463_v49  ;;  %v5230_v2 = vpop.eup %5229  ;;  %5247 = vlog2.f32 %v4046_v43  ;;  %v4026_v46 = vmul.f32 1.442695, %v10460_v48  ;;  %v4028_v21 = vmul.f32 1.442695, %v10463_v49 }
 0x3cb   :  { %v5232_v54 = vpop.eup %5231  ;;  %5249 = vrcp.f32 %v10126_v25  ;;  %v3842_v27 = vpop.xlane.xlu1 %3841  ;;  %v11799_v49 = vld [vmem:[#allocation99_spill] sm:$0xff] }
 0x3cc   :  { %5251 = vpow2.f32 %v4026_v46  ;;  %v10469_v29 = vsub.f32 %v9990_v40, %v3842_v27  ;;  %v10472_v26 = vsub.f32 %v9993_v36, %v3842_v27  ;;  %v4116_v28 = vadd.f32 %v5232_v54, %v5230_v2  ;;  %v5234_v13 = vpop.eup %5233 }
 0x3cd   :  { %5253 = vpow2.f32 %v4028_v21 }
 0x3ce   :  { %11791 = vst [vmem:[#allocation114_spill] sm:$0xff] %v10469_v29  ;;  %11792 = vst [vmem:[#allocation115_spill] sm:$0xff] %v10472_v26  ;;  %v5236_v43 = vpop.eup %5235  ;;  %5255 = vlog2.f32 %v4049_v24  ;;  %v4030_v17 = vmul.f32 1.442695, %v10469_v29  ;;  %v4032_v33 = vmul.f32 1.442695, %v10472_v26  ;;  %4117 = vadd.xlane.f32.xlu0 %v4116_v28  ;;  %v4052_v10 = vpop.xlane.xlu0 %4051 }
 0x3cf   :  { %v5238_v25 = vpop.eup %5237  ;;  %5257 = vrcp.f32 %v10178_v55  ;;  %v3845_v63 = vpop.xlane.xlu1 %3844  ;;  %v11795_v28 = vld [vmem:[#allocation47_spill] sm:$0xff]  ;;  %v11798_v26 = vld [vmem:[#allocation98_spill] sm:$0xff] }
 0x3d0   :  { %v5240_v40 = vpop.eup %5239  ;;  %5259 = vpow2.f32 %v4030_v17  ;;  %v10478_v36 = vsub.f32 %v10000_v8, %v3845_v63  ;;  %v10481_v12 = vsub.f32 %v10003_v22, %v3845_v63  ;;  %v4119_v2 = vadd.f32 %v5238_v25, %v5236_v43 }
 0x3d1   :  { %v5242_v46 = vpop.eup %5241  ;;  %5261 = vpow2.f32 %v4032_v33  ;;  %v1607_v17 = vmul.f32 %v5234_v13, %v11795_v28  ;;  %v1677_v33 = vadd.s32 104, %v9781_v0  ;;  %v10490_v25 = vadd.s32 112, %v9781_v0 }
 0x3d2   :  { %11793 = vst [vmem:[#allocation116_spill] sm:$0xff] %v10478_v36  ;;  %11794 = vst [vmem:[#allocation117_spill] sm:$0xff] %v10481_v12  ;;  %v5244_v21 = vpop.eup %5243  ;;  %v4034_v54 = vmul.f32 1.442695, %v10478_v36  ;;  %v4036_v24 = vmul.f32 1.442695, %v10481_v12  ;;  %4120 = vadd.xlane.f32.xlu1 %v4119_v2  ;;  %5263 = vlog2.f32 %v4052_v10  ;;  %v4055_v22 = vpop.xlane.xlu0 %4054 }
 0x3d3   :  { %v5246_v55 = vpop.eup %5245  ;;  %v10485_v27 = vpop.xlane.xlu1 %1541  ;;  %v4137_v1 = vmul.f32 0.6931472, %v5242_v46  ;;  %v11796_v10 = vld [vmem:[#allocation50_spill] sm:$0xff]  ;;  %v10495_v28 = vadd.s32 120, %v9781_v0  ;;  %vm1789_vm7 = vcmp.gt.f32.partialorder %v1607_v17, 0.5  ;;  %vm1725_vm8 = vcmp.eq.s32.totalorder %v1677_v33, %v9783_v7 }
 0x3d4   :  { %v5248_v8 = vpop.eup %5247  ;;  %5265 = vpow2.f32 %v4034_v54  ;;  %v4122_v63 = vadd.f32 %v5246_v55, %v5244_v21  ;;  %v1608_v2 = vmul.f32 %v5234_v13, %v11796_v10  ;;  %v11800_v13 = vld [vmem:[#allocation56_spill] sm:$0xff]  ;;  %vm1727_vm9 = vcmp.eq.s32.totalorder %v10490_v25, %v9783_v7 }
 0x3d5   :  { %v5250_v43 = vpop.eup %5249  ;;  %5267 = vpow2.f32 %v4036_v24  ;;  %v4139_v54 = vmul.f32 0.6931472, %v5248_v8  ;;  %v11797_v24 = vld [vmem:[#allocation53_spill] sm:$0xff]  ;;  %v4200_v29 = vsub.f32 %v11798_v26, %v4137_v1  ;;  %v4201_v48 = vsub.f32 %v11799_v49, %v4137_v1  ;;  %v11802_v49 = vld [vmem:[#allocation102_spill] sm:$0xff] }
 0x3d6   :  { %v5252_v12 = vpop.eup %5251  ;;  %5269 = vrcp.f32 %v10195_v37  ;;  %4123 = vadd.xlane.f32.xlu0 %v4122_v63  ;;  %v1610_v55 = vmul.f32 %v5240_v40, %v11797_v24  ;;  %v1611_v10 = vmul.f32 %v5240_v40, %v11800_v13  ;;  %vm1790_vm10 = vcmp.gt.f32.partialorder %v1608_v2, 0.5  ;;  %v11806_v2 = vld [vmem:[#allocation104_spill] sm:$0xff] }
 0x3d7   :  { %v5254_v46 = vpop.eup %5253  ;;  %5271 = vlog2.f32 %v4055_v22  ;;  %v10497_v21 = vpop.xlane.xlu1 %1544  ;;  %v1853_v17 = vsel %vm1789_vm7, 1.0, %v11636_v9  ;;  %v11801_v22 = vld [vmem:[#allocation55_spill] sm:$0xff]  ;;  %v10509_v26 = vadd.s32 128, %v9781_v0  ;;  %vm1729_vm12 = vcmp.eq.s32.totalorder %v10495_v28, %v9783_v7  ;;  %v11818_v7 = vld [vmem:[#allocation100_spill] sm:$0xff] }
 0x3d8   :  { %v5256_v36 = vpop.eup %5255  ;;  %v4125_v37 = vadd.f32 %v5254_v46, %v5252_v12  ;;  %v1613_v24 = vmul.f32 %v5250_v43, %v11801_v22  ;;  %v4202_v12 = vsub.f32 %v11802_v49, %v4139_v54  ;;  %v11803_v46 = vld [vmem:[#allocation103_spill] sm:$0xff]  ;;  %vm1791_vm11 = vcmp.gt.f32.partialorder %v1610_v55, 0.5 }
 0x3d9   :  { %v5258_v63 = vpop.eup %5257  ;;  %v4203_v44 = vsub.f32 %v11803_v46, %v4139_v54  ;;  %v4141_v58 = vmul.f32 0.6931472, %v5256_v36  ;;  %v4264_v13 = vmul.f32 %v4200_v29, %v10189_v4  ;;  %v4265_v22 = vmul.f32 %v4201_v48, %v10184_v20  ;;  %v11804_v54 = vld [vmem:[#allocation57_spill] sm:$0xff]  ;;  %v11805_v4 = vld [vmem:[#allocation64_spill] sm:$0xff] }
 0x3da   :  { %v5260_v8 = vpop.eup %5259  ;;  %4126 = vadd.xlane.f32.xlu1 %v4125_v37  ;;  %v10524_v49 = vsel %vm1790_vm10, 1.0, %v11636_v9  ;;  %v10528_v36 = vsel %vm1725_vm8, 1.0, %v1853_v17  ;;  %vm1792_vm13 = vcmp.gt.f32.partialorder %v1611_v10, 0.5  ;;  %v1614_v55 = vmul.f32 %v5250_v43, %v11804_v54  ;;  %v11807_v46 = vld [vmem:[#allocation105_spill] sm:$0xff]  ;;  %v11809_v43 = vld [vmem:[#allocation95_spill] sm:$0xff] }
 0x3db   :  { %v5262_v1 = vpop.eup %5261  ;;  %v10513_v40 = vpop.xlane.xlu1 %1547  ;;  %5273 = vrcp.f32 %v10259_v14  ;;  %v1855_v20 = vsel %vm1791_vm11, 1.0, %v11636_v9  ;;  %vm1793_vm14 = vcmp.gt.f32.partialorder %v1613_v24, 0.5  ;;  %v1617_v48 = vmul.f32 %v5258_v63, %v11805_v4 }
 0x3dc   :  { %v4128_v37 = vadd.f32 %v5262_v1, %v5260_v8  ;;  %v5264_v11 = vpop.eup %5263  ;;  %v4204_v1 = vsub.f32 %v11806_v2, %v4141_v58  ;;  %v4205_v30 = vsub.f32 %v11807_v46, %v4141_v58  ;;  %v4266_v19 = vmul.f32 %v4202_v12, %v11808_v60  ;;  %v11810_v60 = vld [vmem:[#allocation62_spill] sm:$0xff]  ;;  %v11813_v46 = vld [vmem:[#allocation107_spill] sm:$0xff] }
 0x3dd   :  { %v4267_v54 = vmul.f32 %v4203_v44, %v11809_v43  ;;  %v4143_v14 = vmul.f32 0.6931472, %v5264_v11  ;;  %v4461_v4 = vadd.f32 %v10528_v36, %v10524_v49  ;;  %v10544_v2 = vsel %vm1792_vm13, 1.0, %v11636_v9 }
 0x3de   :  { %v5266_v8 = vpop.eup %5265  ;;  %4129 = vadd.xlane.f32.xlu0 %v4128_v37  ;;  %v4058_v33 = vpop.xlane.xlu0 %4057  ;;  %v4329_v37 = vadd.f32 %v4265_v22, %v4264_v13  ;;  %v10549_v58 = vsel %vm1727_vm9, 1.0, %v1855_v20  ;;  %vm1794_vm15 = vcmp.gt.f32.partialorder %v1614_v55, 0.5  ;;  %v1857_v11 = vsel %vm1793_vm14, 1.0, %v11636_v9 }
 0x3df   :  { %v5268_v29 = vpop.eup %5267  ;;  %v10536_v17 = vpop.xlane.xlu1 %1550  ;;  %5275 = vlog2.f32 %v4058_v33  ;;  %v1616_v44 = vmul.f32 %v5258_v63, %v11810_v60  ;;  %vm1796_vm0 = vcmp.gt.f32.partialorder %v1617_v48, 0.5  ;;  %v4332_v13 = vadd.f32 %v4267_v54, %v4266_v19  ;;  %v11817_v60 = vld [vmem:[#allocation101_spill] sm:$0xff] }
 0x3e0   :  { %v5270_v53 = vpop.eup %5269  ;;  %v4131_v32 = vadd.f32 %v5268_v29, %v5266_v8  ;;  %5277 = vrcp.f32 %v10274_v5  ;;  %v4268_v22 = vmul.f32 %v4204_v1, %v10206_v42  ;;  %v4269_v25 = vmul.f32 %v4205_v30, %v10202_v35  ;;  %v11811_v8 = vld [vmem:[#allocation66_spill] sm:$0xff]  ;;  %v11814_v1 = vld [vmem:[#allocation65_spill] sm:$0xff] }
 0x3e1   :  { %v5272_v45 = vpop.eup %5271  ;;  %v1620_v20 = vmul.f32 %v5270_v53, %v11811_v8  ;;  %v11812_v29 = vld [vmem:[#allocation106_spill] sm:$0xff]  ;;  %vm1732_vm1 = vcmp.eq.s32.totalorder %v10509_v26, %v10520_v62  ;;  %v1681_v63 = vadd.s32 136, %v9781_v0  ;;  %v4464_v42 = vadd.f32 %v10549_v58, %v10544_v2  ;;  %v11819_v8 = vld [vmem:[#allocation72_spill] sm:$0xff]  ;;  %v11822_v26 = vld [vmem:[#allocation41_spill] sm:$0xff] }
 0x3e2   :  { %4330 = vadd.xlane.f32.xlu0 %v4329_v37  ;;  %4132 = vadd.xlane.f32.xlu1 %v4131_v32  ;;  %v4061_v12 = vpop.xlane.xlu0 %4060  ;;  %v4206_v5 = vsub.f32 %v11812_v29, %v4143_v14  ;;  %v4207_v32 = vsub.f32 %v11813_v46, %v4143_v14  ;;  %v4145_v33 = vmul.f32 0.6931472, %v5272_v45  ;;  %v10569_v35 = vsel %vm1794_vm15, 1.0, %v11636_v9  ;;  %v11815_v14 = vld [vmem:[#allocation35_spill] sm:$0xff]  ;;  %v11816_v37 = vld [vmem:[#allocation38_spill] sm:$0xff] }
 0x3e3   :  { %v10555_v10 = vpop.xlane.xlu1 %1553  ;;  %5279 = vlog2.f32 %v4061_v12  ;;  %v10574_v19 = vsel %vm1729_vm12, 1.0, %v1857_v11  ;;  %vm1795_vm2 = vcmp.gt.f32.partialorder %v1616_v44, 0.5  ;;  %v4335_v30 = vadd.f32 %v4269_v25, %v4268_v22 }
 0x3e4   :  { %v1860_v24 = vsel %vm1796_vm0, 1.0, %v11636_v9  ;;  %v1619_v43 = vmul.f32 %v5270_v53, %v11814_v1  ;;  %vm1798_vm3 = vcmp.gt.f32.partialorder %v1620_v20, 0.5  ;;  %v4208_v55 = vsub.f32 %v11815_v14, %v4145_v33 }
 0x3e5   :  { %v5274_v54 = vpop.eup %5273  ;;  %v4270_v12 = vmul.f32 %v4206_v5, %v11817_v60  ;;  %v4271_v28 = vmul.f32 %v4207_v32, %v11818_v7  ;;  %vm1734_vm4 = vcmp.eq.s32.totalorder %v1681_v63, %v10520_v62  ;;  %5281 = vrcp.f32 %v10330_v56  ;;  %v11820_v32 = vld [vmem:[#allocation21_spill] sm:$0xff] }
 0x3e6   :  { %4333 = vadd.xlane.f32.xlu0 %v4332_v13  ;;  %4462 = vadd.xlane.f32.xlu1 %v4461_v4  ;;  %v4209_v4 = vsub.f32 %v11816_v37, %v4145_v33  ;;  %v4467_v53 = vadd.f32 %v10574_v19, %v10569_v35  ;;  %v10591_v48 = vsel %vm1795_vm2, 1.0, %v11636_v9  ;;  %v10596_v13 = vsel %vm1732_vm1, 1.0, %v1860_v24  ;;  %v11821_v33 = vld [vmem:[#allocation22_spill] sm:$0xff]  ;;  %v11823_v24 = vld [vmem:[#allocation44_spill] sm:$0xff] }
 0x3e7   :  { %v10576_v45 = vpop.xlane.xlu1 %1556  ;;  %vm1797_vm5 = vcmp.gt.f32.partialorder %v1619_v43, 0.5  ;;  %v1862_v56 = vsel %vm1798_vm3, 1.0, %v11636_v9  ;;  %v1623_v29 = vmul.f32 %v5274_v54, %v11819_v8  ;;  %v4338_v46 = vadd.f32 %v4271_v28, %v4270_v12  ;;  %v11825_v28 = vld [vmem:[#allocation75_spill] sm:$0xff]  ;;  %v11827_v8 = vld [vmem:[#allocation108_spill] sm:$0xff]  ;;  %v11828_v43 = vld [vmem:[#allocation10_spill] sm:$0xff] }
 0x3e8   :  { %v4272_v44 = vmul.f32 %v4208_v55, %v11820_v32  ;;  %v1682_v14 = vadd.s32 144, %v9781_v0  ;;  %v4470_v20 = vadd.f32 %v10596_v13, %v10591_v48  ;;  %v10611_v60 = vsel %vm1797_vm5, 1.0, %v11636_v9  ;;  %v11824_v55 = vld [vmem:[#allocation70_spill] sm:$0xff] }
 0x3e9   :  { %v5276_v11 = vpop.eup %5275  ;;  %v10616_v7 = vsel %vm1734_vm4, 1.0, %v1862_v56  ;;  %vm1800_vm6 = vcmp.gt.f32.partialorder %v1623_v29, 0.5  ;;  %v1683_v56 = vadd.s32 152, %v9781_v0 }
 0x3ea   :  { %4336 = vadd.xlane.f32.xlu0 %v4335_v30  ;;  %4465 = vadd.xlane.f32.xlu1 %v4464_v42  ;;  %v4147_v22 = vmul.f32 0.6931472, %v5276_v11  ;;  %v5278_v5 = vpop.eup %5277  ;;  %v4273_v42 = vmul.f32 %v4209_v4, %v11821_v33  ;;  %v1622_v4 = vmul.f32 %v5274_v54, %v11824_v55  ;;  %v11829_v33 = vld [vmem:[#allocation43_spill] sm:$0xff]  ;;  %vm1736_vm7 = vcmp.eq.s32.totalorder %v1682_v14, %v10520_v62  ;;  %v11830_v54 = vld [vmem:[#allocation73_spill] sm:$0xff] }
 0x3eb   :  { %v4040_v25 = vpop.xlane.xlu1 %4039  ;;  %v1626_v11 = vmul.f32 %v5278_v5, %v11825_v28  ;;  %v1864_v63 = vsel %vm1800_vm6, 1.0, %v11636_v9  ;;  %vm1738_vm11 = vcmp.eq.s32.totalorder %v1683_v56, %v10520_v62 }
 0x3ec   :  { %5283 = vlog2.f32 %v4040_v25  ;;  %v4210_v30 = vsub.f32 %v11822_v26, %v4147_v22  ;;  %v4211_v1 = vsub.f32 %v11823_v24, %v4147_v22  ;;  %v11826_v22 = vld [vmem:[#allocation109_spill] sm:$0xff]  ;;  %v1625_v24 = vmul.f32 %v5278_v5, %v11830_v54  ;;  %v11831_v5 = vld [vmem:[#allocation59_spill] sm:$0xff] }
 0x3ed   :  { %5285 = vrcp.f32 %v10339_v16  ;;  %v5280_v37 = vpop.eup %5279  ;;  %vm1799_vm8 = vcmp.gt.f32.partialorder %v1622_v4, 0.5  ;;  %vm1802_vm9 = vcmp.gt.f32.partialorder %v1626_v11, 0.5  ;;  %v11836_v54 = vld [vmem:[#allocation83_spill] sm:$0xff] }
 0x3ee   :  { %4339 = vadd.xlane.f32.xlu0 %v4338_v46  ;;  %4468 = vadd.xlane.f32.xlu1 %v4467_v53  ;;  %v4149_v12 = vmul.f32 0.6931472, %v5280_v37  ;;  %v4064_v16 = vpop.xlane.xlu0 %4063  ;;  %v4341_v53 = vadd.f32 %v4273_v42, %v4272_v44  ;;  %v4274_v25 = vmul.f32 %v4210_v30, %v11826_v22  ;;  %v4275_v46 = vmul.f32 %v4211_v1, %v11827_v8  ;;  %v11834_v8 = vld [vmem:[#allocation27_spill] sm:$0xff] }
 0x3ef   :  { %5287 = vlog2.f32 %v4064_v16  ;;  %v4473_v44 = vadd.f32 %v10616_v7, %v10611_v60  ;;  %v5282_v42 = vpop.eup %5281  ;;  %vm1801_vm10 = vcmp.gt.f32.partialorder %v1625_v24, 0.5  ;;  %v1866_v4 = vsel %vm1802_vm9, 1.0, %v11636_v9  ;;  %v11832_v16 = vld [vmem:[#allocation79_spill] sm:$0xff] }
 0x3f0   :  { %v4212_v32 = vsub.f32 %v11828_v43, %v4149_v12  ;;  %v4213_v26 = vsub.f32 %v11829_v33, %v4149_v12  ;;  %5289 = vrcp.f32 %v10359_v18  ;;  %v4344_v30 = vadd.f32 %v4275_v46, %v4274_v25 }
 0x3f1   :  { %v10633_v18 = vsel %vm1799_vm8, 1.0, %v11636_v9  ;;  %v1629_v28 = vmul.f32 %v5282_v42, %v11832_v16  ;;  %v1684_v22 = vadd.s32 160, %v9781_v0  ;;  %v10651_v43 = vsel %vm1738_vm11, 1.0, %v1866_v4 }
 0x3f2   :  { %4342 = vadd.xlane.f32.xlu0 %v4341_v53  ;;  %4471 = vadd.xlane.f32.xlu1 %v4470_v20  ;;  %v4067_v29 = vpop.xlane.xlu0 %4066  ;;  %v4276_v1 = vmul.f32 %v4212_v32, %v10244_v6  ;;  %v4277_v37 = vmul.f32 %v4213_v26, %v11831_v5  ;;  %v10637_v20 = vsel %vm1736_vm7, 1.0, %v1864_v63  ;;  %v10646_v53 = vsel %vm1801_vm10, 1.0, %v11636_v9  ;;  %v11835_v32 = vld [vmem:[#allocation80_spill] sm:$0xff]  ;;  %v11838_v5 = vld [vmem:[#allocation91_spill] sm:$0xff] }
 0x3f3   :  { %5291 = vlog2.f32 %v4067_v29  ;;  %v4476_v14 = vadd.f32 %v10637_v20, %v10633_v18  ;;  %v1628_v33 = vmul.f32 %v5282_v42, %v11835_v32  ;;  %v1685_v63 = vadd.s32 168, %v9781_v0  ;;  %v11844_v32 = vld [vmem:[#allocation88_spill] sm:$0xff] }
 0x3f4   :  { %5293 = vrcp.f32 %v10485_v27  ;;  %v4347_v11 = vadd.f32 %v4277_v37, %v4276_v1  ;;  %v11833_v27 = vld [vmem:[#allocation46_spill] sm:$0xff]  ;;  %vm1804_vm12 = vcmp.gt.f32.partialorder %v1629_v28, 0.5  ;;  %vm1740_vm13 = vcmp.eq.s32.totalorder %v1684_v22, %v10520_v62  ;;  %v11841_v28 = vld [vmem:[#allocation81_spill] sm:$0xff] }
 0x3f5   :  { %5295 = vrcp.f32 %v10497_v21  ;;  %v11839_v21 = vld [vmem:[#allocation16_spill] sm:$0xff]  ;;  %vm1803_vm14 = vcmp.gt.f32.partialorder %v1628_v33, 0.5  ;;  %v1868_v16 = vsel %vm1804_vm12, 1.0, %v11636_v9  ;;  %vm1742_vm15 = vcmp.eq.s32.totalorder %v1685_v63, %v10520_v62 }
 0x3f6   :  { %v5284_v55 = vpop.eup %5283  ;;  %4345 = vadd.xlane.f32.xlu0 %v4344_v30  ;;  %4474 = vadd.xlane.f32.xlu1 %v4473_v44  ;;  %v4479_v44 = vadd.f32 %v10651_v43, %v10646_v53  ;;  %v11837_v30 = vld [vmem:[#allocation93_spill] sm:$0xff]  ;;  %5297 = vrcp.f32 %v10513_v40 }
 0x3f7   :  { %v5286_v6 = vpop.eup %5285  ;;  %v4135_v12 = vmul.f32 0.6931472, %v5284_v55  ;;  %v11840_v55 = vld [vmem:[#allocation49_spill] sm:$0xff] }
 0x3f8   :  { %v1632_v24 = vmul.f32 %v5286_v6, %v11836_v54 }
 0x3f9   :  { %v4198_v25 = vsub.f32 %v11833_v27, %v4135_v12  ;;  %v4199_v46 = vsub.f32 %v11834_v8, %v4135_v12  ;;  %v5288_v26 = vpop.eup %5287 }
 0x3fa   :  { %4348 = vadd.xlane.f32.xlu0 %v4347_v11  ;;  %4477 = vadd.xlane.f32.xlu1 %v4476_v14  ;;  %v4151_v56 = vmul.f32 0.6931472, %v5288_v26  ;;  %v5290_v29 = vpop.eup %5289  ;;  %v1631_v11 = vmul.f32 %v5286_v6, %v11841_v28  ;;  %vm1806_vm0 = vcmp.gt.f32.partialorder %v1632_v24, 0.5  ;;  %v11845_v6 = vld [vmem:[#allocation18_spill] sm:$0xff]  ;;  %v11848_v28 = vld [vmem:[#allocation31_spill] sm:$0xff] }
 0x3fb   :  { %v4262_v1 = vmul.f32 %v4198_v25, %v11837_v30  ;;  %v4263_v37 = vmul.f32 %v4199_v46, %v11838_v5  ;;  %v11842_v25 = vld [vmem:[#allocation29_spill] sm:$0xff]  ;;  %v11843_v46 = vld [vmem:[#allocation28_spill] sm:$0xff]  ;;  %v1635_v26 = vmul.f32 %v5290_v29, %v11844_v32  ;;  %v11846_v5 = vld [vmem:[#allocation51_spill] sm:$0xff] }
 0x3fc   :  { %v4214_v42 = vsub.f32 %v11839_v21, %v4151_v56  ;;  %v4215_v4 = vsub.f32 %v11840_v55, %v4151_v56  ;;  %v10672_v56 = vsel %vm1803_vm14, 1.0, %v11636_v9  ;;  %vm1805_vm1 = vcmp.gt.f32.partialorder %v1631_v11, 0.5 }
 0x3fd   :  { %v5292_v12 = vpop.eup %5291  ;;  %v4326_v33 = vadd.f32 %v4263_v37, %v4262_v1  ;;  %v1870_v1 = vsel %vm1806_vm0, 1.0, %v11636_v9  ;;  %v11847_v37 = vld [vmem:[#allocation86_spill] sm:$0xff]  ;;  %vm1808_vm2 = vcmp.gt.f32.partialorder %v1635_v26, 0.5  ;;  %v1687_v11 = vadd.s32 184, %v9781_v0 }
 0x3fe   :  { %4480 = vadd.xlane.f32.xlu1 %v4479_v44  ;;  %v4153_v14 = vmul.f32 0.6931472, %v5292_v12  ;;  %v4070_v27 = vpop.xlane.xlu0 %4069  ;;  %v4278_v8 = vmul.f32 %v4214_v42, %v11842_v25  ;;  %v4279_v40 = vmul.f32 %v4215_v4, %v11843_v46  ;;  %v5294_v54 = vpop.eup %5293  ;;  %v1686_v44 = vadd.s32 176, %v9781_v0  ;;  %v11849_v25 = vld [vmem:[#allocation32_spill] sm:$0xff] }
 0x3ff   :  { %5299 = vlog2.f32 %v4070_v27  ;;  %v10679_v42 = vsel %vm1740_vm13, 1.0, %v1868_v16  ;;  %v1634_v4 = vmul.f32 %v5290_v29, %v11847_v37  ;;  %v5296_v16 = vpop.eup %5295  ;;  %v10692_v46 = vsel %vm1805_vm1, 1.0, %v11636_v9 }
 0x400   :  { %v4216_v30 = vsub.f32 %v11845_v6, %v4153_v14  ;;  %v4217_v21 = vsub.f32 %v11846_v5, %v4153_v14  ;;  %v4350_v55 = vadd.f32 %v4279_v40, %v4278_v8  ;;  %5301 = vrcp.f32 %v10536_v17  ;;  %v11850_v8 = vld [vmem:[#allocation8_spill] sm:$0xff]  ;;  %v11851_v40 = vld [vmem:[#allocation6_spill] sm:$0xff]  ;;  %v1560_v6 = vpop.xlane.xlu1 %1559 }
 0x401   :  { %v1638_v22 = vmul.f32 %v5294_v54, %v11850_v8  ;;  %v4482_v17 = vadd.f32 %v10679_v42, %v10672_v56  ;;  %v10696_v29 = vsel %vm1742_vm15, 1.0, %v1870_v1  ;;  %v1637_v32 = vmul.f32 %v5294_v54, %v11851_v40 }
 0x402   :  { %4327 = vadd.xlane.f32.xlu1 %v4326_v33  ;;  %v4073_v12 = vpop.xlane.xlu0 %4072  ;;  %4351 = vadd.xlane.f32.xlu0 %v4350_v55  ;;  %v4280_v27 = vmul.f32 %v4216_v30, %v11848_v28  ;;  %v4281_v14 = vmul.f32 %v4217_v21, %v11849_v25  ;;  %vm1744_vm3 = vcmp.eq.s32.totalorder %v1686_v44, %v10520_v62  ;;  %vm1807_vm4 = vcmp.gt.f32.partialorder %v1634_v4, 0.5  ;;  %v5298_v33 = vpop.eup %5297  ;;  %v11852_v30 = vld [vmem:[#allocation7_spill] sm:$0xff]  ;;  %v11854_v4 = vld [vmem:[#allocation9_spill] sm:$0xff] }
 0x403   :  { %5303 = vlog2.f32 %v4073_v12  ;;  %v1872_v26 = vsel %vm1808_vm2, 1.0, %v11636_v9  ;;  %vm1810_vm5 = vcmp.gt.f32.partialorder %v1638_v22, 0.5  ;;  %v1641_v5 = vmul.f32 %v5296_v16, %v11852_v30  ;;  %v11853_v21 = vld [vmem:[#allocation63_spill] sm:$0xff]  ;;  %v11855_v22 = vld [vmem:[#allocation82_spill] sm:$0xff] }
 0x404   :  { %v4353_v24 = vadd.f32 %v4281_v14, %v4280_v27  ;;  %5305 = vrcp.f32 %v10555_v10  ;;  %v4485_v63 = vadd.f32 %v10696_v29, %v10692_v46  ;;  %v1640_v55 = vmul.f32 %v5296_v16, %v11853_v21  ;;  %v11857_v30 = vld [vmem:[#allocation30_spill] sm:$0xff] }
 0x405   :  { %v1688_v54 = vadd.s32 192, %v9781_v0  ;;  %v10708_v10 = vsel %vm1807_vm4, 1.0, %v11636_v9  ;;  %v10710_v44 = vsel %vm1744_vm3, 1.0, %v1872_v26  ;;  %vm1746_vm6 = vcmp.eq.s32.totalorder %v1687_v11, %v10520_v62 }
 0x406   :  { %4483 = vadd.xlane.f32.xlu1 %v4482_v17  ;;  %4354 = vadd.xlane.f32.xlu0 %v4353_v24  ;;  %vm1809_vm7 = vcmp.gt.f32.partialorder %v1637_v32, 0.5  ;;  %5307 = vrcp.f32 %v10576_v45  ;;  %v1874_v37 = vsel %vm1810_vm5, 1.0, %v11636_v9  ;;  %v1644_v12 = vmul.f32 %v5298_v33, %v11854_v4  ;;  %v1563_v45 = vpop.xlane.xlu1 %1562  ;;  %v11856_v17 = vld [vmem:[#allocation19_spill] sm:$0xff] }
 0x407   :  { %v1689_v28 = vadd.s32 200, %v9781_v0  ;;  %vm1812_vm8 = vcmp.gt.f32.partialorder %v1641_v5, 0.5  ;;  %v4488_v14 = vadd.f32 %v10710_v44, %v10708_v10  ;;  %v10720_v8 = vsel %vm1809_vm7, 1.0, %v11636_v9  ;;  %v11858_v4 = vld [vmem:[#allocation11_spill] sm:$0xff] }
 0x408   :  { %vm1748_vm9 = vcmp.eq.s32.totalorder %v1688_v54, %v10520_v62  ;;  %vm1811_vm10 = vcmp.gt.f32.partialorder %v1640_v55, 0.5  ;;  %5309 = vrcp.f32 %v1560_v6  ;;  %v10727_v40 = vsel %vm1746_vm6, 1.0, %v1874_v37  ;;  %v11861_v55 = vld [vmem:[#allocation12_spill] sm:$0xff] }
 0x409   :  { %v5300_v1 = vpop.eup %5299  ;;  %v1876_v26 = vsel %vm1812_vm8, 1.0, %v11636_v9  ;;  %v1643_v5 = vmul.f32 %v5298_v33, %v11857_v30  ;;  %vm1750_vm11 = vcmp.eq.s32.totalorder %v1689_v28, %v10520_v62  ;;  %vm1814_vm12 = vcmp.gt.f32.partialorder %v1644_v12, 0.5 }
 0x40a   :  { %4486 = vadd.xlane.f32.xlu1 %v4485_v63  ;;  %v4155_v27 = vmul.f32 0.6931472, %v5300_v1  ;;  %v5302_v25 = vpop.eup %5301  ;;  %v4491_v37 = vadd.f32 %v10727_v40, %v10720_v8  ;;  %v1690_v33 = vadd.s32 208, %v9781_v0  ;;  %v1692_v28 = vadd.s32 224, %v9781_v0 }
 0x40b   :  { %vm1813_vm13 = vcmp.gt.f32.partialorder %v1643_v5, 0.5 }
 0x40c   :  { %v4218_v16 = vsub.f32 %v11855_v22, %v4155_v27  ;;  %v4219_v24 = vsub.f32 %v11856_v17, %v4155_v27  ;;  %v1647_v27 = vmul.f32 %v5302_v25, %v11858_v4  ;;  %v11859_v22 = vld [vmem:[#allocation58_spill] sm:$0xff]  ;;  %vm1752_vm15 = vcmp.eq.s32.totalorder %v1690_v33, %v10520_v62 }
 0x40d   :  { %v5304_v32 = vpop.eup %5303  ;;  %vm1756_vm5 = vcmp.eq.s32.totalorder %v1692_v28, %v10520_v62 }
 0x40e   :  { %4489 = vadd.xlane.f32.xlu1 %v4488_v14  ;;  %v4157_v63 = vmul.f32 0.6931472, %v5304_v32  ;;  %v4076_v6 = vpop.xlane.xlu0 %4075  ;;  %v4282_v21 = vmul.f32 %v4218_v16, %v10302_v23  ;;  %v4283_v1 = vmul.f32 %v4219_v24, %v10293_v52  ;;  %v5306_v11 = vpop.eup %5305  ;;  %v10739_v14 = vsel %vm1811_vm10, 1.0, %v11636_v9  ;;  %v11860_v32 = vld [vmem:[#allocation60_spill] sm:$0xff] }
 0x40f   :  { %5311 = vlog2.f32 %v4076_v6  ;;  %v10746_v52 = vsel %vm1748_vm9, 1.0, %v1876_v26  ;;  %v1878_v16 = vsel %vm1814_vm12, 1.0, %v11636_v9  ;;  %v1646_v24 = vmul.f32 %v5302_v25, %v11861_v55  ;;  %v1566_v6 = vpop.xlane.xlu1 %1565 }
 0x410   :  { %v4220_v17 = vsub.f32 %v11859_v22, %v4157_v63  ;;  %v4221_v30 = vsub.f32 %v11860_v32, %v4157_v63  ;;  %v4356_v23 = vadd.f32 %v4283_v1, %v4282_v21  ;;  %5313 = vrcp.f32 %v1563_v45  ;;  %v11862_v21 = vld [vmem:[#allocation13_spill] sm:$0xff]  ;;  %v5308_v26 = vpop.eup %5307 }
 0x411   :  { %vm1816_vm14 = vcmp.gt.f32.partialorder %v1647_v27, 0.5  ;;  %v1650_v54 = vmul.f32 %v5306_v11, %v11862_v21  ;;  %v4494_v45 = vadd.f32 %v10746_v52, %v10739_v14  ;;  %v10758_v25 = vsel %vm1813_vm13, 1.0, %v11636_v9 }
 0x412   :  { %4492 = vadd.xlane.f32.xlu1 %v4491_v37  ;;  %v4079_v4 = vpop.xlane.xlu0 %4078  ;;  %4357 = vadd.xlane.f32.xlu0 %v4356_v23  ;;  %v4284_v22 = vmul.f32 %v4220_v17, %v10324_v41  ;;  %v4285_v63 = vmul.f32 %v4221_v30, %v10320_v47  ;;  %11863 = vst [vmem:[#allocation47_spill] sm:$0xff] %v10758_v25  ;;  %v10762_v5 = vsel %vm1750_vm11, 1.0, %v1878_v16  ;;  %v11865_v41 = vld [vmem:[#allocation14_spill] sm:$0xff]  ;;  %vm1815_vm0 = vcmp.gt.f32.partialorder %v1646_v24, 0.5  ;;  %v5310_v37 = vpop.eup %5309  ;;  %v11866_v17 = vld [vmem:[#allocation15_spill] sm:$0xff]  ;;  %v11869_v16 = vld [vmem:[#allocation52_spill] sm:$0xff] }
 0x413   :  { %5315 = vlog2.f32 %v4079_v4  ;;  %11864 = vst [vmem:[#allocation50_spill] sm:$0xff] %v10762_v5  ;;  %v1649_v47 = vmul.f32 %v5306_v11, %v11865_v41  ;;  %v1880_v1 = vsel %vm1816_vm14, 1.0, %v11636_v9  ;;  %v1691_v27 = vadd.s32 216, %v9781_v0  ;;  %v11870_v4 = vld [vmem:[#allocation17_spill] sm:$0xff] }
 0x414   :  { %v4359_v12 = vadd.f32 %v4285_v63, %v4284_v22  ;;  %5317 = vrcp.f32 %v1566_v6  ;;  %vm1818_vm1 = vcmp.gt.f32.partialorder %v1650_v54, 0.5  ;;  %v1653_v32 = vmul.f32 %v5308_v26, %v11866_v17  ;;  %v11873_v17 = vld [vmem:[#allocation54_spill] sm:$0xff] }
 0x415   :  { %v4497_v30 = vadd.f32 %v10762_v5, %v10758_v25  ;;  %v10772_v23 = vsel %vm1815_vm0, 1.0, %v11636_v9  ;;  %v10776_v11 = vsel %vm1752_vm15, 1.0, %v1880_v1  ;;  %vm1817_vm2 = vcmp.gt.f32.partialorder %v1649_v47, 0.5 }
 0x416   :  { %4495 = vadd.xlane.f32.xlu1 %v4494_v45  ;;  %4360 = vadd.xlane.f32.xlu0 %v4359_v12  ;;  %11867 = vst [vmem:[#allocation53_spill] sm:$0xff] %v10772_v23  ;;  %11868 = vst [vmem:[#allocation98_spill] sm:$0xff] %v10776_v11  ;;  %v1652_v55 = vmul.f32 %v5308_v26, %v11869_v16  ;;  %vm1754_vm3 = vcmp.eq.s32.totalorder %v1691_v27, %v10520_v62  ;;  %v1882_v6 = vsel %vm1818_vm1, 1.0, %v11636_v9  ;;  %v11871_v26 = vld [vmem:[#allocation94_spill] sm:$0xff]  ;;  %vm4614_vm0 = vcmask 7168  }
 0x417   :  { %v1656_v22 = vmul.f32 %v5310_v37, %v11870_v4  ;;  %vm1820_vm4 = vcmp.gt.f32.partialorder %v1653_v32, 0.5  ;;  %v4500_v54 = vadd.f32 %v10776_v11, %v10772_v23  ;;  %v10785_v33 = vsel %vm1817_vm2, 1.0, %v11636_v9  ;;  %v11872_v12 = vld [vmem:[#allocation26_spill] sm:$0xff]  ;;  %v11874_v11 = vld [vmem:[#allocation69_spill] sm:$0xff]  ;;  %v11875_v23 = vld [vmem:[#allocation24_spill] sm:$0xff] }
 0x418   :  { %v10790_v47 = vsel %vm1754_vm3, 1.0, %v1882_v6  ;;  %vm1819_vm6 = vcmp.gt.f32.partialorder %v1652_v55, 0.5  ;;  %v1884_v27 = vsel %vm1820_vm4, 1.0, %v11636_v9  ;;  %v1655_v32 = vmul.f32 %v5310_v37, %v11873_v17 }
 0x419   :  { %v5312_v24 = vpop.eup %5311  ;;  %vm1822_vm7 = vcmp.gt.f32.partialorder %v1656_v22, 0.5  ;;  %v4503_v55 = vadd.f32 %v10790_v47, %v10785_v33  ;;  %v1694_v37 = vadd.s32 240, %v9781_v0  ;;  %vm4691_vm1 = vcmask 0  }
 0x41a   :  { %4498 = vadd.xlane.f32.xlu1 %v4497_v30  ;;  %v4159_v63 = vmul.f32 0.6931472, %v5312_v24  ;;  %v5314_v21 = vpop.eup %5313  ;;  %v1693_v30 = vadd.s32 232, %v9781_v0  ;;  %vm1821_vm9 = vcmp.gt.f32.partialorder %v1655_v32, 0.5 }
 0x41b   :  { %v10820_v32 = vsel %vm1821_vm9, 1.0, %v11636_v9  ;;  %vm1760_vm11 = vcmp.eq.s32.totalorder %v1694_v37, %v10520_v62 }
 0x41c   :  { %v4222_v45 = vsub.f32 %v11871_v26, %v4159_v63  ;;  %v4223_v41 = vsub.f32 %v11872_v12, %v4159_v63  ;;  %v1659_v63 = vmul.f32 %v5314_v21, %v11875_v23  ;;  %v11876_v12 = vld [vmem:[#allocation61_spill] sm:$0xff]  ;;  %vm1758_vm8 = vcmp.eq.s32.totalorder %v1693_v30, %v10520_v62 }
 0x41d   :  { %v5316_v1 = vpop.eup %5315  ;;  %v1886_v23 = vsel %vm1822_vm7, 1.0, %v11636_v9 }
 0x41e   :  { %4501 = vadd.xlane.f32.xlu1 %v4500_v54  ;;  %v4161_v16 = vmul.f32 0.6931472, %v5316_v1  ;;  %v4082_v24 = vpop.xlane.xlu0 %4081  ;;  %v4286_v4 = vmul.f32 %v4222_v45, %v10337_v15  ;;  %v4287_v26 = vmul.f32 %v4223_v41, %v11874_v11  ;;  %v5318_v6 = vpop.eup %5317  ;;  %v10801_v54 = vsel %vm1819_vm6, 1.0, %v11636_v9  ;;  %v11877_v1 = vld [vmem:[#allocation25_spill] sm:$0xff]  ;;  %v11878_v11 = vld [vmem:[#allocation20_spill] sm:$0xff] }
 0x41f   :  { %5319 = vlog2.f32 %v4082_v24  ;;  %v10808_v15 = vsel %vm1756_vm5, 1.0, %v1884_v27  ;;  %v1658_v45 = vmul.f32 %v5314_v21, %v11878_v11  ;;  %vm1824_vm10 = vcmp.gt.f32.partialorder %v1659_v63, 0.5 }
 0x420   :  { %v4224_v17 = vsub.f32 %v11876_v12, %v4161_v16  ;;  %v4225_v5 = vsub.f32 %v11877_v1, %v4161_v16  ;;  %v4362_v25 = vadd.f32 %v4287_v26, %v4286_v4  ;;  %v11879_v4 = vld [vmem:[#allocation23_spill] sm:$0xff]  ;;  %v4506_v27 = vadd.f32 %v10808_v15, %v10801_v54 }
 0x421   :  { %v1662_v28 = vmul.f32 %v5318_v6, %v11879_v4  ;;  %v10822_v22 = vsel %vm1758_vm8, 1.0, %v1886_v23  ;;  %vm1823_vm12 = vcmp.gt.f32.partialorder %v1658_v45, 0.5  ;;  %v11882_v23 = vld [vmem:[#allocation67_spill] sm:$0xff] }
 0x422   :  { %4504 = vadd.xlane.f32.xlu1 %v4503_v55  ;;  %v4085_v41 = vpop.xlane.xlu0 %4084  ;;  %4363 = vadd.xlane.f32.xlu0 %v4362_v25  ;;  %v4288_v24 = vmul.f32 %v4224_v17, %v10528_v36  ;;  %v4289_v16 = vmul.f32 %v4225_v5, %v10524_v49  ;;  %v1888_v36 = vsel %vm1824_vm10, 1.0, %v11636_v9  ;;  %v11880_v49 = vld [vmem:[#allocation89_spill] sm:$0xff]  ;;  %v1695_v5 = vadd.s32 248, %v9781_v0  ;;  %v11881_v17 = vld [vmem:[#allocation68_spill] sm:$0xff] }
 0x423   :  { %5321 = vlog2.f32 %v4085_v41  ;;  %v1661_v25 = vmul.f32 %v5318_v6, %v11880_v49  ;;  %vm1826_vm13 = vcmp.gt.f32.partialorder %v1662_v28, 0.5  ;;  %v4509_v21 = vadd.f32 %v10822_v22, %v10820_v32  ;;  %v10837_v6 = vpop.xlane.xlu1 %4426 }
 0x424   :  { %v4365_v30 = vadd.f32 %v4289_v16, %v4288_v24  ;;  %v10831_v26 = vsel %vm1823_vm12, 1.0, %v11636_v9  ;;  %v10833_v63 = vsel %vm1760_vm11, 1.0, %v1888_v36  ;;  %vm1762_vm14 = vcmp.eq.s32.totalorder %v1695_v5, %v10520_v62  ;;  %v11883_v36 = vld [vmem:[#allocation34_spill] sm:$0xff] }
 0x425   :  { %vm1825_vm15 = vcmp.gt.f32.partialorder %v1661_v25, 0.5  ;;  %v1890_v37 = vsel %vm1826_vm13, 1.0, %v11636_v9  ;;  %v4512_v12 = vadd.f32 %v10833_v63, %v10831_v26 }
 0x426   :  { %4507 = vadd.xlane.f32.xlu1 %v4506_v27  ;;  %4366 = vadd.xlane.f32.xlu0 %v4365_v30  ;;  %v10844_v45 = vsel %vm1825_vm15, 1.0, %v11636_v9  ;;  %v10846_v41 = vsel %vm1762_vm14, 1.0, %v1890_v37  ;;  %v11884_v9 = vld [vmem:[#allocation33_spill] sm:$0xff] }
 0x427   :  { %v4515_v27 = vadd.f32 %v10846_v41, %v10844_v45  ;;  %v10852_v30 = vpop.xlane.xlu1 %4432 }
 0x429   :  { %v5320_v55 = vpop.eup %5319 }
 0x42a   :  { %4510 = vadd.xlane.f32.xlu1 %v4509_v21  ;;  %v4163_v0 = vmul.f32 0.6931472, %v5320_v55 }
 0x42b   :  { %v10858_v37 = vpop.xlane.xlu1 %4438 }
 0x42c   :  { %v4226_v1 = vsub.f32 %v11881_v17, %v4163_v0  ;;  %v4227_v11 = vsub.f32 %v11882_v23, %v4163_v0 }
 0x42d   :  { %v5322_v24 = vpop.eup %5321 }
 0x42e   :  { %4513 = vadd.xlane.f32.xlu1 %v4512_v12  ;;  %v4165_v62 = vmul.f32 0.6931472, %v5322_v24  ;;  %v4088_v16 = vpop.xlane.xlu0 %4087  ;;  %v4290_v4 = vmul.f32 %v4226_v1, %v10549_v58  ;;  %v4291_v28 = vmul.f32 %v4227_v11, %v10544_v2 }
 0x42f   :  { %5323 = vlog2.f32 %v4088_v16  ;;  %v10860_v1 = vpop.xlane.xlu1 %4444 }
 0x430   :  { %v4228_v49 = vsub.f32 %v11883_v36, %v4165_v62  ;;  %v4229_v25 = vsub.f32 %v11884_v9, %v4165_v62  ;;  %v4368_v5 = vadd.f32 %v4291_v28, %v4290_v4  ;;  %v11885_v4 = vld [vmem:[#allocation71_spill] sm:$0xff] }
 0x432   :  { %4516 = vadd.xlane.f32.xlu1 %v4515_v27  ;;  %v4091_v21 = vpop.xlane.xlu0 %4090  ;;  %4369 = vadd.xlane.f32.xlu0 %v4368_v5  ;;  %v4292_v55 = vmul.f32 %v4228_v49, %v10574_v19  ;;  %v4293_v58 = vmul.f32 %v4229_v25, %v10569_v35  ;;  %v11886_v27 = vld [vmem:[#allocation36_spill] sm:$0xff] }
 0x433   :  { %5325 = vlog2.f32 %v4091_v21  ;;  %v10868_v9 = vpop.xlane.xlu1 %4447 }
 0x434   :  { %v4371_v2 = vadd.f32 %v4293_v58, %v4292_v55  ;;  %v11887_v58 = vld [vmem:[#allocation37_spill] sm:$0xff] }
 0x436   :  { %4372 = vadd.xlane.f32.xlu0 %v4371_v2 }
 0x439   :  { %v5324_v0 = vpop.eup %5323 }
 0x43a   :  { %v4167_v12 = vmul.f32 0.6931472, %v5324_v0  ;;  %v4094_v17 = vpop.xlane.xlu0 %4093  ;;  %v11888_v0 = vld [vmem:[#allocation40_spill] sm:$0xff] }
 0x43b   :  { %5327 = vlog2.f32 %v4094_v17 }
 0x43c   :  { %v4230_v23 = vsub.f32 %v10344_v59, %v4167_v12  ;;  %v4231_v11 = vsub.f32 %v10347_v57, %v4167_v12 }
 0x43d   :  { %v5326_v24 = vpop.eup %5325 }
 0x43e   :  { %v4169_v62 = vmul.f32 0.6931472, %v5326_v24  ;;  %v4097_v19 = vpop.xlane.xlu0 %4096  ;;  %v4294_v35 = vmul.f32 %v4230_v23, %v10591_v48  ;;  %v4295_v16 = vmul.f32 %v4231_v11, %v10596_v13  ;;  %v10872_v13 = vpop.xlane.xlu1 %4450 }
 0x43f   :  { %5329 = vlog2.f32 %v4097_v19 }
 0x440   :  { %v4232_v28 = vsub.f32 %v11885_v4, %v4169_v62  ;;  %v4233_v36 = vsub.f32 %v11886_v27, %v4169_v62  ;;  %v4374_v49 = vadd.f32 %v4295_v16, %v4294_v35 }
 0x442   :  { %v4100_v25 = vpop.xlane.xlu0 %4099  ;;  %4375 = vadd.xlane.f32.xlu0 %v4374_v49  ;;  %v4296_v59 = vmul.f32 %v4232_v28, %v10611_v60  ;;  %v4297_v57 = vmul.f32 %v4233_v36, %v10616_v7  ;;  %v10880_v16 = vpop.xlane.xlu1 %4453 }
 0x443   :  { %5331 = vlog2.f32 %v4100_v25 }
 0x444   :  { %v4377_v5 = vadd.f32 %v4297_v57, %v4296_v59 }
 0x445   :  { %v5328_v21 = vpop.eup %5327 }
 0x446   :  { %v4171_v48 = vmul.f32 0.6931472, %v5328_v21  ;;  %v4103_v55 = vpop.xlane.xlu0 %4102  ;;  %4378 = vadd.xlane.f32.xlu0 %v4377_v5  ;;  %v10888_v5 = vpop.xlane.xlu1 %4456 }
 0x447   :  { %5333 = vlog2.f32 %v4103_v55 }
 0x448   :  { %v4234_v2 = vsub.f32 %v11887_v58, %v4171_v48  ;;  %v4235_v12 = vsub.f32 %v11888_v0, %v4171_v48 }
 0x449   :  { %v5330_v17 = vpop.eup %5329 }
 0x44a   :  { %v4173_v23 = vmul.f32 0.6931472, %v5330_v17  ;;  %v4106_v11 = vpop.xlane.xlu0 %4105  ;;  %v4298_v60 = vmul.f32 %v4234_v2, %v10633_v18  ;;  %v4299_v7 = vmul.f32 %v4235_v12, %v10637_v20  ;;  %v10896_v17 = vpop.xlane.xlu1 %4459 }
 0x44b   :  { %5335 = vlog2.f32 %v4106_v11 }
 0x44c   :  { %v4236_v24 = vsub.f32 %v10370_v3, %v4173_v23  ;;  %v4237_v62 = vsub.f32 %v10373_v34, %v4173_v23  ;;  %v4380_v19 = vadd.f32 %v4299_v7, %v4298_v60 }
 0x44d   :  { %v5332_v35 = vpop.eup %5331 }
 0x44e   :  { %v4175_v4 = vmul.f32 0.6931472, %v5332_v35  ;;  %v4109_v28 = vpop.xlane.xlu0 %4108  ;;  %4381 = vadd.xlane.f32.xlu0 %v4380_v19  ;;  %v4300_v27 = vmul.f32 %v4236_v24, %v10646_v53  ;;  %v4301_v36 = vmul.f32 %v4237_v62, %v10651_v43  ;;  %v11889_v43 = vld [vmem:[#allocation39_spill] sm:$0xff] }
 0x44f   :  { %5337 = vlog2.f32 %v4109_v28 }
 0x450   :  { %v4238_v18 = vsub.f32 %v10378_v39, %v4175_v4  ;;  %v4239_v20 = vsub.f32 %v10381_v38, %v4175_v4  ;;  %v4383_v49 = vadd.f32 %v4301_v36, %v4300_v27  ;;  %v11891_v4 = vld [vmem:[#allocation76_spill] sm:$0xff] }
 0x451   :  { %v5334_v3 = vpop.eup %5333 }
 0x452   :  { %v4177_v25 = vmul.f32 0.6931472, %v5334_v3  ;;  %v4112_v34 = vpop.xlane.xlu0 %4111  ;;  %4384 = vadd.xlane.f32.xlu0 %v4383_v49  ;;  %v4302_v59 = vmul.f32 %v4238_v18, %v10672_v56  ;;  %v4303_v57 = vmul.f32 %v4239_v20, %v10679_v42  ;;  %v11893_v3 = vld [vmem:[#allocation78_spill] sm:$0xff] }
 0x453   :  { %5339 = vlog2.f32 %v4112_v34 }
 0x454   :  { %v4240_v53 = vsub.f32 %v10386_v51, %v4177_v25  ;;  %v4241_v21 = vsub.f32 %v11889_v43, %v4177_v25  ;;  %v4386_v48 = vadd.f32 %v4303_v57, %v4302_v59  ;;  %v11895_v43 = vld [vmem:[#allocation47_spill] sm:$0xff] }
 0x455   :  { %v5336_v39 = vpop.eup %5335 }
 0x456   :  { %v4179_v55 = vmul.f32 0.6931472, %v5336_v39  ;;  %v4115_v38 = vpop.xlane.xlu0 %4114  ;;  %4387 = vadd.xlane.f32.xlu0 %v4386_v48  ;;  %v4304_v58 = vmul.f32 %v4240_v53, %v10692_v46  ;;  %v4305_v2 = vmul.f32 %v4241_v21, %v10696_v29  ;;  %v11890_v29 = vld [vmem:[#allocation45_spill] sm:$0xff]  ;;  %v11896_v48 = vld [vmem:[#allocation50_spill] sm:$0xff] }
 0x457   :  { %5341 = vlog2.f32 %v4115_v38 }
 0x458   :  { %v4242_v56 = vsub.f32 %v10394_v31, %v4179_v55  ;;  %v4243_v42 = vsub.f32 %v10397_v50, %v4179_v55  ;;  %v4389_v0 = vadd.f32 %v4305_v2, %v4304_v58  ;;  %v11897_v55 = vld [vmem:[#allocation85_spill] sm:$0xff] }
 0x459   :  { %v5338_v12 = vpop.eup %5337 }
 0x45a   :  { %v4181_v51 = vmul.f32 0.6931472, %v5338_v12  ;;  %4390 = vadd.xlane.f32.xlu0 %v4389_v0  ;;  %v4306_v11 = vmul.f32 %v4242_v56, %v10708_v10  ;;  %v4307_v60 = vmul.f32 %v4243_v42, %v10710_v44  ;;  %v11892_v10 = vld [vmem:[#allocation48_spill] sm:$0xff]  ;;  %v11899_v0 = vld [vmem:[#allocation53_spill] sm:$0xff] }
 0x45b   :  { %v4118_v23 = vpop.xlane.xlu0 %4117 }
 0x45c   :  { %5343 = vlog2.f32 %v4118_v23  ;;  %v4244_v46 = vsub.f32 %v10404_v61, %v4181_v51  ;;  %v4245_v7 = vsub.f32 %v11890_v29, %v4181_v51  ;;  %v4392_v24 = vadd.f32 %v4307_v60, %v4306_v11  ;;  %v11900_v51 = vld [vmem:[#allocation98_spill] sm:$0xff] }
 0x45d   :  { %v5340_v31 = vpop.eup %5339  ;;  %v11901_v11 = vld [vmem:[#allocation90_spill] sm:$0xff] }
 0x45e   :  { %v4183_v62 = vmul.f32 0.6931472, %v5340_v31  ;;  %4393 = vadd.xlane.f32.xlu0 %v4392_v24  ;;  %v4308_v19 = vmul.f32 %v4244_v46, %v10720_v8  ;;  %v4309_v35 = vmul.f32 %v4245_v7, %v10727_v40  ;;  %v11894_v8 = vld [vmem:[#allocation84_spill] sm:$0xff] }
 0x45f   :  { %v4121_v50 = vpop.xlane.xlu1 %4120  ;;  %v11902_v46 = vld [vmem:[#allocation92_spill] sm:$0xff] }
 0x460   :  { %5345 = vlog2.f32 %v4121_v50  ;;  %v4246_v28 = vsub.f32 %v11891_v4, %v4183_v62  ;;  %v4247_v27 = vsub.f32 %v11892_v10, %v4183_v62  ;;  %v4395_v44 = vadd.f32 %v4309_v35, %v4308_v19  ;;  %v11903_v4 = vld [vmem:[#allocation110_spill] sm:$0xff]  ;;  %v11904_v10 = vld [vmem:[#allocation111_spill] sm:$0xff] }
 0x461   :  { %v5342_v36 = vpop.eup %5341 }
 0x462   :  { %v4185_v18 = vmul.f32 0.6931472, %v5342_v36  ;;  %4396 = vadd.xlane.f32.xlu0 %v4395_v44  ;;  %v4310_v20 = vmul.f32 %v4246_v28, %v10739_v14  ;;  %v4311_v49 = vmul.f32 %v4247_v27, %v10746_v52  ;;  %v11898_v14 = vld [vmem:[#allocation87_spill] sm:$0xff] }
 0x463   :  { %v4124_v61 = vpop.xlane.xlu0 %4123 }
 0x464   :  { %5347 = vlog2.f32 %v4124_v61  ;;  %v4248_v25 = vsub.f32 %v11893_v3, %v4185_v18  ;;  %v4249_v34 = vsub.f32 %v11894_v8, %v4185_v18  ;;  %v4398_v40 = vadd.f32 %v4311_v49, %v4310_v20  ;;  %v11906_v8 = vld [vmem:[#allocation113_spill] sm:$0xff] }
 0x466   :  { %v5344_v59 = vpop.eup %5343  ;;  %4399 = vadd.xlane.f32.xlu0 %v4398_v40  ;;  %v4312_v21 = vmul.f32 %v4248_v25, %v11895_v43  ;;  %v4313_v39 = vmul.f32 %v4249_v34, %v11896_v48  ;;  %v11905_v25 = vld [vmem:[#allocation112_spill] sm:$0xff]  ;;  %v11907_v48 = vld [vmem:[#allocation114_spill] sm:$0xff] }
 0x467   :  { %v4187_v57 = vmul.f32 0.6931472, %v5344_v59  ;;  %v4127_v53 = vpop.xlane.xlu1 %4126 }
 0x468   :  { %5349 = vlog2.f32 %v4127_v53  ;;  %v4401_v52 = vadd.f32 %v4313_v39, %v4312_v21 }
 0x469   :  { %v4250_v38 = vsub.f32 %v11897_v55, %v4187_v57  ;;  %v4251_v58 = vsub.f32 %v11898_v14, %v4187_v57 }
 0x46a   :  { %v5346_v2 = vpop.eup %5345  ;;  %4402 = vadd.xlane.f32.xlu0 %v4401_v52 }
 0x46b   :  { %v4189_v56 = vmul.f32 0.6931472, %v5346_v2  ;;  %v4130_v42 = vpop.xlane.xlu0 %4129  ;;  %v4314_v12 = vmul.f32 %v4250_v38, %v11899_v0  ;;  %v4315_v23 = vmul.f32 %v4251_v58, %v11900_v51  ;;  %v11910_v0 = vld [vmem:[#allocation117_spill] sm:$0xff] }
 0x46c   :  { %5351 = vlog2.f32 %v4130_v42 }
 0x46d   :  { %v4252_v60 = vsub.f32 %v11901_v11, %v4189_v56  ;;  %v4253_v29 = vsub.f32 %v11902_v46, %v4189_v56  ;;  %v4404_v7 = vadd.f32 %v4315_v23, %v4314_v12  ;;  %v11909_v56 = vld [vmem:[#allocation116_spill] sm:$0xff]  ;;  %v11911_v46 = vld [vmem:[#allocation74_spill] sm:$0xff] }
 0x46e   :  { %v5348_v24 = vpop.eup %5347 }
 0x46f   :  { %v4191_v31 = vmul.f32 0.6931472, %v5348_v24  ;;  %v4331_v62 = vpop.xlane.xlu0 %4330  ;;  %4405 = vadd.xlane.f32.xlu0 %v4404_v7  ;;  %v4133_v50 = vpop.xlane.xlu1 %4132  ;;  %v4316_v19 = vmul.f32 %v4252_v60, %v10785_v33  ;;  %v4317_v35 = vmul.f32 %v4253_v29, %v10790_v47  ;;  %v11912_v29 = vld [vmem:[#allocation42_spill] sm:$0xff]  ;;  %v11913_v7 = vld [vmem:[#allocation77_spill] sm:$0xff] }
 0x470   :  { %5353 = vlog2.f32 %v4133_v50 }
 0x471   :  { %v4254_v28 = vsub.f32 %v11903_v4, %v4191_v31  ;;  %v4255_v27 = vsub.f32 %v11904_v10, %v4191_v31  ;;  %v4407_v44 = vadd.f32 %v4317_v35, %v4316_v19  ;;  %5355 = vrcp.f32 %v10837_v6  ;;  %v11914_v6 = vld [vmem:[#allocation96_spill] sm:$0xff] }
 0x472   :  { %v5350_v36 = vpop.eup %5349  ;;  %5357 = vrcp.f32 %v11911_v46 }
 0x473   :  { %v4193_v18 = vmul.f32 0.6931472, %v5350_v36  ;;  %v4334_v61 = vpop.xlane.xlu0 %4333  ;;  %4408 = vadd.xlane.f32.xlu1 %v4407_v44  ;;  %v10922_v20 = vpop.xlane.xlu1 %4462  ;;  %v4318_v49 = vmul.f32 %v4254_v28, %v10801_v54  ;;  %v4319_v3 = vmul.f32 %v4255_v27, %v10808_v15  ;;  %v11908_v54 = vld [vmem:[#allocation115_spill] sm:$0xff]  ;;  %5359 = vrcp.f32 %v11912_v29 }
 0x474   :  { %5361 = vrcp.f32 %v10852_v30 }
 0x475   :  { %v4256_v33 = vsub.f32 %v11905_v25, %v4193_v18  ;;  %v4257_v47 = vsub.f32 %v11906_v8, %v4193_v18  ;;  %v4410_v34 = vadd.f32 %v4319_v3, %v4318_v49  ;;  %5363 = vrcp.f32 %v11913_v7 }
 0x476   :  { %v5352_v40 = vpop.eup %5351  ;;  %5365 = vrcp.f32 %v10858_v37 }
 0x477   :  { %v4195_v59 = vmul.f32 0.6931472, %v5352_v40  ;;  %v4337_v57 = vpop.xlane.xlu0 %4336  ;;  %4411 = vadd.xlane.f32.xlu0 %v4410_v34  ;;  %v10928_v53 = vpop.xlane.xlu1 %4465  ;;  %v4320_v43 = vmul.f32 %v4256_v33, %v10820_v32  ;;  %v4321_v21 = vmul.f32 %v4257_v47, %v10822_v22  ;;  %5367 = vrcp.f32 %v11914_v6 }
 0x478   :  { %5369 = vrcp.f32 %v10860_v1 }
 0x479   :  { %v4258_v39 = vsub.f32 %v11907_v48, %v4195_v59  ;;  %v4259_v55 = vsub.f32 %v11908_v54, %v4195_v59  ;;  %v4413_v15 = vadd.f32 %v4321_v21, %v4320_v43  ;;  %5371 = vrcp.f32 %v10868_v9 }
 0x47a   :  { %v5354_v38 = vpop.eup %5353  ;;  %5373 = vrcp.f32 %v10872_v13 }
 0x47b   :  { %v4197_v14 = vmul.f32 0.6931472, %v5354_v38  ;;  %4414 = vadd.xlane.f32.xlu1 %v4413_v15  ;;  %v10934_v58 = vpop.xlane.xlu1 %4468  ;;  %v4322_v52 = vmul.f32 %v4258_v39, %v10831_v26  ;;  %v4323_v2 = vmul.f32 %v4259_v55, %v10833_v63  ;;  %v4340_v12 = vpop.xlane.xlu0 %4339  ;;  %5375 = vrcp.f32 %v10880_v16 }
 0x47c   :  { %5377 = vrcp.f32 %v10888_v5 }
 0x47d   :  { %v4260_v42 = vsub.f32 %v11909_v56, %v4197_v14  ;;  %v4261_v32 = vsub.f32 %v11910_v0, %v4197_v14  ;;  %v4416_v22 = vadd.f32 %v4323_v2, %v4322_v52  ;;  %5379 = vrcp.f32 %v10896_v17 }
 0x47e   :  { %5381 = vrcp.f32 %v10922_v20 }
 0x47f   :  { %4417 = vadd.xlane.f32.xlu0 %v4416_v22  ;;  %v10940_v51 = vpop.xlane.xlu1 %4471  ;;  %v4324_v23 = vmul.f32 %v4260_v42, %v10844_v45  ;;  %v4325_v11 = vmul.f32 %v4261_v32, %v10846_v41  ;;  %v4343_v26 = vpop.xlane.xlu0 %4342  ;;  %5383 = vrcp.f32 %v10928_v53 }
 0x480   :  { %v5356_v41 = vpop.eup %5355  ;;  %5385 = vrcp.f32 %v10934_v58 }
 0x481   :  { %v4419_v60 = vadd.f32 %v4325_v11, %v4324_v23  ;;  %v4551_v50 = vmul.f32 %v5356_v41, %v4331_v62  ;;  %v5358_v19 = vpop.eup %5357  ;;  %5387 = vrcp.f32 %v10940_v51 }
 0x482   :  { %v5360_v35 = vpop.eup %5359  ;;  %v4552_v4 = vmul.f32 %v5358_v19, %v4334_v61 }
 0x483   :  { %4420 = vadd.xlane.f32.xlu1 %v4419_v60  ;;  %v10946_v63 = vpop.xlane.xlu1 %4474  ;;  %v4346_v45 = vpop.xlane.xlu0 %4345  ;;  %v4583_v27 = vmul.f32 -0.5, %v4551_v50 }
 0x484   :  { %v5362_v28 = vpop.eup %5361  ;;  %v4584_v18 = vmul.f32 -0.5, %v4552_v4  ;;  %5389 = vrcp.f32 %v10946_v63 }
 0x485   :  { %v4553_v44 = vmul.f32 %v5362_v28, %v4337_v57  ;;  %v5364_v36 = vpop.eup %5363  ;;  %v4616_v1 = vsel %vm4614_vm0, %v4583_v27, 0.0 }
 0x486   :  { %v4554_v49 = vmul.f32 %v5364_v36, %v4340_v12  ;;  %v5366_v3 = vpop.eup %5365  ;;  %v4618_v34 = vsel %vm4614_vm0, %v4584_v18, 0.0 }
 0x487   :  { %v10951_v24 = vpop.xlane.xlu1 %4477  ;;  %v4349_v30 = vpop.xlane.xlu0 %4348  ;;  %v4585_v61 = vmul.f32 -0.5, %v4553_v44  ;;  %v4555_v33 = vmul.f32 %v5366_v3, %v4343_v26 }
 0x488   :  { %v5368_v8 = vpop.eup %5367  ;;  %v4586_v40 = vmul.f32 -0.5, %v4554_v49  ;;  %5391 = vrcp.f32 %v10951_v24 }
 0x489   :  { %v4556_v13 = vmul.f32 %v5368_v8, %v4346_v45  ;;  %v5370_v59 = vpop.eup %5369  ;;  %v4620_v43 = vsel %vm4614_vm0, %v4585_v61, 0.0  ;;  %v4587_v21 = vmul.f32 -0.5, %v4555_v33 }
 0x48a   :  { %v4557_v48 = vmul.f32 %v5370_v59, %v4349_v30  ;;  %v5372_v39 = vpop.eup %5371  ;;  %v4622_v15 = vsel %vm4614_vm0, %v4586_v40, 0.0 }
 0x48b   :  { %v10955_v31 = vpop.xlane.xlu1 %4480  ;;  %v4588_v38 = vmul.f32 -0.5, %v4556_v13  ;;  %v5374_v16 = vpop.eup %5373  ;;  %v4624_v2 = vsel %vm4614_vm0, %v4587_v21, 0.0 }
 0x48c   :  { %v4589_v56 = vmul.f32 -0.5, %v4557_v48  ;;  %v5376_v23 = vpop.eup %5375  ;;  %5393 = vrcp.f32 %v10955_v31 }
 0x48d   :  { %v4626_v32 = vsel %vm4614_vm0, %v4588_v38, 0.0  ;;  %v5378_v41 = vpop.eup %5377 }
 0x48e   :  { %v4628_v11 = vsel %vm4614_vm0, %v4589_v56, 0.0  ;;  %v5380_v40 = vpop.eup %5379 }
 0x48f   :  { %v4328_v10 = vpop.xlane.xlu1 %4327  ;;  %v4352_v25 = vpop.xlane.xlu0 %4351 }
 0x490   :  { %v4550_v37 = vmul.f32 %v5360_v35, %v4328_v10  ;;  %v4558_v14 = vmul.f32 %v5372_v39, %v4352_v25 }
 0x492   :  { %v4582_v62 = vmul.f32 -0.5, %v4550_v37  ;;  %v4590_v12 = vmul.f32 -0.5, %v4558_v14 }
 0x493   :  { %v4355_v55 = vpop.xlane.xlu0 %4354  ;;  %v4484_v44 = vpop.xlane.xlu1 %4483 }
 0x494   :  { %v4615_v9 = vsel %vm4614_vm0, %v4582_v62, 0.0  ;;  %v4559_v42 = vmul.f32 %v5374_v16, %v4355_v55  ;;  %v4630_v29 = vsel %vm4614_vm0, %v4590_v12, 0.0  ;;  %5395 = vrcp.f32 %v4484_v44 }
 0x495   :  { %v4617_v47 = vadd.f32 %v4616_v1, %v4615_v9 }
 0x496   :  { %v4591_v60 = vmul.f32 -0.5, %v4559_v42 }
 0x497   :  { %v4619_v57 = vadd.f32 %v4618_v34, %v4617_v47  ;;  %v4487_v36 = vpop.xlane.xlu1 %4486 }
 0x498   :  { %v4632_v6 = vsel %vm4614_vm0, %v4591_v60, 0.0  ;;  %5397 = vrcp.f32 %v4487_v36 }
 0x499   :  { %v4621_v54 = vadd.f32 %v4620_v43, %v4619_v57  ;;  %v5382_v43 = vpop.eup %5381 }
 0x49a   :  { %v5384_v20 = vpop.eup %5383 }
 0x49b   :  { %v4623_v52 = vadd.f32 %v4622_v15, %v4621_v54  ;;  %v4490_v49 = vpop.xlane.xlu1 %4489  ;;  %v5386_v58 = vpop.eup %5385 }
 0x49c   :  { %v5388_v55 = vpop.eup %5387  ;;  %5399 = vrcp.f32 %v4490_v49 }
 0x49d   :  { %v4625_v0 = vadd.f32 %v4624_v2, %v4623_v52  ;;  %v5390_v24 = vpop.eup %5389 }
 0x49e   :  { %v5392_v2 = vpop.eup %5391 }
 0x49f   :  { %v4627_v22 = vadd.f32 %v4626_v32, %v4625_v0  ;;  %v4358_v5 = vpop.xlane.xlu0 %4357  ;;  %v4493_v3 = vpop.xlane.xlu1 %4492 }
 0x4a0   :  { %v4560_v26 = vmul.f32 %v5376_v23, %v4358_v5  ;;  %5401 = vrcp.f32 %v4493_v3  ;;  %v5394_v23 = vpop.eup %5393 }
 0x4a1   :  { %v4629_v46 = vadd.f32 %v4628_v11, %v4627_v22 }
 0x4a2   :  { %v4592_v45 = vmul.f32 -0.5, %v4560_v26  ;;  %v5396_v26 = vpop.eup %5395 }
 0x4a3   :  { %v4631_v7 = vadd.f32 %v4630_v29, %v4629_v46  ;;  %v4361_v50 = vpop.xlane.xlu0 %4360  ;;  %v4496_v1 = vpop.xlane.xlu1 %4495 }
 0x4a4   :  { %v4634_v35 = vsel %vm4614_vm0, %v4592_v45, 0.0  ;;  %v4561_v4 = vmul.f32 %v5378_v41, %v4361_v50  ;;  %5403 = vrcp.f32 %v4496_v1  ;;  %v5398_v50 = vpop.eup %5397 }
 0x4a5   :  { %v4633_v19 = vadd.f32 %v4632_v6, %v4631_v7 }
 0x4a6   :  { %v4593_v30 = vmul.f32 -0.5, %v4561_v4 }
 0x4a7   :  { %v4635_v28 = vadd.f32 %v4634_v35, %v4633_v19  ;;  %v4499_v33 = vpop.xlane.xlu1 %4498 }
 0x4a8   :  { %v4636_v10 = vsel %vm4614_vm0, %v4593_v30, 0.0  ;;  %5405 = vrcp.f32 %v4499_v33 }
 0x4a9   :  { %v4637_v27 = vadd.f32 %v4636_v10, %v4635_v28  ;;  %v5400_v10 = vpop.eup %5399 }
 0x4aa   :  { %v5402_v49 = vpop.eup %5401 }
 0x4ab   :  { %v4502_v47 = vpop.xlane.xlu1 %4501 }
 0x4ac   :  { %5407 = vrcp.f32 %v4502_v47 }
 0x4af   :  { %v4364_v37 = vpop.xlane.xlu0 %4363  ;;  %v4505_v13 = vpop.xlane.xlu1 %4504 }
 0x4b0   :  { %v4562_v57 = vmul.f32 %v5380_v40, %v4364_v37  ;;  %5409 = vrcp.f32 %v4505_v13 }
 0x4b2   :  { %v4594_v21 = vmul.f32 -0.5, %v4562_v57 }
 0x4b3   :  { %v4367_v18 = vpop.xlane.xlu0 %4366  ;;  %v4508_v39 = vpop.xlane.xlu1 %4507 }
 0x4b4   :  { %v4563_v17 = vmul.f32 %v5382_v43, %v4367_v18  ;;  %v4638_v15 = vsel %vm4614_vm0, %v4594_v21, 0.0  ;;  %5411 = vrcp.f32 %v4508_v39 }
 0x4b5   :  { %v4639_v56 = vadd.f32 %v4638_v15, %v4637_v27 }
 0x4b6   :  { %v4595_v51 = vmul.f32 -0.5, %v4563_v17 }
 0x4b7   :  { %v4511_v42 = vpop.xlane.xlu1 %4510 }
 0x4b8   :  { %v4640_v16 = vsel %vm4614_vm0, %v4595_v51, 0.0  ;;  %5413 = vrcp.f32 %v4511_v42 }
 0x4b9   :  { %v4641_v11 = vadd.f32 %v4640_v16, %v4639_v56 }
 0x4bb   :  { %v4514_v19 = vpop.xlane.xlu1 %4513 }
 0x4bc   :  { %5415 = vrcp.f32 %v4514_v19 }
 0x4bf   :  { %v4370_v62 = vpop.xlane.xlu0 %4369  ;;  %v4517_v33 = vpop.xlane.xlu1 %4516 }
 0x4c0   :  { %v4564_v48 = vmul.f32 %v5384_v20, %v4370_v62  ;;  %5417 = vrcp.f32 %v4517_v33 }
 0x4c2   :  { %v4596_v38 = vmul.f32 -0.5, %v4564_v48 }
 0x4c3   :  { %v4373_v25 = vpop.xlane.xlu0 %4372 }
 0x4c4   :  { %v4565_v54 = vmul.f32 %v5386_v58, %v4373_v25  ;;  %v4642_v32 = vsel %vm4614_vm0, %v4596_v38, 0.0 }
 0x4c5   :  { %v4643_v29 = vadd.f32 %v4642_v32, %v4641_v11 }
 0x4c6   :  { %v4597_v31 = vmul.f32 -0.5, %v4565_v54 }
 0x4c8   :  { %v4644_v60 = vsel %vm4614_vm0, %v4597_v31, 0.0 }
 0x4c9   :  { %v4645_v35 = vadd.f32 %v4644_v60, %v4643_v29 }
 0x4cf   :  { %v4376_v61 = vpop.xlane.xlu0 %4375 }
 0x4d0   :  { %v4566_v14 = vmul.f32 %v5388_v55, %v4376_v61  ;;  %v5404_v61 = vpop.eup %5403 }
 0x4d1   :  { %v5406_v40 = vpop.eup %5405 }
 0x4d2   :  { %v4598_v12 = vmul.f32 -0.5, %v4566_v14  ;;  %v5408_v20 = vpop.eup %5407 }
 0x4d3   :  { %v4379_v9 = vpop.xlane.xlu0 %4378  ;;  %v5410_v51 = vpop.eup %5409 }
 0x4d4   :  { %v4567_v52 = vmul.f32 %v5390_v24, %v4379_v9  ;;  %v4646_v45 = vsel %vm4614_vm0, %v4598_v12, 0.0  ;;  %v5412_v38 = vpop.eup %5411 }
 0x4d5   :  { %v4647_v27 = vadd.f32 %v4646_v45, %v4645_v35 }
 0x4d6   :  { %v4599_v5 = vmul.f32 -0.5, %v4567_v52 }
 0x4d8   :  { %v4648_v4 = vsel %vm4614_vm0, %v4599_v5, 0.0 }
 0x4d9   :  { %v4649_v62 = vadd.f32 %v4648_v4, %v4647_v27 }
 0x4db   :  { %v4382_v8 = vpop.xlane.xlu0 %4381 }
 0x4dc   :  { %v4568_v22 = vmul.f32 %v5392_v2, %v4382_v8 }
 0x4de   :  { %v4600_v41 = vmul.f32 -0.5, %v4568_v22 }
 0x4df   :  { %v4385_v34 = vpop.xlane.xlu0 %4384 }
 0x4e0   :  { %v4569_v46 = vmul.f32 %v5394_v23, %v4385_v34  ;;  %v4650_v37 = vsel %vm4614_vm0, %v4600_v41, 0.0 }
 0x4e1   :  { %v4651_v9 = vadd.f32 %v4650_v37, %v4649_v62 }
 0x4e2   :  { %v4601_v28 = vmul.f32 -0.5, %v4569_v46 }
 0x4e3   :  { %v4388_v59 = vpop.xlane.xlu0 %4387 }
 0x4e4   :  { %v4570_v6 = vmul.f32 %v5396_v26, %v4388_v59  ;;  %v4652_v3 = vsel %vm4614_vm0, %v4601_v28, 0.0 }
 0x4e5   :  { %v4653_v13 = vadd.f32 %v4652_v3, %v4651_v9 }
 0x4e6   :  { %v4602_v36 = vmul.f32 -0.5, %v4570_v6 }
 0x4e7   :  { %v4391_v53 = vpop.xlane.xlu0 %4390 }
 0x4e8   :  { %v4571_v30 = vmul.f32 %v5398_v50, %v4391_v53  ;;  %v4654_v8 = vsel %vm4614_vm0, %v4602_v36, 0.0 }
 0x4e9   :  { %v4655_v53 = vadd.f32 %v4654_v8, %v4653_v13 }
 0x4ea   :  { %v4603_v25 = vmul.f32 -0.5, %v4571_v30 }
 0x4eb   :  { %v4394_v63 = vpop.xlane.xlu0 %4393 }
 0x4ec   :  { %v4572_v18 = vmul.f32 %v5400_v10, %v4394_v63  ;;  %v4656_v57 = vsel %vm4614_vm0, %v4603_v25, 0.0 }
 0x4ed   :  { %v4657_v54 = vadd.f32 %v4656_v57, %v4655_v53 }
 0x4ee   :  { %v4604_v47 = vmul.f32 -0.5, %v4572_v18 }
 0x4ef   :  { %v4397_v0 = vpop.xlane.xlu0 %4396 }
 0x4f0   :  { %v4573_v1 = vmul.f32 %v5402_v49, %v4397_v0  ;;  %v4658_v48 = vsel %vm4614_vm0, %v4604_v47, 0.0  ;;  %v5414_v0 = vpop.eup %5413 }
 0x4f1   :  { %v4659_v14 = vadd.f32 %v4658_v48, %v4657_v54  ;;  %v5416_v26 = vpop.eup %5415 }
 0x4f2   :  { %v4605_v43 = vmul.f32 -0.5, %v4573_v1  ;;  %v5418_v35 = vpop.eup %5417 }
 0x4f3   :  { %v4400_v7 = vpop.xlane.xlu0 %4399 }
 0x4f4   :  { %v4574_v34 = vmul.f32 %v5404_v61, %v4400_v7  ;;  %v4660_v55 = vsel %vm4614_vm0, %v4605_v43, 0.0 }
 0x4f5   :  { %v4661_v2 = vadd.f32 %v4660_v55, %v4659_v14 }
 0x4f6   :  { %v4606_v58 = vmul.f32 -0.5, %v4574_v34 }
 0x4f7   :  { %v4403_v44 = vpop.xlane.xlu0 %4402 }
 0x4f8   :  { %v4575_v17 = vmul.f32 %v5406_v40, %v4403_v44  ;;  %v4662_v16 = vsel %vm4614_vm0, %v4606_v58, 0.0 }
 0x4f9   :  { %v4663_v32 = vadd.f32 %v4662_v16, %v4661_v2 }
 0x4fa   :  { %v4607_v63 = vmul.f32 -0.5, %v4575_v17 }
 0x4fc   :  { %v4406_v59 = vpop.xlane.xlu0 %4405  ;;  %v4664_v56 = vsel %vm4614_vm0, %v4607_v63, 0.0 }
 0x4fd   :  { %v4576_v39 = vmul.f32 %v5408_v20, %v4406_v59  ;;  %v4665_v60 = vadd.f32 %v4664_v56, %v4663_v32 }
 0x4ff   :  { %v4608_v31 = vmul.f32 -0.5, %v4576_v39 }
 0x500   :  { %v4409_v21 = vpop.xlane.xlu1 %4408 }
 0x501   :  { %v4577_v15 = vmul.f32 %v5410_v51, %v4409_v21  ;;  %v4666_v22 = vsel %vm4614_vm0, %v4608_v31, 0.0 }
 0x502   :  { %v4667_v29 = vadd.f32 %v4666_v22, %v4665_v60 }
 0x503   :  { %v4609_v42 = vmul.f32 -0.5, %v4577_v15 }
 0x504   :  { %v4412_v24 = vpop.xlane.xlu0 %4411 }
 0x505   :  { %v4578_v52 = vmul.f32 %v5412_v38, %v4412_v24  ;;  %v4668_v5 = vsel %vm4614_vm0, %v4609_v42, 0.0 }
 0x506   :  { %v4669_v6 = vadd.f32 %v4668_v5, %v4667_v29 }
 0x507   :  { %v4610_v23 = vmul.f32 -0.5, %v4578_v52 }
 0x508   :  { %v4415_v12 = vpop.xlane.xlu1 %4414 }
 0x509   :  { %v4579_v11 = vmul.f32 %v5414_v0, %v4415_v12  ;;  %v4670_v45 = vsel %vm4614_vm0, %v4610_v23, 0.0 }
 0x50a   :  { %v4671_v4 = vadd.f32 %v4670_v45, %v4669_v6 }
 0x50b   :  { %v4611_v46 = vmul.f32 -0.5, %v4579_v11 }
 0x50c   :  { %v4418_v7 = vpop.xlane.xlu0 %4417 }
 0x50d   :  { %v4580_v41 = vmul.f32 %v5416_v26, %v4418_v7  ;;  %v4672_v50 = vsel %vm4614_vm0, %v4611_v46, 0.0 }
 0x50e   :  { %v4673_v27 = vadd.f32 %v4672_v50, %v4671_v4 }
 0x50f   :  { %v4612_v19 = vmul.f32 -0.5, %v4580_v41 }
 0x510   :  { %v4421_v28 = vpop.xlane.xlu1 %4420 }
 0x511   :  { %v4674_v30 = vsel %vm4614_vm0, %v4612_v19, 0.0  ;;  %v4581_v10 = vmul.f32 %v5418_v35, %v4421_v28 }
 0x512   :  { %v4675_v37 = vadd.f32 %v4674_v30, %v4673_v27 }
 0x513   :  { %v4613_v44 = vmul.f32 -0.5, %v4581_v10 }
 0x515   :  { %v4676_v36 = vsel %vm4614_vm0, %v4613_v44, 0.0 }
 0x516   :  { %v4677_v18 = vadd.f32 %v4676_v36, %v4675_v37 }
 0x518   :  { %4678 = vadd.xlane.f32.xlu0 %v4677_v18 }
 0x5a5   :  { %v4679_v49 = vpop.xlane.xlu0 %4678 }
 0x5a6   :  { %v4680_v62 = vrot.slane %v4679_v49, 4 }
 0x5a8   :  { %v4681_v3 = vadd.f32 %v4680_v62, %v4679_v49 }
 0x5aa   :  { %v4682_v25 = vrot.slane %v4681_v3, 2 }
 0x5ac   :  { %v4683_v1 = vadd.f32 %v4682_v25, %v4681_v3 }
 0x5ae   :  { %v4684_v61 = vrot.slane %v4683_v1, 1 }
 0x5b0   :  { %v4685_v33 = vadd.f32 %v4684_v61, %v4683_v1 }
 0x5b2   :  { %4967 = vpush %v4685_v33 }
 0x5e3   :  { %s4968_s4 = spop %4967 }
 0x5e4   :  { %s4689_s5 = smul.f32 0.00390625, %s4968_s4 }
 0x5e6   :  { %v4690_v9 = vstv %s4689_s5 }
 0x5e7   :  { %4692 = vst.msk [vmem:[#allocation3] sm:$0x1] %vm4691_vm1, %v4690_v9 }
 0x5e8   :  { %5686 = shalt.err (!%p5683_p4)
}
 0x5e9   :  { %s5687_s10 = scalar_lea.hbm %s11016_s2, 16 }
 0x5ea   :  { %p5688_p5 = scmp.ne.s32.totalorder %s11016_s2, %s5687_s10  ;;  %p5691_p6 = scmp.lt.u32.totalorder %s5687_s10, %s11016_s2 }
 0x5ec   :  { %p5693_p7 = pnand %p5691_p6, %p5688_p5 }
 0x5ee   :  { %5696 = shalt.err (!%p5693_p7)
}
 0x5ef   :  { %4702 = dma.vmem_to_hbm [thread:$0]  %s4700_s3, 16, %s11016_s2, [#allocation4]  }
 0x5f0   :  { %5697 = dma.done.wait [#allocation4], 16  }
 0x5f1   :  { %5698 = vsyncadd [#allocation4], 4294967280 }
 0x5f2   :  { %4706 = vsyncpa [#allocation4], 1 }

// kernel: graph_con_loss.3
= control target key start
LH: loop header
LB: loop body
LE: loop exit
PB: predicated region body
PF: predicated region fallthrough
CT: control target
= control target key end

     0   :  { %8 = vsyncpa [#allocation4], 0  ;;  %s5372_s0 = inlined_call_operand.vmem [shape: bf16[256,512], index: 0, kind: input, shape index: {}]   ;;  %s5373_s1 = inlined_call_operand.hbm [shape: bf16[512,2048], index: 1, kind: input, shape index: {}]   ;;  %s5374_s2 = inlined_call_operand.hbm [shape: f32[1,2048], index: 2, kind: input, shape index: {}]   ;;  %s5375_s3 = inlined_call_operand.vmem [shape: f32[256,2048], index: 3, kind: output, shape index: {}]  }
   0x1   :  { %10 = vsyncpa [#allocation4 + $0x1], 0 }
   0x2   :  { %11 = vsyncpa [#allocation6], 0 }
   0x3   :  { %13 = vsyncpa [#allocation6 + $0x1], 0  ;;  %s4342_s12 = smov 0   ;;  %s4344_s13 = smov 0  }
   0x4   :  { %s4346_s14 = smov 0   ;;  %s4348_s15 = smov 0  }
   0x5   :  { %s4350_s16 = smov 0   ;;  %s4352_s17 = smov 0  }
   0x6 LB: > { %s3507_s18 = sadd.s32 4294967295, %s4315_s17   ;;  %s31_s19 = sadd.s32 1, %s4311_s16  ;;  %s4315_s17 = sphi %s4352_s17, %s19_s17   ;;  %s4311_s16 = sphi %s4350_s16, %s5390_s16   ;;  %s4307_s15 = sphi %s4348_s15, %s5389_s15   ;;  %s4303_s14 = sphi %s4346_s14, %s5388_s14   ;;  %s4299_s13 = sphi %s4344_s13, %s5387_s13   ;;  %s4295_s12 = sphi %s4342_s12, %s5386_s12  }
   0x7   : > { %p33_p0 = scmp.ge.s32.totalorder %s31_s19, 4  ;;  %s66_s20 = sadd.s32 1, %s4303_s14 }
   0x8   : > { %p73_p1 = scmp.ne.s32.totalorder %s4303_s14, %s4299_s13  ;;  %p74_p2 = scmp.eq.s32.totalorder %s4315_s17, 0 }
   0x9   : > { %s5392_s19 = smov (%p33_p0, %s31_s19), 0  ;;  %p79_p4 = scmp.ne.s32.totalorder %s4299_s13, %s4295_s12 }
   0xa   : > { %p4378_p3 = por %p74_p2, %p73_p1  ;;  %s62_s22 = ssub.s32 %s4311_s16, %s5392_s19 }
   0xb   : > { %p80_p5 = scmp.eq.s32.totalorder %s3507_s18, 0  ;;  %p64_p6 = scmp.eq.s32.totalorder %s62_s22, 0 }
   0xc   : > { %p129_p7 = scmp.eq.s32.totalorder %s3507_s18, 3  ;;  %p3861_p10 = scmp.lt.s32.totalorder %s4315_s17, 4 }
   0xd   : > { %p4385_p8 = por %p80_p5, %p79_p4  ;;  %s4398_s26 = sand.u32 1, %s4303_s14  }
   0xe   : > { %s4390_s24 = scalar_select %p64_p6, %s4303_s14, %s66_s20  }
   0xf   : > { %s5378_s23 = scalar_select %p4385_p8, 1, 0 }
  0x10   : > { %p4392_p9 = por %p129_p7, %p73_p1  ;;  %s3719_s27 = sshll.u32 %s4311_s16, 8 }
  0x11   : > { %s3512_s28 = sshll.u32 %s4398_s26, 10  ;;  %s4405_s4 = scalar_lea.hbm %s5373_s1, %s3719_s27 }
  0x12   : > { %s5379_s25 = scalar_select %p4392_p9, 1, 0 }
  0x13   : > { %s168_s5 = scalar_lea.vmem [#allocation3], %s3512_s28  ;;  %p4409_p11 = pnand %p3861_p10, %p4378_p3 }
  0x14   : > { %s178_s6 = sshll.u32 %s168_s5, 4  ;;  %s165_s8 = scalar_lea.sflag [#allocation4], %s4398_s26  ;;  %s4413_s6 = int_to_ptr.vmem [resolvable:$true] %s178_s6 }
  0x15   : > { %s4201_s9 = scalar_lea.hbm %s4405_s4, 16384  ;;  %p4203_p0 = pneg %p4409_p11 }
  0x16   : > { %p4202_p13 = scmp.ne.s32.totalorder %s4405_s4, %s4201_s9  ;;  %s4206_s12 = scalar_lea.hbm %s5373_s1, 65536 }
  0x17   : > { %p4207_p3 = scmp.lt.u32.totalorder %s4405_s4, %s5373_s1  ;;  %p4208_p4 = scmp.lt.u32.totalorder %s4206_s12, %s4201_s9 }
  0x18   : > { %p4204_p1 = pnand %p4203_p0, %p4202_p13  ;;  %p4210_p6 = scmp.lt.u32.totalorder %s4201_s9, %s4405_s4 }
  0x19   : > { %p4209_p5 = por %p4208_p4, %p4207_p3 }
  0x1a   : > { %p4205_p2 = pneg %p4204_p1 }
  0x1b   : > { %p4211_p7 = por %p4210_p6, %p4209_p5 }
  0x1d   : > { %p4212_p10 = pnand %p4211_p7, %p4205_p2 }
  0x1f   : > { %4215 = shalt.err (!%p4212_p10)
}
  0x20   : > { %s4216_s21 = scalar_lea.vmem %s4413_s6, 16384  ;;  %s4317_s22 = smov [#allocation3]  }
  0x21   : > { %p4217_p13 = scmp.ne.s32.totalorder %s4413_s6, %s4216_s21  ;;  %s4221_s27 = sshll.u32 %s4317_s22, 4  ;;  %s4222_s27 = int_to_ptr.vmem [resolvable:$false] %s4221_s27 }
  0x22   : > { %s4223_s28 = scalar_lea.vmem %s4222_s27, 32768  ;;  %p4224_p9 = scmp.lt.s32.totalorder %s4413_s6, %s4222_s27 }
  0x23   : > { %p4219_p1 = pnand %p4217_p13, %p4203_p0  ;;  %p4225_p3 = scmp.lt.s32.totalorder %s4223_s28, %s4216_s21 }
  0x25   : > { %p4220_p12 = pneg %p4219_p1  ;;  %p4226_p4 = por %p4225_p3, %p4224_p9 }
  0x27   : > { %p4227_p5 = pnand %p4226_p4, %p4220_p12 }
  0x29   : > { %4230 = shalt.err (!%p4227_p5)
}
  0x2a   : > { %s4318_s29 = smov 1024   ;;  %s4319_s30 = smov 256  }
  0x2b   : > { %s4320_s5 = smov 16   ;;  %p205_p2 = scmp.lt.s32.totalorder %s4315_s17, 5 }
  0x2c   : > { %3857 = dma.hbm_to_vmem [thread:$0]  (!%p4409_p11), %s4405_s4, 16384, %s4413_s6, %s165_s8, %s4318_s29, %s4319_s30, %s4320_s5  }
  0x2d   : > { %s3515_s9 = sshll.u32 %s4398_s26, 2  ;;  %s3720_s10 = sshll.u32 %s4311_s16, 6 }
  0x2e   : > { %p5381_p9 = scmp.ge.s32.totalorder %s4315_s17, 1  ;;  %s4456_s20 = scalar_lea.hbm %s5374_s2, %s3720_s10 }
  0x2f   : > { %s192_s21 = scalar_lea.vmem [#allocation5], %s3515_s9  ;;  %s189_s4 = scalar_lea.sflag [#allocation6], %s4398_s26 }
  0x30   : > { %p4449_p12 = pnand %p5381_p9, %p205_p2  ;;  %s200_s22 = sshll.u32 %s192_s21, 4  ;;  %s201_s22 = int_to_ptr.vmem [resolvable:$true] %s200_s22 }
  0x31   : > { %s4231_s6 = scalar_lea.hbm %s4456_s20, 64  ;;  %s4236_s28 = scalar_lea.hbm %s5374_s2, 256 }
  0x32   : > { %s5382_s11 = scalar_select %p4449_p12, 1, 0 }
  0x33   : > { %p4232_p6 = scmp.ne.s32.totalorder %s4456_s20, %s4231_s6  ;;  %p4237_p13 = scmp.lt.u32.totalorder %s4456_s20, %s5374_s2 }
  0x34   : > { %p4238_p1 = scmp.lt.u32.totalorder %s4236_s28, %s4231_s6  ;;  %p4240_p4 = scmp.lt.u32.totalorder %s4231_s6, %s4456_s20 }
  0x35   : > { %p4234_p7 = pnand %p4232_p6, %p4203_p0 }
  0x36   : > { %p4239_p3 = por %p4238_p1, %p4237_p13 }
  0x37   : > { %p4235_p10 = pneg %p4234_p7 }
  0x38   : > { %p4241_p5 = por %p4240_p4, %p4239_p3 }
  0x3a   : > { %p4242_p2 = pnand %p4241_p5, %p4235_p10 }
  0x3c   : > { %4245 = shalt.err (!%p4242_p2)
}
  0x3d   : > { %s4246_s26 = scalar_lea.vmem %s201_s22, 64  ;;  %s4321_s5 = smov [#allocation5]  }
  0x3e   : > { %p4247_p9 = scmp.ne.s32.totalorder %s201_s22, %s4246_s26  ;;  %s4251_s9 = sshll.u32 %s4321_s5, 4  ;;  %s4252_s9 = int_to_ptr.vmem [resolvable:$false] %s4251_s9 }
  0x3f   : > { %s4253_s10 = scalar_lea.vmem %s4252_s9, 128  ;;  %p4254_p8 = scmp.lt.s32.totalorder %s201_s22, %s4252_s9 }
  0x40   : > { %p4249_p6 = pnand %p4247_p9, %p4203_p0  ;;  %p4255_p12 = scmp.lt.s32.totalorder %s4253_s10, %s4246_s26 }
  0x42   : > { %p4250_p7 = pneg %p4249_p6  ;;  %p4256_p1 = por %p4255_p12, %p4254_p8 }
  0x44   : > { %p4257_p13 = pnand %p4256_p1, %p4250_p7 }
  0x46   : > { %4260 = shalt.err (!%p4257_p13)
}
  0x47   : > { %3860 = dma.hbm_to_vmem [thread:$0]  (!%p4409_p11), %s4456_s20, 64, %s201_s22, %s189_s4  }
  0x48   : > { %p5383_p10 = scmp.ne.s32.totalorder %s5382_s11, 0 }
  0x49   : > { %s4481_s12 = sand.u32 (!%p5383_p10), 1, %s4299_s13   ;;  %p5384_p8 = scmp.ne.s32.totalorder (!%p5383_p10), %s5378_s23, 0 }
  0x4a   : > { %209 = sbr.rel (%p5383_p10) target bundleno = 668 (0x29c), region = 32  ;;  %s3519_s18 = sshll.u32 (!%p5383_p10), %s4481_s12, 10 }
  0x4b   : > { %s212_s21 = scalar_lea.sflag (!%p5383_p10), [#allocation4], %s4481_s12  ;;  %s4487_s6 = scalar_lea.vmem (!%p5383_p10), [#allocation3], %s3519_s18 }
  0x51   : > { %4286 = dma.done.wait (%p5384_p8), %s212_s21, 16384  }
  0x52   : > { %4288 = vsyncadd (%p5384_p8), %s212_s21, 4294950912  ;;  %s3520_s7 = sshll.u32 %s4481_s12, 2  ;;  %s221_s11 = scalar_lea.sflag [#allocation6], %s4481_s12 }
  0x53   : > { %s4495_s20 = scalar_lea.vmem [#allocation5], %s3520_s7 }
  0x54   : > { %4290 = dma.done.wait (%p5384_p8), %s221_s11, 64  }
  0x55   : > { %4292 = vsyncadd (%p5384_p8), %s221_s11, 4294967232  ;;  %v3913_v0 = vld [vmem:[%s4487_s6 + $0x4] ss:$16 sps:$4 sm:$0xff]   ;;  %v3915_v1 = vld [vmem:[%s4487_s6 + $0xc] ss:$16 sps:$4 sm:$0xff]   ;;  %p5385_p11 = scmp.ne.s32.totalorder %s5379_s25, 0 }
  0x56   : > { %1678 = vmatprep.subr.bf16.mxu0 %v3913_v0  ;;  %v3917_v2 = vld [vmem:[%s4487_s6] ss:$16 sps:$4 sm:$0xff]   ;;  %v3918_v3 = vld [vmem:[%s4487_s6 + $0x8] ss:$16 sps:$4 sm:$0xff]   ;;  %2064 = vmatprep.subr.bf16.mxu1 %v3915_v1  ;;  %v3919_v4 = vld [vmem:[%s4487_s6 + $0x24] ss:$16 sps:$4 sm:$0xff]  }
  0x57   : > { %1679 = vmatpush1.bf16.msra.mxu0 %v3917_v2  ;;  %2065 = vmatpush1.bf16.msra.mxu1 %v3918_v3  ;;  %v3921_v5 = vld [vmem:[%s4487_s6 + $0x2c] ss:$16 sps:$4 sm:$0xff]   ;;  %v3923_v6 = vld [vmem:[%s4487_s6 + $0x20] ss:$16 sps:$4 sm:$0xff]   ;;  %v3924_v7 = vld [vmem:[%s4487_s6 + $0x28] ss:$16 sps:$4 sm:$0xff]  }
  0x58   : > { %1680 = vmatprep.subr.bf16.mxu0 %v3919_v4  ;;  %2066 = vmatprep.subr.bf16.mxu1 %v3921_v5  ;;  %v3925_v8 = vld [vmem:[%s4487_s6 + $0x44] ss:$16 sps:$4 sm:$0xff]   ;;  %v3927_v9 = vld [vmem:[%s4487_s6 + $0x4c] ss:$16 sps:$4 sm:$0xff]   ;;  %v3929_v10 = vld [vmem:[%s4487_s6 + $0x40] ss:$16 sps:$4 sm:$0xff]  }
  0x59   : > { %v3930_v11 = vld [vmem:[%s4487_s6 + $0x48] ss:$16 sps:$4 sm:$0xff]   ;;  %v3931_v12 = vld [vmem:[%s4487_s6 + $0x64] ss:$16 sps:$4 sm:$0xff]   ;;  %v3933_v13 = vld [vmem:[%s4487_s6 + $0x6c] ss:$16 sps:$4 sm:$0xff]  }
  0x5a   : > { %v3935_v14 = vld [vmem:[%s4487_s6 + $0x60] ss:$16 sps:$4 sm:$0xff]   ;;  %v3936_v15 = vld [vmem:[%s4487_s6 + $0x68] ss:$16 sps:$4 sm:$0xff]   ;;  %v3937_v16 = vld [vmem:[%s4487_s6 + $0x84] ss:$16 sps:$4 sm:$0xff]  }
  0x5b   : > { %1681 = vmatpush1.bf16.msra.mxu0 %v3923_v6  ;;  %2067 = vmatpush1.bf16.msra.mxu1 %v3924_v7  ;;  %v3939_v17 = vld [vmem:[%s4487_s6 + $0x8c] ss:$16 sps:$4 sm:$0xff]   ;;  %v3941_v18 = vld [vmem:[%s4487_s6 + $0x80] ss:$16 sps:$4 sm:$0xff]   ;;  %v3942_v19 = vld [vmem:[%s4487_s6 + $0x88] ss:$16 sps:$4 sm:$0xff]  }
  0x5c   : > { %1682 = vmatprep.subr.bf16.mxu0 %v3925_v8  ;;  %2068 = vmatprep.subr.bf16.mxu1 %v3927_v9  ;;  %v3943_v20 = vld [vmem:[%s4487_s6 + $0xa4] ss:$16 sps:$4 sm:$0xff]   ;;  %v3945_v21 = vld [vmem:[%s4487_s6 + $0xac] ss:$16 sps:$4 sm:$0xff]   ;;  %v3947_v22 = vld [vmem:[%s4487_s6 + $0xa0] ss:$16 sps:$4 sm:$0xff]  }
  0x5d   : > { %v3948_v23 = vld [vmem:[%s4487_s6 + $0xa8] ss:$16 sps:$4 sm:$0xff]   ;;  %v3949_v24 = vld [vmem:[%s4487_s6 + $0xc4] ss:$16 sps:$4 sm:$0xff]   ;;  %v3951_v25 = vld [vmem:[%s4487_s6 + $0xcc] ss:$16 sps:$4 sm:$0xff]  }
  0x5e   : > { %v3953_v26 = vld [vmem:[%s4487_s6 + $0xc0] ss:$16 sps:$4 sm:$0xff]   ;;  %v3954_v27 = vld [vmem:[%s4487_s6 + $0xc8] ss:$16 sps:$4 sm:$0xff]   ;;  %v3955_v28 = vld [vmem:[%s4487_s6 + $0xe4] ss:$16 sps:$4 sm:$0xff]  }
  0x5f   : > { %1683 = vmatpush1.bf16.msra.mxu0 %v3929_v10  ;;  %2069 = vmatpush1.bf16.msra.mxu1 %v3930_v11  ;;  %v3957_v29 = vld [vmem:[%s4487_s6 + $0xec] ss:$16 sps:$4 sm:$0xff]   ;;  %v3959_v30 = vld [vmem:[%s4487_s6 + $0xe0] ss:$16 sps:$4 sm:$0xff]   ;;  %v3960_v31 = vld [vmem:[%s4487_s6 + $0xe8] ss:$16 sps:$4 sm:$0xff]  }
  0x60   : > { %1684 = vmatprep.subr.bf16.mxu0 %v3931_v12  ;;  %2070 = vmatprep.subr.bf16.mxu1 %v3933_v13  ;;  %v3961_v32 = vld [vmem:[%s4487_s6 + $0x104] ss:$16 sps:$4 sm:$0xff]   ;;  %v3963_v33 = vld [vmem:[%s4487_s6 + $0x10c] ss:$16 sps:$4 sm:$0xff]   ;;  %v3965_v34 = vld [vmem:[%s4487_s6 + $0x100] ss:$16 sps:$4 sm:$0xff]  }
  0x61   : > { %v3966_v35 = vld [vmem:[%s4487_s6 + $0x108] ss:$16 sps:$4 sm:$0xff]   ;;  %v3967_v36 = vld [vmem:[%s4487_s6 + $0x124] ss:$16 sps:$4 sm:$0xff]   ;;  %v3969_v37 = vld [vmem:[%s4487_s6 + $0x12c] ss:$16 sps:$4 sm:$0xff]  }
  0x62   : > { %v3971_v38 = vld [vmem:[%s4487_s6 + $0x120] ss:$16 sps:$4 sm:$0xff]   ;;  %v3972_v39 = vld [vmem:[%s4487_s6 + $0x128] ss:$16 sps:$4 sm:$0xff]   ;;  %v3973_v40 = vld [vmem:[%s4487_s6 + $0x144] ss:$16 sps:$4 sm:$0xff]  }
  0x63   : > { %1685 = vmatpush1.bf16.msra.mxu0 %v3935_v14  ;;  %2071 = vmatpush1.bf16.msra.mxu1 %v3936_v15  ;;  %v3975_v41 = vld [vmem:[%s4487_s6 + $0x14c] ss:$16 sps:$4 sm:$0xff]   ;;  %v3977_v42 = vld [vmem:[%s4487_s6 + $0x140] ss:$16 sps:$4 sm:$0xff]   ;;  %v3978_v43 = vld [vmem:[%s4487_s6 + $0x148] ss:$16 sps:$4 sm:$0xff]  }
  0x64   : > { %1686 = vmatprep.subr.bf16.mxu0 %v3937_v16  ;;  %2072 = vmatprep.subr.bf16.mxu1 %v3939_v17  ;;  %v3979_v44 = vld [vmem:[%s4487_s6 + $0x164] ss:$16 sps:$4 sm:$0xff]   ;;  %v3981_v45 = vld [vmem:[%s4487_s6 + $0x16c] ss:$16 sps:$4 sm:$0xff]   ;;  %v3983_v46 = vld [vmem:[%s4487_s6 + $0x160] ss:$16 sps:$4 sm:$0xff]  }
  0x65   : > { %v3984_v47 = vld [vmem:[%s4487_s6 + $0x168] ss:$16 sps:$4 sm:$0xff]   ;;  %v4011_v48 = vld [vmem:[%s5372_s0 + $0x4] ss:$16 sps:$4 sm:$0xff]   ;;  %v3987_v50 = vld [vmem:[%s4487_s6 + $0x18c] ss:$16 sps:$4 sm:$0xff]  }
  0x66   : > { %v3985_v49 = vld [vmem:[%s4487_s6 + $0x184] ss:$16 sps:$4 sm:$0xff]   ;;  %1710 = vmatprep.mubr.bf16.mxu0 %v4011_v48  ;;  %2096 = vmatprep.mubr.bf16.mxu1 %v4011_v48  ;;  %v3989_v51 = vld [vmem:[%s4487_s6 + $0x180] ss:$16 sps:$4 sm:$0xff]   ;;  %v3990_v52 = vld [vmem:[%s4487_s6 + $0x188] ss:$16 sps:$4 sm:$0xff]  }
  0x67   : > { %1687 = vmatpush1.bf16.msra.mxu0 %v3941_v18  ;;  %2073 = vmatpush1.bf16.msra.mxu1 %v3942_v19  ;;  %v3991_v53 = vld [vmem:[%s4487_s6 + $0x1a4] ss:$16 sps:$4 sm:$0xff]   ;;  %v3993_v54 = vld [vmem:[%s4487_s6 + $0x1ac] ss:$16 sps:$4 sm:$0xff]   ;;  %v3995_v55 = vld [vmem:[%s4487_s6 + $0x1a0] ss:$16 sps:$4 sm:$0xff]  }
  0x68   : > { %1688 = vmatprep.subr.bf16.mxu0 %v3943_v20  ;;  %2074 = vmatprep.subr.bf16.mxu1 %v3945_v21  ;;  %v3996_v56 = vld [vmem:[%s4487_s6 + $0x1a8] ss:$16 sps:$4 sm:$0xff]   ;;  %v3997_v57 = vld [vmem:[%s4487_s6 + $0x1c4] ss:$16 sps:$4 sm:$0xff]   ;;  %v3999_v58 = vld [vmem:[%s4487_s6 + $0x1cc] ss:$16 sps:$4 sm:$0xff]  }
  0x69   : > { %v4001_v59 = vld [vmem:[%s4487_s6 + $0x1c0] ss:$16 sps:$4 sm:$0xff]   ;;  %v4002_v60 = vld [vmem:[%s4487_s6 + $0x1c8] ss:$16 sps:$4 sm:$0xff]   ;;  %v4003_v61 = vld [vmem:[%s4487_s6 + $0x1e4] ss:$16 sps:$4 sm:$0xff]  }
  0x6a   : > { %v4005_v62 = vld [vmem:[%s4487_s6 + $0x1ec] ss:$16 sps:$4 sm:$0xff]   ;;  %v4007_v63 = vld [vmem:[%s4487_s6 + $0x1e0] ss:$16 sps:$4 sm:$0xff]   ;;  %v4008_v0 = vld [vmem:[%s4487_s6 + $0x1e8] ss:$16 sps:$4 sm:$0xff]  }
  0x6b   : > { %1689 = vmatpush1.bf16.msra.mxu0 %v3947_v22  ;;  %2075 = vmatpush1.bf16.msra.mxu1 %v3948_v23  ;;  %v4014_v1 = vld [vmem:[%s4487_s6 + $0x204] ss:$16 sps:$4 sm:$0xff]   ;;  %v4017_v2 = vld [vmem:[%s4487_s6 + $0x20c] ss:$16 sps:$4 sm:$0xff]   ;;  %v4009_v3 = vld [vmem:[%s5372_s0] ss:$16 sps:$4 sm:$0xff]  }
  0x6c   : > { %1690 = vmatprep.subr.bf16.mxu0 %v3949_v24  ;;  %2076 = vmatprep.subr.bf16.mxu1 %v3951_v25  ;;  %v4012_v4 = vld [vmem:[%s4487_s6 + $0x200] ss:$16 sps:$4 sm:$0xff]   ;;  %v4015_v5 = vld [vmem:[%s4487_s6 + $0x208] ss:$16 sps:$4 sm:$0xff]   ;;  %v4018_v6 = vld [vmem:[%s5372_s0 + $0x24] ss:$16 sps:$4 sm:$0xff]  }
  0x6d   : > { %v4023_v7 = vld [vmem:[%s4487_s6 + $0x224] ss:$16 sps:$4 sm:$0xff]   ;;  %v4026_v8 = vld [vmem:[%s4487_s6 + $0x22c] ss:$16 sps:$4 sm:$0xff]   ;;  %v4021_v9 = vld [vmem:[%s4487_s6 + $0x220] ss:$16 sps:$4 sm:$0xff]  }
  0x6e   : > { %v4024_v10 = vld [vmem:[%s4487_s6 + $0x228] ss:$16 sps:$4 sm:$0xff]   ;;  %v4032_v11 = vld [vmem:[%s4487_s6 + $0x244] ss:$16 sps:$4 sm:$0xff]   ;;  %v4035_v12 = vld [vmem:[%s4487_s6 + $0x24c] ss:$16 sps:$4 sm:$0xff]  }
  0x6f   : > { %1691 = vmatpush1.bf16.msra.mxu0 %v3953_v26  ;;  %2077 = vmatpush1.bf16.msra.mxu1 %v3954_v27  ;;  %v4020_v13 = vld [vmem:[%s5372_s0 + $0x20] ss:$16 sps:$4 sm:$0xff]   ;;  %v4027_v14 = vld [vmem:[%s5372_s0 + $0x44] ss:$16 sps:$4 sm:$0xff]   ;;  %v4033_v16 = vld [vmem:[%s4487_s6 + $0x248] ss:$16 sps:$4 sm:$0xff]  }
  0x70   : > { %1692 = vmatprep.subr.bf16.mxu0 %v3955_v28  ;;  %2078 = vmatprep.subr.bf16.mxu1 %v3957_v29  ;;  %v4030_v15 = vld [vmem:[%s4487_s6 + $0x240] ss:$16 sps:$4 sm:$0xff]   ;;  %v4041_v17 = vld [vmem:[%s4487_s6 + $0x264] ss:$16 sps:$4 sm:$0xff]   ;;  %v4044_v18 = vld [vmem:[%s4487_s6 + $0x26c] ss:$16 sps:$4 sm:$0xff]  }
  0x71   : > { %v4039_v19 = vld [vmem:[%s4487_s6 + $0x260] ss:$16 sps:$4 sm:$0xff]   ;;  %v4042_v20 = vld [vmem:[%s4487_s6 + $0x268] ss:$16 sps:$4 sm:$0xff]   ;;  %v4050_v21 = vld [vmem:[%s4487_s6 + $0x284] ss:$16 sps:$4 sm:$0xff]  }
  0x72   : > { %v4053_v22 = vld [vmem:[%s4487_s6 + $0x28c] ss:$16 sps:$4 sm:$0xff]   ;;  %v4029_v23 = vld [vmem:[%s5372_s0 + $0x40] ss:$16 sps:$4 sm:$0xff]   ;;  %v4036_v24 = vld [vmem:[%s5372_s0 + $0x64] ss:$16 sps:$4 sm:$0xff]  }
  0x73   : > { %1693 = vmatpush1.bf16.msra.mxu0 %v3959_v30  ;;  %2079 = vmatpush1.bf16.msra.mxu1 %v3960_v31  ;;  %v4048_v25 = vld [vmem:[%s4487_s6 + $0x280] ss:$16 sps:$4 sm:$0xff]   ;;  %v4051_v26 = vld [vmem:[%s4487_s6 + $0x288] ss:$16 sps:$4 sm:$0xff]   ;;  %v4059_v27 = vld [vmem:[%s4487_s6 + $0x2a4] ss:$16 sps:$4 sm:$0xff]  }
  0x74   : > { %1694 = vmatprep.subr.bf16.mxu0 %v3961_v32  ;;  %2080 = vmatprep.subr.bf16.mxu1 %v3963_v33  ;;  %v4062_v28 = vld [vmem:[%s4487_s6 + $0x2ac] ss:$16 sps:$4 sm:$0xff]   ;;  %v4057_v29 = vld [vmem:[%s4487_s6 + $0x2a0] ss:$16 sps:$4 sm:$0xff]   ;;  %v4060_v30 = vld [vmem:[%s4487_s6 + $0x2a8] ss:$16 sps:$4 sm:$0xff]  }
  0x75   : > { %v4068_v31 = vld [vmem:[%s4487_s6 + $0x2c4] ss:$16 sps:$4 sm:$0xff]   ;;  %v4071_v32 = vld [vmem:[%s4487_s6 + $0x2cc] ss:$16 sps:$4 sm:$0xff]   ;;  %v4038_v33 = vld [vmem:[%s5372_s0 + $0x60] ss:$16 sps:$4 sm:$0xff]  }
  0x76   : > { %v4098_v48 = vld [vmem:[%s4487_s6 + $0x32c] ss:$16 sps:$4 sm:$0xff]   ;;  %s3721_s12 = sshll.u32 (%p5385_p11), %s4307_s15, 5 }
  0x77   : > { %1695 = vmatpush1.bf16.msra.mxu0 %v3965_v34  ;;  %2081 = vmatpush1.bf16.msra.mxu1 %v3966_v35  ;;  %v4045_v34 = vld [vmem:[%s5372_s0 + $0x84] ss:$16 sps:$4 sm:$0xff]   ;;  %v4066_v35 = vld [vmem:[%s4487_s6 + $0x2c0] ss:$16 sps:$4 sm:$0xff]   ;;  %s5099_s8 = scalar_lea.vmem (%p5385_p11), %s5375_s3, %s3721_s12 }
  0x78   : > { %1696 = vmatprep.subr.bf16.mxu0 %v3967_v36  ;;  %2082 = vmatprep.subr.bf16.mxu1 %v3969_v37  ;;  %v4069_v36 = vld [vmem:[%s4487_s6 + $0x2c8] ss:$16 sps:$4 sm:$0xff]   ;;  %v4077_v37 = vld [vmem:[%s4487_s6 + $0x2e4] ss:$16 sps:$4 sm:$0xff]  }
  0x7b   : > { %1697 = vmatpush1.bf16.msra.mxu0 %v3971_v38  ;;  %2083 = vmatpush1.bf16.msra.mxu1 %v3972_v39  ;;  %v4080_v38 = vld [vmem:[%s4487_s6 + $0x2ec] ss:$16 sps:$4 sm:$0xff]   ;;  %v4075_v39 = vld [vmem:[%s4487_s6 + $0x2e0] ss:$16 sps:$4 sm:$0xff]  }
  0x7c   : > { %1698 = vmatprep.subr.bf16.mxu0 %v3973_v40  ;;  %2084 = vmatprep.subr.bf16.mxu1 %v3975_v41  ;;  %v4078_v40 = vld [vmem:[%s4487_s6 + $0x2e8] ss:$16 sps:$4 sm:$0xff]   ;;  %v4086_v41 = vld [vmem:[%s4487_s6 + $0x304] ss:$16 sps:$4 sm:$0xff]  }
  0x7f   : > { %1699 = vmatpush1.bf16.msra.mxu0 %v3977_v42  ;;  %2085 = vmatpush1.bf16.msra.mxu1 %v3978_v43  ;;  %v4089_v42 = vld [vmem:[%s4487_s6 + $0x30c] ss:$16 sps:$4 sm:$0xff]   ;;  %v4047_v43 = vld [vmem:[%s5372_s0 + $0x80] ss:$16 sps:$4 sm:$0xff]  }
  0x80   : > { %1700 = vmatprep.subr.bf16.mxu0 %v3979_v44  ;;  %2086 = vmatprep.subr.bf16.mxu1 %v3981_v45  ;;  %v4054_v44 = vld [vmem:[%s5372_s0 + $0xa4] ss:$16 sps:$4 sm:$0xff]   ;;  %v4084_v45 = vld [vmem:[%s4487_s6 + $0x300] ss:$16 sps:$4 sm:$0xff]  }
  0x83   : > { %1701 = vmatpush1.bf16.msra.mxu0 %v3983_v46  ;;  %2087 = vmatpush1.bf16.msra.mxu1 %v3984_v47  ;;  %v4087_v46 = vld [vmem:[%s4487_s6 + $0x308] ss:$16 sps:$4 sm:$0xff]   ;;  %v4095_v47 = vld [vmem:[%s4487_s6 + $0x324] ss:$16 sps:$4 sm:$0xff]  }
  0x84   : > { %1702 = vmatprep.subr.bf16.mxu0 %v3985_v49  ;;  %2088 = vmatprep.subr.bf16.mxu1 %v3987_v50  ;;  %v4093_v49 = vld [vmem:[%s4487_s6 + $0x320] ss:$16 sps:$4 sm:$0xff]   ;;  %v4096_v50 = vld [vmem:[%s4487_s6 + $0x328] ss:$16 sps:$4 sm:$0xff]  }
  0x87   : > { %1703 = vmatpush1.bf16.msra.mxu0 %v3989_v51  ;;  %2089 = vmatpush1.bf16.msra.mxu1 %v3990_v52  ;;  %v4104_v51 = vld [vmem:[%s4487_s6 + $0x344] ss:$16 sps:$4 sm:$0xff]   ;;  %v4107_v52 = vld [vmem:[%s4487_s6 + $0x34c] ss:$16 sps:$4 sm:$0xff]  }
  0x88   : > { %1704 = vmatprep.subr.bf16.mxu0 %v3991_v53  ;;  %2090 = vmatprep.subr.bf16.mxu1 %v3993_v54  ;;  %v4056_v53 = vld [vmem:[%s5372_s0 + $0xa0] ss:$16 sps:$4 sm:$0xff]   ;;  %v4063_v54 = vld [vmem:[%s5372_s0 + $0xc4] ss:$16 sps:$4 sm:$0xff]  }
  0x8b   : > { %1705 = vmatpush1.bf16.msra.mxu0 %v3995_v55  ;;  %2091 = vmatpush1.bf16.msra.mxu1 %v3996_v56  ;;  %v4102_v55 = vld [vmem:[%s4487_s6 + $0x340] ss:$16 sps:$4 sm:$0xff]   ;;  %v4105_v56 = vld [vmem:[%s4487_s6 + $0x348] ss:$16 sps:$4 sm:$0xff]  }
  0x8c   : > { %1706 = vmatprep.subr.bf16.mxu0 %v3997_v57  ;;  %2092 = vmatprep.subr.bf16.mxu1 %v3999_v58  ;;  %v4113_v57 = vld [vmem:[%s4487_s6 + $0x364] ss:$16 sps:$4 sm:$0xff]   ;;  %v4116_v58 = vld [vmem:[%s4487_s6 + $0x36c] ss:$16 sps:$4 sm:$0xff]  }
  0x8f   : > { %1707 = vmatpush1.bf16.msra.mxu0 %v4001_v59  ;;  %2093 = vmatpush1.bf16.msra.mxu1 %v4002_v60  ;;  %v4111_v59 = vld [vmem:[%s4487_s6 + $0x360] ss:$16 sps:$4 sm:$0xff]   ;;  %v4114_v60 = vld [vmem:[%s4487_s6 + $0x368] ss:$16 sps:$4 sm:$0xff]  }
  0x90   : > { %1708 = vmatprep.subr.bf16.mxu0 %v4003_v61  ;;  %2094 = vmatprep.subr.bf16.mxu1 %v4005_v62  ;;  %v4122_v61 = vld [vmem:[%s4487_s6 + $0x384] ss:$16 sps:$4 sm:$0xff]   ;;  %v4125_v62 = vld [vmem:[%s4487_s6 + $0x38c] ss:$16 sps:$4 sm:$0xff]  }
  0x93   : > { %1709 = vmatpush1.bf16.msra.mxu0 %v4007_v63  ;;  %2095 = vmatpush1.bf16.msra.mxu1 %v4008_v0  ;;  %v4065_v63 = vld [vmem:[%s5372_s0 + $0xc0] ss:$16 sps:$4 sm:$0xff]   ;;  %v4072_v0 = vld [vmem:[%s5372_s0 + $0xe4] ss:$16 sps:$4 sm:$0xff]  }
  0x94   : > { %1871 = vmatprep.subr.bf16.mxu0 %v4014_v1  ;;  %2257 = vmatprep.subr.bf16.mxu1 %v4017_v2  ;;  %v4120_v1 = vld [vmem:[%s4487_s6 + $0x380] ss:$16 sps:$4 sm:$0xff]   ;;  %v4123_v2 = vld [vmem:[%s4487_s6 + $0x388] ss:$16 sps:$4 sm:$0xff]  }
  0x96   : > { %1711 = vmatmul.mubr.bf16.vlgmr.msra.gmra.mrb[0].mxu0 %v4009_v3  ;;  %2097 = vmatmul.mubr.bf16.vlgmr.msra.gmra.mrb[0].mxu1 %v4009_v3  ;;  %v4131_v3 = vld [vmem:[%s4487_s6 + $0x3a4] ss:$16 sps:$4 sm:$0xff]  }
  0x97   : > { %1872 = vmatpush1.bf16.msra.mxu0 %v4012_v4  ;;  %2258 = vmatpush1.bf16.msra.mxu1 %v4015_v5  ;;  %v4134_v4 = vld [vmem:[%s4487_s6 + $0x3ac] ss:$16 sps:$4 sm:$0xff]   ;;  %v4129_v5 = vld [vmem:[%s4487_s6 + $0x3a0] ss:$16 sps:$4 sm:$0xff]  }
  0x98   : > { %1720 = vmatprep.mubr.bf16.mxu0 %v4018_v6  ;;  %2106 = vmatprep.mubr.bf16.mxu1 %v4018_v6  ;;  %v4132_v6 = vld [vmem:[%s4487_s6 + $0x3a8] ss:$16 sps:$4 sm:$0xff]  }
  0x99   : > { %1873 = vmatprep.subr.bf16.mxu0 %v4023_v7  ;;  %2259 = vmatprep.subr.bf16.mxu1 %v4026_v8  ;;  %v4140_v7 = vld [vmem:[%s4487_s6 + $0x3c4] ss:$16 sps:$4 sm:$0xff]   ;;  %v4074_v8 = vld [vmem:[%s5372_s0 + $0xe0] ss:$16 sps:$4 sm:$0xff]  }
  0x9b   : > { %1874 = vmatpush1.bf16.msra.mxu0 %v4021_v9  ;;  %2260 = vmatpush1.bf16.msra.mxu1 %v4024_v10  ;;  %v4143_v9 = vld [vmem:[%s4487_s6 + $0x3cc] ss:$16 sps:$4 sm:$0xff]   ;;  %v4081_v10 = vld [vmem:[%s5372_s0 + $0x104] ss:$16 sps:$4 sm:$0xff]  }
  0x9c   : > { %1875 = vmatprep.subr.bf16.mxu0 %v4032_v11  ;;  %2261 = vmatprep.subr.bf16.mxu1 %v4035_v12  ;;  %v4138_v11 = vld [vmem:[%s4487_s6 + $0x3c0] ss:$16 sps:$4 sm:$0xff]   ;;  %v4141_v12 = vld [vmem:[%s4487_s6 + $0x3c8] ss:$16 sps:$4 sm:$0xff]  }
  0x9e   : > { %1721 = vmatmul.mubr.bf16.gmra.mrb[4].mxu0 %v4020_v13  ;;  %2107 = vmatmul.mubr.bf16.gmra.mrb[4].mxu1 %v4020_v13  ;;  %v4149_v13 = vld [vmem:[%s4487_s6 + $0x3e4] ss:$16 sps:$4 sm:$0xff]  }
  0x9f   : > { %1730 = vmatprep.mubr.bf16.mxu0 %v4027_v14  ;;  %2116 = vmatprep.mubr.bf16.mxu1 %v4027_v14  ;;  %v4152_v14 = vld [vmem:[%s4487_s6 + $0x3ec] ss:$16 sps:$4 sm:$0xff]  }
  0xa0   : > { %1876 = vmatpush1.bf16.msra.mxu0 %v4030_v15  ;;  %2262 = vmatpush1.bf16.msra.mxu1 %v4033_v16  ;;  %v4147_v15 = vld [vmem:[%s4487_s6 + $0x3e0] ss:$16 sps:$4 sm:$0xff]   ;;  %v4150_v16 = vld [vmem:[%s4487_s6 + $0x3e8] ss:$16 sps:$4 sm:$0xff]  }
  0xa1   : > { %1877 = vmatprep.subr.bf16.mxu0 %v4041_v17  ;;  %2263 = vmatprep.subr.bf16.mxu1 %v4044_v18  ;;  %v4083_v17 = vld [vmem:[%s5372_s0 + $0x100] ss:$16 sps:$4 sm:$0xff]   ;;  %v4090_v18 = vld [vmem:[%s5372_s0 + $0x124] ss:$16 sps:$4 sm:$0xff]  }
  0xa4   : > { %1878 = vmatpush1.bf16.msra.mxu0 %v4039_v19  ;;  %2264 = vmatpush1.bf16.msra.mxu1 %v4042_v20  ;;  %v4092_v19 = vld [vmem:[%s5372_s0 + $0x120] ss:$16 sps:$4 sm:$0xff]   ;;  %v4099_v20 = vld [vmem:[%s5372_s0 + $0x144] ss:$16 sps:$4 sm:$0xff]  }
  0xa5   : > { %1879 = vmatprep.subr.bf16.mxu0 %v4050_v21  ;;  %2265 = vmatprep.subr.bf16.mxu1 %v4053_v22  ;;  %v4101_v21 = vld [vmem:[%s5372_s0 + $0x140] ss:$16 sps:$4 sm:$0xff]   ;;  %v4108_v22 = vld [vmem:[%s5372_s0 + $0x164] ss:$16 sps:$4 sm:$0xff]  }
  0xa6   : > { %1731 = vmatmul.mubr.bf16.gmra.mrb[8].mxu0 %v4029_v23  ;;  %2117 = vmatmul.mubr.bf16.gmra.mrb[8].mxu1 %v4029_v23  ;;  %v4110_v23 = vld [vmem:[%s5372_s0 + $0x160] ss:$16 sps:$4 sm:$0xff]  }
  0xa7   : > { %1740 = vmatprep.mubr.bf16.mxu0 %v4036_v24  ;;  %2126 = vmatprep.mubr.bf16.mxu1 %v4036_v24  ;;  %v4117_v24 = vld [vmem:[%s5372_s0 + $0x184] ss:$16 sps:$4 sm:$0xff]  }
  0xa8   : > { %1880 = vmatpush1.bf16.msra.mxu0 %v4048_v25  ;;  %2266 = vmatpush1.bf16.msra.mxu1 %v4051_v26  ;;  %v4119_v25 = vld [vmem:[%s5372_s0 + $0x180] ss:$16 sps:$4 sm:$0xff]   ;;  %v4126_v26 = vld [vmem:[%s5372_s0 + $0x1a4] ss:$16 sps:$4 sm:$0xff]  }
  0xa9   : > { %1881 = vmatprep.subr.bf16.mxu0 %v4059_v27  ;;  %2267 = vmatprep.subr.bf16.mxu1 %v4062_v28  ;;  %v4128_v27 = vld [vmem:[%s5372_s0 + $0x1a0] ss:$16 sps:$4 sm:$0xff]   ;;  %v4135_v28 = vld [vmem:[%s5372_s0 + $0x1c4] ss:$16 sps:$4 sm:$0xff]  }
  0xac   : > { %1882 = vmatpush1.bf16.msra.mxu0 %v4057_v29  ;;  %2268 = vmatpush1.bf16.msra.mxu1 %v4060_v30  ;;  %v4137_v29 = vld [vmem:[%s5372_s0 + $0x1c0] ss:$16 sps:$4 sm:$0xff]   ;;  %v4144_v30 = vld [vmem:[%s5372_s0 + $0x1e4] ss:$16 sps:$4 sm:$0xff]  }
  0xad   : > { %1883 = vmatprep.subr.bf16.mxu0 %v4068_v31  ;;  %2269 = vmatprep.subr.bf16.mxu1 %v4071_v32  ;;  %v4146_v31 = vld [vmem:[%s5372_s0 + $0x1e0] ss:$16 sps:$4 sm:$0xff]   ;;  %v4155_v32 = vld [vmem:[%s5372_s0 + $0xc] ss:$16 sps:$4 sm:$0xff]  }
  0xae   : > { %1741 = vmatmul.mubr.bf16.gmra.mrb[12].mxu0 %v4038_v33  ;;  %2127 = vmatmul.mubr.bf16.gmra.mrb[12].mxu1 %v4038_v33  ;;  %v4153_v33 = vld [vmem:[%s5372_s0 + $0x8] ss:$16 sps:$4 sm:$0xff]  }
  0xaf   : > { %1750 = vmatprep.mubr.bf16.mxu0 %v4045_v34  ;;  %2136 = vmatprep.mubr.bf16.mxu1 %v4045_v34  ;;  %v4156_v34 = vld [vmem:[%s5372_s0 + $0x2c] ss:$16 sps:$4 sm:$0xff]  }
  0xb0   : > { %1884 = vmatpush1.bf16.msra.mxu0 %v4066_v35  ;;  %2270 = vmatpush1.bf16.msra.mxu1 %v4069_v36  ;;  %v4158_v35 = vld [vmem:[%s5372_s0 + $0x28] ss:$16 sps:$4 sm:$0xff]   ;;  %v4159_v36 = vld [vmem:[%s5372_s0 + $0x4c] ss:$16 sps:$4 sm:$0xff]  }
  0xb1   : > { %1885 = vmatprep.subr.bf16.mxu0 %v4077_v37  ;;  %2271 = vmatprep.subr.bf16.mxu1 %v4080_v38  ;;  %v4161_v37 = vld [vmem:[%s5372_s0 + $0x48] ss:$16 sps:$4 sm:$0xff]   ;;  %v4162_v38 = vld [vmem:[%s5372_s0 + $0x6c] ss:$16 sps:$4 sm:$0xff]  }
  0xb4   : > { %1886 = vmatpush1.bf16.msra.mxu0 %v4075_v39  ;;  %2272 = vmatpush1.bf16.msra.mxu1 %v4078_v40  ;;  %v4164_v39 = vld [vmem:[%s5372_s0 + $0x68] ss:$16 sps:$4 sm:$0xff]   ;;  %v4165_v40 = vld [vmem:[%s5372_s0 + $0x8c] ss:$16 sps:$4 sm:$0xff]  }
  0xb5   : > { %1887 = vmatprep.subr.bf16.mxu0 %v4086_v41  ;;  %2273 = vmatprep.subr.bf16.mxu1 %v4089_v42  ;;  %v4167_v41 = vld [vmem:[%s5372_s0 + $0x88] ss:$16 sps:$4 sm:$0xff]   ;;  %v4168_v42 = vld [vmem:[%s5372_s0 + $0xac] ss:$16 sps:$4 sm:$0xff]  }
  0xb6   : > { %1751 = vmatmul.mubr.bf16.gmra.mrb[16].mxu0 %v4047_v43  ;;  %2137 = vmatmul.mubr.bf16.gmra.mrb[16].mxu1 %v4047_v43  ;;  %v4170_v43 = vld [vmem:[%s5372_s0 + $0xa8] ss:$16 sps:$4 sm:$0xff]  }
  0xb7   : > { %1760 = vmatprep.mubr.bf16.mxu0 %v4054_v44  ;;  %2146 = vmatprep.mubr.bf16.mxu1 %v4054_v44  ;;  %v4171_v44 = vld [vmem:[%s5372_s0 + $0xcc] ss:$16 sps:$4 sm:$0xff]  }
  0xb8   : > { %1888 = vmatpush1.bf16.msra.mxu0 %v4084_v45  ;;  %2274 = vmatpush1.bf16.msra.mxu1 %v4087_v46  ;;  %v4173_v45 = vld [vmem:[%s5372_s0 + $0xc8] ss:$16 sps:$4 sm:$0xff]   ;;  %v4174_v46 = vld [vmem:[%s5372_s0 + $0xec] ss:$16 sps:$4 sm:$0xff]  }
  0xb9   : > { %1889 = vmatprep.subr.bf16.mxu0 %v4095_v47  ;;  %2275 = vmatprep.subr.bf16.mxu1 %v4098_v48  ;;  %v4176_v47 = vld [vmem:[%s5372_s0 + $0xe8] ss:$16 sps:$4 sm:$0xff]   ;;  %v4177_v48 = vld [vmem:[%s5372_s0 + $0x10c] ss:$16 sps:$4 sm:$0xff]  }
  0xbc   : > { %1890 = vmatpush1.bf16.msra.mxu0 %v4093_v49  ;;  %2276 = vmatpush1.bf16.msra.mxu1 %v4096_v50  ;;  %v4179_v49 = vld [vmem:[%s5372_s0 + $0x108] ss:$16 sps:$4 sm:$0xff]   ;;  %v4180_v50 = vld [vmem:[%s5372_s0 + $0x12c] ss:$16 sps:$4 sm:$0xff]  }
  0xbd   : > { %1891 = vmatprep.subr.bf16.mxu0 %v4104_v51  ;;  %2277 = vmatprep.subr.bf16.mxu1 %v4107_v52  ;;  %v4182_v51 = vld [vmem:[%s5372_s0 + $0x128] ss:$16 sps:$4 sm:$0xff]   ;;  %v4183_v52 = vld [vmem:[%s5372_s0 + $0x14c] ss:$16 sps:$4 sm:$0xff]  }
  0xbe   : > { %1761 = vmatmul.mubr.bf16.gmra.mrb[20].mxu0 %v4056_v53  ;;  %2147 = vmatmul.mubr.bf16.gmra.mrb[20].mxu1 %v4056_v53  ;;  %v4185_v53 = vld [vmem:[%s5372_s0 + $0x148] ss:$16 sps:$4 sm:$0xff]  }
  0xbf   : > { %1770 = vmatprep.mubr.bf16.mxu0 %v4063_v54  ;;  %2156 = vmatprep.mubr.bf16.mxu1 %v4063_v54  ;;  %v4186_v54 = vld [vmem:[%s5372_s0 + $0x16c] ss:$16 sps:$4 sm:$0xff]  }
  0xc0   : > { %1892 = vmatpush1.bf16.msra.mxu0 %v4102_v55  ;;  %2278 = vmatpush1.bf16.msra.mxu1 %v4105_v56  ;;  %v4188_v55 = vld [vmem:[%s5372_s0 + $0x168] ss:$16 sps:$4 sm:$0xff]   ;;  %v4189_v56 = vld [vmem:[%s5372_s0 + $0x18c] ss:$16 sps:$4 sm:$0xff]  }
  0xc1   : > { %1893 = vmatprep.subr.bf16.mxu0 %v4113_v57  ;;  %2279 = vmatprep.subr.bf16.mxu1 %v4116_v58  ;;  %v4191_v57 = vld [vmem:[%s5372_s0 + $0x188] ss:$16 sps:$4 sm:$0xff]   ;;  %v4192_v58 = vld [vmem:[%s5372_s0 + $0x1ac] ss:$16 sps:$4 sm:$0xff]  }
  0xc4   : > { %1894 = vmatpush1.bf16.msra.mxu0 %v4111_v59  ;;  %2280 = vmatpush1.bf16.msra.mxu1 %v4114_v60  ;;  %v4194_v59 = vld [vmem:[%s5372_s0 + $0x1a8] ss:$16 sps:$4 sm:$0xff]   ;;  %v4195_v60 = vld [vmem:[%s5372_s0 + $0x1cc] ss:$16 sps:$4 sm:$0xff]  }
  0xc5   : > { %1895 = vmatprep.subr.bf16.mxu0 %v4122_v61  ;;  %2281 = vmatprep.subr.bf16.mxu1 %v4125_v62  ;;  %v4197_v61 = vld [vmem:[%s5372_s0 + $0x1c8] ss:$16 sps:$4 sm:$0xff]   ;;  %v4198_v62 = vld [vmem:[%s5372_s0 + $0x1ec] ss:$16 sps:$4 sm:$0xff]  }
  0xc6   : > { %1771 = vmatmul.mubr.bf16.gmra.mrb[24].mxu0 %v4065_v63  ;;  %2157 = vmatmul.mubr.bf16.gmra.mrb[24].mxu1 %v4065_v63  ;;  %v4200_v63 = vld [vmem:[%s5372_s0 + $0x1e8] ss:$16 sps:$4 sm:$0xff]  }
  0xc7   : > { %1780 = vmatprep.mubr.bf16.mxu0 %v4072_v0  ;;  %2166 = vmatprep.mubr.bf16.mxu1 %v4072_v0  ;;  %v2839_v0 = vlaneseq }
  0xc8   : > { %1896 = vmatpush1.bf16.msra.mxu0 %v4120_v1  ;;  %2282 = vmatpush1.bf16.msra.mxu1 %v4123_v2 }
  0xc9   : > { %1897 = vmatprep.subr.bf16.mxu0 %v4131_v3  ;;  %2283 = vmatprep.subr.bf16.mxu1 %v4134_v4  ;;  %v2840_v1 = vshrl.u32 %v2839_v0, 7  ;;  %v2837_v4 = vld [vmem:[%s4495_s20] sm:$0xf]  ;;  %s4836_s20 = scalar_lea.vmem [#allocation7], %s3519_s18 }
  0xcb   : > { %v2841_v2 = vsub.s32 0, %v2840_v1  ;;  %v2849_v3 = vsub.s32 2, %v2840_v1 }
  0xcc   : > { %1898 = vmatpush1.bf16.msra.mxu0 %v4129_v5  ;;  %2284 = vmatpush1.bf16.msra.mxu1 %v4132_v6  ;;  %v2845_v5 = vsub.s32 1, %v2840_v1  ;;  %v2853_v6 = vsub.s32 3, %v2840_v1 }
  0xcd   : > { %1899 = vmatprep.subr.bf16.mxu0 %v4140_v7  ;;  %2285 = vmatprep.subr.bf16.mxu1 %v4143_v9  ;;  %v4822_v7 = vrot.slane %v2837_v4, %v2841_v2 }
  0xce   : > { %1781 = vmatmul.mubr.bf16.gmra.mrb[28].mxu0 %v4074_v8  ;;  %2167 = vmatmul.mubr.bf16.gmra.mrb[28].mxu1 %v4074_v8  ;;  %v4824_v8 = vrot.slane %v2837_v4, %v2849_v3  ;;  %v4826_v9 = vrot.slane %v2837_v4, %v2845_v5 }
  0xcf   : > { %1790 = vmatprep.mubr.bf16.mxu0 %v4081_v10  ;;  %2176 = vmatprep.mubr.bf16.mxu1 %v4081_v10  ;;  %v4828_v10 = vrot.slane %v2837_v4, %v2853_v6 }
  0xd0   : > { %1900 = vmatpush1.bf16.msra.mxu0 %v4138_v11  ;;  %2286 = vmatpush1.bf16.msra.mxu1 %v4141_v12 }
  0xd1   : > { %1901 = vmatprep.subr.bf16.mxu0 %v4149_v13  ;;  %2287 = vmatprep.subr.bf16.mxu1 %v4152_v14 }
  0xd4   : > { %1902 = vmatpush1.bf16.msra.mxu0 %v4147_v15  ;;  %2288 = vmatpush1.bf16.msra.mxu1 %v4150_v16 }
  0xd6   : > { %1791 = vmatmul.mubr.bf16.gmra.mrb[32].mxu0 %v4083_v17  ;;  %2177 = vmatmul.mubr.bf16.gmra.mrb[32].mxu1 %v4083_v17 }
  0xd7   : > { %1800 = vmatprep.mubr.bf16.mxu0 %v4090_v18  ;;  %2186 = vmatprep.mubr.bf16.mxu1 %v4090_v18 }
  0xde   : > { %1801 = vmatmul.mubr.bf16.gmra.mrb[36].mxu0 %v4092_v19  ;;  %2187 = vmatmul.mubr.bf16.gmra.mrb[36].mxu1 %v4092_v19 }
  0xdf   : > { %1810 = vmatprep.mubr.bf16.mxu0 %v4099_v20  ;;  %2196 = vmatprep.mubr.bf16.mxu1 %v4099_v20 }
  0xe6   : > { %1811 = vmatmul.mubr.bf16.gmra.mrb[40].mxu0 %v4101_v21  ;;  %2197 = vmatmul.mubr.bf16.gmra.mrb[40].mxu1 %v4101_v21 }
  0xe7   : > { %1820 = vmatprep.mubr.bf16.mxu0 %v4108_v22  ;;  %2206 = vmatprep.mubr.bf16.mxu1 %v4108_v22 }
  0xee   : > { %1821 = vmatmul.mubr.bf16.gmra.mrb[44].mxu0 %v4110_v23  ;;  %2207 = vmatmul.mubr.bf16.gmra.mrb[44].mxu1 %v4110_v23 }
  0xef   : > { %1830 = vmatprep.mubr.bf16.mxu0 %v4117_v24  ;;  %2216 = vmatprep.mubr.bf16.mxu1 %v4117_v24 }
  0xf6   : > { %1831 = vmatmul.mubr.bf16.gmra.mrb[48].mxu0 %v4119_v25  ;;  %2217 = vmatmul.mubr.bf16.gmra.mrb[48].mxu1 %v4119_v25 }
  0xf7   : > { %1840 = vmatprep.mubr.bf16.mxu0 %v4126_v26  ;;  %2226 = vmatprep.mubr.bf16.mxu1 %v4126_v26 }
  0xfe   : > { %1841 = vmatmul.mubr.bf16.gmra.mrb[52].mxu0 %v4128_v27  ;;  %2227 = vmatmul.mubr.bf16.gmra.mrb[52].mxu1 %v4128_v27 }
  0xff   : > { %1850 = vmatprep.mubr.bf16.mxu0 %v4135_v28  ;;  %2236 = vmatprep.mubr.bf16.mxu1 %v4135_v28 }
 0x106   : > { %1851 = vmatmul.mubr.bf16.gmra.mrb[56].mxu0 %v4137_v29  ;;  %2237 = vmatmul.mubr.bf16.gmra.mrb[56].mxu1 %v4137_v29 }
 0x107   : > { %1860 = vmatprep.mubr.bf16.mxu0 %v4144_v30  ;;  %2246 = vmatprep.mubr.bf16.mxu1 %v4144_v30 }
 0x10e   : > { %1861 = vmatmul.mubr.bf16.gmra.mrb[60].mxu0 %v4146_v31  ;;  %2247 = vmatmul.mubr.bf16.gmra.mrb[60].mxu1 %v4146_v31 }
 0x10f   : > { %1903 = vmatprep.mubr.bf16.mxu0 %v4155_v32  ;;  %2289 = vmatprep.mubr.bf16.mxu1 %v4155_v32 }
 0x116   : > { %1904 = vmatmul.mubr.bf16.vlgmr.msra.gmra.mrb[0].mxu0 %v4153_v33  ;;  %2290 = vmatmul.mubr.bf16.vlgmr.msra.gmra.mrb[0].mxu1 %v4153_v33 }
 0x117   : > { %1913 = vmatprep.mubr.bf16.mxu0 %v4156_v34  ;;  %2299 = vmatprep.mubr.bf16.mxu1 %v4156_v34 }
 0x11e   : > { %1914 = vmatmul.mubr.bf16.gmra.mrb[4].mxu0 %v4158_v35  ;;  %2300 = vmatmul.mubr.bf16.gmra.mrb[4].mxu1 %v4158_v35 }
 0x11f   : > { %1923 = vmatprep.mubr.bf16.mxu0 %v4159_v36  ;;  %2309 = vmatprep.mubr.bf16.mxu1 %v4159_v36 }
 0x126   : > { %1924 = vmatmul.mubr.bf16.gmra.mrb[8].mxu0 %v4161_v37  ;;  %2310 = vmatmul.mubr.bf16.gmra.mrb[8].mxu1 %v4161_v37 }
 0x127   : > { %1933 = vmatprep.mubr.bf16.mxu0 %v4162_v38  ;;  %2319 = vmatprep.mubr.bf16.mxu1 %v4162_v38 }
 0x12e   : > { %1934 = vmatmul.mubr.bf16.gmra.mrb[12].mxu0 %v4164_v39  ;;  %2320 = vmatmul.mubr.bf16.gmra.mrb[12].mxu1 %v4164_v39 }
 0x12f   : > { %1943 = vmatprep.mubr.bf16.mxu0 %v4165_v40  ;;  %2329 = vmatprep.mubr.bf16.mxu1 %v4165_v40 }
 0x136   : > { %1944 = vmatmul.mubr.bf16.gmra.mrb[16].mxu0 %v4167_v41  ;;  %2330 = vmatmul.mubr.bf16.gmra.mrb[16].mxu1 %v4167_v41 }
 0x137   : > { %1953 = vmatprep.mubr.bf16.mxu0 %v4168_v42  ;;  %2339 = vmatprep.mubr.bf16.mxu1 %v4168_v42 }
 0x13e   : > { %1954 = vmatmul.mubr.bf16.gmra.mrb[20].mxu0 %v4170_v43  ;;  %2340 = vmatmul.mubr.bf16.gmra.mrb[20].mxu1 %v4170_v43 }
 0x13f   : > { %1963 = vmatprep.mubr.bf16.mxu0 %v4171_v44  ;;  %2349 = vmatprep.mubr.bf16.mxu1 %v4171_v44 }
 0x146   : > { %1964 = vmatmul.mubr.bf16.gmra.mrb[24].mxu0 %v4173_v45  ;;  %2350 = vmatmul.mubr.bf16.gmra.mrb[24].mxu1 %v4173_v45 }
 0x147   : > { %1973 = vmatprep.mubr.bf16.mxu0 %v4174_v46  ;;  %2359 = vmatprep.mubr.bf16.mxu1 %v4174_v46 }
 0x14e   : > { %1974 = vmatmul.mubr.bf16.gmra.mrb[28].mxu0 %v4176_v47  ;;  %2360 = vmatmul.mubr.bf16.gmra.mrb[28].mxu1 %v4176_v47 }
 0x14f   : > { %1983 = vmatprep.mubr.bf16.mxu0 %v4177_v48  ;;  %2369 = vmatprep.mubr.bf16.mxu1 %v4177_v48 }
 0x156   : > { %1984 = vmatmul.mubr.bf16.gmra.mrb[32].mxu0 %v4179_v49  ;;  %2370 = vmatmul.mubr.bf16.gmra.mrb[32].mxu1 %v4179_v49 }
 0x157   : > { %1993 = vmatprep.mubr.bf16.mxu0 %v4180_v50  ;;  %2379 = vmatprep.mubr.bf16.mxu1 %v4180_v50 }
 0x15e   : > { %1994 = vmatmul.mubr.bf16.gmra.mrb[36].mxu0 %v4182_v51  ;;  %2380 = vmatmul.mubr.bf16.gmra.mrb[36].mxu1 %v4182_v51 }
 0x15f   : > { %2003 = vmatprep.mubr.bf16.mxu0 %v4183_v52  ;;  %2389 = vmatprep.mubr.bf16.mxu1 %v4183_v52 }
 0x166   : > { %2004 = vmatmul.mubr.bf16.gmra.mrb[40].mxu0 %v4185_v53  ;;  %2390 = vmatmul.mubr.bf16.gmra.mrb[40].mxu1 %v4185_v53 }
 0x167   : > { %2013 = vmatprep.mubr.bf16.mxu0 %v4186_v54  ;;  %2399 = vmatprep.mubr.bf16.mxu1 %v4186_v54 }
 0x16e   : > { %2014 = vmatmul.mubr.bf16.gmra.mrb[44].mxu0 %v4188_v55  ;;  %2400 = vmatmul.mubr.bf16.gmra.mrb[44].mxu1 %v4188_v55 }
 0x16f   : > { %2023 = vmatprep.mubr.bf16.mxu0 %v4189_v56  ;;  %2409 = vmatprep.mubr.bf16.mxu1 %v4189_v56 }
 0x176   : > { %2024 = vmatmul.mubr.bf16.gmra.mrb[48].mxu0 %v4191_v57  ;;  %2410 = vmatmul.mubr.bf16.gmra.mrb[48].mxu1 %v4191_v57 }
 0x177   : > { %2033 = vmatprep.mubr.bf16.mxu0 %v4192_v58  ;;  %2419 = vmatprep.mubr.bf16.mxu1 %v4192_v58 }
 0x17e   : > { %2034 = vmatmul.mubr.bf16.gmra.mrb[52].mxu0 %v4194_v59  ;;  %2420 = vmatmul.mubr.bf16.gmra.mrb[52].mxu1 %v4194_v59 }
 0x17f   : > { %2043 = vmatprep.mubr.bf16.mxu0 %v4195_v60  ;;  %2429 = vmatprep.mubr.bf16.mxu1 %v4195_v60 }
 0x186   : > { %2044 = vmatmul.mubr.bf16.gmra.mrb[56].mxu0 %v4197_v61  ;;  %2430 = vmatmul.mubr.bf16.gmra.mrb[56].mxu1 %v4197_v61 }
 0x187   : > { %2053 = vmatprep.mubr.bf16.mxu0 %v4198_v62  ;;  %2439 = vmatprep.mubr.bf16.mxu1 %v4198_v62 }
 0x18e   : > { %2054 = vmatmul.mubr.bf16.gmra.mrb[60].mxu0 %v4200_v63  ;;  %2440 = vmatmul.mubr.bf16.gmra.mrb[60].mxu1 %v4200_v63 }
 0x1e9   : > { %v1905_v11 = vpop.f32.mrb[0].mxu0  ;;  %v2291_v12 = vpop.f32.mrb[0].mxu1 }
 0x1ea   : > { %v2859_v13 = vadd.f32 %v4822_v7, %v1905_v11  ;;  %v2861_v14 = vadd.f32 %v4824_v8, %v2291_v12  ;;  %v1907_v15 = vpop.f32.mrb[1].mxu0  ;;  %v2293_v16 = vpop.f32.mrb[1].mxu1 }
 0x1eb   : > { %v2860_v17 = vadd.f32 %v4826_v9, %v1907_v15  ;;  %v2862_v18 = vadd.f32 %v4828_v10, %v2293_v16  ;;  %v1909_v19 = vpop.f32.mrb[2].mxu0  ;;  %v2295_v20 = vpop.f32.mrb[2].mxu1 }
 0x1ec   : > { %2987 = vst [vmem:[%s4836_s20] sm:$0xff] %v2859_v13  ;;  %2989 = vst [vmem:[%s4836_s20 + $0x10] sm:$0xff] %v2861_v14  ;;  %v2863_v21 = vadd.f32 %v4822_v7, %v1909_v19  ;;  %v2865_v22 = vadd.f32 %v4824_v8, %v2295_v20  ;;  %v1911_v23 = vpop.f32.mrb[3].mxu0  ;;  %v2297_v24 = vpop.f32.mrb[3].mxu1 }
 0x1ed   : > { %2988 = vst [vmem:[%s4836_s20 + $0x8] sm:$0xff] %v2860_v17  ;;  %2990 = vst [vmem:[%s4836_s20 + $0x18] sm:$0xff] %v2862_v18  ;;  %v2864_v25 = vadd.f32 %v4826_v9, %v1911_v23  ;;  %v2866_v26 = vadd.f32 %v4828_v10, %v2297_v24 }
 0x1ee   : > { %2991 = vst [vmem:[%s4836_s20 + $0x20] sm:$0xff] %v2863_v21  ;;  %2993 = vst [vmem:[%s4836_s20 + $0x30] sm:$0xff] %v2865_v22 }
 0x1ef   : > { %2992 = vst [vmem:[%s4836_s20 + $0x28] sm:$0xff] %v2864_v25  ;;  %2994 = vst [vmem:[%s4836_s20 + $0x38] sm:$0xff] %v2866_v26 }
 0x1f1   : > { %v1915_v27 = vpop.f32.mrb[4].mxu0  ;;  %v2301_v28 = vpop.f32.mrb[4].mxu1 }
 0x1f2   : > { %v2867_v29 = vadd.f32 %v4822_v7, %v1915_v27  ;;  %v2869_v30 = vadd.f32 %v4824_v8, %v2301_v28  ;;  %v1917_v31 = vpop.f32.mrb[5].mxu0  ;;  %v2303_v32 = vpop.f32.mrb[5].mxu1 }
 0x1f3   : > { %v2868_v33 = vadd.f32 %v4826_v9, %v1917_v31  ;;  %v2870_v34 = vadd.f32 %v4828_v10, %v2303_v32  ;;  %v1919_v35 = vpop.f32.mrb[6].mxu0  ;;  %v2305_v36 = vpop.f32.mrb[6].mxu1 }
 0x1f4   : > { %2995 = vst [vmem:[%s4836_s20 + $0x40] sm:$0xff] %v2867_v29  ;;  %2997 = vst [vmem:[%s4836_s20 + $0x50] sm:$0xff] %v2869_v30  ;;  %v2871_v37 = vadd.f32 %v4822_v7, %v1919_v35  ;;  %v2873_v38 = vadd.f32 %v4824_v8, %v2305_v36  ;;  %v1921_v39 = vpop.f32.mrb[7].mxu0  ;;  %v2307_v40 = vpop.f32.mrb[7].mxu1 }
 0x1f5   : > { %2996 = vst [vmem:[%s4836_s20 + $0x48] sm:$0xff] %v2868_v33  ;;  %2998 = vst [vmem:[%s4836_s20 + $0x58] sm:$0xff] %v2870_v34  ;;  %v2872_v41 = vadd.f32 %v4826_v9, %v1921_v39  ;;  %v2874_v42 = vadd.f32 %v4828_v10, %v2307_v40 }
 0x1f6   : > { %2999 = vst [vmem:[%s4836_s20 + $0x60] sm:$0xff] %v2871_v37  ;;  %3001 = vst [vmem:[%s4836_s20 + $0x70] sm:$0xff] %v2873_v38 }
 0x1f7   : > { %3000 = vst [vmem:[%s4836_s20 + $0x68] sm:$0xff] %v2872_v41  ;;  %3002 = vst [vmem:[%s4836_s20 + $0x78] sm:$0xff] %v2874_v42 }
 0x1f9   : > { %v1925_v43 = vpop.f32.mrb[8].mxu0  ;;  %v2311_v44 = vpop.f32.mrb[8].mxu1 }
 0x1fa   : > { %v2875_v45 = vadd.f32 %v4822_v7, %v1925_v43  ;;  %v2877_v46 = vadd.f32 %v4824_v8, %v2311_v44  ;;  %v1927_v47 = vpop.f32.mrb[9].mxu0  ;;  %v2313_v48 = vpop.f32.mrb[9].mxu1 }
 0x1fb   : > { %v2876_v49 = vadd.f32 %v4826_v9, %v1927_v47  ;;  %v2878_v50 = vadd.f32 %v4828_v10, %v2313_v48  ;;  %v1929_v51 = vpop.f32.mrb[10].mxu0  ;;  %v2315_v52 = vpop.f32.mrb[10].mxu1 }
 0x1fc   : > { %3003 = vst [vmem:[%s4836_s20 + $0x80] sm:$0xff] %v2875_v45  ;;  %3005 = vst [vmem:[%s4836_s20 + $0x90] sm:$0xff] %v2877_v46  ;;  %v2879_v53 = vadd.f32 %v4822_v7, %v1929_v51  ;;  %v2881_v54 = vadd.f32 %v4824_v8, %v2315_v52  ;;  %v1931_v55 = vpop.f32.mrb[11].mxu0  ;;  %v2317_v56 = vpop.f32.mrb[11].mxu1 }
 0x1fd   : > { %3004 = vst [vmem:[%s4836_s20 + $0x88] sm:$0xff] %v2876_v49  ;;  %3006 = vst [vmem:[%s4836_s20 + $0x98] sm:$0xff] %v2878_v50  ;;  %v2880_v57 = vadd.f32 %v4826_v9, %v1931_v55  ;;  %v2882_v58 = vadd.f32 %v4828_v10, %v2317_v56 }
 0x1fe   : > { %3007 = vst [vmem:[%s4836_s20 + $0xa0] sm:$0xff] %v2879_v53  ;;  %3009 = vst [vmem:[%s4836_s20 + $0xb0] sm:$0xff] %v2881_v54 }
 0x1ff   : > { %3008 = vst [vmem:[%s4836_s20 + $0xa8] sm:$0xff] %v2880_v57  ;;  %3010 = vst [vmem:[%s4836_s20 + $0xb8] sm:$0xff] %v2882_v58 }
 0x201   : > { %v1935_v59 = vpop.f32.mrb[12].mxu0  ;;  %v2321_v60 = vpop.f32.mrb[12].mxu1 }
 0x202   : > { %v2883_v61 = vadd.f32 %v4822_v7, %v1935_v59  ;;  %v2885_v62 = vadd.f32 %v4824_v8, %v2321_v60  ;;  %v1937_v63 = vpop.f32.mrb[13].mxu0  ;;  %v2323_v0 = vpop.f32.mrb[13].mxu1 }
 0x203   : > { %v2884_v1 = vadd.f32 %v4826_v9, %v1937_v63  ;;  %v2886_v2 = vadd.f32 %v4828_v10, %v2323_v0  ;;  %v1939_v3 = vpop.f32.mrb[14].mxu0  ;;  %v2325_v4 = vpop.f32.mrb[14].mxu1 }
 0x204   : > { %3011 = vst [vmem:[%s4836_s20 + $0xc0] sm:$0xff] %v2883_v61  ;;  %3013 = vst [vmem:[%s4836_s20 + $0xd0] sm:$0xff] %v2885_v62  ;;  %v2887_v5 = vadd.f32 %v4822_v7, %v1939_v3  ;;  %v2889_v6 = vadd.f32 %v4824_v8, %v2325_v4  ;;  %v1941_v11 = vpop.f32.mrb[15].mxu0  ;;  %v2327_v12 = vpop.f32.mrb[15].mxu1 }
 0x205   : > { %3012 = vst [vmem:[%s4836_s20 + $0xc8] sm:$0xff] %v2884_v1  ;;  %3014 = vst [vmem:[%s4836_s20 + $0xd8] sm:$0xff] %v2886_v2  ;;  %v2888_v13 = vadd.f32 %v4826_v9, %v1941_v11  ;;  %v2890_v14 = vadd.f32 %v4828_v10, %v2327_v12 }
 0x206   : > { %3015 = vst [vmem:[%s4836_s20 + $0xe0] sm:$0xff] %v2887_v5  ;;  %3017 = vst [vmem:[%s4836_s20 + $0xf0] sm:$0xff] %v2889_v6 }
 0x207   : > { %3016 = vst [vmem:[%s4836_s20 + $0xe8] sm:$0xff] %v2888_v13  ;;  %3018 = vst [vmem:[%s4836_s20 + $0xf8] sm:$0xff] %v2890_v14 }
 0x209   : > { %v1945_v15 = vpop.f32.mrb[16].mxu0  ;;  %v2331_v16 = vpop.f32.mrb[16].mxu1 }
 0x20a   : > { %v2891_v17 = vadd.f32 %v4822_v7, %v1945_v15  ;;  %v2893_v18 = vadd.f32 %v4824_v8, %v2331_v16  ;;  %v1947_v19 = vpop.f32.mrb[17].mxu0  ;;  %v2333_v20 = vpop.f32.mrb[17].mxu1 }
 0x20b   : > { %v2892_v21 = vadd.f32 %v4826_v9, %v1947_v19  ;;  %v2894_v22 = vadd.f32 %v4828_v10, %v2333_v20  ;;  %v1949_v23 = vpop.f32.mrb[18].mxu0  ;;  %v2335_v24 = vpop.f32.mrb[18].mxu1 }
 0x20c   : > { %3019 = vst [vmem:[%s4836_s20 + $0x100] sm:$0xff] %v2891_v17  ;;  %3021 = vst [vmem:[%s4836_s20 + $0x110] sm:$0xff] %v2893_v18  ;;  %v2895_v25 = vadd.f32 %v4822_v7, %v1949_v23  ;;  %v2897_v26 = vadd.f32 %v4824_v8, %v2335_v24  ;;  %v1951_v27 = vpop.f32.mrb[19].mxu0  ;;  %v2337_v28 = vpop.f32.mrb[19].mxu1 }
 0x20d   : > { %3020 = vst [vmem:[%s4836_s20 + $0x108] sm:$0xff] %v2892_v21  ;;  %3022 = vst [vmem:[%s4836_s20 + $0x118] sm:$0xff] %v2894_v22  ;;  %v2896_v29 = vadd.f32 %v4826_v9, %v1951_v27  ;;  %v2898_v30 = vadd.f32 %v4828_v10, %v2337_v28 }
 0x20e   : > { %3023 = vst [vmem:[%s4836_s20 + $0x120] sm:$0xff] %v2895_v25  ;;  %3025 = vst [vmem:[%s4836_s20 + $0x130] sm:$0xff] %v2897_v26 }
 0x20f   : > { %3024 = vst [vmem:[%s4836_s20 + $0x128] sm:$0xff] %v2896_v29  ;;  %3026 = vst [vmem:[%s4836_s20 + $0x138] sm:$0xff] %v2898_v30 }
 0x211   : > { %v1955_v31 = vpop.f32.mrb[20].mxu0  ;;  %v2341_v32 = vpop.f32.mrb[20].mxu1 }
 0x212   : > { %v2899_v33 = vadd.f32 %v4822_v7, %v1955_v31  ;;  %v2901_v34 = vadd.f32 %v4824_v8, %v2341_v32  ;;  %v1957_v35 = vpop.f32.mrb[21].mxu0  ;;  %v2343_v36 = vpop.f32.mrb[21].mxu1 }
 0x213   : > { %v2900_v37 = vadd.f32 %v4826_v9, %v1957_v35  ;;  %v2902_v38 = vadd.f32 %v4828_v10, %v2343_v36  ;;  %v1959_v39 = vpop.f32.mrb[22].mxu0  ;;  %v2345_v40 = vpop.f32.mrb[22].mxu1 }
 0x214   : > { %3027 = vst [vmem:[%s4836_s20 + $0x140] sm:$0xff] %v2899_v33  ;;  %3029 = vst [vmem:[%s4836_s20 + $0x150] sm:$0xff] %v2901_v34  ;;  %v2903_v41 = vadd.f32 %v4822_v7, %v1959_v39  ;;  %v2905_v42 = vadd.f32 %v4824_v8, %v2345_v40  ;;  %v1961_v43 = vpop.f32.mrb[23].mxu0  ;;  %v2347_v44 = vpop.f32.mrb[23].mxu1 }
 0x215   : > { %3028 = vst [vmem:[%s4836_s20 + $0x148] sm:$0xff] %v2900_v37  ;;  %3030 = vst [vmem:[%s4836_s20 + $0x158] sm:$0xff] %v2902_v38  ;;  %v2904_v45 = vadd.f32 %v4826_v9, %v1961_v43  ;;  %v2906_v46 = vadd.f32 %v4828_v10, %v2347_v44 }
 0x216   : > { %3031 = vst [vmem:[%s4836_s20 + $0x160] sm:$0xff] %v2903_v41  ;;  %3033 = vst [vmem:[%s4836_s20 + $0x170] sm:$0xff] %v2905_v42 }
 0x217   : > { %3032 = vst [vmem:[%s4836_s20 + $0x168] sm:$0xff] %v2904_v45  ;;  %3034 = vst [vmem:[%s4836_s20 + $0x178] sm:$0xff] %v2906_v46 }
 0x219   : > { %v1965_v47 = vpop.f32.mrb[24].mxu0  ;;  %v2351_v48 = vpop.f32.mrb[24].mxu1 }
 0x21a   : > { %v2907_v49 = vadd.f32 %v4822_v7, %v1965_v47  ;;  %v2909_v50 = vadd.f32 %v4824_v8, %v2351_v48  ;;  %v1967_v51 = vpop.f32.mrb[25].mxu0  ;;  %v2353_v52 = vpop.f32.mrb[25].mxu1 }
 0x21b   : > { %v2908_v53 = vadd.f32 %v4826_v9, %v1967_v51  ;;  %v2910_v54 = vadd.f32 %v4828_v10, %v2353_v52  ;;  %v1969_v55 = vpop.f32.mrb[26].mxu0  ;;  %v2355_v56 = vpop.f32.mrb[26].mxu1 }
 0x21c   : > { %3035 = vst [vmem:[%s4836_s20 + $0x180] sm:$0xff] %v2907_v49  ;;  %3037 = vst [vmem:[%s4836_s20 + $0x190] sm:$0xff] %v2909_v50  ;;  %v2911_v57 = vadd.f32 %v4822_v7, %v1969_v55  ;;  %v2913_v58 = vadd.f32 %v4824_v8, %v2355_v56  ;;  %v1971_v59 = vpop.f32.mrb[27].mxu0  ;;  %v2357_v60 = vpop.f32.mrb[27].mxu1 }
 0x21d   : > { %3036 = vst [vmem:[%s4836_s20 + $0x188] sm:$0xff] %v2908_v53  ;;  %3038 = vst [vmem:[%s4836_s20 + $0x198] sm:$0xff] %v2910_v54  ;;  %v2912_v61 = vadd.f32 %v4826_v9, %v1971_v59  ;;  %v2914_v62 = vadd.f32 %v4828_v10, %v2357_v60 }
 0x21e   : > { %3039 = vst [vmem:[%s4836_s20 + $0x1a0] sm:$0xff] %v2911_v57  ;;  %3041 = vst [vmem:[%s4836_s20 + $0x1b0] sm:$0xff] %v2913_v58 }
 0x21f   : > { %3040 = vst [vmem:[%s4836_s20 + $0x1a8] sm:$0xff] %v2912_v61  ;;  %3042 = vst [vmem:[%s4836_s20 + $0x1b8] sm:$0xff] %v2914_v62 }
 0x221   : > { %v1975_v63 = vpop.f32.mrb[28].mxu0  ;;  %v2361_v0 = vpop.f32.mrb[28].mxu1 }
 0x222   : > { %v2915_v1 = vadd.f32 %v4822_v7, %v1975_v63  ;;  %v2917_v2 = vadd.f32 %v4824_v8, %v2361_v0  ;;  %v1977_v3 = vpop.f32.mrb[29].mxu0  ;;  %v2363_v4 = vpop.f32.mrb[29].mxu1 }
 0x223   : > { %v2916_v5 = vadd.f32 %v4826_v9, %v1977_v3  ;;  %v2918_v6 = vadd.f32 %v4828_v10, %v2363_v4  ;;  %v1979_v11 = vpop.f32.mrb[30].mxu0  ;;  %v2365_v12 = vpop.f32.mrb[30].mxu1 }
 0x224   : > { %3043 = vst [vmem:[%s4836_s20 + $0x1c0] sm:$0xff] %v2915_v1  ;;  %3045 = vst [vmem:[%s4836_s20 + $0x1d0] sm:$0xff] %v2917_v2  ;;  %v2919_v13 = vadd.f32 %v4822_v7, %v1979_v11  ;;  %v2921_v14 = vadd.f32 %v4824_v8, %v2365_v12  ;;  %v1981_v15 = vpop.f32.mrb[31].mxu0  ;;  %v2367_v16 = vpop.f32.mrb[31].mxu1 }
 0x225   : > { %3044 = vst [vmem:[%s4836_s20 + $0x1c8] sm:$0xff] %v2916_v5  ;;  %3046 = vst [vmem:[%s4836_s20 + $0x1d8] sm:$0xff] %v2918_v6  ;;  %v2920_v17 = vadd.f32 %v4826_v9, %v1981_v15  ;;  %v2922_v18 = vadd.f32 %v4828_v10, %v2367_v16 }
 0x226   : > { %3047 = vst [vmem:[%s4836_s20 + $0x1e0] sm:$0xff] %v2919_v13  ;;  %3049 = vst [vmem:[%s4836_s20 + $0x1f0] sm:$0xff] %v2921_v14 }
 0x227   : > { %3048 = vst [vmem:[%s4836_s20 + $0x1e8] sm:$0xff] %v2920_v17  ;;  %3050 = vst [vmem:[%s4836_s20 + $0x1f8] sm:$0xff] %v2922_v18 }
 0x229   : > { %v1985_v19 = vpop.f32.mrb[32].mxu0  ;;  %v2371_v20 = vpop.f32.mrb[32].mxu1 }
 0x22a   : > { %v2923_v21 = vadd.f32 %v4822_v7, %v1985_v19  ;;  %v2925_v22 = vadd.f32 %v4824_v8, %v2371_v20  ;;  %v1987_v23 = vpop.f32.mrb[33].mxu0  ;;  %v2373_v24 = vpop.f32.mrb[33].mxu1 }
 0x22b   : > { %v2924_v25 = vadd.f32 %v4826_v9, %v1987_v23  ;;  %v2926_v26 = vadd.f32 %v4828_v10, %v2373_v24  ;;  %v1989_v27 = vpop.f32.mrb[34].mxu0  ;;  %v2375_v28 = vpop.f32.mrb[34].mxu1 }
 0x22c   : > { %3051 = vst [vmem:[%s4836_s20 + $0x200] sm:$0xff] %v2923_v21  ;;  %3053 = vst [vmem:[%s4836_s20 + $0x210] sm:$0xff] %v2925_v22  ;;  %v2927_v29 = vadd.f32 %v4822_v7, %v1989_v27  ;;  %v2929_v30 = vadd.f32 %v4824_v8, %v2375_v28  ;;  %v1991_v31 = vpop.f32.mrb[35].mxu0  ;;  %v2377_v32 = vpop.f32.mrb[35].mxu1 }
 0x22d   : > { %3052 = vst [vmem:[%s4836_s20 + $0x208] sm:$0xff] %v2924_v25  ;;  %3054 = vst [vmem:[%s4836_s20 + $0x218] sm:$0xff] %v2926_v26  ;;  %v2928_v33 = vadd.f32 %v4826_v9, %v1991_v31  ;;  %v2930_v34 = vadd.f32 %v4828_v10, %v2377_v32 }
 0x22e   : > { %3055 = vst [vmem:[%s4836_s20 + $0x220] sm:$0xff] %v2927_v29  ;;  %3057 = vst [vmem:[%s4836_s20 + $0x230] sm:$0xff] %v2929_v30 }
 0x22f   : > { %3056 = vst [vmem:[%s4836_s20 + $0x228] sm:$0xff] %v2928_v33  ;;  %3058 = vst [vmem:[%s4836_s20 + $0x238] sm:$0xff] %v2930_v34 }
 0x231   : > { %v1995_v35 = vpop.f32.mrb[36].mxu0  ;;  %v2381_v36 = vpop.f32.mrb[36].mxu1 }
 0x232   : > { %v2931_v37 = vadd.f32 %v4822_v7, %v1995_v35  ;;  %v2933_v38 = vadd.f32 %v4824_v8, %v2381_v36  ;;  %v1997_v39 = vpop.f32.mrb[37].mxu0  ;;  %v2383_v40 = vpop.f32.mrb[37].mxu1 }
 0x233   : > { %v2932_v41 = vadd.f32 %v4826_v9, %v1997_v39  ;;  %v2934_v42 = vadd.f32 %v4828_v10, %v2383_v40  ;;  %v1999_v43 = vpop.f32.mrb[38].mxu0  ;;  %v2385_v44 = vpop.f32.mrb[38].mxu1 }
 0x234   : > { %3059 = vst [vmem:[%s4836_s20 + $0x240] sm:$0xff] %v2931_v37  ;;  %3061 = vst [vmem:[%s4836_s20 + $0x250] sm:$0xff] %v2933_v38  ;;  %v2935_v45 = vadd.f32 %v4822_v7, %v1999_v43  ;;  %v2937_v46 = vadd.f32 %v4824_v8, %v2385_v44  ;;  %v2001_v47 = vpop.f32.mrb[39].mxu0  ;;  %v2387_v48 = vpop.f32.mrb[39].mxu1 }
 0x235   : > { %3060 = vst [vmem:[%s4836_s20 + $0x248] sm:$0xff] %v2932_v41  ;;  %3062 = vst [vmem:[%s4836_s20 + $0x258] sm:$0xff] %v2934_v42  ;;  %v2936_v49 = vadd.f32 %v4826_v9, %v2001_v47  ;;  %v2938_v50 = vadd.f32 %v4828_v10, %v2387_v48 }
 0x236   : > { %3063 = vst [vmem:[%s4836_s20 + $0x260] sm:$0xff] %v2935_v45  ;;  %3065 = vst [vmem:[%s4836_s20 + $0x270] sm:$0xff] %v2937_v46 }
 0x237   : > { %3064 = vst [vmem:[%s4836_s20 + $0x268] sm:$0xff] %v2936_v49  ;;  %3066 = vst [vmem:[%s4836_s20 + $0x278] sm:$0xff] %v2938_v50 }
 0x239   : > { %v2005_v51 = vpop.f32.mrb[40].mxu0  ;;  %v2391_v52 = vpop.f32.mrb[40].mxu1 }
 0x23a   : > { %v2939_v53 = vadd.f32 %v4822_v7, %v2005_v51  ;;  %v2941_v54 = vadd.f32 %v4824_v8, %v2391_v52  ;;  %v2007_v55 = vpop.f32.mrb[41].mxu0  ;;  %v2393_v56 = vpop.f32.mrb[41].mxu1 }
 0x23b   : > { %v2940_v57 = vadd.f32 %v4826_v9, %v2007_v55  ;;  %v2942_v58 = vadd.f32 %v4828_v10, %v2393_v56  ;;  %v2009_v59 = vpop.f32.mrb[42].mxu0  ;;  %v2395_v60 = vpop.f32.mrb[42].mxu1 }
 0x23c   : > { %3067 = vst [vmem:[%s4836_s20 + $0x280] sm:$0xff] %v2939_v53  ;;  %3069 = vst [vmem:[%s4836_s20 + $0x290] sm:$0xff] %v2941_v54  ;;  %v2943_v61 = vadd.f32 %v4822_v7, %v2009_v59  ;;  %v2945_v62 = vadd.f32 %v4824_v8, %v2395_v60  ;;  %v2011_v63 = vpop.f32.mrb[43].mxu0  ;;  %v2397_v0 = vpop.f32.mrb[43].mxu1 }
 0x23d   : > { %3068 = vst [vmem:[%s4836_s20 + $0x288] sm:$0xff] %v2940_v57  ;;  %3070 = vst [vmem:[%s4836_s20 + $0x298] sm:$0xff] %v2942_v58  ;;  %v2944_v1 = vadd.f32 %v4826_v9, %v2011_v63  ;;  %v2946_v2 = vadd.f32 %v4828_v10, %v2397_v0 }
 0x23e   : > { %3071 = vst [vmem:[%s4836_s20 + $0x2a0] sm:$0xff] %v2943_v61  ;;  %3073 = vst [vmem:[%s4836_s20 + $0x2b0] sm:$0xff] %v2945_v62 }
 0x23f   : > { %3072 = vst [vmem:[%s4836_s20 + $0x2a8] sm:$0xff] %v2944_v1  ;;  %3074 = vst [vmem:[%s4836_s20 + $0x2b8] sm:$0xff] %v2946_v2 }
 0x241   : > { %v2015_v3 = vpop.f32.mrb[44].mxu0  ;;  %v2401_v4 = vpop.f32.mrb[44].mxu1 }
 0x242   : > { %v2947_v5 = vadd.f32 %v4822_v7, %v2015_v3  ;;  %v2949_v6 = vadd.f32 %v4824_v8, %v2401_v4  ;;  %v2017_v11 = vpop.f32.mrb[45].mxu0  ;;  %v2403_v12 = vpop.f32.mrb[45].mxu1 }
 0x243   : > { %v2948_v13 = vadd.f32 %v4826_v9, %v2017_v11  ;;  %v2950_v14 = vadd.f32 %v4828_v10, %v2403_v12  ;;  %v2019_v15 = vpop.f32.mrb[46].mxu0  ;;  %v2405_v16 = vpop.f32.mrb[46].mxu1 }
 0x244   : > { %3075 = vst [vmem:[%s4836_s20 + $0x2c0] sm:$0xff] %v2947_v5  ;;  %3077 = vst [vmem:[%s4836_s20 + $0x2d0] sm:$0xff] %v2949_v6  ;;  %v2951_v17 = vadd.f32 %v4822_v7, %v2019_v15  ;;  %v2953_v18 = vadd.f32 %v4824_v8, %v2405_v16  ;;  %v2021_v19 = vpop.f32.mrb[47].mxu0  ;;  %v2407_v20 = vpop.f32.mrb[47].mxu1 }
 0x245   : > { %3076 = vst [vmem:[%s4836_s20 + $0x2c8] sm:$0xff] %v2948_v13  ;;  %3078 = vst [vmem:[%s4836_s20 + $0x2d8] sm:$0xff] %v2950_v14  ;;  %v2952_v21 = vadd.f32 %v4826_v9, %v2021_v19  ;;  %v2954_v22 = vadd.f32 %v4828_v10, %v2407_v20 }
 0x246   : > { %3079 = vst [vmem:[%s4836_s20 + $0x2e0] sm:$0xff] %v2951_v17  ;;  %3081 = vst [vmem:[%s4836_s20 + $0x2f0] sm:$0xff] %v2953_v18 }
 0x247   : > { %3080 = vst [vmem:[%s4836_s20 + $0x2e8] sm:$0xff] %v2952_v21  ;;  %3082 = vst [vmem:[%s4836_s20 + $0x2f8] sm:$0xff] %v2954_v22 }
 0x249   : > { %v2025_v23 = vpop.f32.mrb[48].mxu0  ;;  %v2411_v24 = vpop.f32.mrb[48].mxu1 }
 0x24a   : > { %v2955_v25 = vadd.f32 %v4822_v7, %v2025_v23  ;;  %v2957_v26 = vadd.f32 %v4824_v8, %v2411_v24  ;;  %v2027_v27 = vpop.f32.mrb[49].mxu0  ;;  %v2413_v28 = vpop.f32.mrb[49].mxu1 }
 0x24b   : > { %v2956_v29 = vadd.f32 %v4826_v9, %v2027_v27  ;;  %v2958_v30 = vadd.f32 %v4828_v10, %v2413_v28  ;;  %v2029_v31 = vpop.f32.mrb[50].mxu0  ;;  %v2415_v32 = vpop.f32.mrb[50].mxu1  ;;  %v3145_v27 = vld [vmem:[%s4836_s20 + $0x20] sm:$0xff] (%p5385_p11)  ;;  %v3147_v28 = vld [vmem:[%s4836_s20 + $0x28] sm:$0xff] (%p5385_p11) }
 0x24c   : > { %3083 = vst [vmem:[%s4836_s20 + $0x300] sm:$0xff] %v2955_v25  ;;  %3085 = vst [vmem:[%s4836_s20 + $0x310] sm:$0xff] %v2957_v26  ;;  %v2959_v33 = vadd.f32 %v4822_v7, %v2029_v31  ;;  %v2961_v34 = vadd.f32 %v4824_v8, %v2415_v32  ;;  %v2031_v35 = vpop.f32.mrb[51].mxu0  ;;  %v2417_v36 = vpop.f32.mrb[51].mxu1  ;;  %v3153_v31 = vld [vmem:[%s4836_s20 + $0x40] sm:$0xff] (%p5385_p11)  ;;  %v3155_v32 = vld [vmem:[%s4836_s20 + $0x48] sm:$0xff] (%p5385_p11) }
 0x24d   : > { %3084 = vst [vmem:[%s4836_s20 + $0x308] sm:$0xff] %v2956_v29  ;;  %3086 = vst [vmem:[%s4836_s20 + $0x318] sm:$0xff] %v2958_v30  ;;  %v2960_v37 = vadd.f32 %v4826_v9, %v2031_v35  ;;  %v2962_v38 = vadd.f32 %v4828_v10, %v2417_v36  ;;  %v3149_v29 = vld [vmem:[%s4836_s20 + $0x30] sm:$0xff] (%p5385_p11)  ;;  %v3151_v30 = vld [vmem:[%s4836_s20 + $0x38] sm:$0xff] (%p5385_p11) }
 0x24e   : > { %3087 = vst [vmem:[%s4836_s20 + $0x320] sm:$0xff] %v2959_v33  ;;  %3089 = vst [vmem:[%s4836_s20 + $0x330] sm:$0xff] %v2961_v34  ;;  %v3157_v33 = vld [vmem:[%s4836_s20 + $0x50] sm:$0xff] (%p5385_p11)  ;;  %v3159_v34 = vld [vmem:[%s4836_s20 + $0x58] sm:$0xff] (%p5385_p11) }
 0x24f   : > { %3088 = vst [vmem:[%s4836_s20 + $0x328] sm:$0xff] %v2960_v37  ;;  %3090 = vst [vmem:[%s4836_s20 + $0x338] sm:$0xff] %v2962_v38  ;;  %v3161_v35 = vld [vmem:[%s4836_s20 + $0x60] sm:$0xff] (%p5385_p11)  ;;  %v3163_v36 = vld [vmem:[%s4836_s20 + $0x68] sm:$0xff] (%p5385_p11) }
 0x250   : > { %3146 = vst [vmem:[%s5099_s8 + $0x80] sm:$0xff] (%p5385_p11), %v3145_v27  ;;  %3148 = vst [vmem:[%s5099_s8 + $0x88] sm:$0xff] (%p5385_p11), %v3147_v28  ;;  %v3165_v37 = vld [vmem:[%s4836_s20 + $0x70] sm:$0xff] (%p5385_p11)  ;;  %v3167_v38 = vld [vmem:[%s4836_s20 + $0x78] sm:$0xff] (%p5385_p11) }
 0x251   : > { %v2035_v39 = vpop.f32.mrb[52].mxu0  ;;  %v2421_v40 = vpop.f32.mrb[52].mxu1  ;;  %3150 = vst [vmem:[%s5099_s8 + $0x90] sm:$0xff] (%p5385_p11), %v3149_v29  ;;  %3152 = vst [vmem:[%s5099_s8 + $0x98] sm:$0xff] (%p5385_p11), %v3151_v30  ;;  %v3273_v27 = vld [vmem:[%s4836_s20 + $0x220] sm:$0xff] (%p5385_p11)  ;;  %v3275_v28 = vld [vmem:[%s4836_s20 + $0x228] sm:$0xff] (%p5385_p11) }
 0x252   : > { %v2963_v41 = vadd.f32 %v4822_v7, %v2035_v39  ;;  %v2965_v42 = vadd.f32 %v4824_v8, %v2421_v40  ;;  %v2037_v43 = vpop.f32.mrb[53].mxu0  ;;  %v2423_v44 = vpop.f32.mrb[53].mxu1  ;;  %3154 = vst [vmem:[%s5099_s8 + $0x100] sm:$0xff] (%p5385_p11), %v3153_v31  ;;  %3156 = vst [vmem:[%s5099_s8 + $0x108] sm:$0xff] (%p5385_p11), %v3155_v32  ;;  %v3169_v39 = vld [vmem:[%s4836_s20 + $0x80] sm:$0xff] (%p5385_p11)  ;;  %v3171_v40 = vld [vmem:[%s4836_s20 + $0x88] sm:$0xff] (%p5385_p11) }
 0x253   : > { %v2964_v45 = vadd.f32 %v4826_v9, %v2037_v43  ;;  %v2966_v46 = vadd.f32 %v4828_v10, %v2423_v44  ;;  %v2039_v47 = vpop.f32.mrb[54].mxu0  ;;  %v2425_v48 = vpop.f32.mrb[54].mxu1  ;;  %3158 = vst [vmem:[%s5099_s8 + $0x110] sm:$0xff] (%p5385_p11), %v3157_v33  ;;  %3160 = vst [vmem:[%s5099_s8 + $0x118] sm:$0xff] (%p5385_p11), %v3159_v34  ;;  %v3177_v43 = vld [vmem:[%s4836_s20 + $0xa0] sm:$0xff] (%p5385_p11)  ;;  %v3179_v44 = vld [vmem:[%s4836_s20 + $0xa8] sm:$0xff] (%p5385_p11) }
 0x254   : > { %3091 = vst [vmem:[%s4836_s20 + $0x340] sm:$0xff] %v2963_v41  ;;  %3093 = vst [vmem:[%s4836_s20 + $0x350] sm:$0xff] %v2965_v42  ;;  %v2967_v49 = vadd.f32 %v4822_v7, %v2039_v47  ;;  %v2969_v50 = vadd.f32 %v4824_v8, %v2425_v48  ;;  %v2041_v51 = vpop.f32.mrb[55].mxu0  ;;  %v2427_v52 = vpop.f32.mrb[55].mxu1  ;;  %v3173_v41 = vld [vmem:[%s4836_s20 + $0x90] sm:$0xff] (%p5385_p11)  ;;  %v3175_v42 = vld [vmem:[%s4836_s20 + $0x98] sm:$0xff] (%p5385_p11) }
 0x255   : > { %3092 = vst [vmem:[%s4836_s20 + $0x348] sm:$0xff] %v2964_v45  ;;  %3094 = vst [vmem:[%s4836_s20 + $0x358] sm:$0xff] %v2966_v46  ;;  %v2968_v53 = vadd.f32 %v4826_v9, %v2041_v51  ;;  %v2970_v54 = vadd.f32 %v4828_v10, %v2427_v52  ;;  %v3181_v45 = vld [vmem:[%s4836_s20 + $0xb0] sm:$0xff] (%p5385_p11)  ;;  %v3183_v46 = vld [vmem:[%s4836_s20 + $0xb8] sm:$0xff] (%p5385_p11) }
 0x256   : > { %3095 = vst [vmem:[%s4836_s20 + $0x360] sm:$0xff] %v2967_v49  ;;  %3097 = vst [vmem:[%s4836_s20 + $0x370] sm:$0xff] %v2969_v50  ;;  %v3185_v47 = vld [vmem:[%s4836_s20 + $0xc0] sm:$0xff] (%p5385_p11)  ;;  %v3187_v48 = vld [vmem:[%s4836_s20 + $0xc8] sm:$0xff] (%p5385_p11) }
 0x257   : > { %3096 = vst [vmem:[%s4836_s20 + $0x368] sm:$0xff] %v2968_v53  ;;  %3098 = vst [vmem:[%s4836_s20 + $0x378] sm:$0xff] %v2970_v54  ;;  %v3189_v49 = vld [vmem:[%s4836_s20 + $0xd0] sm:$0xff] (%p5385_p11)  ;;  %v3191_v50 = vld [vmem:[%s4836_s20 + $0xd8] sm:$0xff] (%p5385_p11) }
 0x258   : > { %3162 = vst [vmem:[%s5099_s8 + $0x180] sm:$0xff] (%p5385_p11), %v3161_v35  ;;  %3164 = vst [vmem:[%s5099_s8 + $0x188] sm:$0xff] (%p5385_p11), %v3163_v36  ;;  %v3193_v51 = vld [vmem:[%s4836_s20 + $0xe0] sm:$0xff] (%p5385_p11)  ;;  %v3195_v52 = vld [vmem:[%s4836_s20 + $0xe8] sm:$0xff] (%p5385_p11) }
 0x259   : > { %v2045_v55 = vpop.f32.mrb[56].mxu0  ;;  %v2431_v56 = vpop.f32.mrb[56].mxu1  ;;  %3166 = vst [vmem:[%s5099_s8 + $0x190] sm:$0xff] (%p5385_p11), %v3165_v37  ;;  %3168 = vst [vmem:[%s5099_s8 + $0x198] sm:$0xff] (%p5385_p11), %v3167_v38  ;;  %v3197_v53 = vld [vmem:[%s4836_s20 + $0xf0] sm:$0xff] (%p5385_p11)  ;;  %v3199_v54 = vld [vmem:[%s4836_s20 + $0xf8] sm:$0xff] (%p5385_p11) }
 0x25a   : > { %v2971_v57 = vadd.f32 %v4822_v7, %v2045_v55  ;;  %v2973_v58 = vadd.f32 %v4824_v8, %v2431_v56  ;;  %v2047_v59 = vpop.f32.mrb[57].mxu0  ;;  %v2433_v60 = vpop.f32.mrb[57].mxu1  ;;  %3170 = vst [vmem:[%s5099_s8 + $0x200] sm:$0xff] (%p5385_p11), %v3169_v39  ;;  %3172 = vst [vmem:[%s5099_s8 + $0x208] sm:$0xff] (%p5385_p11), %v3171_v40  ;;  %v3201_v55 = vld [vmem:[%s4836_s20 + $0x100] sm:$0xff] (%p5385_p11)  ;;  %v3203_v56 = vld [vmem:[%s4836_s20 + $0x108] sm:$0xff] (%p5385_p11) }
 0x25b   : > { %v2972_v61 = vadd.f32 %v4826_v9, %v2047_v59  ;;  %v2974_v62 = vadd.f32 %v4828_v10, %v2433_v60  ;;  %v2049_v63 = vpop.f32.mrb[58].mxu0  ;;  %v2435_v0 = vpop.f32.mrb[58].mxu1  ;;  %3174 = vst [vmem:[%s5099_s8 + $0x210] sm:$0xff] (%p5385_p11), %v3173_v41  ;;  %3176 = vst [vmem:[%s5099_s8 + $0x218] sm:$0xff] (%p5385_p11), %v3175_v42  ;;  %v3209_v59 = vld [vmem:[%s4836_s20 + $0x120] sm:$0xff] (%p5385_p11)  ;;  %v3211_v60 = vld [vmem:[%s4836_s20 + $0x128] sm:$0xff] (%p5385_p11) }
 0x25c   : > { %3099 = vst [vmem:[%s4836_s20 + $0x380] sm:$0xff] %v2971_v57  ;;  %3101 = vst [vmem:[%s4836_s20 + $0x390] sm:$0xff] %v2973_v58  ;;  %v2975_v1 = vadd.f32 %v4822_v7, %v2049_v63  ;;  %v2977_v2 = vadd.f32 %v4824_v8, %v2435_v0  ;;  %v2051_v3 = vpop.f32.mrb[59].mxu0  ;;  %v2437_v4 = vpop.f32.mrb[59].mxu1  ;;  %v3205_v57 = vld [vmem:[%s4836_s20 + $0x110] sm:$0xff] (%p5385_p11)  ;;  %v3207_v58 = vld [vmem:[%s4836_s20 + $0x118] sm:$0xff] (%p5385_p11) }
 0x25d   : > { %3100 = vst [vmem:[%s4836_s20 + $0x388] sm:$0xff] %v2972_v61  ;;  %3102 = vst [vmem:[%s4836_s20 + $0x398] sm:$0xff] %v2974_v62  ;;  %v2976_v5 = vadd.f32 %v4826_v9, %v2051_v3  ;;  %v2978_v6 = vadd.f32 %v4828_v10, %v2437_v4  ;;  %v3213_v61 = vld [vmem:[%s4836_s20 + $0x130] sm:$0xff] (%p5385_p11)  ;;  %v3215_v62 = vld [vmem:[%s4836_s20 + $0x138] sm:$0xff] (%p5385_p11) }
 0x25e   : > { %3103 = vst [vmem:[%s4836_s20 + $0x3a0] sm:$0xff] %v2975_v1  ;;  %3105 = vst [vmem:[%s4836_s20 + $0x3b0] sm:$0xff] %v2977_v2  ;;  %v3217_v63 = vld [vmem:[%s4836_s20 + $0x140] sm:$0xff] (%p5385_p11)  ;;  %v3219_v0 = vld [vmem:[%s4836_s20 + $0x148] sm:$0xff] (%p5385_p11) }
 0x25f   : > { %3104 = vst [vmem:[%s4836_s20 + $0x3a8] sm:$0xff] %v2976_v5  ;;  %3106 = vst [vmem:[%s4836_s20 + $0x3b8] sm:$0xff] %v2978_v6  ;;  %v3221_v1 = vld [vmem:[%s4836_s20 + $0x150] sm:$0xff] (%p5385_p11)  ;;  %v3223_v2 = vld [vmem:[%s4836_s20 + $0x158] sm:$0xff] (%p5385_p11) }
 0x260   : > { %3178 = vst [vmem:[%s5099_s8 + $0x280] sm:$0xff] (%p5385_p11), %v3177_v43  ;;  %3180 = vst [vmem:[%s5099_s8 + $0x288] sm:$0xff] (%p5385_p11), %v3179_v44  ;;  %v3225_v3 = vld [vmem:[%s4836_s20 + $0x160] sm:$0xff] (%p5385_p11)  ;;  %v3227_v4 = vld [vmem:[%s4836_s20 + $0x168] sm:$0xff] (%p5385_p11) }
 0x261   : > { %v2055_v11 = vpop.f32.mrb[60].mxu0  ;;  %v2441_v12 = vpop.f32.mrb[60].mxu1  ;;  %3121 = sbr.rel (!%p5385_p11) target bundleno = 668 (0x29c), region = 52  ;;  %3182 = vst [vmem:[%s5099_s8 + $0x290] sm:$0xff] (%p5385_p11), %v3181_v45  ;;  %3184 = vst [vmem:[%s5099_s8 + $0x298] sm:$0xff] (%p5385_p11), %v3183_v46  ;;  %v3229_v5 = vld [vmem:[%s4836_s20 + $0x170] sm:$0xff] (%p5385_p11) }
 0x262   : > { %v2979_v13 = vadd.f32 %v4822_v7, %v2055_v11  ;;  %v2981_v14 = vadd.f32 %v4824_v8, %v2441_v12  ;;  %v2057_v15 = vpop.f32.mrb[61].mxu0  ;;  %v2443_v16 = vpop.f32.mrb[61].mxu1  ;;  %3186 = vst [vmem:[%s5099_s8 + $0x300] sm:$0xff] (%p5385_p11), %v3185_v47  ;;  %3188 = vst [vmem:[%s5099_s8 + $0x308] sm:$0xff] (%p5385_p11), %v3187_v48  ;;  %v3231_v6 = vld [vmem:[%s4836_s20 + $0x178] sm:$0xff] (%p5385_p11)  ;;  %v3233_v11 = vld [vmem:[%s4836_s20 + $0x180] sm:$0xff] (%p5385_p11) }
 0x263   : > { %v2980_v17 = vadd.f32 %v4826_v9, %v2057_v15  ;;  %v2982_v18 = vadd.f32 %v4828_v10, %v2443_v16  ;;  %v2059_v19 = vpop.f32.mrb[62].mxu0  ;;  %v2445_v20 = vpop.f32.mrb[62].mxu1  ;;  %3190 = vst [vmem:[%s5099_s8 + $0x310] sm:$0xff] (%p5385_p11), %v3189_v49  ;;  %3192 = vst [vmem:[%s5099_s8 + $0x318] sm:$0xff] (%p5385_p11), %v3191_v50  ;;  %v3235_v12 = vld [vmem:[%s4836_s20 + $0x188] sm:$0xff] (%p5385_p11)  ;;  %v3241_v15 = vld [vmem:[%s4836_s20 + $0x1a0] sm:$0xff] (%p5385_p11) }
 0x264   : > { %3107 = vst [vmem:[%s4836_s20 + $0x3c0] sm:$0xff] %v2979_v13  ;;  %3109 = vst [vmem:[%s4836_s20 + $0x3d0] sm:$0xff] %v2981_v14  ;;  %v2983_v21 = vadd.f32 %v4822_v7, %v2059_v19  ;;  %v2985_v22 = vadd.f32 %v4824_v8, %v2445_v20  ;;  %v2061_v23 = vpop.f32.mrb[63].mxu0  ;;  %v2447_v24 = vpop.f32.mrb[63].mxu1  ;;  %v3137_v7 = vld [vmem:[%s4836_s20] sm:$0xff] (%p5385_p11)  ;;  %v3139_v8 = vld [vmem:[%s4836_s20 + $0x8] sm:$0xff] (%p5385_p11) }
 0x265   : > { %3108 = vst [vmem:[%s4836_s20 + $0x3c8] sm:$0xff] %v2980_v17  ;;  %3110 = vst [vmem:[%s4836_s20 + $0x3d8] sm:$0xff] %v2982_v18  ;;  %v2984_v25 = vadd.f32 %v4826_v9, %v2061_v23  ;;  %v2986_v26 = vadd.f32 %v4828_v10, %v2447_v24  ;;  %v3141_v9 = vld [vmem:[%s4836_s20 + $0x10] sm:$0xff] (%p5385_p11)  ;;  %v3143_v10 = vld [vmem:[%s4836_s20 + $0x18] sm:$0xff] (%p5385_p11) }
 0x266   : > { %3111 = vst [vmem:[%s4836_s20 + $0x3e0] sm:$0xff] %v2983_v21  ;;  %3113 = vst [vmem:[%s4836_s20 + $0x3f0] sm:$0xff] %v2985_v22  ;;  %v3237_v13 = vld [vmem:[%s4836_s20 + $0x190] sm:$0xff] (%p5385_p11)  ;;  %v3239_v14 = vld [vmem:[%s4836_s20 + $0x198] sm:$0xff] (%p5385_p11) }
 0x267   : > { %3112 = vst [vmem:[%s4836_s20 + $0x3e8] sm:$0xff] %v2984_v25  ;;  %3114 = vst [vmem:[%s4836_s20 + $0x3f8] sm:$0xff] %v2986_v26  ;;  %v3243_v16 = vld [vmem:[%s4836_s20 + $0x1a8] sm:$0xff] (%p5385_p11)  ;;  %v3245_v17 = vld [vmem:[%s4836_s20 + $0x1b0] sm:$0xff] (%p5385_p11) }
 0x268   : > { %3138 = vst [vmem:[%s5099_s8] sm:$0xff] %v3137_v7  ;;  %3140 = vst [vmem:[%s5099_s8 + $0x8] sm:$0xff] %v3139_v8  ;;  %v3247_v18 = vld [vmem:[%s4836_s20 + $0x1b8] sm:$0xff]  ;;  %v3249_v19 = vld [vmem:[%s4836_s20 + $0x1c0] sm:$0xff] }
 0x269   : > { %3142 = vst [vmem:[%s5099_s8 + $0x10] sm:$0xff] %v3141_v9  ;;  %3144 = vst [vmem:[%s5099_s8 + $0x18] sm:$0xff] %v3143_v10  ;;  %v3251_v20 = vld [vmem:[%s4836_s20 + $0x1c8] sm:$0xff]  ;;  %v3253_v21 = vld [vmem:[%s4836_s20 + $0x1d0] sm:$0xff] }
 0x26a   : > { %3194 = vst [vmem:[%s5099_s8 + $0x380] sm:$0xff] %v3193_v51  ;;  %3196 = vst [vmem:[%s5099_s8 + $0x388] sm:$0xff] %v3195_v52  ;;  %v3255_v22 = vld [vmem:[%s4836_s20 + $0x1d8] sm:$0xff]  ;;  %v3257_v23 = vld [vmem:[%s4836_s20 + $0x1e0] sm:$0xff] }
 0x26b   : > { %3198 = vst [vmem:[%s5099_s8 + $0x390] sm:$0xff] %v3197_v53  ;;  %3200 = vst [vmem:[%s5099_s8 + $0x398] sm:$0xff] %v3199_v54  ;;  %v3259_v24 = vld [vmem:[%s4836_s20 + $0x1e8] sm:$0xff]  ;;  %v3261_v25 = vld [vmem:[%s4836_s20 + $0x1f0] sm:$0xff] }
 0x26c   : > { %3202 = vst [vmem:[%s5099_s8 + $0x400] sm:$0xff] %v3201_v55  ;;  %3204 = vst [vmem:[%s5099_s8 + $0x408] sm:$0xff] %v3203_v56  ;;  %v3263_v26 = vld [vmem:[%s4836_s20 + $0x1f8] sm:$0xff]  ;;  %v3265_v7 = vld [vmem:[%s4836_s20 + $0x200] sm:$0xff] }
 0x26d   : > { %3206 = vst [vmem:[%s5099_s8 + $0x410] sm:$0xff] %v3205_v57  ;;  %3208 = vst [vmem:[%s5099_s8 + $0x418] sm:$0xff] %v3207_v58  ;;  %v3267_v8 = vld [vmem:[%s4836_s20 + $0x208] sm:$0xff]  ;;  %v3269_v9 = vld [vmem:[%s4836_s20 + $0x210] sm:$0xff] }
 0x26e   : > { %3210 = vst [vmem:[%s5099_s8 + $0x480] sm:$0xff] %v3209_v59  ;;  %3212 = vst [vmem:[%s5099_s8 + $0x488] sm:$0xff] %v3211_v60  ;;  %v3271_v10 = vld [vmem:[%s4836_s20 + $0x218] sm:$0xff]  ;;  %v3277_v29 = vld [vmem:[%s4836_s20 + $0x230] sm:$0xff] }
 0x26f   : > { %3214 = vst [vmem:[%s5099_s8 + $0x490] sm:$0xff] %v3213_v61  ;;  %3216 = vst [vmem:[%s5099_s8 + $0x498] sm:$0xff] %v3215_v62  ;;  %v3279_v30 = vld [vmem:[%s4836_s20 + $0x238] sm:$0xff]  ;;  %v3281_v31 = vld [vmem:[%s4836_s20 + $0x240] sm:$0xff] }
 0x270   : > { %3218 = vst [vmem:[%s5099_s8 + $0x500] sm:$0xff] %v3217_v63  ;;  %3220 = vst [vmem:[%s5099_s8 + $0x508] sm:$0xff] %v3219_v0  ;;  %v3283_v32 = vld [vmem:[%s4836_s20 + $0x248] sm:$0xff]  ;;  %v3285_v33 = vld [vmem:[%s4836_s20 + $0x250] sm:$0xff] }
 0x271   : > { %3222 = vst [vmem:[%s5099_s8 + $0x510] sm:$0xff] %v3221_v1  ;;  %3224 = vst [vmem:[%s5099_s8 + $0x518] sm:$0xff] %v3223_v2  ;;  %v3287_v34 = vld [vmem:[%s4836_s20 + $0x258] sm:$0xff]  ;;  %v3289_v35 = vld [vmem:[%s4836_s20 + $0x260] sm:$0xff] }
 0x272   : > { %3226 = vst [vmem:[%s5099_s8 + $0x580] sm:$0xff] %v3225_v3  ;;  %3228 = vst [vmem:[%s5099_s8 + $0x588] sm:$0xff] %v3227_v4  ;;  %v3291_v36 = vld [vmem:[%s4836_s20 + $0x268] sm:$0xff]  ;;  %v3293_v37 = vld [vmem:[%s4836_s20 + $0x270] sm:$0xff] }
 0x273   : > { %3230 = vst [vmem:[%s5099_s8 + $0x590] sm:$0xff] %v3229_v5  ;;  %3232 = vst [vmem:[%s5099_s8 + $0x598] sm:$0xff] %v3231_v6  ;;  %v3295_v38 = vld [vmem:[%s4836_s20 + $0x278] sm:$0xff]  ;;  %v3297_v39 = vld [vmem:[%s4836_s20 + $0x280] sm:$0xff] }
 0x274   : > { %3234 = vst [vmem:[%s5099_s8 + $0x600] sm:$0xff] %v3233_v11  ;;  %3236 = vst [vmem:[%s5099_s8 + $0x608] sm:$0xff] %v3235_v12  ;;  %v3299_v40 = vld [vmem:[%s4836_s20 + $0x288] sm:$0xff]  ;;  %v3301_v41 = vld [vmem:[%s4836_s20 + $0x290] sm:$0xff] }
 0x275   : > { %3238 = vst [vmem:[%s5099_s8 + $0x610] sm:$0xff] %v3237_v13  ;;  %3240 = vst [vmem:[%s5099_s8 + $0x618] sm:$0xff] %v3239_v14  ;;  %v3303_v42 = vld [vmem:[%s4836_s20 + $0x298] sm:$0xff]  ;;  %v3305_v43 = vld [vmem:[%s4836_s20 + $0x2a0] sm:$0xff] }
 0x276   : > { %3242 = vst [vmem:[%s5099_s8 + $0x680] sm:$0xff] %v3241_v15  ;;  %3244 = vst [vmem:[%s5099_s8 + $0x688] sm:$0xff] %v3243_v16  ;;  %v3307_v44 = vld [vmem:[%s4836_s20 + $0x2a8] sm:$0xff]  ;;  %v3309_v45 = vld [vmem:[%s4836_s20 + $0x2b0] sm:$0xff] }
 0x277   : > { %3246 = vst [vmem:[%s5099_s8 + $0x690] sm:$0xff] %v3245_v17  ;;  %3248 = vst [vmem:[%s5099_s8 + $0x698] sm:$0xff] %v3247_v18  ;;  %v3311_v46 = vld [vmem:[%s4836_s20 + $0x2b8] sm:$0xff]  ;;  %v3313_v47 = vld [vmem:[%s4836_s20 + $0x2c0] sm:$0xff] }
 0x278   : > { %3250 = vst [vmem:[%s5099_s8 + $0x700] sm:$0xff] %v3249_v19  ;;  %3252 = vst [vmem:[%s5099_s8 + $0x708] sm:$0xff] %v3251_v20  ;;  %v3315_v48 = vld [vmem:[%s4836_s20 + $0x2c8] sm:$0xff]  ;;  %v3317_v49 = vld [vmem:[%s4836_s20 + $0x2d0] sm:$0xff] }
 0x279   : > { %3254 = vst [vmem:[%s5099_s8 + $0x710] sm:$0xff] %v3253_v21  ;;  %3256 = vst [vmem:[%s5099_s8 + $0x718] sm:$0xff] %v3255_v22  ;;  %v3319_v50 = vld [vmem:[%s4836_s20 + $0x2d8] sm:$0xff]  ;;  %v3321_v51 = vld [vmem:[%s4836_s20 + $0x2e0] sm:$0xff] }
 0x27a   : > { %3258 = vst [vmem:[%s5099_s8 + $0x780] sm:$0xff] %v3257_v23  ;;  %3260 = vst [vmem:[%s5099_s8 + $0x788] sm:$0xff] %v3259_v24  ;;  %v3323_v52 = vld [vmem:[%s4836_s20 + $0x2e8] sm:$0xff]  ;;  %v3325_v53 = vld [vmem:[%s4836_s20 + $0x2f0] sm:$0xff] }
 0x27b   : > { %3262 = vst [vmem:[%s5099_s8 + $0x790] sm:$0xff] %v3261_v25  ;;  %3264 = vst [vmem:[%s5099_s8 + $0x798] sm:$0xff] %v3263_v26  ;;  %v3327_v54 = vld [vmem:[%s4836_s20 + $0x2f8] sm:$0xff]  ;;  %v3329_v55 = vld [vmem:[%s4836_s20 + $0x300] sm:$0xff] }
 0x27c   : > { %3266 = vst [vmem:[%s5099_s8 + $0x800] sm:$0xff] %v3265_v7  ;;  %3268 = vst [vmem:[%s5099_s8 + $0x808] sm:$0xff] %v3267_v8  ;;  %v3331_v56 = vld [vmem:[%s4836_s20 + $0x308] sm:$0xff]  ;;  %v3333_v57 = vld [vmem:[%s4836_s20 + $0x310] sm:$0xff] }
 0x27d   : > { %3270 = vst [vmem:[%s5099_s8 + $0x810] sm:$0xff] %v3269_v9  ;;  %3272 = vst [vmem:[%s5099_s8 + $0x818] sm:$0xff] %v3271_v10  ;;  %v3335_v58 = vld [vmem:[%s4836_s20 + $0x318] sm:$0xff]  ;;  %v3337_v59 = vld [vmem:[%s4836_s20 + $0x320] sm:$0xff] }
 0x27e   : > { %3274 = vst [vmem:[%s5099_s8 + $0x880] sm:$0xff] %v3273_v27  ;;  %3276 = vst [vmem:[%s5099_s8 + $0x888] sm:$0xff] %v3275_v28  ;;  %v3339_v60 = vld [vmem:[%s4836_s20 + $0x328] sm:$0xff]  ;;  %v3341_v61 = vld [vmem:[%s4836_s20 + $0x330] sm:$0xff] }
 0x27f   : > { %3278 = vst [vmem:[%s5099_s8 + $0x890] sm:$0xff] %v3277_v29  ;;  %3280 = vst [vmem:[%s5099_s8 + $0x898] sm:$0xff] %v3279_v30  ;;  %v3343_v62 = vld [vmem:[%s4836_s20 + $0x338] sm:$0xff]  ;;  %v3345_v63 = vld [vmem:[%s4836_s20 + $0x340] sm:$0xff] }
 0x280   : > { %3282 = vst [vmem:[%s5099_s8 + $0x900] sm:$0xff] %v3281_v31  ;;  %3284 = vst [vmem:[%s5099_s8 + $0x908] sm:$0xff] %v3283_v32  ;;  %v3347_v0 = vld [vmem:[%s4836_s20 + $0x348] sm:$0xff]  ;;  %v3349_v1 = vld [vmem:[%s4836_s20 + $0x350] sm:$0xff] }
 0x281   : > { %3286 = vst [vmem:[%s5099_s8 + $0x910] sm:$0xff] %v3285_v33  ;;  %3288 = vst [vmem:[%s5099_s8 + $0x918] sm:$0xff] %v3287_v34  ;;  %v3351_v2 = vld [vmem:[%s4836_s20 + $0x358] sm:$0xff]  ;;  %v3353_v3 = vld [vmem:[%s4836_s20 + $0x360] sm:$0xff] }
 0x282   : > { %3290 = vst [vmem:[%s5099_s8 + $0x980] sm:$0xff] %v3289_v35  ;;  %3292 = vst [vmem:[%s5099_s8 + $0x988] sm:$0xff] %v3291_v36  ;;  %v3355_v4 = vld [vmem:[%s4836_s20 + $0x368] sm:$0xff]  ;;  %v3357_v5 = vld [vmem:[%s4836_s20 + $0x370] sm:$0xff] }
 0x283   : > { %3294 = vst [vmem:[%s5099_s8 + $0x990] sm:$0xff] %v3293_v37  ;;  %3296 = vst [vmem:[%s5099_s8 + $0x998] sm:$0xff] %v3295_v38  ;;  %v3359_v6 = vld [vmem:[%s4836_s20 + $0x378] sm:$0xff]  ;;  %v3361_v11 = vld [vmem:[%s4836_s20 + $0x380] sm:$0xff] }
 0x284   : > { %3298 = vst [vmem:[%s5099_s8 + $0xa00] sm:$0xff] %v3297_v39  ;;  %3300 = vst [vmem:[%s5099_s8 + $0xa08] sm:$0xff] %v3299_v40  ;;  %v3363_v12 = vld [vmem:[%s4836_s20 + $0x388] sm:$0xff]  ;;  %v3365_v13 = vld [vmem:[%s4836_s20 + $0x390] sm:$0xff] }
 0x285   : > { %3302 = vst [vmem:[%s5099_s8 + $0xa10] sm:$0xff] %v3301_v41  ;;  %3304 = vst [vmem:[%s5099_s8 + $0xa18] sm:$0xff] %v3303_v42  ;;  %v3367_v14 = vld [vmem:[%s4836_s20 + $0x398] sm:$0xff]  ;;  %v3369_v15 = vld [vmem:[%s4836_s20 + $0x3a0] sm:$0xff] }
 0x286   : > { %3306 = vst [vmem:[%s5099_s8 + $0xa80] sm:$0xff] %v3305_v43  ;;  %3308 = vst [vmem:[%s5099_s8 + $0xa88] sm:$0xff] %v3307_v44  ;;  %v3371_v16 = vld [vmem:[%s4836_s20 + $0x3a8] sm:$0xff]  ;;  %v3373_v17 = vld [vmem:[%s4836_s20 + $0x3b0] sm:$0xff] }
 0x287   : > { %3310 = vst [vmem:[%s5099_s8 + $0xa90] sm:$0xff] %v3309_v45  ;;  %3312 = vst [vmem:[%s5099_s8 + $0xa98] sm:$0xff] %v3311_v46  ;;  %v3375_v18 = vld [vmem:[%s4836_s20 + $0x3b8] sm:$0xff]  ;;  %v3377_v19 = vld [vmem:[%s4836_s20 + $0x3c0] sm:$0xff] }
 0x288   : > { %3314 = vst [vmem:[%s5099_s8 + $0xb00] sm:$0xff] %v3313_v47  ;;  %3316 = vst [vmem:[%s5099_s8 + $0xb08] sm:$0xff] %v3315_v48  ;;  %v3379_v20 = vld [vmem:[%s4836_s20 + $0x3c8] sm:$0xff]  ;;  %v3381_v21 = vld [vmem:[%s4836_s20 + $0x3d0] sm:$0xff] }
 0x289   : > { %3318 = vst [vmem:[%s5099_s8 + $0xb10] sm:$0xff] %v3317_v49  ;;  %3320 = vst [vmem:[%s5099_s8 + $0xb18] sm:$0xff] %v3319_v50  ;;  %v3383_v22 = vld [vmem:[%s4836_s20 + $0x3d8] sm:$0xff]  ;;  %v3385_v23 = vld [vmem:[%s4836_s20 + $0x3e0] sm:$0xff] }
 0x28a   : > { %3322 = vst [vmem:[%s5099_s8 + $0xb80] sm:$0xff] %v3321_v51  ;;  %3324 = vst [vmem:[%s5099_s8 + $0xb88] sm:$0xff] %v3323_v52  ;;  %v3387_v24 = vld [vmem:[%s4836_s20 + $0x3e8] sm:$0xff]  ;;  %v3389_v25 = vld [vmem:[%s4836_s20 + $0x3f0] sm:$0xff] }
 0x28b   : > { %3326 = vst [vmem:[%s5099_s8 + $0xb90] sm:$0xff] %v3325_v53  ;;  %3328 = vst [vmem:[%s5099_s8 + $0xb98] sm:$0xff] %v3327_v54  ;;  %v3391_v26 = vld [vmem:[%s4836_s20 + $0x3f8] sm:$0xff] }
 0x28c   : > { %3330 = vst [vmem:[%s5099_s8 + $0xc00] sm:$0xff] %v3329_v55  ;;  %3332 = vst [vmem:[%s5099_s8 + $0xc08] sm:$0xff] %v3331_v56 }
 0x28d   : > { %3334 = vst [vmem:[%s5099_s8 + $0xc10] sm:$0xff] %v3333_v57  ;;  %3336 = vst [vmem:[%s5099_s8 + $0xc18] sm:$0xff] %v3335_v58 }
 0x28e   : > { %3338 = vst [vmem:[%s5099_s8 + $0xc80] sm:$0xff] %v3337_v59  ;;  %3340 = vst [vmem:[%s5099_s8 + $0xc88] sm:$0xff] %v3339_v60 }
 0x28f   : > { %3342 = vst [vmem:[%s5099_s8 + $0xc90] sm:$0xff] %v3341_v61  ;;  %3344 = vst [vmem:[%s5099_s8 + $0xc98] sm:$0xff] %v3343_v62 }
 0x290   : > { %3346 = vst [vmem:[%s5099_s8 + $0xd00] sm:$0xff] %v3345_v63  ;;  %3348 = vst [vmem:[%s5099_s8 + $0xd08] sm:$0xff] %v3347_v0 }
 0x291   : > { %3350 = vst [vmem:[%s5099_s8 + $0xd10] sm:$0xff] %v3349_v1  ;;  %3352 = vst [vmem:[%s5099_s8 + $0xd18] sm:$0xff] %v3351_v2 }
 0x292   : > { %3354 = vst [vmem:[%s5099_s8 + $0xd80] sm:$0xff] %v3353_v3  ;;  %3356 = vst [vmem:[%s5099_s8 + $0xd88] sm:$0xff] %v3355_v4 }
 0x293   : > { %3358 = vst [vmem:[%s5099_s8 + $0xd90] sm:$0xff] %v3357_v5  ;;  %3360 = vst [vmem:[%s5099_s8 + $0xd98] sm:$0xff] %v3359_v6 }
 0x294   : > { %3362 = vst [vmem:[%s5099_s8 + $0xe00] sm:$0xff] %v3361_v11  ;;  %3364 = vst [vmem:[%s5099_s8 + $0xe08] sm:$0xff] %v3363_v12 }
 0x295   : > { %3366 = vst [vmem:[%s5099_s8 + $0xe10] sm:$0xff] %v3365_v13  ;;  %3368 = vst [vmem:[%s5099_s8 + $0xe18] sm:$0xff] %v3367_v14 }
 0x296   : > { %3370 = vst [vmem:[%s5099_s8 + $0xe80] sm:$0xff] %v3369_v15  ;;  %3372 = vst [vmem:[%s5099_s8 + $0xe88] sm:$0xff] %v3371_v16 }
 0x297   : > { %3374 = vst [vmem:[%s5099_s8 + $0xe90] sm:$0xff] %v3373_v17  ;;  %3376 = vst [vmem:[%s5099_s8 + $0xe98] sm:$0xff] %v3375_v18 }
 0x298   : > { %3378 = vst [vmem:[%s5099_s8 + $0xf00] sm:$0xff] %v3377_v19  ;;  %3380 = vst [vmem:[%s5099_s8 + $0xf08] sm:$0xff] %v3379_v20 }
 0x299   : > { %3382 = vst [vmem:[%s5099_s8 + $0xf10] sm:$0xff] %v3381_v21  ;;  %3384 = vst [vmem:[%s5099_s8 + $0xf18] sm:$0xff] %v3383_v22 }
 0x29a   : > { %3386 = vst [vmem:[%s5099_s8 + $0xf80] sm:$0xff] %v3385_v23  ;;  %3388 = vst [vmem:[%s5099_s8 + $0xf88] sm:$0xff] %v3387_v24 }
 0x29b   : > { %3390 = vst [vmem:[%s5099_s8 + $0xf90] sm:$0xff] %v3389_v25  ;;  %3392 = vst [vmem:[%s5099_s8 + $0xf98] sm:$0xff] %v3391_v26 }
 0x29c PF: > { %s19_s17 = sadd.s32 1, %s4315_s17   ;;  %s5386_s12 = smov %s4299_s13 }
 0x29d   : > { %p16_p0 = scmp.ge.s32.totalorder %s19_s17, 6   ;;  %s5387_s13 = smov %s4303_s14 }
 0x29e   : > { %s5388_s14 = smov %s4390_s24  ;;  %s5389_s15 = smov %s4311_s16 }
 0x29f   : > { %s5390_s16 = smov %s5392_s19  ;;  %18 = sbr.rel (!%p16_p0) target bundleno = 6 (0x6), region = 119 }
 0x2a6   :  { %3408 = vsyncpa [#allocation4], 1 }
 0x2a7   :  { %3410 = vsyncpa [#allocation4 + $0x1], 1 }
 0x2a8   :  { %3411 = vsyncpa [#allocation6], 1 }
 0x2a9   :  { %3413 = vsyncpa [#allocation6 + $0x1], 1 }

// kernel: graph_con_loss.4
= control target key start
LH: loop header
LB: loop body
LE: loop exit
PB: predicated region body
PF: predicated region fallthrough
CT: control target
= control target key end

     0   :  { %s4181_s12 = smov 0   ;;  %s4183_s13 = smov 0   ;;  %s5047_s0 = inlined_call_operand.vmem [shape: f32[256,2048], index: 0, kind: input, shape index: {}]   ;;  %s5048_s1 = inlined_call_operand.vmem [shape: bf16[2,512,512], index: 1, kind: input, shape index: {}]   ;;  %s5049_s2 = inlined_call_operand.vmem [shape: f32[2,1,512], index: 2, kind: input, shape index: {}]   ;;  %s5050_s3 = inlined_call_operand.vmem [shape: f32[2,256,512], index: 3, kind: output, shape index: {}]  }
   0x1   :  { %s4185_s14 = smov 0   ;;  %s4187_s15 = smov 0  }
   0x2   :  { %s4189_s16 = smov 0  }
   0x3 LB: > { %s32_s17 = sadd.s32 1, %s4155_s15  ;;  %s36_s18 = sadd.s32 2, %s4155_s15  ;;  %s4159_s16 = sphi %s4189_s16, %s13_s16   ;;  %s4155_s15 = sphi %s4187_s15, %s5054_s15   ;;  %s4151_s14 = sphi %s4185_s14, %s5053_s14   ;;  %s4147_s13 = sphi %s4183_s13, %s5052_s13   ;;  %s4143_s12 = sphi %s4181_s12, %s5051_s12  }
   0x4   : > { %p34_p0 = scmp.ge.s32.totalorder %s32_s17, 2  ;;  %p50_p1 = scmp.ne.s32.totalorder %s4147_s13, %s4143_s12 }
   0x5   : > { %p51_p2 = scmp.eq.s32.totalorder %s4159_s16, 0  ;;  %s43_s21 = sadd.s32 1, %s4147_s13 }
   0x6   : > { %s5056_s17 = smov (%p34_p0, %s32_s17), 0  ;;  %p3491_p5 = scmp.ge.s32.totalorder %s4159_s16, 2 }
   0x7   : > { %p52_p3 = por %p51_p2, %p50_p1  ;;  %s38_s19 = sadd.s32 2, %s5056_s17 }
   0x8   : > { %s40_s20 = ssub.s32 %s36_s18, %s38_s19  ;;  %162 = sbr.rel (%p3491_p5) target bundleno = 83 (0x53), region = 16 }
   0x9   : > { %p41_p4 = scmp.eq.s32.totalorder %s40_s20, 0 }
   0xb   : > { %s4216_s22 = scalar_select %p41_p4, %s4147_s13, %s43_s21  }
   0xf   : > { %165 = sbr.rel (!%p52_p3) target bundleno = 83 (0x53), region = 20  ;;  %s167_s23 = sand.u32 (%p52_p3), 1, %s4147_s13  }
  0x10   : > { %s3493_s24 = sshll.u32 (%p52_p3), %s4155_s15, 5  ;;  %s3492_s25 = sshll.u32 (%p52_p3), %s167_s23, 10 }
  0x11   : > { %s4224_s28 = scalar_lea.vmem (%p52_p3), %s5047_s0, %s3493_s24  ;;  %s4229_s29 = scalar_lea.vmem (%p52_p3), [#allocation3], %s3492_s25 }
  0x12   : > { %v3494_v0 = vld [vmem:[%s4224_s28 + $0x40] sm:$0xff] (%p52_p3)  ;;  %v3495_v1 = vld [vmem:[%s4224_s28 + $0x48] sm:$0xff] (%p52_p3)  ;;  %v3496_v2 = vld [vmem:[%s4224_s28 + $0x50] sm:$0xff] (%p52_p3) }
  0x13   : > { %188 = vst [vmem:[%s4229_s29] sm:$0xff] (%p52_p3), %v3494_v0  ;;  %190 = vst [vmem:[%s4229_s29 + $0x8] sm:$0xff] (%p52_p3), %v3495_v1  ;;  %v3497_v3 = vld [vmem:[%s4224_s28 + $0x58] sm:$0xff] (%p52_p3)  ;;  %v3498_v4 = vld [vmem:[%s4224_s28 + $0xc0] sm:$0xff] (%p52_p3) }
  0x14   : > { %192 = vst [vmem:[%s4229_s29 + $0x10] sm:$0xff] (%p52_p3), %v3496_v2  ;;  %v3499_v5 = vld [vmem:[%s4224_s28 + $0xc8] sm:$0xff] (%p52_p3)  ;;  %194 = vst [vmem:[%s4229_s29 + $0x18] sm:$0xff] (%p52_p3), %v3497_v3  ;;  %v3500_v6 = vld [vmem:[%s4224_s28 + $0xd0] sm:$0xff] (%p52_p3) }
  0x15   : > { %196 = vst [vmem:[%s4229_s29 + $0x20] sm:$0xff] (%p52_p3), %v3498_v4  ;;  %198 = vst [vmem:[%s4229_s29 + $0x28] sm:$0xff] (%p52_p3), %v3499_v5  ;;  %v3501_v7 = vld [vmem:[%s4224_s28 + $0xd8] sm:$0xff] (%p52_p3)  ;;  %v3502_v8 = vld [vmem:[%s4224_s28 + $0x140] sm:$0xff] (%p52_p3) }
  0x16   : > { %200 = vst [vmem:[%s4229_s29 + $0x30] sm:$0xff] %v3500_v6  ;;  %202 = vst [vmem:[%s4229_s29 + $0x38] sm:$0xff] %v3501_v7  ;;  %v3503_v9 = vld [vmem:[%s4224_s28 + $0x148] sm:$0xff]  ;;  %v3504_v10 = vld [vmem:[%s4224_s28 + $0x150] sm:$0xff] }
  0x17   : > { %204 = vst [vmem:[%s4229_s29 + $0x40] sm:$0xff] %v3502_v8  ;;  %v3505_v11 = vld [vmem:[%s4224_s28 + $0x158] sm:$0xff]  ;;  %206 = vst [vmem:[%s4229_s29 + $0x48] sm:$0xff] %v3503_v9  ;;  %v3506_v12 = vld [vmem:[%s4224_s28 + $0x1c0] sm:$0xff] }
  0x18   : > { %208 = vst [vmem:[%s4229_s29 + $0x50] sm:$0xff] %v3504_v10  ;;  %210 = vst [vmem:[%s4229_s29 + $0x58] sm:$0xff] %v3505_v11  ;;  %v3507_v13 = vld [vmem:[%s4224_s28 + $0x1c8] sm:$0xff]  ;;  %v3508_v14 = vld [vmem:[%s4224_s28 + $0x1d0] sm:$0xff] }
  0x19   : > { %212 = vst [vmem:[%s4229_s29 + $0x60] sm:$0xff] %v3506_v12  ;;  %214 = vst [vmem:[%s4229_s29 + $0x68] sm:$0xff] %v3507_v13  ;;  %v3509_v15 = vld [vmem:[%s4224_s28 + $0x1d8] sm:$0xff]  ;;  %v3510_v16 = vld [vmem:[%s4224_s28 + $0x240] sm:$0xff] }
  0x1a   : > { %216 = vst [vmem:[%s4229_s29 + $0x70] sm:$0xff] %v3508_v14  ;;  %v3511_v17 = vld [vmem:[%s4224_s28 + $0x248] sm:$0xff]  ;;  %218 = vst [vmem:[%s4229_s29 + $0x78] sm:$0xff] %v3509_v15  ;;  %v3512_v18 = vld [vmem:[%s4224_s28 + $0x250] sm:$0xff] }
  0x1b   : > { %220 = vst [vmem:[%s4229_s29 + $0x80] sm:$0xff] %v3510_v16  ;;  %222 = vst [vmem:[%s4229_s29 + $0x88] sm:$0xff] %v3511_v17  ;;  %v3513_v19 = vld [vmem:[%s4224_s28 + $0x258] sm:$0xff]  ;;  %v3514_v20 = vld [vmem:[%s4224_s28 + $0x2c0] sm:$0xff] }
  0x1c   : > { %224 = vst [vmem:[%s4229_s29 + $0x90] sm:$0xff] %v3512_v18  ;;  %226 = vst [vmem:[%s4229_s29 + $0x98] sm:$0xff] %v3513_v19  ;;  %v3515_v21 = vld [vmem:[%s4224_s28 + $0x2c8] sm:$0xff]  ;;  %v3516_v22 = vld [vmem:[%s4224_s28 + $0x2d0] sm:$0xff] }
  0x1d   : > { %228 = vst [vmem:[%s4229_s29 + $0xa0] sm:$0xff] %v3514_v20  ;;  %v3517_v23 = vld [vmem:[%s4224_s28 + $0x2d8] sm:$0xff]  ;;  %230 = vst [vmem:[%s4229_s29 + $0xa8] sm:$0xff] %v3515_v21  ;;  %v3518_v24 = vld [vmem:[%s4224_s28 + $0x340] sm:$0xff] }
  0x1e   : > { %232 = vst [vmem:[%s4229_s29 + $0xb0] sm:$0xff] %v3516_v22  ;;  %234 = vst [vmem:[%s4229_s29 + $0xb8] sm:$0xff] %v3517_v23  ;;  %v3519_v25 = vld [vmem:[%s4224_s28 + $0x348] sm:$0xff]  ;;  %v3520_v26 = vld [vmem:[%s4224_s28 + $0x350] sm:$0xff] }
  0x1f   : > { %236 = vst [vmem:[%s4229_s29 + $0xc0] sm:$0xff] %v3518_v24  ;;  %238 = vst [vmem:[%s4229_s29 + $0xc8] sm:$0xff] %v3519_v25  ;;  %v3521_v27 = vld [vmem:[%s4224_s28 + $0x358] sm:$0xff]  ;;  %v3522_v28 = vld [vmem:[%s4224_s28 + $0x3c0] sm:$0xff] }
  0x20   : > { %240 = vst [vmem:[%s4229_s29 + $0xd0] sm:$0xff] %v3520_v26  ;;  %v3523_v29 = vld [vmem:[%s4224_s28 + $0x3c8] sm:$0xff]  ;;  %242 = vst [vmem:[%s4229_s29 + $0xd8] sm:$0xff] %v3521_v27  ;;  %v3524_v30 = vld [vmem:[%s4224_s28 + $0x3d0] sm:$0xff] }
  0x21   : > { %244 = vst [vmem:[%s4229_s29 + $0xe0] sm:$0xff] %v3522_v28  ;;  %246 = vst [vmem:[%s4229_s29 + $0xe8] sm:$0xff] %v3523_v29  ;;  %v3525_v31 = vld [vmem:[%s4224_s28 + $0x3d8] sm:$0xff]  ;;  %v3526_v32 = vld [vmem:[%s4224_s28 + $0x440] sm:$0xff] }
  0x22   : > { %248 = vst [vmem:[%s4229_s29 + $0xf0] sm:$0xff] %v3524_v30  ;;  %250 = vst [vmem:[%s4229_s29 + $0xf8] sm:$0xff] %v3525_v31  ;;  %v3527_v33 = vld [vmem:[%s4224_s28 + $0x448] sm:$0xff]  ;;  %v3528_v34 = vld [vmem:[%s4224_s28 + $0x450] sm:$0xff] }
  0x23   : > { %252 = vst [vmem:[%s4229_s29 + $0x100] sm:$0xff] %v3526_v32  ;;  %v3529_v35 = vld [vmem:[%s4224_s28 + $0x458] sm:$0xff]  ;;  %254 = vst [vmem:[%s4229_s29 + $0x108] sm:$0xff] %v3527_v33  ;;  %v3530_v36 = vld [vmem:[%s4224_s28 + $0x4c0] sm:$0xff] }
  0x24   : > { %256 = vst [vmem:[%s4229_s29 + $0x110] sm:$0xff] %v3528_v34  ;;  %258 = vst [vmem:[%s4229_s29 + $0x118] sm:$0xff] %v3529_v35  ;;  %v3531_v37 = vld [vmem:[%s4224_s28 + $0x4c8] sm:$0xff]  ;;  %v3532_v38 = vld [vmem:[%s4224_s28 + $0x4d0] sm:$0xff] }
  0x25   : > { %260 = vst [vmem:[%s4229_s29 + $0x120] sm:$0xff] %v3530_v36  ;;  %262 = vst [vmem:[%s4229_s29 + $0x128] sm:$0xff] %v3531_v37  ;;  %v3533_v39 = vld [vmem:[%s4224_s28 + $0x4d8] sm:$0xff]  ;;  %v3534_v40 = vld [vmem:[%s4224_s28 + $0x540] sm:$0xff] }
  0x26   : > { %264 = vst [vmem:[%s4229_s29 + $0x130] sm:$0xff] %v3532_v38  ;;  %v3535_v41 = vld [vmem:[%s4224_s28 + $0x548] sm:$0xff]  ;;  %266 = vst [vmem:[%s4229_s29 + $0x138] sm:$0xff] %v3533_v39  ;;  %v3536_v42 = vld [vmem:[%s4224_s28 + $0x550] sm:$0xff] }
  0x27   : > { %268 = vst [vmem:[%s4229_s29 + $0x140] sm:$0xff] %v3534_v40  ;;  %270 = vst [vmem:[%s4229_s29 + $0x148] sm:$0xff] %v3535_v41  ;;  %v3537_v43 = vld [vmem:[%s4224_s28 + $0x558] sm:$0xff]  ;;  %v3538_v44 = vld [vmem:[%s4224_s28 + $0x5c0] sm:$0xff] }
  0x28   : > { %272 = vst [vmem:[%s4229_s29 + $0x150] sm:$0xff] %v3536_v42  ;;  %274 = vst [vmem:[%s4229_s29 + $0x158] sm:$0xff] %v3537_v43  ;;  %v3539_v45 = vld [vmem:[%s4224_s28 + $0x5c8] sm:$0xff]  ;;  %v3540_v46 = vld [vmem:[%s4224_s28 + $0x5d0] sm:$0xff] }
  0x29   : > { %276 = vst [vmem:[%s4229_s29 + $0x160] sm:$0xff] %v3538_v44  ;;  %v3541_v47 = vld [vmem:[%s4224_s28 + $0x5d8] sm:$0xff]  ;;  %278 = vst [vmem:[%s4229_s29 + $0x168] sm:$0xff] %v3539_v45  ;;  %v3542_v48 = vld [vmem:[%s4224_s28 + $0x640] sm:$0xff] }
  0x2a   : > { %280 = vst [vmem:[%s4229_s29 + $0x170] sm:$0xff] %v3540_v46  ;;  %282 = vst [vmem:[%s4229_s29 + $0x178] sm:$0xff] %v3541_v47  ;;  %v3543_v49 = vld [vmem:[%s4224_s28 + $0x648] sm:$0xff]  ;;  %v3544_v50 = vld [vmem:[%s4224_s28 + $0x650] sm:$0xff] }
  0x2b   : > { %284 = vst [vmem:[%s4229_s29 + $0x180] sm:$0xff] %v3542_v48  ;;  %286 = vst [vmem:[%s4229_s29 + $0x188] sm:$0xff] %v3543_v49  ;;  %v3545_v51 = vld [vmem:[%s4224_s28 + $0x658] sm:$0xff]  ;;  %v3546_v52 = vld [vmem:[%s4224_s28 + $0x6c0] sm:$0xff] }
  0x2c   : > { %288 = vst [vmem:[%s4229_s29 + $0x190] sm:$0xff] %v3544_v50  ;;  %v3547_v53 = vld [vmem:[%s4224_s28 + $0x6c8] sm:$0xff]  ;;  %290 = vst [vmem:[%s4229_s29 + $0x198] sm:$0xff] %v3545_v51  ;;  %v3548_v54 = vld [vmem:[%s4224_s28 + $0x6d0] sm:$0xff] }
  0x2d   : > { %292 = vst [vmem:[%s4229_s29 + $0x1a0] sm:$0xff] %v3546_v52  ;;  %294 = vst [vmem:[%s4229_s29 + $0x1a8] sm:$0xff] %v3547_v53  ;;  %v3549_v55 = vld [vmem:[%s4224_s28 + $0x6d8] sm:$0xff]  ;;  %v3550_v56 = vld [vmem:[%s4224_s28 + $0x740] sm:$0xff] }
  0x2e   : > { %296 = vst [vmem:[%s4229_s29 + $0x1b0] sm:$0xff] %v3548_v54  ;;  %298 = vst [vmem:[%s4229_s29 + $0x1b8] sm:$0xff] %v3549_v55  ;;  %v3551_v57 = vld [vmem:[%s4224_s28 + $0x748] sm:$0xff]  ;;  %v3552_v58 = vld [vmem:[%s4224_s28 + $0x750] sm:$0xff] }
  0x2f   : > { %300 = vst [vmem:[%s4229_s29 + $0x1c0] sm:$0xff] %v3550_v56  ;;  %v3553_v59 = vld [vmem:[%s4224_s28 + $0x758] sm:$0xff]  ;;  %302 = vst [vmem:[%s4229_s29 + $0x1c8] sm:$0xff] %v3551_v57  ;;  %v3554_v60 = vld [vmem:[%s4224_s28 + $0x7c0] sm:$0xff] }
  0x30   : > { %304 = vst [vmem:[%s4229_s29 + $0x1d0] sm:$0xff] %v3552_v58  ;;  %306 = vst [vmem:[%s4229_s29 + $0x1d8] sm:$0xff] %v3553_v59  ;;  %v3555_v61 = vld [vmem:[%s4224_s28 + $0x7c8] sm:$0xff]  ;;  %v3556_v62 = vld [vmem:[%s4224_s28 + $0x7d0] sm:$0xff] }
  0x31   : > { %308 = vst [vmem:[%s4229_s29 + $0x1e0] sm:$0xff] %v3554_v60  ;;  %310 = vst [vmem:[%s4229_s29 + $0x1e8] sm:$0xff] %v3555_v61  ;;  %v3557_v63 = vld [vmem:[%s4224_s28 + $0x7d8] sm:$0xff]  ;;  %v3558_v0 = vld [vmem:[%s4224_s28 + $0x840] sm:$0xff] }
  0x32   : > { %312 = vst [vmem:[%s4229_s29 + $0x1f0] sm:$0xff] %v3556_v62  ;;  %v3559_v1 = vld [vmem:[%s4224_s28 + $0x848] sm:$0xff]  ;;  %314 = vst [vmem:[%s4229_s29 + $0x1f8] sm:$0xff] %v3557_v63  ;;  %v3560_v2 = vld [vmem:[%s4224_s28 + $0x850] sm:$0xff] }
  0x33   : > { %316 = vst [vmem:[%s4229_s29 + $0x200] sm:$0xff] %v3558_v0  ;;  %318 = vst [vmem:[%s4229_s29 + $0x208] sm:$0xff] %v3559_v1  ;;  %v3561_v3 = vld [vmem:[%s4224_s28 + $0x858] sm:$0xff]  ;;  %v3562_v4 = vld [vmem:[%s4224_s28 + $0x8c0] sm:$0xff] }
  0x34   : > { %320 = vst [vmem:[%s4229_s29 + $0x210] sm:$0xff] %v3560_v2  ;;  %322 = vst [vmem:[%s4229_s29 + $0x218] sm:$0xff] %v3561_v3  ;;  %v3563_v5 = vld [vmem:[%s4224_s28 + $0x8c8] sm:$0xff]  ;;  %v3564_v6 = vld [vmem:[%s4224_s28 + $0x8d0] sm:$0xff] }
  0x35   : > { %324 = vst [vmem:[%s4229_s29 + $0x220] sm:$0xff] %v3562_v4  ;;  %v3565_v7 = vld [vmem:[%s4224_s28 + $0x8d8] sm:$0xff]  ;;  %326 = vst [vmem:[%s4229_s29 + $0x228] sm:$0xff] %v3563_v5  ;;  %v3566_v8 = vld [vmem:[%s4224_s28 + $0x940] sm:$0xff] }
  0x36   : > { %328 = vst [vmem:[%s4229_s29 + $0x230] sm:$0xff] %v3564_v6  ;;  %330 = vst [vmem:[%s4229_s29 + $0x238] sm:$0xff] %v3565_v7  ;;  %v3567_v9 = vld [vmem:[%s4224_s28 + $0x948] sm:$0xff]  ;;  %v3568_v10 = vld [vmem:[%s4224_s28 + $0x950] sm:$0xff] }
  0x37   : > { %332 = vst [vmem:[%s4229_s29 + $0x240] sm:$0xff] %v3566_v8  ;;  %334 = vst [vmem:[%s4229_s29 + $0x248] sm:$0xff] %v3567_v9  ;;  %v3569_v11 = vld [vmem:[%s4224_s28 + $0x958] sm:$0xff]  ;;  %v3570_v12 = vld [vmem:[%s4224_s28 + $0x9c0] sm:$0xff] }
  0x38   : > { %336 = vst [vmem:[%s4229_s29 + $0x250] sm:$0xff] %v3568_v10  ;;  %v3571_v13 = vld [vmem:[%s4224_s28 + $0x9c8] sm:$0xff]  ;;  %338 = vst [vmem:[%s4229_s29 + $0x258] sm:$0xff] %v3569_v11  ;;  %v3572_v14 = vld [vmem:[%s4224_s28 + $0x9d0] sm:$0xff] }
  0x39   : > { %340 = vst [vmem:[%s4229_s29 + $0x260] sm:$0xff] %v3570_v12  ;;  %342 = vst [vmem:[%s4229_s29 + $0x268] sm:$0xff] %v3571_v13  ;;  %v3573_v15 = vld [vmem:[%s4224_s28 + $0x9d8] sm:$0xff]  ;;  %v3574_v16 = vld [vmem:[%s4224_s28 + $0xa40] sm:$0xff] }
  0x3a   : > { %344 = vst [vmem:[%s4229_s29 + $0x270] sm:$0xff] %v3572_v14  ;;  %346 = vst [vmem:[%s4229_s29 + $0x278] sm:$0xff] %v3573_v15  ;;  %v3575_v17 = vld [vmem:[%s4224_s28 + $0xa48] sm:$0xff]  ;;  %v3576_v18 = vld [vmem:[%s4224_s28 + $0xa50] sm:$0xff] }
  0x3b   : > { %348 = vst [vmem:[%s4229_s29 + $0x280] sm:$0xff] %v3574_v16  ;;  %v3577_v19 = vld [vmem:[%s4224_s28 + $0xa58] sm:$0xff]  ;;  %350 = vst [vmem:[%s4229_s29 + $0x288] sm:$0xff] %v3575_v17  ;;  %v3578_v20 = vld [vmem:[%s4224_s28 + $0xac0] sm:$0xff] }
  0x3c   : > { %352 = vst [vmem:[%s4229_s29 + $0x290] sm:$0xff] %v3576_v18  ;;  %354 = vst [vmem:[%s4229_s29 + $0x298] sm:$0xff] %v3577_v19  ;;  %v3579_v21 = vld [vmem:[%s4224_s28 + $0xac8] sm:$0xff]  ;;  %v3580_v22 = vld [vmem:[%s4224_s28 + $0xad0] sm:$0xff] }
  0x3d   : > { %356 = vst [vmem:[%s4229_s29 + $0x2a0] sm:$0xff] %v3578_v20  ;;  %358 = vst [vmem:[%s4229_s29 + $0x2a8] sm:$0xff] %v3579_v21  ;;  %v3581_v23 = vld [vmem:[%s4224_s28 + $0xad8] sm:$0xff]  ;;  %v3582_v24 = vld [vmem:[%s4224_s28 + $0xb40] sm:$0xff] }
  0x3e   : > { %360 = vst [vmem:[%s4229_s29 + $0x2b0] sm:$0xff] %v3580_v22  ;;  %v3583_v25 = vld [vmem:[%s4224_s28 + $0xb48] sm:$0xff]  ;;  %362 = vst [vmem:[%s4229_s29 + $0x2b8] sm:$0xff] %v3581_v23  ;;  %v3584_v26 = vld [vmem:[%s4224_s28 + $0xb50] sm:$0xff] }
  0x3f   : > { %364 = vst [vmem:[%s4229_s29 + $0x2c0] sm:$0xff] %v3582_v24  ;;  %366 = vst [vmem:[%s4229_s29 + $0x2c8] sm:$0xff] %v3583_v25  ;;  %v3585_v27 = vld [vmem:[%s4224_s28 + $0xb58] sm:$0xff]  ;;  %v3586_v28 = vld [vmem:[%s4224_s28 + $0xbc0] sm:$0xff] }
  0x40   : > { %368 = vst [vmem:[%s4229_s29 + $0x2d0] sm:$0xff] %v3584_v26  ;;  %370 = vst [vmem:[%s4229_s29 + $0x2d8] sm:$0xff] %v3585_v27  ;;  %v3587_v29 = vld [vmem:[%s4224_s28 + $0xbc8] sm:$0xff]  ;;  %v3588_v30 = vld [vmem:[%s4224_s28 + $0xbd0] sm:$0xff] }
  0x41   : > { %372 = vst [vmem:[%s4229_s29 + $0x2e0] sm:$0xff] %v3586_v28  ;;  %v3589_v31 = vld [vmem:[%s4224_s28 + $0xbd8] sm:$0xff]  ;;  %374 = vst [vmem:[%s4229_s29 + $0x2e8] sm:$0xff] %v3587_v29  ;;  %v3590_v32 = vld [vmem:[%s4224_s28 + $0xc40] sm:$0xff] }
  0x42   : > { %376 = vst [vmem:[%s4229_s29 + $0x2f0] sm:$0xff] %v3588_v30  ;;  %378 = vst [vmem:[%s4229_s29 + $0x2f8] sm:$0xff] %v3589_v31  ;;  %v3591_v33 = vld [vmem:[%s4224_s28 + $0xc48] sm:$0xff]  ;;  %v3592_v34 = vld [vmem:[%s4224_s28 + $0xc50] sm:$0xff] }
  0x43   : > { %380 = vst [vmem:[%s4229_s29 + $0x300] sm:$0xff] %v3590_v32  ;;  %382 = vst [vmem:[%s4229_s29 + $0x308] sm:$0xff] %v3591_v33  ;;  %v3593_v35 = vld [vmem:[%s4224_s28 + $0xc58] sm:$0xff]  ;;  %v3594_v36 = vld [vmem:[%s4224_s28 + $0xcc0] sm:$0xff] }
  0x44   : > { %384 = vst [vmem:[%s4229_s29 + $0x310] sm:$0xff] %v3592_v34  ;;  %v3595_v37 = vld [vmem:[%s4224_s28 + $0xcc8] sm:$0xff]  ;;  %386 = vst [vmem:[%s4229_s29 + $0x318] sm:$0xff] %v3593_v35  ;;  %v3596_v38 = vld [vmem:[%s4224_s28 + $0xcd0] sm:$0xff] }
  0x45   : > { %388 = vst [vmem:[%s4229_s29 + $0x320] sm:$0xff] %v3594_v36  ;;  %390 = vst [vmem:[%s4229_s29 + $0x328] sm:$0xff] %v3595_v37  ;;  %v3597_v39 = vld [vmem:[%s4224_s28 + $0xcd8] sm:$0xff]  ;;  %v3598_v40 = vld [vmem:[%s4224_s28 + $0xd40] sm:$0xff] }
  0x46   : > { %392 = vst [vmem:[%s4229_s29 + $0x330] sm:$0xff] %v3596_v38  ;;  %394 = vst [vmem:[%s4229_s29 + $0x338] sm:$0xff] %v3597_v39  ;;  %v3599_v41 = vld [vmem:[%s4224_s28 + $0xd48] sm:$0xff]  ;;  %v3600_v42 = vld [vmem:[%s4224_s28 + $0xd50] sm:$0xff] }
  0x47   : > { %396 = vst [vmem:[%s4229_s29 + $0x340] sm:$0xff] %v3598_v40  ;;  %v3601_v43 = vld [vmem:[%s4224_s28 + $0xd58] sm:$0xff]  ;;  %398 = vst [vmem:[%s4229_s29 + $0x348] sm:$0xff] %v3599_v41  ;;  %v3602_v44 = vld [vmem:[%s4224_s28 + $0xdc0] sm:$0xff] }
  0x48   : > { %400 = vst [vmem:[%s4229_s29 + $0x350] sm:$0xff] %v3600_v42  ;;  %402 = vst [vmem:[%s4229_s29 + $0x358] sm:$0xff] %v3601_v43  ;;  %v3603_v45 = vld [vmem:[%s4224_s28 + $0xdc8] sm:$0xff]  ;;  %v3604_v46 = vld [vmem:[%s4224_s28 + $0xdd0] sm:$0xff] }
  0x49   : > { %404 = vst [vmem:[%s4229_s29 + $0x360] sm:$0xff] %v3602_v44  ;;  %406 = vst [vmem:[%s4229_s29 + $0x368] sm:$0xff] %v3603_v45  ;;  %v3605_v47 = vld [vmem:[%s4224_s28 + $0xdd8] sm:$0xff]  ;;  %v3606_v48 = vld [vmem:[%s4224_s28 + $0xe40] sm:$0xff] }
  0x4a   : > { %408 = vst [vmem:[%s4229_s29 + $0x370] sm:$0xff] %v3604_v46  ;;  %v3607_v49 = vld [vmem:[%s4224_s28 + $0xe48] sm:$0xff]  ;;  %410 = vst [vmem:[%s4229_s29 + $0x378] sm:$0xff] %v3605_v47  ;;  %v3608_v50 = vld [vmem:[%s4224_s28 + $0xe50] sm:$0xff] }
  0x4b   : > { %412 = vst [vmem:[%s4229_s29 + $0x380] sm:$0xff] %v3606_v48  ;;  %414 = vst [vmem:[%s4229_s29 + $0x388] sm:$0xff] %v3607_v49  ;;  %v3609_v51 = vld [vmem:[%s4224_s28 + $0xe58] sm:$0xff]  ;;  %v3610_v52 = vld [vmem:[%s4224_s28 + $0xec0] sm:$0xff] }
  0x4c   : > { %416 = vst [vmem:[%s4229_s29 + $0x390] sm:$0xff] %v3608_v50  ;;  %418 = vst [vmem:[%s4229_s29 + $0x398] sm:$0xff] %v3609_v51  ;;  %v3611_v53 = vld [vmem:[%s4224_s28 + $0xec8] sm:$0xff]  ;;  %v3612_v54 = vld [vmem:[%s4224_s28 + $0xed0] sm:$0xff] }
  0x4d   : > { %420 = vst [vmem:[%s4229_s29 + $0x3a0] sm:$0xff] %v3610_v52  ;;  %v3613_v55 = vld [vmem:[%s4224_s28 + $0xed8] sm:$0xff]  ;;  %422 = vst [vmem:[%s4229_s29 + $0x3a8] sm:$0xff] %v3611_v53  ;;  %v3614_v56 = vld [vmem:[%s4224_s28 + $0xf40] sm:$0xff] }
  0x4e   : > { %424 = vst [vmem:[%s4229_s29 + $0x3b0] sm:$0xff] %v3612_v54  ;;  %426 = vst [vmem:[%s4229_s29 + $0x3b8] sm:$0xff] %v3613_v55  ;;  %v3615_v57 = vld [vmem:[%s4224_s28 + $0xf48] sm:$0xff]  ;;  %v3616_v58 = vld [vmem:[%s4224_s28 + $0xf50] sm:$0xff] }
  0x4f   : > { %428 = vst [vmem:[%s4229_s29 + $0x3c0] sm:$0xff] %v3614_v56  ;;  %430 = vst [vmem:[%s4229_s29 + $0x3c8] sm:$0xff] %v3615_v57  ;;  %v3617_v59 = vld [vmem:[%s4224_s28 + $0xf58] sm:$0xff]  ;;  %v3618_v60 = vld [vmem:[%s4224_s28 + $0xfc0] sm:$0xff] }
  0x50   : > { %432 = vst [vmem:[%s4229_s29 + $0x3d0] sm:$0xff] %v3616_v58  ;;  %v3619_v61 = vld [vmem:[%s4224_s28 + $0xfc8] sm:$0xff]  ;;  %434 = vst [vmem:[%s4229_s29 + $0x3d8] sm:$0xff] %v3617_v59  ;;  %v3620_v62 = vld [vmem:[%s4224_s28 + $0xfd0] sm:$0xff] }
  0x51   : > { %436 = vst [vmem:[%s4229_s29 + $0x3e0] sm:$0xff] %v3618_v60  ;;  %438 = vst [vmem:[%s4229_s29 + $0x3e8] sm:$0xff] %v3619_v61  ;;  %v3621_v63 = vld [vmem:[%s4224_s28 + $0xfd8] sm:$0xff] }
  0x52   : > { %440 = vst [vmem:[%s4229_s29 + $0x3f0] sm:$0xff] %v3620_v62  ;;  %442 = vst [vmem:[%s4229_s29 + $0x3f8] sm:$0xff] %v3621_v63 }
  0x53 PF: > { %p3622_p6 = scmp.ge.s32.totalorder %s4159_s16, 1  ;;  %p478_p7 = scmp.lt.s32.totalorder %s4159_s16, 3 }
  0x55   : > { %p479_p8 = pnand %p3622_p6, %p478_p7 }
  0x56   : > { %p539_p9 = scmp.lt.s32.totalorder (!%p479_p8), %s4151_s14, 1  ;;  %s485_s30 = sand.u32 (!%p479_p8), 1, %s4143_s12  }
  0x57   : > { %482 = sbr.rel (%p479_p8) target bundleno = 628 (0x274), region = 51  ;;  %s3623_s4 = sshll.u32 (!%p479_p8), %s485_s30, 10 }
  0x58   : > { %s4492_s6 = scalar_lea.vmem (!%p479_p8), [#allocation3], %s3623_s4 }
  0x59   : > { %v705_v0 = vld [vmem:[%s4492_s6 + $0x8] sm:$0xff] (!%p479_p8)  ;;  %v704_v63 = vld [vmem:[%s4492_s6] sm:$0xff] (!%p479_p8) }
  0x5a   : > { %v709_v1 = vld [vmem:[%s4492_s6 + $0x28] sm:$0xff] (!%p479_p8)  ;;  %v833_v2 = vmax.f32 (!%p479_p8), %v705_v0, 0.0  ;;  %v708_v0 = vld [vmem:[%s4492_s6 + $0x20] sm:$0xff] (!%p479_p8) }
  0x5b   : > { %v837_v3 = vmax.f32 (!%p479_p8), %v709_v1, 0.0 }
  0x5d   : > { %v961_v6 = vpack.c.bf16 (!%p479_p8), %v837_v3, %v833_v2  ;;  %v713_v3 = vld [vmem:[%s4492_s6 + $0x48] sm:$0xff] (!%p479_p8) }
  0x5e   : > { %s5058_s14 = smov (!%p539_p9, %s4151_s14), 1 }
  0x5f   : > { %s3759_s5 = sshll.u32 %s5058_s14, 10  ;;  %1952 = vmatprep.mubr.bf16.mxu0 %v961_v6  ;;  %2338 = vmatprep.mubr.bf16.mxu1 %v961_v6  ;;  %v717_v6 = vld [vmem:[%s4492_s6 + $0x68] sm:$0xff]  ;;  %s3626_s10 = sshll.u32 %s5058_s14, 2 }
  0x60   : > { %s4501_s9 = scalar_lea.vmem %s5048_s1, %s3759_s5  ;;  %s560_s18 = scalar_lea.vmem %s5049_s2, %s3626_s10 }
  0x61   : > { %v3929_v4 = vld [vmem:[%s4501_s9 + $0x4] ss:$16 sps:$4 sm:$0xff]   ;;  %v3931_v5 = vld [vmem:[%s4501_s9 + $0xc] ss:$16 sps:$4 sm:$0xff]   ;;  %v3933_v7 = vld [vmem:[%s4501_s9] ss:$16 sps:$4 sm:$0xff]   ;;  %s4774_s21 = scalar_lea.vmem %s5050_s3, %s3759_s5 }
  0x62   : > { %1920 = vmatprep.subr.bf16.mxu0 %v3929_v4  ;;  %v3934_v8 = vld [vmem:[%s4501_s9 + $0x8] ss:$16 sps:$4 sm:$0xff]   ;;  %2306 = vmatprep.subr.bf16.mxu1 %v3931_v5  ;;  %v3935_v9 = vld [vmem:[%s4501_s9 + $0x24] ss:$16 sps:$4 sm:$0xff]   ;;  %v3937_v10 = vld [vmem:[%s4501_s9 + $0x2c] ss:$16 sps:$4 sm:$0xff]  }
  0x63   : > { %1921 = vmatpush1.bf16.msra.mxu0 %v3933_v7  ;;  %2307 = vmatpush1.bf16.msra.mxu1 %v3934_v8  ;;  %v3939_v11 = vld [vmem:[%s4501_s9 + $0x20] ss:$16 sps:$4 sm:$0xff]   ;;  %v3940_v12 = vld [vmem:[%s4501_s9 + $0x28] ss:$16 sps:$4 sm:$0xff]   ;;  %v3941_v13 = vld [vmem:[%s4501_s9 + $0x44] ss:$16 sps:$4 sm:$0xff]  }
  0x64   : > { %1922 = vmatprep.subr.bf16.mxu0 %v3935_v9  ;;  %2308 = vmatprep.subr.bf16.mxu1 %v3937_v10  ;;  %v3943_v14 = vld [vmem:[%s4501_s9 + $0x4c] ss:$16 sps:$4 sm:$0xff]   ;;  %v3945_v15 = vld [vmem:[%s4501_s9 + $0x40] ss:$16 sps:$4 sm:$0xff]   ;;  %v3946_v16 = vld [vmem:[%s4501_s9 + $0x48] ss:$16 sps:$4 sm:$0xff]  }
  0x65   : > { %v3947_v17 = vld [vmem:[%s4501_s9 + $0x64] ss:$16 sps:$4 sm:$0xff]   ;;  %v3949_v18 = vld [vmem:[%s4501_s9 + $0x6c] ss:$16 sps:$4 sm:$0xff]   ;;  %v3951_v19 = vld [vmem:[%s4501_s9 + $0x60] ss:$16 sps:$4 sm:$0xff]  }
  0x66   : > { %v3952_v20 = vld [vmem:[%s4501_s9 + $0x68] ss:$16 sps:$4 sm:$0xff]   ;;  %v3953_v21 = vld [vmem:[%s4501_s9 + $0x84] ss:$16 sps:$4 sm:$0xff]   ;;  %v3955_v22 = vld [vmem:[%s4501_s9 + $0x8c] ss:$16 sps:$4 sm:$0xff]  }
  0x67   : > { %1923 = vmatpush1.bf16.msra.mxu0 %v3939_v11  ;;  %2309 = vmatpush1.bf16.msra.mxu1 %v3940_v12  ;;  %v3957_v23 = vld [vmem:[%s4501_s9 + $0x80] ss:$16 sps:$4 sm:$0xff]   ;;  %v3958_v24 = vld [vmem:[%s4501_s9 + $0x88] ss:$16 sps:$4 sm:$0xff]   ;;  %v3959_v25 = vld [vmem:[%s4501_s9 + $0xa4] ss:$16 sps:$4 sm:$0xff]  }
  0x68   : > { %1924 = vmatprep.subr.bf16.mxu0 %v3941_v13  ;;  %2310 = vmatprep.subr.bf16.mxu1 %v3943_v14  ;;  %v3961_v26 = vld [vmem:[%s4501_s9 + $0xac] ss:$16 sps:$4 sm:$0xff]   ;;  %v3963_v27 = vld [vmem:[%s4501_s9 + $0xa0] ss:$16 sps:$4 sm:$0xff]   ;;  %v3964_v28 = vld [vmem:[%s4501_s9 + $0xa8] ss:$16 sps:$4 sm:$0xff]  }
  0x69   : > { %v3965_v29 = vld [vmem:[%s4501_s9 + $0xc4] ss:$16 sps:$4 sm:$0xff]   ;;  %v3967_v30 = vld [vmem:[%s4501_s9 + $0xcc] ss:$16 sps:$4 sm:$0xff]   ;;  %v3969_v31 = vld [vmem:[%s4501_s9 + $0xc0] ss:$16 sps:$4 sm:$0xff]  }
  0x6a   : > { %v3970_v32 = vld [vmem:[%s4501_s9 + $0xc8] ss:$16 sps:$4 sm:$0xff]   ;;  %v3971_v33 = vld [vmem:[%s4501_s9 + $0xe4] ss:$16 sps:$4 sm:$0xff]   ;;  %v3973_v34 = vld [vmem:[%s4501_s9 + $0xec] ss:$16 sps:$4 sm:$0xff]  }
  0x6b   : > { %1925 = vmatpush1.bf16.msra.mxu0 %v3945_v15  ;;  %2311 = vmatpush1.bf16.msra.mxu1 %v3946_v16  ;;  %v3975_v35 = vld [vmem:[%s4501_s9 + $0xe0] ss:$16 sps:$4 sm:$0xff]   ;;  %v3976_v36 = vld [vmem:[%s4501_s9 + $0xe8] ss:$16 sps:$4 sm:$0xff]   ;;  %v3977_v37 = vld [vmem:[%s4501_s9 + $0x104] ss:$16 sps:$4 sm:$0xff]  }
  0x6c   : > { %1926 = vmatprep.subr.bf16.mxu0 %v3947_v17  ;;  %2312 = vmatprep.subr.bf16.mxu1 %v3949_v18  ;;  %v3979_v38 = vld [vmem:[%s4501_s9 + $0x10c] ss:$16 sps:$4 sm:$0xff]   ;;  %v3981_v39 = vld [vmem:[%s4501_s9 + $0x100] ss:$16 sps:$4 sm:$0xff]   ;;  %v3982_v40 = vld [vmem:[%s4501_s9 + $0x108] ss:$16 sps:$4 sm:$0xff]  }
  0x6d   : > { %v3983_v41 = vld [vmem:[%s4501_s9 + $0x124] ss:$16 sps:$4 sm:$0xff]   ;;  %v3985_v42 = vld [vmem:[%s4501_s9 + $0x12c] ss:$16 sps:$4 sm:$0xff]   ;;  %v3987_v43 = vld [vmem:[%s4501_s9 + $0x120] ss:$16 sps:$4 sm:$0xff]  }
  0x6e   : > { %v3988_v44 = vld [vmem:[%s4501_s9 + $0x128] ss:$16 sps:$4 sm:$0xff]   ;;  %v3989_v45 = vld [vmem:[%s4501_s9 + $0x144] ss:$16 sps:$4 sm:$0xff]   ;;  %v3991_v46 = vld [vmem:[%s4501_s9 + $0x14c] ss:$16 sps:$4 sm:$0xff]  }
  0x6f   : > { %1927 = vmatpush1.bf16.msra.mxu0 %v3951_v19  ;;  %2313 = vmatpush1.bf16.msra.mxu1 %v3952_v20  ;;  %v3993_v47 = vld [vmem:[%s4501_s9 + $0x140] ss:$16 sps:$4 sm:$0xff]   ;;  %v3994_v48 = vld [vmem:[%s4501_s9 + $0x148] ss:$16 sps:$4 sm:$0xff]   ;;  %v3995_v49 = vld [vmem:[%s4501_s9 + $0x164] ss:$16 sps:$4 sm:$0xff]  }
  0x70   : > { %1928 = vmatprep.subr.bf16.mxu0 %v3953_v21  ;;  %2314 = vmatprep.subr.bf16.mxu1 %v3955_v22  ;;  %v3997_v50 = vld [vmem:[%s4501_s9 + $0x16c] ss:$16 sps:$4 sm:$0xff]   ;;  %v3999_v51 = vld [vmem:[%s4501_s9 + $0x160] ss:$16 sps:$4 sm:$0xff]   ;;  %v4000_v52 = vld [vmem:[%s4501_s9 + $0x168] ss:$16 sps:$4 sm:$0xff]  }
  0x71   : > { %v4001_v53 = vld [vmem:[%s4501_s9 + $0x184] ss:$16 sps:$4 sm:$0xff]   ;;  %v4003_v54 = vld [vmem:[%s4501_s9 + $0x18c] ss:$16 sps:$4 sm:$0xff]   ;;  %v4005_v55 = vld [vmem:[%s4501_s9 + $0x180] ss:$16 sps:$4 sm:$0xff]  }
  0x72   : > { %v4006_v56 = vld [vmem:[%s4501_s9 + $0x188] ss:$16 sps:$4 sm:$0xff]   ;;  %v4007_v57 = vld [vmem:[%s4501_s9 + $0x1a4] ss:$16 sps:$4 sm:$0xff]   ;;  %v4009_v58 = vld [vmem:[%s4501_s9 + $0x1ac] ss:$16 sps:$4 sm:$0xff]  }
  0x73   : > { %1929 = vmatpush1.bf16.msra.mxu0 %v3957_v23  ;;  %2315 = vmatpush1.bf16.msra.mxu1 %v3958_v24  ;;  %v4011_v59 = vld [vmem:[%s4501_s9 + $0x1a0] ss:$16 sps:$4 sm:$0xff]   ;;  %v4012_v60 = vld [vmem:[%s4501_s9 + $0x1a8] ss:$16 sps:$4 sm:$0xff]   ;;  %v4013_v61 = vld [vmem:[%s4501_s9 + $0x1c4] ss:$16 sps:$4 sm:$0xff]  }
  0x74   : > { %1930 = vmatprep.subr.bf16.mxu0 %v3959_v25  ;;  %2316 = vmatprep.subr.bf16.mxu1 %v3961_v26  ;;  %v4015_v62 = vld [vmem:[%s4501_s9 + $0x1cc] ss:$16 sps:$4 sm:$0xff]   ;;  %v4017_v1 = vld [vmem:[%s4501_s9 + $0x1c0] ss:$16 sps:$4 sm:$0xff]   ;;  %v4018_v2 = vld [vmem:[%s4501_s9 + $0x1c8] ss:$16 sps:$4 sm:$0xff]  }
  0x75   : > { %v4019_v4 = vld [vmem:[%s4501_s9 + $0x1e4] ss:$16 sps:$4 sm:$0xff]   ;;  %v4021_v5 = vld [vmem:[%s4501_s9 + $0x1ec] ss:$16 sps:$4 sm:$0xff]   ;;  %v832_v7 = vmax.f32 %v704_v63, 0.0  ;;  %v836_v8 = vmax.f32 %v708_v0, 0.0 }
  0x76   : > { %v4023_v9 = vld [vmem:[%s4501_s9 + $0x1e0] ss:$16 sps:$4 sm:$0xff]   ;;  %v4024_v10 = vld [vmem:[%s4501_s9 + $0x1e8] ss:$16 sps:$4 sm:$0xff]   ;;  %v4027_v11 = vld [vmem:[%s4501_s9 + $0x204] ss:$16 sps:$4 sm:$0xff]  }
  0x77   : > { %1931 = vmatpush1.bf16.msra.mxu0 %v3963_v27  ;;  %2317 = vmatpush1.bf16.msra.mxu1 %v3964_v28  ;;  %v4030_v12 = vld [vmem:[%s4501_s9 + $0x20c] ss:$16 sps:$4 sm:$0xff]   ;;  %v841_v13 = vmax.f32 %v713_v3, 0.0  ;;  %v845_v14 = vmax.f32 %v717_v6, 0.0  ;;  %v960_v15 = vpack.c.bf16 %v836_v8, %v832_v7  ;;  %v4025_v16 = vld [vmem:[%s4501_s9 + $0x200] ss:$16 sps:$4 sm:$0xff]  }
  0x78   : > { %1932 = vmatprep.subr.bf16.mxu0 %v3965_v29  ;;  %2318 = vmatprep.subr.bf16.mxu1 %v3967_v30  ;;  %v4028_v17 = vld [vmem:[%s4501_s9 + $0x208] ss:$16 sps:$4 sm:$0xff]   ;;  %v712_v18 = vld [vmem:[%s4492_s6 + $0x40] sm:$0xff]  ;;  %v4036_v22 = vld [vmem:[%s4501_s9 + $0x22c] ss:$16 sps:$4 sm:$0xff]  }
  0x79   : > { %v716_v19 = vld [vmem:[%s4492_s6 + $0x60] sm:$0xff]  ;;  %v965_v21 = vpack.c.bf16 %v845_v14, %v841_v13  ;;  %v721_v23 = vld [vmem:[%s4492_s6 + $0x88] sm:$0xff]  ;;  %v840_v25 = vmax.f32 %v712_v18, 0.0 }
  0x7a   : > { %v4033_v20 = vld [vmem:[%s4501_s9 + $0x224] ss:$16 sps:$4 sm:$0xff]   ;;  %v725_v24 = vld [vmem:[%s4492_s6 + $0xa8] sm:$0xff]  ;;  %v844_v26 = vmax.f32 %v716_v19, 0.0  ;;  %v4031_v27 = vld [vmem:[%s4501_s9 + $0x220] ss:$16 sps:$4 sm:$0xff]  }
  0x7b   : > { %1933 = vmatpush1.bf16.msra.mxu0 %v3969_v31  ;;  %2319 = vmatpush1.bf16.msra.mxu1 %v3970_v32  ;;  %v4034_v28 = vld [vmem:[%s4501_s9 + $0x228] ss:$16 sps:$4 sm:$0xff]   ;;  %v849_v29 = vmax.f32 %v721_v23, 0.0  ;;  %v853_v30 = vmax.f32 %v725_v24, 0.0  ;;  %v4039_v31 = vld [vmem:[%s4501_s9 + $0x244] ss:$16 sps:$4 sm:$0xff]  }
  0x7c   : > { %1934 = vmatprep.subr.bf16.mxu0 %v3971_v33  ;;  %2320 = vmatprep.subr.bf16.mxu1 %v3973_v34  ;;  %v4042_v32 = vld [vmem:[%s4501_s9 + $0x24c] ss:$16 sps:$4 sm:$0xff]   ;;  %v964_v33 = vpack.c.bf16 %v844_v26, %v840_v25  ;;  %v720_v34 = vld [vmem:[%s4492_s6 + $0x80] sm:$0xff] }
  0x7d   : > { %v4063_v3 = vld [vmem:[%s4501_s9 + $0x2c4] ss:$16 sps:$4 sm:$0xff]   ;;  %v4072_v14 = vld [vmem:[%s4501_s9 + $0x2ec] ss:$16 sps:$4 sm:$0xff]   ;;  %v4067_v19 = vld [vmem:[%s4501_s9 + $0x2e0] ss:$16 sps:$4 sm:$0xff]  }
  0x7e   : > { %v736_v6 = vld [vmem:[%s4492_s6 + $0x100] sm:$0xff] }
  0x7f   : > { %1935 = vmatpush1.bf16.msra.mxu0 %v3975_v35  ;;  %2321 = vmatpush1.bf16.msra.mxu1 %v3976_v36  ;;  %v724_v35 = vld [vmem:[%s4492_s6 + $0xa0] sm:$0xff]  ;;  %v969_v36 = vpack.c.bf16 %v853_v30, %v849_v29  ;;  %v4076_v30 = vld [vmem:[%s4501_s9 + $0x308] ss:$16 sps:$4 sm:$0xff]  }
  0x80   : > { %1936 = vmatprep.subr.bf16.mxu0 %v3977_v37  ;;  %2322 = vmatprep.subr.bf16.mxu1 %v3979_v38  ;;  %v4037_v37 = vld [vmem:[%s4501_s9 + $0x240] ss:$16 sps:$4 sm:$0xff]   ;;  %v4040_v38 = vld [vmem:[%s4501_s9 + $0x248] ss:$16 sps:$4 sm:$0xff]   ;;  %v4069_v13 = vld [vmem:[%s4501_s9 + $0x2e4] ss:$16 sps:$4 sm:$0xff]  }
  0x81   : > { %v740_v7 = vld [vmem:[%s4492_s6 + $0x120] sm:$0xff] }
  0x82   : > { %v744_v24 = vld [vmem:[%s4492_s6 + $0x140] sm:$0xff] }
  0x83   : > { %1937 = vmatpush1.bf16.msra.mxu0 %v3981_v39  ;;  %2323 = vmatpush1.bf16.msra.mxu1 %v3982_v40  ;;  %v729_v39 = vld [vmem:[%s4492_s6 + $0xc8] sm:$0xff]  ;;  %v748_v25 = vld [vmem:[%s4492_s6 + $0x160] sm:$0xff] }
  0x84   : > { %1938 = vmatprep.subr.bf16.mxu0 %v3983_v41  ;;  %2324 = vmatprep.subr.bf16.mxu1 %v3985_v42  ;;  %v733_v40 = vld [vmem:[%s4492_s6 + $0xe8] sm:$0xff]  ;;  %v4045_v41 = vld [vmem:[%s4501_s9 + $0x264] ss:$16 sps:$4 sm:$0xff]   ;;  %v4073_v29 = vld [vmem:[%s4501_s9 + $0x300] ss:$16 sps:$4 sm:$0xff]  }
  0x85   : > { %v4048_v42 = vld [vmem:[%s4501_s9 + $0x26c] ss:$16 sps:$4 sm:$0xff]  }
  0x87   : > { %1939 = vmatpush1.bf16.msra.mxu0 %v3987_v43  ;;  %2325 = vmatpush1.bf16.msra.mxu1 %v3988_v44  ;;  %v848_v43 = vmax.f32 %v720_v34, 0.0  ;;  %v852_v44 = vmax.f32 %v724_v35, 0.0  ;;  %v876_v34 = vmax.f32 %v748_v25, 0.0 }
  0x88   : > { %1940 = vmatprep.subr.bf16.mxu0 %v3989_v45  ;;  %2326 = vmatprep.subr.bf16.mxu1 %v3991_v46  ;;  %v857_v45 = vmax.f32 %v729_v39, 0.0  ;;  %v861_v46 = vmax.f32 %v733_v40, 0.0  ;;  %v4087_v39 = vld [vmem:[%s4501_s9 + $0x344] ss:$16 sps:$4 sm:$0xff]   ;;  %v4090_v40 = vld [vmem:[%s4501_s9 + $0x34c] ss:$16 sps:$4 sm:$0xff]  }
  0x8b   : > { %1941 = vmatpush1.bf16.msra.mxu0 %v3993_v47  ;;  %2327 = vmatpush1.bf16.msra.mxu1 %v3994_v48  ;;  %v4043_v47 = vld [vmem:[%s4501_s9 + $0x260] ss:$16 sps:$4 sm:$0xff]   ;;  %v4046_v48 = vld [vmem:[%s4501_s9 + $0x268] ss:$16 sps:$4 sm:$0xff]  }
  0x8c   : > { %1942 = vmatprep.subr.bf16.mxu0 %v3995_v49  ;;  %2328 = vmatprep.subr.bf16.mxu1 %v3997_v50  ;;  %v4051_v49 = vld [vmem:[%s4501_s9 + $0x284] ss:$16 sps:$4 sm:$0xff]   ;;  %v4054_v50 = vld [vmem:[%s4501_s9 + $0x28c] ss:$16 sps:$4 sm:$0xff]  }
  0x8f   : > { %1943 = vmatpush1.bf16.msra.mxu0 %v3999_v51  ;;  %2329 = vmatpush1.bf16.msra.mxu1 %v4000_v52  ;;  %v968_v51 = vpack.c.bf16 %v852_v44, %v848_v43  ;;  %v728_v52 = vld [vmem:[%s4492_s6 + $0xc0] sm:$0xff] }
  0x90   : > { %1944 = vmatprep.subr.bf16.mxu0 %v4001_v53  ;;  %2330 = vmatprep.subr.bf16.mxu1 %v4003_v54  ;;  %v732_v53 = vld [vmem:[%s4492_s6 + $0xe0] sm:$0xff]  ;;  %v973_v54 = vpack.c.bf16 %v861_v46, %v857_v45  ;;  %v761_v45 = vld [vmem:[%s4492_s6 + $0x1c8] sm:$0xff] }
  0x91   : > { %v752_v43 = vld [vmem:[%s4492_s6 + $0x180] sm:$0xff]  ;;  %v765_v46 = vld [vmem:[%s4492_s6 + $0x1e8] sm:$0xff] }
  0x92   : > { %v756_v44 = vld [vmem:[%s4492_s6 + $0x1a0] sm:$0xff] }
  0x93   : > { %1945 = vmatpush1.bf16.msra.mxu0 %v4005_v55  ;;  %2331 = vmatpush1.bf16.msra.mxu1 %v4006_v56  ;;  %v737_v55 = vld [vmem:[%s4492_s6 + $0x108] sm:$0xff] }
  0x94   : > { %1946 = vmatprep.subr.bf16.mxu0 %v4007_v57  ;;  %2332 = vmatprep.subr.bf16.mxu1 %v4009_v58  ;;  %v741_v56 = vld [vmem:[%s4492_s6 + $0x128] sm:$0xff]  ;;  %v4049_v57 = vld [vmem:[%s4501_s9 + $0x280] ss:$16 sps:$4 sm:$0xff]   ;;  %v865_v63 = vmax.f32 %v737_v55, 0.0 }
  0x95   : > { %v4052_v58 = vld [vmem:[%s4501_s9 + $0x288] ss:$16 sps:$4 sm:$0xff]   ;;  %v869_v0 = vmax.f32 %v741_v56, 0.0  ;;  %v4091_v55 = vld [vmem:[%s4501_s9 + $0x360] ss:$16 sps:$4 sm:$0xff]  }
  0x96   : > { %v4094_v56 = vld [vmem:[%s4501_s9 + $0x368] ss:$16 sps:$4 sm:$0xff]  }
  0x97   : > { %1947 = vmatpush1.bf16.msra.mxu0 %v4011_v59  ;;  %2333 = vmatpush1.bf16.msra.mxu1 %v4012_v60  ;;  %v4057_v59 = vld [vmem:[%s4501_s9 + $0x2a4] ss:$16 sps:$4 sm:$0xff]   ;;  %v4060_v60 = vld [vmem:[%s4501_s9 + $0x2ac] ss:$16 sps:$4 sm:$0xff]   ;;  %v977_v8 = vpack.c.bf16 %v869_v0, %v865_v63 }
  0x98   : > { %1948 = vmatprep.subr.bf16.mxu0 %v4013_v61  ;;  %2334 = vmatprep.subr.bf16.mxu1 %v4015_v62  ;;  %v856_v61 = vmax.f32 %v728_v52, 0.0  ;;  %v860_v62 = vmax.f32 %v732_v53, 0.0  ;;  %v884_v52 = vmax.f32 %v756_v44, 0.0  ;;  %v889_v53 = vmax.f32 %v761_v45, 0.0  ;;  %v769_v63 = vld [vmem:[%s4492_s6 + $0x208] sm:$0xff] }
  0x99   : > { %v773_v0 = vld [vmem:[%s4492_s6 + $0x228] sm:$0xff] }
  0x9a   : > { %v797_v44 = vld [vmem:[%s4492_s6 + $0x2e8] sm:$0xff] }
  0x9b   : > { %1949 = vmatpush1.bf16.msra.mxu0 %v4017_v1  ;;  %2335 = vmatpush1.bf16.msra.mxu1 %v4018_v2  ;;  %v4055_v1 = vld [vmem:[%s4501_s9 + $0x2a0] ss:$16 sps:$4 sm:$0xff]   ;;  %v4058_v2 = vld [vmem:[%s4501_s9 + $0x2a8] ss:$16 sps:$4 sm:$0xff]  }
  0x9c   : > { %1950 = vmatprep.subr.bf16.mxu0 %v4019_v4  ;;  %2336 = vmatprep.subr.bf16.mxu1 %v4021_v5  ;;  %v4066_v4 = vld [vmem:[%s4501_s9 + $0x2cc] ss:$16 sps:$4 sm:$0xff]   ;;  %v972_v5 = vpack.c.bf16 %v860_v62, %v856_v61  ;;  %v760_v61 = vld [vmem:[%s4492_s6 + $0x1c0] sm:$0xff] }
  0x9d   : > { %v764_v62 = vld [vmem:[%s4492_s6 + $0x1e0] sm:$0xff] }
  0x9f   : > { %1951 = vmatpush1.bf16.msra.mxu0 %v4023_v9  ;;  %2337 = vmatpush1.bf16.msra.mxu1 %v4024_v10  ;;  %v745_v9 = vld [vmem:[%s4492_s6 + $0x148] sm:$0xff] }
  0xa0   : > { %2113 = vmatprep.subr.bf16.mxu0 %v4027_v11  ;;  %2499 = vmatprep.subr.bf16.mxu1 %v4030_v12  ;;  %v749_v10 = vld [vmem:[%s4492_s6 + $0x168] sm:$0xff]  ;;  %v4061_v11 = vld [vmem:[%s4501_s9 + $0x2c0] ss:$16 sps:$4 sm:$0xff]  }
  0xa1   : > { %v4064_v12 = vld [vmem:[%s4501_s9 + $0x2c8] ss:$16 sps:$4 sm:$0xff]   ;;  %v877_v18 = vmax.f32 %v749_v10, 0.0 }
  0xa2   : > { %1953 = vmatmul.mubr.bf16.vlgmr.msra.gmra.mrb[0].mxu0 %v960_v15  ;;  %2339 = vmatmul.mubr.bf16.vlgmr.msra.gmra.mrb[0].mxu1 %v960_v15  ;;  %v864_v15 = vmax.f32 %v736_v6, 0.0  ;;  %v892_v6 = vmax.f32 %v764_v62, 0.0  ;;  %v4106_v10 = vld [vmem:[%s4501_s9 + $0x3a8] ss:$16 sps:$4 sm:$0xff]   ;;  %v804_v62 = vld [vmem:[%s4492_s6 + $0x320] sm:$0xff] }
  0xa3   : > { %2114 = vmatpush1.bf16.msra.mxu0 %v4025_v16  ;;  %2500 = vmatpush1.bf16.msra.mxu1 %v4028_v17  ;;  %v868_v16 = vmax.f32 %v740_v7, 0.0  ;;  %v873_v17 = vmax.f32 %v745_v9, 0.0  ;;  %v897_v7 = vmax.f32 %v769_v63, 0.0  ;;  %v4103_v9 = vld [vmem:[%s4501_s9 + $0x3a0] ss:$16 sps:$4 sm:$0xff]   ;;  %v809_v63 = vld [vmem:[%s4492_s6 + $0x348] sm:$0xff] }
  0xa4   : > { %1962 = vmatprep.mubr.bf16.mxu0 %v965_v21  ;;  %2348 = vmatprep.mubr.bf16.mxu1 %v965_v21  ;;  %v4075_v21 = vld [vmem:[%s4501_s9 + $0x304] ss:$16 sps:$4 sm:$0xff]  }
  0xa5   : > { %2115 = vmatprep.subr.bf16.mxu0 %v4033_v20  ;;  %2501 = vmatprep.subr.bf16.mxu1 %v4036_v22  ;;  %v4070_v20 = vld [vmem:[%s4501_s9 + $0x2e8] ss:$16 sps:$4 sm:$0xff]   ;;  %v4078_v22 = vld [vmem:[%s4501_s9 + $0x30c] ss:$16 sps:$4 sm:$0xff]   ;;  %v976_v23 = vpack.c.bf16 %v868_v16, %v864_v15  ;;  %v981_v26 = vpack.c.bf16 %v877_v18, %v873_v17  ;;  %v768_v15 = vld [vmem:[%s4492_s6 + $0x200] sm:$0xff] }
  0xa6   : > { %v772_v16 = vld [vmem:[%s4492_s6 + $0x220] sm:$0xff]  ;;  %v777_v17 = vld [vmem:[%s4492_s6 + $0x248] sm:$0xff] }
  0xa7   : > { %2116 = vmatpush1.bf16.msra.mxu0 %v4031_v27  ;;  %2502 = vmatpush1.bf16.msra.mxu1 %v4034_v28  ;;  %v753_v27 = vld [vmem:[%s4492_s6 + $0x188] sm:$0xff]  ;;  %v905_v25 = vmax.f32 %v777_v17, 0.0  ;;  %v816_v17 = vld [vmem:[%s4492_s6 + $0x380] sm:$0xff] }
  0xa8   : > { %2117 = vmatprep.subr.bf16.mxu0 %v4039_v31  ;;  %2503 = vmatprep.subr.bf16.mxu1 %v4042_v32  ;;  %v757_v28 = vld [vmem:[%s4492_s6 + $0x1a8] sm:$0xff]  ;;  %v4081_v31 = vld [vmem:[%s4501_s9 + $0x324] ss:$16 sps:$4 sm:$0xff]   ;;  %v881_v35 = vmax.f32 %v753_v27, 0.0  ;;  %v4115_v27 = vld [vmem:[%s4501_s9 + $0x3e0] ss:$16 sps:$4 sm:$0xff]  }
  0xa9   : > { %v4084_v32 = vld [vmem:[%s4501_s9 + $0x32c] ss:$16 sps:$4 sm:$0xff]  }
  0xaa   : > { %1963 = vmatmul.mubr.bf16.gmra.mrb[4].mxu0 %v964_v33  ;;  %2349 = vmatmul.mubr.bf16.gmra.mrb[4].mxu1 %v964_v33  ;;  %v872_v33 = vmax.f32 %v744_v24, 0.0  ;;  %v781_v18 = vld [vmem:[%s4492_s6 + $0x268] sm:$0xff]  ;;  %v900_v24 = vmax.f32 %v772_v16, 0.0 }
  0xab   : > { %1972 = vmatprep.mubr.bf16.mxu0 %v969_v36  ;;  %2358 = vmatprep.mubr.bf16.mxu1 %v969_v36  ;;  %v885_v36 = vmax.f32 %v757_v28, 0.0  ;;  %v4118_v28 = vld [vmem:[%s4501_s9 + $0x3e8] ss:$16 sps:$4 sm:$0xff]  }
  0xac   : > { %2118 = vmatpush1.bf16.msra.mxu0 %v4037_v37  ;;  %2504 = vmatpush1.bf16.msra.mxu1 %v4040_v38  ;;  %v4079_v37 = vld [vmem:[%s4501_s9 + $0x320] ss:$16 sps:$4 sm:$0xff]   ;;  %v4082_v38 = vld [vmem:[%s4501_s9 + $0x328] ss:$16 sps:$4 sm:$0xff]  }
  0xad   : > { %2119 = vmatprep.subr.bf16.mxu0 %v4045_v41  ;;  %2505 = vmatprep.subr.bf16.mxu1 %v4048_v42  ;;  %v980_v41 = vpack.c.bf16 %v876_v34, %v872_v33  ;;  %v985_v42 = vpack.c.bf16 %v885_v36, %v881_v35  ;;  %v785_v33 = vld [vmem:[%s4492_s6 + $0x288] sm:$0xff] }
  0xae   : > { %v789_v34 = vld [vmem:[%s4492_s6 + $0x2a8] sm:$0xff] }
  0xb0   : > { %2120 = vmatpush1.bf16.msra.mxu0 %v4043_v47  ;;  %2506 = vmatpush1.bf16.msra.mxu1 %v4046_v48  ;;  %v4085_v47 = vld [vmem:[%s4501_s9 + $0x340] ss:$16 sps:$4 sm:$0xff]   ;;  %v4088_v48 = vld [vmem:[%s4501_s9 + $0x348] ss:$16 sps:$4 sm:$0xff]  }
  0xb1   : > { %2121 = vmatprep.subr.bf16.mxu0 %v4051_v49  ;;  %2507 = vmatprep.subr.bf16.mxu1 %v4054_v50  ;;  %v4093_v49 = vld [vmem:[%s4501_s9 + $0x364] ss:$16 sps:$4 sm:$0xff]   ;;  %v4096_v50 = vld [vmem:[%s4501_s9 + $0x36c] ss:$16 sps:$4 sm:$0xff]  }
  0xb2   : > { %1973 = vmatmul.mubr.bf16.gmra.mrb[8].mxu0 %v968_v51  ;;  %2359 = vmatmul.mubr.bf16.gmra.mrb[8].mxu1 %v968_v51  ;;  %v880_v51 = vmax.f32 %v752_v43, 0.0  ;;  %v793_v43 = vld [vmem:[%s4492_s6 + $0x2c8] sm:$0xff] }
  0xb3   : > { %1982 = vmatprep.mubr.bf16.mxu0 %v973_v54  ;;  %2368 = vmatprep.mubr.bf16.mxu1 %v973_v54  ;;  %v893_v54 = vmax.f32 %v765_v46, 0.0 }
  0xb4   : > { %2122 = vmatpush1.bf16.msra.mxu0 %v4049_v57  ;;  %2508 = vmatpush1.bf16.msra.mxu1 %v4052_v58  ;;  %v4099_v57 = vld [vmem:[%s4501_s9 + $0x384] ss:$16 sps:$4 sm:$0xff]   ;;  %v4102_v58 = vld [vmem:[%s4501_s9 + $0x38c] ss:$16 sps:$4 sm:$0xff]  }
  0xb5   : > { %2123 = vmatprep.subr.bf16.mxu0 %v4057_v59  ;;  %2509 = vmatprep.subr.bf16.mxu1 %v4060_v60  ;;  %v984_v59 = vpack.c.bf16 %v884_v52, %v880_v51  ;;  %v989_v60 = vpack.c.bf16 %v893_v54, %v889_v53  ;;  %v792_v51 = vld [vmem:[%s4492_s6 + $0x2c0] sm:$0xff]  ;;  %v801_v53 = vld [vmem:[%s4492_s6 + $0x308] sm:$0xff] }
  0xb6   : > { %v796_v52 = vld [vmem:[%s4492_s6 + $0x2e0] sm:$0xff]  ;;  %v805_v54 = vld [vmem:[%s4492_s6 + $0x328] sm:$0xff] }
  0xb8   : > { %2124 = vmatpush1.bf16.msra.mxu0 %v4055_v1  ;;  %2510 = vmatpush1.bf16.msra.mxu1 %v4058_v2  ;;  %v4097_v1 = vld [vmem:[%s4501_s9 + $0x380] ss:$16 sps:$4 sm:$0xff]   ;;  %v4100_v2 = vld [vmem:[%s4501_s9 + $0x388] ss:$16 sps:$4 sm:$0xff]  }
  0xb9   : > { %2125 = vmatprep.subr.bf16.mxu0 %v4063_v3  ;;  %2511 = vmatprep.subr.bf16.mxu1 %v4066_v4  ;;  %v4105_v3 = vld [vmem:[%s4501_s9 + $0x3a4] ss:$16 sps:$4 sm:$0xff]   ;;  %v4108_v4 = vld [vmem:[%s4501_s9 + $0x3ac] ss:$16 sps:$4 sm:$0xff]  }
  0xba   : > { %1983 = vmatmul.mubr.bf16.gmra.mrb[12].mxu0 %v972_v5  ;;  %2369 = vmatmul.mubr.bf16.gmra.mrb[12].mxu1 %v972_v5  ;;  %v888_v5 = vmax.f32 %v760_v61, 0.0  ;;  %v800_v61 = vld [vmem:[%s4492_s6 + $0x300] sm:$0xff] }
  0xbb   : > { %1992 = vmatprep.mubr.bf16.mxu0 %v977_v8  ;;  %2378 = vmatprep.mubr.bf16.mxu1 %v977_v8  ;;  %v901_v8 = vmax.f32 %v773_v0, 0.0  ;;  %v813_v0 = vld [vmem:[%s4492_s6 + $0x368] sm:$0xff] }
  0xbc   : > { %2126 = vmatpush1.bf16.msra.mxu0 %v4061_v11  ;;  %2512 = vmatpush1.bf16.msra.mxu1 %v4064_v12  ;;  %v4111_v11 = vld [vmem:[%s4501_s9 + $0x3c4] ss:$16 sps:$4 sm:$0xff]   ;;  %v4114_v12 = vld [vmem:[%s4501_s9 + $0x3cc] ss:$16 sps:$4 sm:$0xff]  }
  0xbd   : > { %2127 = vmatprep.subr.bf16.mxu0 %v4069_v13  ;;  %2513 = vmatprep.subr.bf16.mxu1 %v4072_v14  ;;  %v988_v13 = vpack.c.bf16 %v892_v6, %v888_v5  ;;  %v993_v14 = vpack.c.bf16 %v901_v8, %v897_v7  ;;  %v808_v7 = vld [vmem:[%s4492_s6 + $0x340] sm:$0xff] }
  0xbe   : > { %v812_v8 = vld [vmem:[%s4492_s6 + $0x360] sm:$0xff] }
  0xc0   : > { %2128 = vmatpush1.bf16.msra.mxu0 %v4067_v19  ;;  %2514 = vmatpush1.bf16.msra.mxu1 %v4070_v20  ;;  %v4109_v19 = vld [vmem:[%s4501_s9 + $0x3c0] ss:$16 sps:$4 sm:$0xff]   ;;  %v4112_v20 = vld [vmem:[%s4501_s9 + $0x3c8] ss:$16 sps:$4 sm:$0xff]  }
  0xc1   : > { %2129 = vmatprep.subr.bf16.mxu0 %v4075_v21  ;;  %2515 = vmatprep.subr.bf16.mxu1 %v4078_v22  ;;  %v4117_v21 = vld [vmem:[%s4501_s9 + $0x3e4] ss:$16 sps:$4 sm:$0xff]   ;;  %v4120_v22 = vld [vmem:[%s4501_s9 + $0x3ec] ss:$16 sps:$4 sm:$0xff]  }
  0xc2   : > { %1993 = vmatmul.mubr.bf16.gmra.mrb[16].mxu0 %v976_v23  ;;  %2379 = vmatmul.mubr.bf16.gmra.mrb[16].mxu1 %v976_v23  ;;  %v896_v23 = vmax.f32 %v768_v15, 0.0 }
  0xc3   : > { %2002 = vmatprep.mubr.bf16.mxu0 %v981_v26  ;;  %2388 = vmatprep.mubr.bf16.mxu1 %v981_v26  ;;  %v909_v26 = vmax.f32 %v781_v18, 0.0  ;;  %v820_v18 = vld [vmem:[%s4492_s6 + $0x3a0] sm:$0xff] }
  0xc4   : > { %2130 = vmatpush1.bf16.msra.mxu0 %v4073_v29  ;;  %2516 = vmatpush1.bf16.msra.mxu1 %v4076_v30  ;;  %v992_v29 = vpack.c.bf16 %v900_v24, %v896_v23 }
  0xc5   : > { %2131 = vmatprep.subr.bf16.mxu0 %v4081_v31  ;;  %2517 = vmatprep.subr.bf16.mxu1 %v4084_v32  ;;  %v997_v30 = vpack.c.bf16 %v909_v26, %v905_v25  ;;  %v776_v31 = vld [vmem:[%s4492_s6 + $0x240] sm:$0xff] }
  0xc6   : > { %v780_v32 = vld [vmem:[%s4492_s6 + $0x260] sm:$0xff]  ;;  %v904_v35 = vmax.f32 %v776_v31, 0.0 }
  0xc7   : > { %v908_v36 = vmax.f32 %v780_v32, 0.0 }
  0xc8   : > { %2132 = vmatpush1.bf16.msra.mxu0 %v4079_v37  ;;  %2518 = vmatpush1.bf16.msra.mxu1 %v4082_v38  ;;  %v913_v37 = vmax.f32 %v785_v33, 0.0  ;;  %v917_v38 = vmax.f32 %v789_v34, 0.0 }
  0xc9   : > { %2133 = vmatprep.subr.bf16.mxu0 %v4087_v39  ;;  %2519 = vmatprep.subr.bf16.mxu1 %v4090_v40  ;;  %v996_v39 = vpack.c.bf16 %v908_v36, %v904_v35 }
  0xca   : > { %2003 = vmatmul.mubr.bf16.gmra.mrb[20].mxu0 %v980_v41  ;;  %2389 = vmatmul.mubr.bf16.gmra.mrb[20].mxu1 %v980_v41  ;;  %v1001_v40 = vpack.c.bf16 %v917_v38, %v913_v37  ;;  %v784_v41 = vld [vmem:[%s4492_s6 + $0x280] sm:$0xff]  ;;  %v706_v37 = vld [vmem:[%s4492_s6 + $0x10] sm:$0xff] }
  0xcb   : > { %2012 = vmatprep.mubr.bf16.mxu0 %v985_v42  ;;  %2398 = vmatprep.mubr.bf16.mxu1 %v985_v42  ;;  %v788_v42 = vld [vmem:[%s4492_s6 + $0x2a0] sm:$0xff]  ;;  %v912_v45 = vmax.f32 %v784_v41, 0.0  ;;  %v710_v38 = vld [vmem:[%s4492_s6 + $0x30] sm:$0xff]  ;;  %v834_v41 = vmax.f32 %v706_v37, 0.0 }
  0xcc   : > { %2134 = vmatpush1.bf16.msra.mxu0 %v4085_v47  ;;  %2520 = vmatpush1.bf16.msra.mxu1 %v4088_v48  ;;  %v916_v46 = vmax.f32 %v788_v42, 0.0  ;;  %v921_v47 = vmax.f32 %v793_v43, 0.0  ;;  %v925_v48 = vmax.f32 %v797_v44, 0.0  ;;  %v838_v42 = vmax.f32 %v710_v38, 0.0 }
  0xcd   : > { %2135 = vmatprep.subr.bf16.mxu0 %v4093_v49  ;;  %2521 = vmatprep.subr.bf16.mxu1 %v4096_v50 }
  0xce   : > { %v1000_v49 = vpack.c.bf16 %v916_v46, %v912_v45  ;;  %v1005_v50 = vpack.c.bf16 %v925_v48, %v921_v47  ;;  %v962_v45 = vpack.c.bf16 %v838_v42, %v834_v41  ;;  %v714_v47 = vld [vmem:[%s4492_s6 + $0x50] sm:$0xff] }
  0xcf   : > { %v718_v48 = vld [vmem:[%s4492_s6 + $0x70] sm:$0xff] }
  0xd0   : > { %2136 = vmatpush1.bf16.msra.mxu0 %v4091_v55  ;;  %2522 = vmatpush1.bf16.msra.mxu1 %v4094_v56  ;;  %v920_v55 = vmax.f32 %v792_v51, 0.0  ;;  %v924_v56 = vmax.f32 %v796_v52, 0.0  ;;  %v842_v51 = vmax.f32 %v714_v47, 0.0  ;;  %v846_v52 = vmax.f32 %v718_v48, 0.0 }
  0xd1   : > { %2137 = vmatprep.subr.bf16.mxu0 %v4099_v57  ;;  %2523 = vmatprep.subr.bf16.mxu1 %v4102_v58  ;;  %v929_v57 = vmax.f32 %v801_v53, 0.0  ;;  %v933_v58 = vmax.f32 %v805_v54, 0.0 }
  0xd2   : > { %2013 = vmatmul.mubr.bf16.gmra.mrb[24].mxu0 %v984_v59  ;;  %2399 = vmatmul.mubr.bf16.gmra.mrb[24].mxu1 %v984_v59  ;;  %v1004_v59 = vpack.c.bf16 %v924_v56, %v920_v55  ;;  %v966_v55 = vpack.c.bf16 %v846_v52, %v842_v51 }
  0xd3   : > { %2022 = vmatprep.mubr.bf16.mxu0 %v989_v60  ;;  %2408 = vmatprep.mubr.bf16.mxu1 %v989_v60  ;;  %v1009_v60 = vpack.c.bf16 %v933_v58, %v929_v57  ;;  %v722_v57 = vld [vmem:[%s4492_s6 + $0x90] sm:$0xff] }
  0xd4   : > { %2138 = vmatpush1.bf16.msra.mxu0 %v4097_v1  ;;  %2524 = vmatpush1.bf16.msra.mxu1 %v4100_v2  ;;  %v928_v1 = vmax.f32 %v800_v61, 0.0  ;;  %v932_v2 = vmax.f32 %v804_v62, 0.0  ;;  %v726_v58 = vld [vmem:[%s4492_s6 + $0xb0] sm:$0xff]  ;;  %v850_v61 = vmax.f32 %v722_v57, 0.0 }
  0xd5   : > { %2139 = vmatprep.subr.bf16.mxu0 %v4105_v3  ;;  %2525 = vmatprep.subr.bf16.mxu1 %v4108_v4  ;;  %v937_v3 = vmax.f32 %v809_v63, 0.0  ;;  %v941_v4 = vmax.f32 %v813_v0, 0.0  ;;  %v854_v62 = vmax.f32 %v726_v58, 0.0 }
  0xd6   : > { %v1008_v5 = vpack.c.bf16 %v932_v2, %v928_v1 }
  0xd7   : > { %v1013_v6 = vpack.c.bf16 %v941_v4, %v937_v3  ;;  %v970_v1 = vpack.c.bf16 %v854_v62, %v850_v61  ;;  %v730_v3 = vld [vmem:[%s4492_s6 + $0xd0] sm:$0xff] }
  0xd8   : > { %2140 = vmatpush1.bf16.msra.mxu0 %v4103_v9  ;;  %2526 = vmatpush1.bf16.msra.mxu1 %v4106_v10  ;;  %v817_v9 = vld [vmem:[%s4492_s6 + $0x388] sm:$0xff]  ;;  %v734_v4 = vld [vmem:[%s4492_s6 + $0xf0] sm:$0xff] }
  0xd9   : > { %2141 = vmatprep.subr.bf16.mxu0 %v4111_v11  ;;  %2527 = vmatprep.subr.bf16.mxu1 %v4114_v12  ;;  %v821_v10 = vld [vmem:[%s4492_s6 + $0x3a8] sm:$0xff]  ;;  %v936_v11 = vmax.f32 %v808_v7, 0.0  ;;  %v940_v12 = vmax.f32 %v812_v8, 0.0  ;;  %v858_v7 = vmax.f32 %v730_v3, 0.0  ;;  %v862_v8 = vmax.f32 %v734_v4, 0.0 }
  0xda   : > { %2023 = vmatmul.mubr.bf16.gmra.mrb[28].mxu0 %v988_v13  ;;  %2409 = vmatmul.mubr.bf16.gmra.mrb[28].mxu1 %v988_v13  ;;  %v945_v13 = vmax.f32 %v817_v9, 0.0 }
  0xdb   : > { %2032 = vmatprep.mubr.bf16.mxu0 %v993_v14  ;;  %2418 = vmatprep.mubr.bf16.mxu1 %v993_v14  ;;  %v949_v14 = vmax.f32 %v821_v10, 0.0  ;;  %v1012_v15 = vpack.c.bf16 %v940_v12, %v936_v11  ;;  %v974_v11 = vpack.c.bf16 %v862_v8, %v858_v7 }
  0xdc   : > { %2142 = vmatpush1.bf16.msra.mxu0 %v4109_v19  ;;  %2528 = vmatpush1.bf16.msra.mxu1 %v4112_v20  ;;  %v825_v19 = vld [vmem:[%s4492_s6 + $0x3c8] sm:$0xff] }
  0xdd   : > { %2143 = vmatprep.subr.bf16.mxu0 %v4117_v21  ;;  %2529 = vmatprep.subr.bf16.mxu1 %v4120_v22  ;;  %v1017_v16 = vpack.c.bf16 %v949_v14, %v945_v13  ;;  %v829_v20 = vld [vmem:[%s4492_s6 + $0x3e8] sm:$0xff]  ;;  %v944_v21 = vmax.f32 %v816_v17, 0.0  ;;  %v948_v22 = vmax.f32 %v820_v18, 0.0  ;;  %v953_v23 = vmax.f32 %v825_v19, 0.0  ;;  %v738_v13 = vld [vmem:[%s4492_s6 + $0x110] sm:$0xff] }
  0xde   : > { %v957_v24 = vmax.f32 %v829_v20, 0.0  ;;  %v742_v14 = vld [vmem:[%s4492_s6 + $0x130] sm:$0xff]  ;;  %v866_v17 = vmax.f32 %v738_v13, 0.0 }
  0xdf   : > { %v1016_v25 = vpack.c.bf16 %v948_v22, %v944_v21  ;;  %v870_v18 = vmax.f32 %v742_v14, 0.0 }
  0xe0   : > { %2144 = vmatpush1.bf16.msra.mxu0 %v4115_v27  ;;  %2530 = vmatpush1.bf16.msra.mxu1 %v4118_v28  ;;  %v1021_v26 = vpack.c.bf16 %v957_v24, %v953_v23  ;;  %v824_v27 = vld [vmem:[%s4492_s6 + $0x3c0] sm:$0xff]  ;;  %v746_v23 = vld [vmem:[%s4492_s6 + $0x150] sm:$0xff] }
  0xe1   : > { %v828_v28 = vld [vmem:[%s4492_s6 + $0x3e0] sm:$0xff]  ;;  %v952_v31 = vmax.f32 %v824_v27, 0.0  ;;  %v978_v21 = vpack.c.bf16 %v870_v18, %v866_v17  ;;  %v750_v24 = vld [vmem:[%s4492_s6 + $0x170] sm:$0xff]  ;;  %v874_v27 = vmax.f32 %v746_v23, 0.0 }
  0xe2   : > { %2033 = vmatmul.mubr.bf16.gmra.mrb[32].mxu0 %v992_v29  ;;  %2419 = vmatmul.mubr.bf16.gmra.mrb[32].mxu1 %v992_v29  ;;  %v707_v29 = vld [vmem:[%s4492_s6 + $0x18] sm:$0xff]  ;;  %v956_v32 = vmax.f32 %v828_v28, 0.0  ;;  %v878_v28 = vmax.f32 %v750_v24, 0.0 }
  0xe3   : > { %2042 = vmatprep.mubr.bf16.mxu0 %v997_v30  ;;  %2428 = vmatprep.mubr.bf16.mxu1 %v997_v30  ;;  %v711_v30 = vld [vmem:[%s4492_s6 + $0x38] sm:$0xff]  ;;  %v835_v33 = vmax.f32 %v707_v29, 0.0 }
  0xe4   : > { %v839_v34 = vmax.f32 %v711_v30, 0.0  ;;  %v1020_v35 = vpack.c.bf16 %v956_v32, %v952_v31  ;;  %v982_v31 = vpack.c.bf16 %v878_v28, %v874_v27 }
  0xe6   : > { %v963_v36 = vpack.c.bf16 %v839_v34, %v835_v33  ;;  %v754_v33 = vld [vmem:[%s4492_s6 + $0x190] sm:$0xff] }
  0xe7   : > { %v758_v34 = vld [vmem:[%s4492_s6 + $0x1b0] sm:$0xff]  ;;  %v882_v37 = vmax.f32 %v754_v33, 0.0 }
  0xe8   : > { %v886_v38 = vmax.f32 %v758_v34, 0.0 }
  0xea   : > { %2043 = vmatmul.mubr.bf16.gmra.mrb[36].mxu0 %v996_v39  ;;  %2429 = vmatmul.mubr.bf16.gmra.mrb[36].mxu1 %v996_v39  ;;  %v715_v39 = vld [vmem:[%s4492_s6 + $0x58] sm:$0xff]  ;;  %v986_v41 = vpack.c.bf16 %v886_v38, %v882_v37 }
  0xeb   : > { %2052 = vmatprep.mubr.bf16.mxu0 %v1001_v40  ;;  %2438 = vmatprep.mubr.bf16.mxu1 %v1001_v40  ;;  %v719_v40 = vld [vmem:[%s4492_s6 + $0x78] sm:$0xff]  ;;  %v843_v43 = vmax.f32 %v715_v39, 0.0 }
  0xec   : > { %v847_v44 = vmax.f32 %v719_v40, 0.0 }
  0xee   : > { %v967_v46 = vpack.c.bf16 %v847_v44, %v843_v43  ;;  %v762_v43 = vld [vmem:[%s4492_s6 + $0x1d0] sm:$0xff] }
  0xef   : > { %v766_v44 = vld [vmem:[%s4492_s6 + $0x1f0] sm:$0xff]  ;;  %v890_v47 = vmax.f32 %v762_v43, 0.0 }
  0xf0   : > { %v894_v48 = vmax.f32 %v766_v44, 0.0 }
  0xf2   : > { %2053 = vmatmul.mubr.bf16.gmra.mrb[40].mxu0 %v1000_v49  ;;  %2439 = vmatmul.mubr.bf16.gmra.mrb[40].mxu1 %v1000_v49  ;;  %v723_v49 = vld [vmem:[%s4492_s6 + $0x98] sm:$0xff]  ;;  %v990_v51 = vpack.c.bf16 %v894_v48, %v890_v47 }
  0xf3   : > { %2062 = vmatprep.mubr.bf16.mxu0 %v1005_v50  ;;  %2448 = vmatprep.mubr.bf16.mxu1 %v1005_v50  ;;  %v727_v50 = vld [vmem:[%s4492_s6 + $0xb8] sm:$0xff]  ;;  %v851_v53 = vmax.f32 %v723_v49, 0.0 }
  0xf4   : > { %v855_v54 = vmax.f32 %v727_v50, 0.0 }
  0xf6   : > { %v971_v56 = vpack.c.bf16 %v855_v54, %v851_v53  ;;  %v770_v53 = vld [vmem:[%s4492_s6 + $0x210] sm:$0xff] }
  0xf7   : > { %v774_v54 = vld [vmem:[%s4492_s6 + $0x230] sm:$0xff]  ;;  %v898_v57 = vmax.f32 %v770_v53, 0.0 }
  0xf8   : > { %v902_v58 = vmax.f32 %v774_v54, 0.0 }
  0xfa   : > { %2063 = vmatmul.mubr.bf16.gmra.mrb[44].mxu0 %v1004_v59  ;;  %2449 = vmatmul.mubr.bf16.gmra.mrb[44].mxu1 %v1004_v59  ;;  %v731_v59 = vld [vmem:[%s4492_s6 + $0xd8] sm:$0xff]  ;;  %v994_v61 = vpack.c.bf16 %v902_v58, %v898_v57 }
  0xfb   : > { %2072 = vmatprep.mubr.bf16.mxu0 %v1009_v60  ;;  %2458 = vmatprep.mubr.bf16.mxu1 %v1009_v60  ;;  %v735_v60 = vld [vmem:[%s4492_s6 + $0xf8] sm:$0xff]  ;;  %v859_v63 = vmax.f32 %v731_v59, 0.0 }
  0xfc   : > { %v863_v0 = vmax.f32 %v735_v60, 0.0 }
  0xfe   : > { %v975_v2 = vpack.c.bf16 %v863_v0, %v859_v63  ;;  %v778_v63 = vld [vmem:[%s4492_s6 + $0x250] sm:$0xff] }
  0xff   : > { %v782_v0 = vld [vmem:[%s4492_s6 + $0x270] sm:$0xff]  ;;  %v906_v3 = vmax.f32 %v778_v63, 0.0 }
 0x100   : > { %v910_v4 = vmax.f32 %v782_v0, 0.0  ;;  %v3081_v0 = vlaneseq }
 0x102   : > { %2073 = vmatmul.mubr.bf16.gmra.mrb[48].mxu0 %v1008_v5  ;;  %2459 = vmatmul.mubr.bf16.gmra.mrb[48].mxu1 %v1008_v5  ;;  %v739_v5 = vld [vmem:[%s4492_s6 + $0x118] sm:$0xff]  ;;  %v998_v7 = vpack.c.bf16 %v910_v4, %v906_v3  ;;  %v3079_v4 = vld [vmem:[%s560_s18] sm:$0xf] }
 0x103   : > { %2082 = vmatprep.mubr.bf16.mxu0 %v1013_v6  ;;  %2468 = vmatprep.mubr.bf16.mxu1 %v1013_v6  ;;  %v743_v6 = vld [vmem:[%s4492_s6 + $0x138] sm:$0xff]  ;;  %v867_v9 = vmax.f32 %v739_v5, 0.0 }
 0x104   : > { %v871_v10 = vmax.f32 %v743_v6, 0.0 }
 0x106   : > { %v979_v12 = vpack.c.bf16 %v871_v10, %v867_v9  ;;  %v786_v9 = vld [vmem:[%s4492_s6 + $0x290] sm:$0xff] }
 0x107   : > { %v790_v10 = vld [vmem:[%s4492_s6 + $0x2b0] sm:$0xff]  ;;  %v914_v13 = vmax.f32 %v786_v9, 0.0 }
 0x108   : > { %v918_v14 = vmax.f32 %v790_v10, 0.0 }
 0x10a   : > { %2083 = vmatmul.mubr.bf16.gmra.mrb[52].mxu0 %v1012_v15  ;;  %2469 = vmatmul.mubr.bf16.gmra.mrb[52].mxu1 %v1012_v15  ;;  %v747_v15 = vld [vmem:[%s4492_s6 + $0x158] sm:$0xff]  ;;  %v1002_v17 = vpack.c.bf16 %v918_v14, %v914_v13 }
 0x10b   : > { %2092 = vmatprep.mubr.bf16.mxu0 %v1017_v16  ;;  %2478 = vmatprep.mubr.bf16.mxu1 %v1017_v16  ;;  %v751_v16 = vld [vmem:[%s4492_s6 + $0x178] sm:$0xff]  ;;  %v875_v19 = vmax.f32 %v747_v15, 0.0 }
 0x10c   : > { %v879_v20 = vmax.f32 %v751_v16, 0.0 }
 0x10e   : > { %v983_v22 = vpack.c.bf16 %v879_v20, %v875_v19  ;;  %v794_v19 = vld [vmem:[%s4492_s6 + $0x2d0] sm:$0xff] }
 0x10f   : > { %v798_v20 = vld [vmem:[%s4492_s6 + $0x2f0] sm:$0xff]  ;;  %v922_v23 = vmax.f32 %v794_v19, 0.0 }
 0x110   : > { %v926_v24 = vmax.f32 %v798_v20, 0.0 }
 0x112   : > { %2093 = vmatmul.mubr.bf16.gmra.mrb[56].mxu0 %v1016_v25  ;;  %2479 = vmatmul.mubr.bf16.gmra.mrb[56].mxu1 %v1016_v25  ;;  %v755_v25 = vld [vmem:[%s4492_s6 + $0x198] sm:$0xff]  ;;  %v1006_v27 = vpack.c.bf16 %v926_v24, %v922_v23 }
 0x113   : > { %2102 = vmatprep.mubr.bf16.mxu0 %v1021_v26  ;;  %2488 = vmatprep.mubr.bf16.mxu1 %v1021_v26  ;;  %v759_v26 = vld [vmem:[%s4492_s6 + $0x1b8] sm:$0xff]  ;;  %v883_v29 = vmax.f32 %v755_v25, 0.0 }
 0x114   : > { %v887_v30 = vmax.f32 %v759_v26, 0.0 }
 0x116   : > { %v987_v32 = vpack.c.bf16 %v887_v30, %v883_v29  ;;  %v802_v29 = vld [vmem:[%s4492_s6 + $0x310] sm:$0xff] }
 0x117   : > { %v806_v30 = vld [vmem:[%s4492_s6 + $0x330] sm:$0xff]  ;;  %v930_v33 = vmax.f32 %v802_v29, 0.0 }
 0x118   : > { %v934_v34 = vmax.f32 %v806_v30, 0.0 }
 0x11a   : > { %2103 = vmatmul.mubr.bf16.gmra.mrb[60].mxu0 %v1020_v35  ;;  %2489 = vmatmul.mubr.bf16.gmra.mrb[60].mxu1 %v1020_v35  ;;  %v763_v35 = vld [vmem:[%s4492_s6 + $0x1d8] sm:$0xff]  ;;  %v1010_v37 = vpack.c.bf16 %v934_v34, %v930_v33 }
 0x11b   : > { %2145 = vmatprep.mubr.bf16.mxu0 %v963_v36  ;;  %2531 = vmatprep.mubr.bf16.mxu1 %v963_v36  ;;  %v767_v36 = vld [vmem:[%s4492_s6 + $0x1f8] sm:$0xff]  ;;  %v891_v39 = vmax.f32 %v763_v35, 0.0 }
 0x11c   : > { %v895_v40 = vmax.f32 %v767_v36, 0.0 }
 0x11e   : > { %v991_v42 = vpack.c.bf16 %v895_v40, %v891_v39  ;;  %v810_v39 = vld [vmem:[%s4492_s6 + $0x350] sm:$0xff] }
 0x11f   : > { %v814_v40 = vld [vmem:[%s4492_s6 + $0x370] sm:$0xff]  ;;  %v938_v43 = vmax.f32 %v810_v39, 0.0 }
 0x120   : > { %v942_v44 = vmax.f32 %v814_v40, 0.0 }
 0x122   : > { %2146 = vmatmul.mubr.bf16.vlgmr.msra.gmra.mrb[0].mxu0 %v962_v45  ;;  %2532 = vmatmul.mubr.bf16.vlgmr.msra.gmra.mrb[0].mxu1 %v962_v45  ;;  %v771_v45 = vld [vmem:[%s4492_s6 + $0x218] sm:$0xff]  ;;  %v1014_v47 = vpack.c.bf16 %v942_v44, %v938_v43 }
 0x123   : > { %2155 = vmatprep.mubr.bf16.mxu0 %v967_v46  ;;  %2541 = vmatprep.mubr.bf16.mxu1 %v967_v46  ;;  %v775_v46 = vld [vmem:[%s4492_s6 + $0x238] sm:$0xff]  ;;  %v899_v49 = vmax.f32 %v771_v45, 0.0 }
 0x124   : > { %v903_v50 = vmax.f32 %v775_v46, 0.0 }
 0x126   : > { %v995_v52 = vpack.c.bf16 %v903_v50, %v899_v49  ;;  %v818_v49 = vld [vmem:[%s4492_s6 + $0x390] sm:$0xff] }
 0x127   : > { %v822_v50 = vld [vmem:[%s4492_s6 + $0x3b0] sm:$0xff]  ;;  %v946_v53 = vmax.f32 %v818_v49, 0.0 }
 0x128   : > { %v950_v54 = vmax.f32 %v822_v50, 0.0 }
 0x12a   : > { %2156 = vmatmul.mubr.bf16.gmra.mrb[4].mxu0 %v966_v55  ;;  %2542 = vmatmul.mubr.bf16.gmra.mrb[4].mxu1 %v966_v55  ;;  %v779_v55 = vld [vmem:[%s4492_s6 + $0x258] sm:$0xff]  ;;  %v1018_v57 = vpack.c.bf16 %v950_v54, %v946_v53 }
 0x12b   : > { %2165 = vmatprep.mubr.bf16.mxu0 %v971_v56  ;;  %2551 = vmatprep.mubr.bf16.mxu1 %v971_v56  ;;  %v783_v56 = vld [vmem:[%s4492_s6 + $0x278] sm:$0xff]  ;;  %v907_v59 = vmax.f32 %v779_v55, 0.0 }
 0x12c   : > { %v911_v60 = vmax.f32 %v783_v56, 0.0 }
 0x12e   : > { %v999_v62 = vpack.c.bf16 %v911_v60, %v907_v59  ;;  %v826_v59 = vld [vmem:[%s4492_s6 + $0x3d0] sm:$0xff] }
 0x12f   : > { %v830_v60 = vld [vmem:[%s4492_s6 + $0x3f0] sm:$0xff] }
 0x132   : > { %2166 = vmatmul.mubr.bf16.gmra.mrb[8].mxu0 %v970_v1  ;;  %2552 = vmatmul.mubr.bf16.gmra.mrb[8].mxu1 %v970_v1  ;;  %v787_v1 = vld [vmem:[%s4492_s6 + $0x298] sm:$0xff] }
 0x133   : > { %2175 = vmatprep.mubr.bf16.mxu0 %v975_v2  ;;  %2561 = vmatprep.mubr.bf16.mxu1 %v975_v2  ;;  %v791_v2 = vld [vmem:[%s4492_s6 + $0x2b8] sm:$0xff]  ;;  %v915_v5 = vmax.f32 %v787_v1, 0.0  ;;  %v3082_v1 = vshrl.u32 %v3081_v0, 7 }
 0x134   : > { %v919_v6 = vmax.f32 %v791_v2, 0.0 }
 0x135   : > { %v3083_v2 = vsub.s32 0, %v3082_v1  ;;  %v3091_v3 = vsub.s32 2, %v3082_v1 }
 0x136   : > { %v1003_v8 = vpack.c.bf16 %v919_v6, %v915_v5  ;;  %v3087_v5 = vsub.s32 1, %v3082_v1  ;;  %v3095_v6 = vsub.s32 3, %v3082_v1 }
 0x138   : > { %v4765_v9 = vrot.slane %v3079_v4, %v3087_v5  ;;  %v4767_v10 = vrot.slane %v3079_v4, %v3095_v6 }
 0x13a   : > { %2176 = vmatmul.mubr.bf16.gmra.mrb[12].mxu0 %v974_v11  ;;  %2562 = vmatmul.mubr.bf16.gmra.mrb[12].mxu1 %v974_v11  ;;  %v795_v11 = vld [vmem:[%s4492_s6 + $0x2d8] sm:$0xff] }
 0x13b   : > { %2185 = vmatprep.mubr.bf16.mxu0 %v979_v12  ;;  %2571 = vmatprep.mubr.bf16.mxu1 %v979_v12  ;;  %v799_v12 = vld [vmem:[%s4492_s6 + $0x2f8] sm:$0xff]  ;;  %v923_v15 = vmax.f32 %v795_v11, 0.0 }
 0x13c   : > { %v927_v16 = vmax.f32 %v799_v12, 0.0 }
 0x13e   : > { %v1007_v18 = vpack.c.bf16 %v927_v16, %v923_v15 }
 0x142   : > { %2186 = vmatmul.mubr.bf16.gmra.mrb[16].mxu0 %v978_v21  ;;  %2572 = vmatmul.mubr.bf16.gmra.mrb[16].mxu1 %v978_v21  ;;  %v803_v21 = vld [vmem:[%s4492_s6 + $0x318] sm:$0xff] }
 0x143   : > { %2195 = vmatprep.mubr.bf16.mxu0 %v983_v22  ;;  %2581 = vmatprep.mubr.bf16.mxu1 %v983_v22  ;;  %v807_v22 = vld [vmem:[%s4492_s6 + $0x338] sm:$0xff]  ;;  %v931_v25 = vmax.f32 %v803_v21, 0.0 }
 0x144   : > { %v935_v26 = vmax.f32 %v807_v22, 0.0 }
 0x146   : > { %v1011_v28 = vpack.c.bf16 %v935_v26, %v931_v25 }
 0x14a   : > { %2196 = vmatmul.mubr.bf16.gmra.mrb[20].mxu0 %v982_v31  ;;  %2582 = vmatmul.mubr.bf16.gmra.mrb[20].mxu1 %v982_v31  ;;  %v811_v31 = vld [vmem:[%s4492_s6 + $0x358] sm:$0xff] }
 0x14b   : > { %2205 = vmatprep.mubr.bf16.mxu0 %v987_v32  ;;  %2591 = vmatprep.mubr.bf16.mxu1 %v987_v32  ;;  %v815_v32 = vld [vmem:[%s4492_s6 + $0x378] sm:$0xff]  ;;  %v939_v35 = vmax.f32 %v811_v31, 0.0 }
 0x14c   : > { %v943_v36 = vmax.f32 %v815_v32, 0.0 }
 0x14e   : > { %v1015_v38 = vpack.c.bf16 %v943_v36, %v939_v35 }
 0x152   : > { %2206 = vmatmul.mubr.bf16.gmra.mrb[24].mxu0 %v986_v41  ;;  %2592 = vmatmul.mubr.bf16.gmra.mrb[24].mxu1 %v986_v41  ;;  %v819_v41 = vld [vmem:[%s4492_s6 + $0x398] sm:$0xff] }
 0x153   : > { %2215 = vmatprep.mubr.bf16.mxu0 %v991_v42  ;;  %2601 = vmatprep.mubr.bf16.mxu1 %v991_v42  ;;  %v823_v42 = vld [vmem:[%s4492_s6 + $0x3b8] sm:$0xff]  ;;  %v947_v45 = vmax.f32 %v819_v41, 0.0 }
 0x154   : > { %v951_v46 = vmax.f32 %v823_v42, 0.0 }
 0x156   : > { %v1019_v48 = vpack.c.bf16 %v951_v46, %v947_v45 }
 0x15a   : > { %2216 = vmatmul.mubr.bf16.gmra.mrb[28].mxu0 %v990_v51  ;;  %2602 = vmatmul.mubr.bf16.gmra.mrb[28].mxu1 %v990_v51  ;;  %v827_v51 = vld [vmem:[%s4492_s6 + $0x3d8] sm:$0xff] }
 0x15b   : > { %2225 = vmatprep.mubr.bf16.mxu0 %v995_v52  ;;  %2611 = vmatprep.mubr.bf16.mxu1 %v995_v52  ;;  %v831_v52 = vld [vmem:[%s4492_s6 + $0x3f8] sm:$0xff]  ;;  %v955_v55 = vmax.f32 %v827_v51, 0.0 }
 0x15c   : > { %v959_v56 = vmax.f32 %v831_v52, 0.0 }
 0x15e   : > { %v1023_v58 = vpack.c.bf16 %v959_v56, %v955_v55 }
 0x162   : > { %2226 = vmatmul.mubr.bf16.gmra.mrb[32].mxu0 %v994_v61  ;;  %2612 = vmatmul.mubr.bf16.gmra.mrb[32].mxu1 %v994_v61  ;;  %v954_v61 = vmax.f32 %v826_v59, 0.0 }
 0x163   : > { %2235 = vmatprep.mubr.bf16.mxu0 %v999_v62  ;;  %2621 = vmatprep.mubr.bf16.mxu1 %v999_v62  ;;  %v958_v62 = vmax.f32 %v830_v60, 0.0 }
 0x165   : > { %v1022_v63 = vpack.c.bf16 %v958_v62, %v954_v61 }
 0x16a   : > { %2236 = vmatmul.mubr.bf16.gmra.mrb[36].mxu0 %v998_v7  ;;  %2622 = vmatmul.mubr.bf16.gmra.mrb[36].mxu1 %v998_v7  ;;  %v4761_v7 = vrot.slane %v3079_v4, %v3083_v2 }
 0x16b   : > { %2245 = vmatprep.mubr.bf16.mxu0 %v1003_v8  ;;  %2631 = vmatprep.mubr.bf16.mxu1 %v1003_v8  ;;  %v4763_v8 = vrot.slane %v3079_v4, %v3091_v3 }
 0x172   : > { %2246 = vmatmul.mubr.bf16.gmra.mrb[40].mxu0 %v1002_v17  ;;  %2632 = vmatmul.mubr.bf16.gmra.mrb[40].mxu1 %v1002_v17 }
 0x173   : > { %2255 = vmatprep.mubr.bf16.mxu0 %v1007_v18  ;;  %2641 = vmatprep.mubr.bf16.mxu1 %v1007_v18 }
 0x17a   : > { %2256 = vmatmul.mubr.bf16.gmra.mrb[44].mxu0 %v1006_v27  ;;  %2642 = vmatmul.mubr.bf16.gmra.mrb[44].mxu1 %v1006_v27 }
 0x17b   : > { %2265 = vmatprep.mubr.bf16.mxu0 %v1011_v28  ;;  %2651 = vmatprep.mubr.bf16.mxu1 %v1011_v28 }
 0x182   : > { %2266 = vmatmul.mubr.bf16.gmra.mrb[48].mxu0 %v1010_v37  ;;  %2652 = vmatmul.mubr.bf16.gmra.mrb[48].mxu1 %v1010_v37 }
 0x183   : > { %2275 = vmatprep.mubr.bf16.mxu0 %v1015_v38  ;;  %2661 = vmatprep.mubr.bf16.mxu1 %v1015_v38 }
 0x18a   : > { %2276 = vmatmul.mubr.bf16.gmra.mrb[52].mxu0 %v1014_v47  ;;  %2662 = vmatmul.mubr.bf16.gmra.mrb[52].mxu1 %v1014_v47 }
 0x18b   : > { %2285 = vmatprep.mubr.bf16.mxu0 %v1019_v48  ;;  %2671 = vmatprep.mubr.bf16.mxu1 %v1019_v48 }
 0x192   : > { %2286 = vmatmul.mubr.bf16.gmra.mrb[56].mxu0 %v1018_v57  ;;  %2672 = vmatmul.mubr.bf16.gmra.mrb[56].mxu1 %v1018_v57 }
 0x193   : > { %2295 = vmatprep.mubr.bf16.mxu0 %v1023_v58  ;;  %2681 = vmatprep.mubr.bf16.mxu1 %v1023_v58 }
 0x19a   : > { %2296 = vmatmul.mubr.bf16.gmra.mrb[60].mxu0 %v1022_v63  ;;  %2682 = vmatmul.mubr.bf16.gmra.mrb[60].mxu1 %v1022_v63 }
 0x1f5   : > { %v2147_v11 = vpop.f32.mrb[0].mxu0  ;;  %v2533_v12 = vpop.f32.mrb[0].mxu1 }
 0x1f6   : > { %v3101_v13 = vadd.f32 %v4761_v7, %v2147_v11  ;;  %v3103_v14 = vadd.f32 %v4763_v8, %v2533_v12  ;;  %v2149_v15 = vpop.f32.mrb[1].mxu0  ;;  %v2535_v16 = vpop.f32.mrb[1].mxu1 }
 0x1f7   : > { %v3102_v17 = vadd.f32 %v4765_v9, %v2149_v15  ;;  %v3104_v18 = vadd.f32 %v4767_v10, %v2535_v16  ;;  %v2151_v19 = vpop.f32.mrb[2].mxu0  ;;  %v2537_v20 = vpop.f32.mrb[2].mxu1 }
 0x1f8   : > { %3229 = vst [vmem:[%s4774_s21] sm:$0xff] %v3101_v13  ;;  %3231 = vst [vmem:[%s4774_s21 + $0x10] sm:$0xff] %v3103_v14  ;;  %v3105_v21 = vadd.f32 %v4761_v7, %v2151_v19  ;;  %v3107_v22 = vadd.f32 %v4763_v8, %v2537_v20  ;;  %v2153_v23 = vpop.f32.mrb[3].mxu0  ;;  %v2539_v24 = vpop.f32.mrb[3].mxu1 }
 0x1f9   : > { %3230 = vst [vmem:[%s4774_s21 + $0x8] sm:$0xff] %v3102_v17  ;;  %3232 = vst [vmem:[%s4774_s21 + $0x18] sm:$0xff] %v3104_v18  ;;  %v3106_v25 = vadd.f32 %v4765_v9, %v2153_v23  ;;  %v3108_v26 = vadd.f32 %v4767_v10, %v2539_v24 }
 0x1fa   : > { %3233 = vst [vmem:[%s4774_s21 + $0x20] sm:$0xff] %v3105_v21  ;;  %3235 = vst [vmem:[%s4774_s21 + $0x30] sm:$0xff] %v3107_v22 }
 0x1fb   : > { %3234 = vst [vmem:[%s4774_s21 + $0x28] sm:$0xff] %v3106_v25  ;;  %3236 = vst [vmem:[%s4774_s21 + $0x38] sm:$0xff] %v3108_v26 }
 0x1fd   : > { %v2157_v27 = vpop.f32.mrb[4].mxu0  ;;  %v2543_v28 = vpop.f32.mrb[4].mxu1 }
 0x1fe   : > { %v3109_v29 = vadd.f32 %v4761_v7, %v2157_v27  ;;  %v3111_v30 = vadd.f32 %v4763_v8, %v2543_v28  ;;  %v2159_v31 = vpop.f32.mrb[5].mxu0  ;;  %v2545_v32 = vpop.f32.mrb[5].mxu1 }
 0x1ff   : > { %v3110_v33 = vadd.f32 %v4765_v9, %v2159_v31  ;;  %v3112_v34 = vadd.f32 %v4767_v10, %v2545_v32  ;;  %v2161_v35 = vpop.f32.mrb[6].mxu0  ;;  %v2547_v36 = vpop.f32.mrb[6].mxu1 }
 0x200   : > { %3237 = vst [vmem:[%s4774_s21 + $0x40] sm:$0xff] %v3109_v29  ;;  %3239 = vst [vmem:[%s4774_s21 + $0x50] sm:$0xff] %v3111_v30  ;;  %v3113_v37 = vadd.f32 %v4761_v7, %v2161_v35  ;;  %v3115_v38 = vadd.f32 %v4763_v8, %v2547_v36  ;;  %v2163_v39 = vpop.f32.mrb[7].mxu0  ;;  %v2549_v40 = vpop.f32.mrb[7].mxu1 }
 0x201   : > { %3238 = vst [vmem:[%s4774_s21 + $0x48] sm:$0xff] %v3110_v33  ;;  %3240 = vst [vmem:[%s4774_s21 + $0x58] sm:$0xff] %v3112_v34  ;;  %v3114_v41 = vadd.f32 %v4765_v9, %v2163_v39  ;;  %v3116_v42 = vadd.f32 %v4767_v10, %v2549_v40 }
 0x202   : > { %3241 = vst [vmem:[%s4774_s21 + $0x60] sm:$0xff] %v3113_v37  ;;  %3243 = vst [vmem:[%s4774_s21 + $0x70] sm:$0xff] %v3115_v38 }
 0x203   : > { %3242 = vst [vmem:[%s4774_s21 + $0x68] sm:$0xff] %v3114_v41  ;;  %3244 = vst [vmem:[%s4774_s21 + $0x78] sm:$0xff] %v3116_v42 }
 0x205   : > { %v2167_v43 = vpop.f32.mrb[8].mxu0  ;;  %v2553_v44 = vpop.f32.mrb[8].mxu1 }
 0x206   : > { %v3117_v45 = vadd.f32 %v4761_v7, %v2167_v43  ;;  %v3119_v46 = vadd.f32 %v4763_v8, %v2553_v44  ;;  %v2169_v47 = vpop.f32.mrb[9].mxu0  ;;  %v2555_v48 = vpop.f32.mrb[9].mxu1 }
 0x207   : > { %v3118_v49 = vadd.f32 %v4765_v9, %v2169_v47  ;;  %v3120_v50 = vadd.f32 %v4767_v10, %v2555_v48  ;;  %v2171_v51 = vpop.f32.mrb[10].mxu0  ;;  %v2557_v52 = vpop.f32.mrb[10].mxu1 }
 0x208   : > { %3245 = vst [vmem:[%s4774_s21 + $0x80] sm:$0xff] %v3117_v45  ;;  %3247 = vst [vmem:[%s4774_s21 + $0x90] sm:$0xff] %v3119_v46  ;;  %v3121_v53 = vadd.f32 %v4761_v7, %v2171_v51  ;;  %v3123_v54 = vadd.f32 %v4763_v8, %v2557_v52  ;;  %v2173_v55 = vpop.f32.mrb[11].mxu0  ;;  %v2559_v56 = vpop.f32.mrb[11].mxu1 }
 0x209   : > { %3246 = vst [vmem:[%s4774_s21 + $0x88] sm:$0xff] %v3118_v49  ;;  %3248 = vst [vmem:[%s4774_s21 + $0x98] sm:$0xff] %v3120_v50  ;;  %v3122_v57 = vadd.f32 %v4765_v9, %v2173_v55  ;;  %v3124_v58 = vadd.f32 %v4767_v10, %v2559_v56 }
 0x20a   : > { %3249 = vst [vmem:[%s4774_s21 + $0xa0] sm:$0xff] %v3121_v53  ;;  %3251 = vst [vmem:[%s4774_s21 + $0xb0] sm:$0xff] %v3123_v54 }
 0x20b   : > { %3250 = vst [vmem:[%s4774_s21 + $0xa8] sm:$0xff] %v3122_v57  ;;  %3252 = vst [vmem:[%s4774_s21 + $0xb8] sm:$0xff] %v3124_v58 }
 0x20d   : > { %v2177_v59 = vpop.f32.mrb[12].mxu0  ;;  %v2563_v60 = vpop.f32.mrb[12].mxu1 }
 0x20e   : > { %v3125_v61 = vadd.f32 %v4761_v7, %v2177_v59  ;;  %v3127_v62 = vadd.f32 %v4763_v8, %v2563_v60  ;;  %v2179_v63 = vpop.f32.mrb[13].mxu0  ;;  %v2565_v0 = vpop.f32.mrb[13].mxu1 }
 0x20f   : > { %v3126_v1 = vadd.f32 %v4765_v9, %v2179_v63  ;;  %v3128_v2 = vadd.f32 %v4767_v10, %v2565_v0  ;;  %v2181_v3 = vpop.f32.mrb[14].mxu0  ;;  %v2567_v4 = vpop.f32.mrb[14].mxu1 }
 0x210   : > { %3253 = vst [vmem:[%s4774_s21 + $0xc0] sm:$0xff] %v3125_v61  ;;  %3255 = vst [vmem:[%s4774_s21 + $0xd0] sm:$0xff] %v3127_v62  ;;  %v3129_v5 = vadd.f32 %v4761_v7, %v2181_v3  ;;  %v3131_v6 = vadd.f32 %v4763_v8, %v2567_v4  ;;  %v2183_v11 = vpop.f32.mrb[15].mxu0  ;;  %v2569_v12 = vpop.f32.mrb[15].mxu1 }
 0x211   : > { %3254 = vst [vmem:[%s4774_s21 + $0xc8] sm:$0xff] %v3126_v1  ;;  %3256 = vst [vmem:[%s4774_s21 + $0xd8] sm:$0xff] %v3128_v2  ;;  %v3130_v13 = vadd.f32 %v4765_v9, %v2183_v11  ;;  %v3132_v14 = vadd.f32 %v4767_v10, %v2569_v12 }
 0x212   : > { %3257 = vst [vmem:[%s4774_s21 + $0xe0] sm:$0xff] %v3129_v5  ;;  %3259 = vst [vmem:[%s4774_s21 + $0xf0] sm:$0xff] %v3131_v6 }
 0x213   : > { %3258 = vst [vmem:[%s4774_s21 + $0xe8] sm:$0xff] %v3130_v13  ;;  %3260 = vst [vmem:[%s4774_s21 + $0xf8] sm:$0xff] %v3132_v14 }
 0x215   : > { %v2187_v15 = vpop.f32.mrb[16].mxu0  ;;  %v2573_v16 = vpop.f32.mrb[16].mxu1 }
 0x216   : > { %v3133_v17 = vadd.f32 %v4761_v7, %v2187_v15  ;;  %v3135_v18 = vadd.f32 %v4763_v8, %v2573_v16  ;;  %v2189_v19 = vpop.f32.mrb[17].mxu0  ;;  %v2575_v20 = vpop.f32.mrb[17].mxu1 }
 0x217   : > { %v3134_v21 = vadd.f32 %v4765_v9, %v2189_v19  ;;  %v3136_v22 = vadd.f32 %v4767_v10, %v2575_v20  ;;  %v2191_v23 = vpop.f32.mrb[18].mxu0  ;;  %v2577_v24 = vpop.f32.mrb[18].mxu1 }
 0x218   : > { %3261 = vst [vmem:[%s4774_s21 + $0x100] sm:$0xff] %v3133_v17  ;;  %3263 = vst [vmem:[%s4774_s21 + $0x110] sm:$0xff] %v3135_v18  ;;  %v3137_v25 = vadd.f32 %v4761_v7, %v2191_v23  ;;  %v3139_v26 = vadd.f32 %v4763_v8, %v2577_v24  ;;  %v2193_v27 = vpop.f32.mrb[19].mxu0  ;;  %v2579_v28 = vpop.f32.mrb[19].mxu1 }
 0x219   : > { %3262 = vst [vmem:[%s4774_s21 + $0x108] sm:$0xff] %v3134_v21  ;;  %3264 = vst [vmem:[%s4774_s21 + $0x118] sm:$0xff] %v3136_v22  ;;  %v3138_v29 = vadd.f32 %v4765_v9, %v2193_v27  ;;  %v3140_v30 = vadd.f32 %v4767_v10, %v2579_v28 }
 0x21a   : > { %3265 = vst [vmem:[%s4774_s21 + $0x120] sm:$0xff] %v3137_v25  ;;  %3267 = vst [vmem:[%s4774_s21 + $0x130] sm:$0xff] %v3139_v26 }
 0x21b   : > { %3266 = vst [vmem:[%s4774_s21 + $0x128] sm:$0xff] %v3138_v29  ;;  %3268 = vst [vmem:[%s4774_s21 + $0x138] sm:$0xff] %v3140_v30 }
 0x21d   : > { %v2197_v31 = vpop.f32.mrb[20].mxu0  ;;  %v2583_v32 = vpop.f32.mrb[20].mxu1 }
 0x21e   : > { %v3141_v33 = vadd.f32 %v4761_v7, %v2197_v31  ;;  %v3143_v34 = vadd.f32 %v4763_v8, %v2583_v32  ;;  %v2199_v35 = vpop.f32.mrb[21].mxu0  ;;  %v2585_v36 = vpop.f32.mrb[21].mxu1 }
 0x21f   : > { %v3142_v37 = vadd.f32 %v4765_v9, %v2199_v35  ;;  %v3144_v38 = vadd.f32 %v4767_v10, %v2585_v36  ;;  %v2201_v39 = vpop.f32.mrb[22].mxu0  ;;  %v2587_v40 = vpop.f32.mrb[22].mxu1 }
 0x220   : > { %3269 = vst [vmem:[%s4774_s21 + $0x140] sm:$0xff] %v3141_v33  ;;  %3271 = vst [vmem:[%s4774_s21 + $0x150] sm:$0xff] %v3143_v34  ;;  %v3145_v41 = vadd.f32 %v4761_v7, %v2201_v39  ;;  %v3147_v42 = vadd.f32 %v4763_v8, %v2587_v40  ;;  %v2203_v43 = vpop.f32.mrb[23].mxu0  ;;  %v2589_v44 = vpop.f32.mrb[23].mxu1 }
 0x221   : > { %3270 = vst [vmem:[%s4774_s21 + $0x148] sm:$0xff] %v3142_v37  ;;  %3272 = vst [vmem:[%s4774_s21 + $0x158] sm:$0xff] %v3144_v38  ;;  %v3146_v45 = vadd.f32 %v4765_v9, %v2203_v43  ;;  %v3148_v46 = vadd.f32 %v4767_v10, %v2589_v44 }
 0x222   : > { %3273 = vst [vmem:[%s4774_s21 + $0x160] sm:$0xff] %v3145_v41  ;;  %3275 = vst [vmem:[%s4774_s21 + $0x170] sm:$0xff] %v3147_v42 }
 0x223   : > { %3274 = vst [vmem:[%s4774_s21 + $0x168] sm:$0xff] %v3146_v45  ;;  %3276 = vst [vmem:[%s4774_s21 + $0x178] sm:$0xff] %v3148_v46 }
 0x225   : > { %v2207_v47 = vpop.f32.mrb[24].mxu0  ;;  %v2593_v48 = vpop.f32.mrb[24].mxu1 }
 0x226   : > { %v3149_v49 = vadd.f32 %v4761_v7, %v2207_v47  ;;  %v3151_v50 = vadd.f32 %v4763_v8, %v2593_v48  ;;  %v2209_v51 = vpop.f32.mrb[25].mxu0  ;;  %v2595_v52 = vpop.f32.mrb[25].mxu1 }
 0x227   : > { %v3150_v53 = vadd.f32 %v4765_v9, %v2209_v51  ;;  %v3152_v54 = vadd.f32 %v4767_v10, %v2595_v52  ;;  %v2211_v55 = vpop.f32.mrb[26].mxu0  ;;  %v2597_v56 = vpop.f32.mrb[26].mxu1 }
 0x228   : > { %3277 = vst [vmem:[%s4774_s21 + $0x180] sm:$0xff] %v3149_v49  ;;  %3279 = vst [vmem:[%s4774_s21 + $0x190] sm:$0xff] %v3151_v50  ;;  %v3153_v57 = vadd.f32 %v4761_v7, %v2211_v55  ;;  %v3155_v58 = vadd.f32 %v4763_v8, %v2597_v56  ;;  %v2213_v59 = vpop.f32.mrb[27].mxu0  ;;  %v2599_v60 = vpop.f32.mrb[27].mxu1 }
 0x229   : > { %3278 = vst [vmem:[%s4774_s21 + $0x188] sm:$0xff] %v3150_v53  ;;  %3280 = vst [vmem:[%s4774_s21 + $0x198] sm:$0xff] %v3152_v54  ;;  %v3154_v61 = vadd.f32 %v4765_v9, %v2213_v59  ;;  %v3156_v62 = vadd.f32 %v4767_v10, %v2599_v60 }
 0x22a   : > { %3281 = vst [vmem:[%s4774_s21 + $0x1a0] sm:$0xff] %v3153_v57  ;;  %3283 = vst [vmem:[%s4774_s21 + $0x1b0] sm:$0xff] %v3155_v58 }
 0x22b   : > { %3282 = vst [vmem:[%s4774_s21 + $0x1a8] sm:$0xff] %v3154_v61  ;;  %3284 = vst [vmem:[%s4774_s21 + $0x1b8] sm:$0xff] %v3156_v62 }
 0x22d   : > { %v2217_v63 = vpop.f32.mrb[28].mxu0  ;;  %v2603_v0 = vpop.f32.mrb[28].mxu1 }
 0x22e   : > { %v3157_v1 = vadd.f32 %v4761_v7, %v2217_v63  ;;  %v3159_v2 = vadd.f32 %v4763_v8, %v2603_v0  ;;  %v2219_v3 = vpop.f32.mrb[29].mxu0  ;;  %v2605_v4 = vpop.f32.mrb[29].mxu1 }
 0x22f   : > { %v3158_v5 = vadd.f32 %v4765_v9, %v2219_v3  ;;  %v3160_v6 = vadd.f32 %v4767_v10, %v2605_v4  ;;  %v2221_v11 = vpop.f32.mrb[30].mxu0  ;;  %v2607_v12 = vpop.f32.mrb[30].mxu1 }
 0x230   : > { %3285 = vst [vmem:[%s4774_s21 + $0x1c0] sm:$0xff] %v3157_v1  ;;  %3287 = vst [vmem:[%s4774_s21 + $0x1d0] sm:$0xff] %v3159_v2  ;;  %v3161_v13 = vadd.f32 %v4761_v7, %v2221_v11  ;;  %v3163_v14 = vadd.f32 %v4763_v8, %v2607_v12  ;;  %v2223_v15 = vpop.f32.mrb[31].mxu0  ;;  %v2609_v16 = vpop.f32.mrb[31].mxu1 }
 0x231   : > { %3286 = vst [vmem:[%s4774_s21 + $0x1c8] sm:$0xff] %v3158_v5  ;;  %3288 = vst [vmem:[%s4774_s21 + $0x1d8] sm:$0xff] %v3160_v6  ;;  %v3162_v17 = vadd.f32 %v4765_v9, %v2223_v15  ;;  %v3164_v18 = vadd.f32 %v4767_v10, %v2609_v16 }
 0x232   : > { %3289 = vst [vmem:[%s4774_s21 + $0x1e0] sm:$0xff] %v3161_v13  ;;  %3291 = vst [vmem:[%s4774_s21 + $0x1f0] sm:$0xff] %v3163_v14 }
 0x233   : > { %3290 = vst [vmem:[%s4774_s21 + $0x1e8] sm:$0xff] %v3162_v17  ;;  %3292 = vst [vmem:[%s4774_s21 + $0x1f8] sm:$0xff] %v3164_v18 }
 0x235   : > { %v2227_v19 = vpop.f32.mrb[32].mxu0  ;;  %v2613_v20 = vpop.f32.mrb[32].mxu1 }
 0x236   : > { %v3165_v21 = vadd.f32 %v4761_v7, %v2227_v19  ;;  %v3167_v22 = vadd.f32 %v4763_v8, %v2613_v20  ;;  %v2229_v23 = vpop.f32.mrb[33].mxu0  ;;  %v2615_v24 = vpop.f32.mrb[33].mxu1 }
 0x237   : > { %v3166_v25 = vadd.f32 %v4765_v9, %v2229_v23  ;;  %v3168_v26 = vadd.f32 %v4767_v10, %v2615_v24  ;;  %v2231_v27 = vpop.f32.mrb[34].mxu0  ;;  %v2617_v28 = vpop.f32.mrb[34].mxu1 }
 0x238   : > { %3293 = vst [vmem:[%s4774_s21 + $0x200] sm:$0xff] %v3165_v21  ;;  %3295 = vst [vmem:[%s4774_s21 + $0x210] sm:$0xff] %v3167_v22  ;;  %v3169_v29 = vadd.f32 %v4761_v7, %v2231_v27  ;;  %v3171_v30 = vadd.f32 %v4763_v8, %v2617_v28  ;;  %v2233_v31 = vpop.f32.mrb[35].mxu0  ;;  %v2619_v32 = vpop.f32.mrb[35].mxu1 }
 0x239   : > { %3294 = vst [vmem:[%s4774_s21 + $0x208] sm:$0xff] %v3166_v25  ;;  %3296 = vst [vmem:[%s4774_s21 + $0x218] sm:$0xff] %v3168_v26  ;;  %v3170_v33 = vadd.f32 %v4765_v9, %v2233_v31  ;;  %v3172_v34 = vadd.f32 %v4767_v10, %v2619_v32 }
 0x23a   : > { %3297 = vst [vmem:[%s4774_s21 + $0x220] sm:$0xff] %v3169_v29  ;;  %3299 = vst [vmem:[%s4774_s21 + $0x230] sm:$0xff] %v3171_v30 }
 0x23b   : > { %3298 = vst [vmem:[%s4774_s21 + $0x228] sm:$0xff] %v3170_v33  ;;  %3300 = vst [vmem:[%s4774_s21 + $0x238] sm:$0xff] %v3172_v34 }
 0x23d   : > { %v2237_v35 = vpop.f32.mrb[36].mxu0  ;;  %v2623_v36 = vpop.f32.mrb[36].mxu1 }
 0x23e   : > { %v3173_v37 = vadd.f32 %v4761_v7, %v2237_v35  ;;  %v3175_v38 = vadd.f32 %v4763_v8, %v2623_v36  ;;  %v2239_v39 = vpop.f32.mrb[37].mxu0  ;;  %v2625_v40 = vpop.f32.mrb[37].mxu1 }
 0x23f   : > { %v3174_v41 = vadd.f32 %v4765_v9, %v2239_v39  ;;  %v3176_v42 = vadd.f32 %v4767_v10, %v2625_v40  ;;  %v2241_v43 = vpop.f32.mrb[38].mxu0  ;;  %v2627_v44 = vpop.f32.mrb[38].mxu1 }
 0x240   : > { %3301 = vst [vmem:[%s4774_s21 + $0x240] sm:$0xff] %v3173_v37  ;;  %3303 = vst [vmem:[%s4774_s21 + $0x250] sm:$0xff] %v3175_v38  ;;  %v3177_v45 = vadd.f32 %v4761_v7, %v2241_v43  ;;  %v3179_v46 = vadd.f32 %v4763_v8, %v2627_v44  ;;  %v2243_v47 = vpop.f32.mrb[39].mxu0  ;;  %v2629_v48 = vpop.f32.mrb[39].mxu1 }
 0x241   : > { %3302 = vst [vmem:[%s4774_s21 + $0x248] sm:$0xff] %v3174_v41  ;;  %3304 = vst [vmem:[%s4774_s21 + $0x258] sm:$0xff] %v3176_v42  ;;  %v3178_v49 = vadd.f32 %v4765_v9, %v2243_v47  ;;  %v3180_v50 = vadd.f32 %v4767_v10, %v2629_v48 }
 0x242   : > { %3305 = vst [vmem:[%s4774_s21 + $0x260] sm:$0xff] %v3177_v45  ;;  %3307 = vst [vmem:[%s4774_s21 + $0x270] sm:$0xff] %v3179_v46 }
 0x243   : > { %3306 = vst [vmem:[%s4774_s21 + $0x268] sm:$0xff] %v3178_v49  ;;  %3308 = vst [vmem:[%s4774_s21 + $0x278] sm:$0xff] %v3180_v50 }
 0x245   : > { %v2247_v51 = vpop.f32.mrb[40].mxu0  ;;  %v2633_v52 = vpop.f32.mrb[40].mxu1 }
 0x246   : > { %v3181_v53 = vadd.f32 %v4761_v7, %v2247_v51  ;;  %v3183_v54 = vadd.f32 %v4763_v8, %v2633_v52  ;;  %v2249_v55 = vpop.f32.mrb[41].mxu0  ;;  %v2635_v56 = vpop.f32.mrb[41].mxu1 }
 0x247   : > { %v3182_v57 = vadd.f32 %v4765_v9, %v2249_v55  ;;  %v3184_v58 = vadd.f32 %v4767_v10, %v2635_v56  ;;  %v2251_v59 = vpop.f32.mrb[42].mxu0  ;;  %v2637_v60 = vpop.f32.mrb[42].mxu1 }
 0x248   : > { %3309 = vst [vmem:[%s4774_s21 + $0x280] sm:$0xff] %v3181_v53  ;;  %3311 = vst [vmem:[%s4774_s21 + $0x290] sm:$0xff] %v3183_v54  ;;  %v3185_v61 = vadd.f32 %v4761_v7, %v2251_v59  ;;  %v3187_v62 = vadd.f32 %v4763_v8, %v2637_v60  ;;  %v2253_v63 = vpop.f32.mrb[43].mxu0  ;;  %v2639_v0 = vpop.f32.mrb[43].mxu1 }
 0x249   : > { %3310 = vst [vmem:[%s4774_s21 + $0x288] sm:$0xff] %v3182_v57  ;;  %3312 = vst [vmem:[%s4774_s21 + $0x298] sm:$0xff] %v3184_v58  ;;  %v3186_v1 = vadd.f32 %v4765_v9, %v2253_v63  ;;  %v3188_v2 = vadd.f32 %v4767_v10, %v2639_v0 }
 0x24a   : > { %3313 = vst [vmem:[%s4774_s21 + $0x2a0] sm:$0xff] %v3185_v61  ;;  %3315 = vst [vmem:[%s4774_s21 + $0x2b0] sm:$0xff] %v3187_v62 }
 0x24b   : > { %3314 = vst [vmem:[%s4774_s21 + $0x2a8] sm:$0xff] %v3186_v1  ;;  %3316 = vst [vmem:[%s4774_s21 + $0x2b8] sm:$0xff] %v3188_v2 }
 0x24d   : > { %v2257_v3 = vpop.f32.mrb[44].mxu0  ;;  %v2643_v4 = vpop.f32.mrb[44].mxu1 }
 0x24e   : > { %v3189_v5 = vadd.f32 %v4761_v7, %v2257_v3  ;;  %v3191_v6 = vadd.f32 %v4763_v8, %v2643_v4  ;;  %v2259_v11 = vpop.f32.mrb[45].mxu0  ;;  %v2645_v12 = vpop.f32.mrb[45].mxu1 }
 0x24f   : > { %v3190_v13 = vadd.f32 %v4765_v9, %v2259_v11  ;;  %v3192_v14 = vadd.f32 %v4767_v10, %v2645_v12  ;;  %v2261_v15 = vpop.f32.mrb[46].mxu0  ;;  %v2647_v16 = vpop.f32.mrb[46].mxu1 }
 0x250   : > { %3317 = vst [vmem:[%s4774_s21 + $0x2c0] sm:$0xff] %v3189_v5  ;;  %3319 = vst [vmem:[%s4774_s21 + $0x2d0] sm:$0xff] %v3191_v6  ;;  %v3193_v17 = vadd.f32 %v4761_v7, %v2261_v15  ;;  %v3195_v18 = vadd.f32 %v4763_v8, %v2647_v16  ;;  %v2263_v19 = vpop.f32.mrb[47].mxu0  ;;  %v2649_v20 = vpop.f32.mrb[47].mxu1 }
 0x251   : > { %3318 = vst [vmem:[%s4774_s21 + $0x2c8] sm:$0xff] %v3190_v13  ;;  %3320 = vst [vmem:[%s4774_s21 + $0x2d8] sm:$0xff] %v3192_v14  ;;  %v3194_v21 = vadd.f32 %v4765_v9, %v2263_v19  ;;  %v3196_v22 = vadd.f32 %v4767_v10, %v2649_v20 }
 0x252   : > { %3321 = vst [vmem:[%s4774_s21 + $0x2e0] sm:$0xff] %v3193_v17  ;;  %3323 = vst [vmem:[%s4774_s21 + $0x2f0] sm:$0xff] %v3195_v18 }
 0x253   : > { %3322 = vst [vmem:[%s4774_s21 + $0x2e8] sm:$0xff] %v3194_v21  ;;  %3324 = vst [vmem:[%s4774_s21 + $0x2f8] sm:$0xff] %v3196_v22 }
 0x255   : > { %v2267_v23 = vpop.f32.mrb[48].mxu0  ;;  %v2653_v24 = vpop.f32.mrb[48].mxu1 }
 0x256   : > { %v3197_v25 = vadd.f32 %v4761_v7, %v2267_v23  ;;  %v3199_v26 = vadd.f32 %v4763_v8, %v2653_v24  ;;  %v2269_v27 = vpop.f32.mrb[49].mxu0  ;;  %v2655_v28 = vpop.f32.mrb[49].mxu1 }
 0x257   : > { %v3198_v29 = vadd.f32 %v4765_v9, %v2269_v27  ;;  %v3200_v30 = vadd.f32 %v4767_v10, %v2655_v28  ;;  %v2271_v31 = vpop.f32.mrb[50].mxu0  ;;  %v2657_v32 = vpop.f32.mrb[50].mxu1 }
 0x258   : > { %3325 = vst [vmem:[%s4774_s21 + $0x300] sm:$0xff] %v3197_v25  ;;  %3327 = vst [vmem:[%s4774_s21 + $0x310] sm:$0xff] %v3199_v26  ;;  %v3201_v33 = vadd.f32 %v4761_v7, %v2271_v31  ;;  %v3203_v34 = vadd.f32 %v4763_v8, %v2657_v32  ;;  %v2273_v35 = vpop.f32.mrb[51].mxu0  ;;  %v2659_v36 = vpop.f32.mrb[51].mxu1 }
 0x259   : > { %3326 = vst [vmem:[%s4774_s21 + $0x308] sm:$0xff] %v3198_v29  ;;  %3328 = vst [vmem:[%s4774_s21 + $0x318] sm:$0xff] %v3200_v30  ;;  %v3202_v37 = vadd.f32 %v4765_v9, %v2273_v35  ;;  %v3204_v38 = vadd.f32 %v4767_v10, %v2659_v36 }
 0x25a   : > { %3329 = vst [vmem:[%s4774_s21 + $0x320] sm:$0xff] %v3201_v33  ;;  %3331 = vst [vmem:[%s4774_s21 + $0x330] sm:$0xff] %v3203_v34 }
 0x25b   : > { %3330 = vst [vmem:[%s4774_s21 + $0x328] sm:$0xff] %v3202_v37  ;;  %3332 = vst [vmem:[%s4774_s21 + $0x338] sm:$0xff] %v3204_v38 }
 0x25d   : > { %v2277_v39 = vpop.f32.mrb[52].mxu0  ;;  %v2663_v40 = vpop.f32.mrb[52].mxu1 }
 0x25e   : > { %v3205_v41 = vadd.f32 %v4761_v7, %v2277_v39  ;;  %v3207_v42 = vadd.f32 %v4763_v8, %v2663_v40  ;;  %v2279_v43 = vpop.f32.mrb[53].mxu0  ;;  %v2665_v44 = vpop.f32.mrb[53].mxu1 }
 0x25f   : > { %v3206_v45 = vadd.f32 %v4765_v9, %v2279_v43  ;;  %v3208_v46 = vadd.f32 %v4767_v10, %v2665_v44  ;;  %v2281_v47 = vpop.f32.mrb[54].mxu0  ;;  %v2667_v48 = vpop.f32.mrb[54].mxu1 }
 0x260   : > { %3333 = vst [vmem:[%s4774_s21 + $0x340] sm:$0xff] %v3205_v41  ;;  %3335 = vst [vmem:[%s4774_s21 + $0x350] sm:$0xff] %v3207_v42  ;;  %v3209_v49 = vadd.f32 %v4761_v7, %v2281_v47  ;;  %v3211_v50 = vadd.f32 %v4763_v8, %v2667_v48  ;;  %v2283_v51 = vpop.f32.mrb[55].mxu0  ;;  %v2669_v52 = vpop.f32.mrb[55].mxu1 }
 0x261   : > { %3334 = vst [vmem:[%s4774_s21 + $0x348] sm:$0xff] %v3206_v45  ;;  %3336 = vst [vmem:[%s4774_s21 + $0x358] sm:$0xff] %v3208_v46  ;;  %v3210_v53 = vadd.f32 %v4765_v9, %v2283_v51  ;;  %v3212_v54 = vadd.f32 %v4767_v10, %v2669_v52 }
 0x262   : > { %3337 = vst [vmem:[%s4774_s21 + $0x360] sm:$0xff] %v3209_v49  ;;  %3339 = vst [vmem:[%s4774_s21 + $0x370] sm:$0xff] %v3211_v50 }
 0x263   : > { %3338 = vst [vmem:[%s4774_s21 + $0x368] sm:$0xff] %v3210_v53  ;;  %3340 = vst [vmem:[%s4774_s21 + $0x378] sm:$0xff] %v3212_v54 }
 0x265   : > { %v2287_v55 = vpop.f32.mrb[56].mxu0  ;;  %v2673_v56 = vpop.f32.mrb[56].mxu1 }
 0x266   : > { %v3213_v57 = vadd.f32 %v4761_v7, %v2287_v55  ;;  %v3215_v58 = vadd.f32 %v4763_v8, %v2673_v56  ;;  %v2289_v59 = vpop.f32.mrb[57].mxu0  ;;  %v2675_v60 = vpop.f32.mrb[57].mxu1 }
 0x267   : > { %v3214_v61 = vadd.f32 %v4765_v9, %v2289_v59  ;;  %v3216_v62 = vadd.f32 %v4767_v10, %v2675_v60  ;;  %v2291_v63 = vpop.f32.mrb[58].mxu0  ;;  %v2677_v0 = vpop.f32.mrb[58].mxu1 }
 0x268   : > { %3341 = vst [vmem:[%s4774_s21 + $0x380] sm:$0xff] %v3213_v57  ;;  %3343 = vst [vmem:[%s4774_s21 + $0x390] sm:$0xff] %v3215_v58  ;;  %v3217_v1 = vadd.f32 %v4761_v7, %v2291_v63  ;;  %v3219_v2 = vadd.f32 %v4763_v8, %v2677_v0  ;;  %v2293_v3 = vpop.f32.mrb[59].mxu0  ;;  %v2679_v4 = vpop.f32.mrb[59].mxu1 }
 0x269   : > { %3342 = vst [vmem:[%s4774_s21 + $0x388] sm:$0xff] %v3214_v61  ;;  %3344 = vst [vmem:[%s4774_s21 + $0x398] sm:$0xff] %v3216_v62  ;;  %v3218_v5 = vadd.f32 %v4765_v9, %v2293_v3  ;;  %v3220_v6 = vadd.f32 %v4767_v10, %v2679_v4 }
 0x26a   : > { %3345 = vst [vmem:[%s4774_s21 + $0x3a0] sm:$0xff] %v3217_v1  ;;  %3347 = vst [vmem:[%s4774_s21 + $0x3b0] sm:$0xff] %v3219_v2 }
 0x26b   : > { %3346 = vst [vmem:[%s4774_s21 + $0x3a8] sm:$0xff] %v3218_v5  ;;  %3348 = vst [vmem:[%s4774_s21 + $0x3b8] sm:$0xff] %v3220_v6 }
 0x26d   : > { %v2297_v11 = vpop.f32.mrb[60].mxu0  ;;  %v2683_v12 = vpop.f32.mrb[60].mxu1 }
 0x26e   : > { %v3221_v13 = vadd.f32 %v4761_v7, %v2297_v11  ;;  %v3223_v14 = vadd.f32 %v4763_v8, %v2683_v12  ;;  %v2299_v15 = vpop.f32.mrb[61].mxu0  ;;  %v2685_v16 = vpop.f32.mrb[61].mxu1 }
 0x26f   : > { %v3222_v17 = vadd.f32 %v4765_v9, %v2299_v15  ;;  %v3224_v18 = vadd.f32 %v4767_v10, %v2685_v16  ;;  %v2301_v19 = vpop.f32.mrb[62].mxu0  ;;  %v2687_v20 = vpop.f32.mrb[62].mxu1 }
 0x270   : > { %3349 = vst [vmem:[%s4774_s21 + $0x3c0] sm:$0xff] %v3221_v13  ;;  %3351 = vst [vmem:[%s4774_s21 + $0x3d0] sm:$0xff] %v3223_v14  ;;  %v3225_v21 = vadd.f32 %v4761_v7, %v2301_v19  ;;  %v3227_v22 = vadd.f32 %v4763_v8, %v2687_v20  ;;  %v2303_v23 = vpop.f32.mrb[63].mxu0  ;;  %v2689_v24 = vpop.f32.mrb[63].mxu1 }
 0x271   : > { %3350 = vst [vmem:[%s4774_s21 + $0x3c8] sm:$0xff] %v3222_v17  ;;  %3352 = vst [vmem:[%s4774_s21 + $0x3d8] sm:$0xff] %v3224_v18  ;;  %v3226_v25 = vadd.f32 %v4765_v9, %v2303_v23  ;;  %v3228_v26 = vadd.f32 %v4767_v10, %v2689_v24 }
 0x272   : > { %3353 = vst [vmem:[%s4774_s21 + $0x3e0] sm:$0xff] %v3225_v21  ;;  %3355 = vst [vmem:[%s4774_s21 + $0x3f0] sm:$0xff] %v3227_v22 }
 0x273   : > { %3354 = vst [vmem:[%s4774_s21 + $0x3e8] sm:$0xff] %v3226_v25  ;;  %3356 = vst [vmem:[%s4774_s21 + $0x3f8] sm:$0xff] %v3228_v26 }
 0x274 PF: > { %s13_s16 = sadd.s32 1, %s4159_s16   ;;  %s5051_s12 = smov %s4147_s13 }
 0x275   : > { %p10_p10 = scmp.ge.s32.totalorder %s13_s16, 4   ;;  %s5052_s13 = smov %s4216_s22 }
 0x276   : > { %s5053_s14 = smov %s4155_s15  ;;  %s5054_s15 = smov %s5056_s17 }
 0x277   :  { %12 = sbr.rel (!%p10_p10) target bundleno = 3 (0x3), region = 104 }

</bundles_post_ra>
